<compile_context>
chip_gen: v5e
topology: v5e:2x2
jax: 0.10.0
libtpu: 0.0.40
codegen_flags: <defaults>
</compile_context>

<pallas_src>
import numpy as np

import jax
import jax.numpy as jnp
from jax.experimental import pallas as pl
from jax.experimental.pallas import tpu as pltpu


# ----------------------------------------------------------------------------
# One-time host-side weight preparation (pure layout algebra on parameters).
# ----------------------------------------------------------------------------
def _band_matrix(w_slice, in_w, out_w):
    """w_slice: (Cout, Cin, KW) -> banded matrix (Cin*in_w, Cout*out_w).

    B[ci*in_w + (ow+kw), co*out_w + ow] = w_slice[co, ci, kw]; a row of width
    in_w (channels-major) @ B performs the 1-D correlation along W for one
    kernel row, producing a channels-major (co, ow) row.
    """
    c_out, c_in, kw_size = w_slice.shape
    b = np.zeros((c_in, in_w, c_out, out_w), np.float32)
    for kw in range(kw_size):
        for ow in range(out_w):
            b[:, ow + kw, :, ow] = w_slice[:, :, kw].T  # (Cin, Cout)
    return b.reshape(c_in * in_w, c_out * out_w)


def _pool_width_matrix(c_out, w):
    """(c_out*w, c_out*(w//2)) matrix averaging adjacent W pairs per channel."""
    wp = w // 2
    p = np.zeros((c_out * w, c_out * wp), np.float32)
    for c in range(c_out):
        for j in range(wp):
            p[c * w + 2 * j, c * wp + j] = 0.5
            p[c * w + 2 * j + 1, c * wp + j] = 0.5
    return p


def _hpool_shift_matrix(out_h, in_h, dh):
    """(out_h, in_h): row ph averages input rows 2*ph+dh and 2*ph+1+dh.

    Fuses the kernel-row shift (dh) of the H-convolution with the 2x2
    H-average-pool.
    """
    p = np.zeros((out_h, in_h), np.float32)
    for ph in range(out_h):
        p[ph, 2 * ph + dh] = 0.5
        p[ph, 2 * ph + 1 + dh] = 0.5
    return p


def _block_diag(mat, n):
    """Block-diagonal repetition of `mat` n times (per-sample operator)."""
    oh, ih = mat.shape
    out = np.zeros((n * oh, n * ih), np.float32)
    for b in range(n):
        out[b * oh:(b + 1) * oh, b * ih:(b + 1) * ih] = mat
    return out


def _row_select_matrix(tb, h, height):
    """(tb, tb*height): picks stacked row b*height + h for every sample b."""
    s = np.zeros((tb, tb * height), np.float32)
    for b in range(tb):
        s[b, b * height + h] = 1.0
    return s


def prepare_fused_params(params, tb=8):
    """Fold conv banding, pooling, H-shifts and the NCHW flatten into weights."""
    w1 = np.asarray(params["w1"])  # (32, 1, 3, 3)
    b1 = np.asarray(params["b1"])  # (32,)
    w2 = np.asarray(params["w2"])  # (64, 32, 4, 4)
    b2 = np.asarray(params["b2"])  # (64,)
    w3 = np.asarray(params["w3"])  # (128, 1600)  torch layout (out, in)
    b3 = np.asarray(params["b3"])  # (128,)
    w4 = np.asarray(params["w4"])  # (10, 128)
    b4 = np.asarray(params["b4"])  # (10,)

    # conv1: W 28 -> 26 (kw=3) with W-pool 26 -> 13 folded in.   (3, 28, 416)
    p1w = _pool_width_matrix(32, 26)
    b1p = np.stack([_band_matrix(w1[:, :, dh, :], 28, 26) @ p1w for dh in range(3)])
    # H-shift (kh=3) + H-pool 26 -> 13, block-diag per sample.   (3, tb*13, tb*28)
    bd1 = np.stack([_block_diag(_hpool_shift_matrix(13, 28, dh), tb) for dh in range(3)])

    # conv2: W 13 -> 10 (kw=4) with W-pool 10 -> 5 folded in.    (4, 416, 320)
    p2w = _pool_width_matrix(64, 10)
    b2p = np.stack([_band_matrix(w2[:, :, dh, :], 13, 10) @ p2w for dh in range(4)])
    # H-shift (kh=4) + H-pool 10 -> 5, block-diag per sample.    (4, tb*5, tb*13)
    bd2 = np.stack([_block_diag(_hpool_shift_matrix(5, 13, dh), tb) for dh in range(4)])

    # fc1: per-sample row selection over the stacked activation.  (5, tb, tb*5)
    sel = np.stack([_row_select_matrix(tb, h, 5) for h in range(5)])
    # fc1 weight reordered so the kernel's (h, c*5+w) activation layout matches
    # torch's NCHW flatten order c*25 + h*5 + w.                  (5, 320, 128)
    w3r = w3.reshape(128, 64, 5, 5).transpose(2, 1, 3, 0).reshape(5, 320, 128)

    return {
        "b1p": jnp.asarray(b1p),                              # (3, 28, 416)
        "bd1": jnp.asarray(bd1),                              # (3, tb*13, tb*28)
        "bias1": jnp.asarray(np.repeat(b1, 13)[None, :]),     # (1, 416)
        "b2p": jnp.asarray(b2p),                              # (4, 416, 320)
        "bd2": jnp.asarray(bd2),                              # (4, tb*5, tb*13)
        "bias2": jnp.asarray(np.repeat(b2, 5)[None, :]),      # (1, 320)
        "sel": jnp.asarray(sel),                              # (5, tb, tb*5)
        "w3r": jnp.asarray(w3r),                              # (5, 320, 128)
        "b3": jnp.asarray(b3[None, :]),                       # (1, 128)
        "w4t": jnp.asarray(np.ascontiguousarray(w4.T)),       # (128, 10)
        "b4": jnp.asarray(b4[None, :]),                       # (1, 10)
    }


# ----------------------------------------------------------------------------
# Single fused Pallas kernel: TB batch samples per grid step.
# ----------------------------------------------------------------------------
def _fused_forward_kernel(x_ref, bd1_ref, b1p_ref, bias1_ref,
                          bd2_ref, b2p_ref, bias2_ref,
                          sel_ref, w3r_ref, b3_ref, w4_ref, b4_ref,
                          out_ref, p1_ref, p2_ref):
    f32 = jnp.float32
    x = x_ref[...]                                               # (TB*28, 28)

    # --- conv1 (3x3) + avgpool2x2:  sum_dh BD1_dh @ X @ B1P_dh + bias ---
    acc = None
    for dh in range(3):
        t = jnp.dot(bd1_ref[dh], x, preferred_element_type=f32)          # (TB*13, 28)
        c = jnp.dot(t, b1p_ref[dh], preferred_element_type=f32)          # (TB*13, 416)
        acc = c if acc is None else acc + c
    p1_ref[...] = acc + bias1_ref[...]             # rows: b*13+h, cols: c1*13+w

    # --- conv2 (4x4) + avgpool2x2 ---
    p1 = p1_ref[...]
    acc = None
    for dh in range(4):
        t = jnp.dot(bd2_ref[dh], p1, preferred_element_type=f32)         # (TB*5, 416)
        c = jnp.dot(t, b2p_ref[dh], preferred_element_type=f32)          # (TB*5, 320)
        acc = c if acc is None else acc + c
    p2_ref[...] = acc + bias2_ref[...]             # rows: b*5+h, cols: c2*5+w

    # --- fc1 + ReLU (NCHW flatten folded into sel / w3r) ---
    p2 = p2_ref[...]
    z1 = None
    for h in range(5):
        t = jnp.dot(sel_ref[h], p2, preferred_element_type=f32)          # (TB, 320)
        c = jnp.dot(t, w3r_ref[h], preferred_element_type=f32)           # (TB, 128)
        z1 = c if z1 is None else z1 + c
    z1 = jnp.maximum(z1 + b3_ref[...], 0.0)

    # --- fc2 + softmax(dim=1) ---
    z2 = jnp.dot(z1, w4_ref[...], preferred_element_type=f32) + b4_ref[...]  # (TB, 10)
    z2 = z2 - jnp.max(z2, axis=-1, keepdims=True)
    e = jnp.exp(z2)
    out_ref[...] = (e / jnp.sum(e, axis=-1, keepdims=True)).astype(out_ref.dtype)


def fused_forward(fused, x):
    """x: (N, 1, 28, 28) float32 -> (N, 10) softmax probabilities."""
    n = x.shape[0]
    tb = fused["sel"].shape[1]                      # batch tile (static)
    n_pad = ((n + tb - 1) // tb) * tb

    x2 = x.reshape(n, 28 * 28)
    if n_pad != n:
        x2 = jnp.pad(x2, ((0, n_pad - n), (0, 0)))
    x2 = x2.reshape(n_pad * 28, 28)                 # stacked rows: b*28 + h

    out = pl.pallas_call(
        _fused_forward_kernel,
        out_shape=jax.ShapeDtypeStruct((n_pad, 10), jnp.float32),
        grid=(n_pad // tb,),
        in_specs=[
            pl.BlockSpec((tb * 28, 28), lambda i: (i, 0)),        # input rows (per block)
            pl.BlockSpec((3, tb * 13, tb * 28), lambda i: (0, 0, 0)),  # conv1 H-shift+pool
            pl.BlockSpec((3, 28, 416), lambda i: (0, 0, 0)),      # conv1 W-band+pool
            pl.BlockSpec((1, 416), lambda i: (0, 0)),             # bias1
            pl.BlockSpec((4, tb * 5, tb * 13), lambda i: (0, 0, 0)),   # conv2 H-shift+pool
            pl.BlockSpec((4, 416, 320), lambda i: (0, 0, 0)),     # conv2 W-band+pool
            pl.BlockSpec((1, 320), lambda i: (0, 0)),             # bias2
            pl.BlockSpec((5, tb, tb * 5), lambda i: (0, 0, 0)),   # fc1 row selectors
            pl.BlockSpec((5, 320, 128), lambda i: (0, 0, 0)),     # fc1 weights (permuted)
            pl.BlockSpec((1, 128), lambda i: (0, 0)),             # b3
            pl.BlockSpec((128, 10), lambda i: (0, 0)),            # fc2 weights (transposed)
            pl.BlockSpec((1, 10), lambda i: (0, 0)),              # b4
        ],
        out_specs=pl.BlockSpec((tb, 10), lambda i: (i, 0)),
        scratch_shapes=[
            pltpu.VMEM((tb * 13, 416), jnp.float32),              # pooled conv1 activation
            pltpu.VMEM((tb * 5, 320), jnp.float32),               # pooled conv2 activation
        ],
        compiler_params=pltpu.CompilerParams(
            dimension_semantics=("parallel",),
            vmem_limit_bytes=32 * 1024 * 1024,
        ),
    )(x2, fused["bd1"], fused["b1p"], fused["bias1"],
      fused["bd2"], fused["b2p"], fused["bias2"],
      fused["sel"], fused["w3r"], fused["b3"], fused["w4t"], fused["b4"])

    return out[:n]
    # TODO(synk): Model.loss (CrossEntropyLoss) is not part of forward(); not implemented.


# ----------------------------------------------------------------------------
# Parameters (deterministic, PyTorch-layout & PyTorch-style uniform init)
# ----------------------------------------------------------------------------
def init_params(key):
    ks = jax.random.split(key, 8)

    def u(k, shape, fan_in):
        bound = 1.0 / (fan_in ** 0.5)
        return jax.random.uniform(k, shape, jnp.float32, -bound, bound)

    return {
        "w1": u(ks[0], (32, 1, 3, 3), 9),
        "b1": u(ks[1], (32,), 9),
        "w2": u(ks[2], (64, 32, 4, 4), 512),
        "b2": u(ks[3], (64,), 512),
        "w3": u(ks[4], (128, 1600), 1600),   # torch layout (out, in)
        "b3": u(ks[5], (128,), 1600),
        "w4": u(ks[6], (10, 128), 128),
        "b4": u(ks[7], (10,), 128),
    }


# ----------------------------------------------------------------------------
# Pure-JAX reference (mirrors the PyTorch module) for a correctness check.
# ----------------------------------------------------------------------------
def reference_forward(params, x):
    dn = ("NCHW", "OIHW", "NCHW")
    y = jax.lax.conv_general_dilated(x, params["w1"], (1, 1), "VALID",
                                     dimension_numbers=dn)
    y = y + params["b1"][None, :, None, None]
    y = 0.25 * (y[:, :, 0::2, 0::2] + y[:, :, 1::2, 0::2]
                + y[:, :, 0::2, 1::2] + y[:, :, 1::2, 1::2])
    y = jax.lax.conv_general_dilated(y, params["w2"], (1, 1), "VALID",
                                     dimension_numbers=dn)
    y = y + params["b2"][None, :, None, None]
    y = 0.25 * (y[:, :, 0::2, 0::2] + y[:, :, 1::2, 0::2]
                + y[:, :, 0::2, 1::2] + y[:, :, 1::2, 1::2])
    y = y.reshape(x.shape[0], -1)                       # NCHW flatten
    y = jnp.maximum(y @ params["w3"].T + params["b3"], 0.0)
    y = y @ params["w4"].T + params["b4"]
    return jax.nn.softmax(y, axis=1)


if __name__ == "__main__":
    key = jax.random.PRNGKey(0)
    xkey, pkey = jax.random.split(key)
    # Shapes implied by Linear(64*5*5, ...): 28x28 single-channel input.
    x = jax.random.normal(xkey, (2, 1, 28, 28), jnp.float32)
    params = init_params(pkey)
    fused = prepare_fused_params(params, tb=8)   # one-time host-side weight prep

    out = jax.block_until_ready(jax.jit(fused_forward)(fused, x))
    ref = jax.block_until_ready(jax.jit(reference_forward)(params, x))

    assert out.shape == (2, 10), out.shape
    assert bool(jnp.all(jnp.isfinite(out)))
    # Softmax rows should sum to ~1.
    assert bool(jnp.all(jnp.abs(jnp.sum(out, axis=1) - 1.0) < 1e-4))
    max_err = float(jnp.max(jnp.abs(out - ref)))
    assert max_err < 2e-3, f"max |pallas - reference| = {max_err}"
    print("KERNEL_OK")
</pallas_src>

<mosaic_0001>
module attributes {stable_mosaic.version = 11 : i64} {
  func.func @_fused_forward_kernel(%arg0: i32, %arg1: memref<224x28xf32, #tpu.memory_space<vmem>>, %arg2: memref<3x104x224xf32, #tpu.memory_space<vmem>>, %arg3: memref<3x28x416xf32, #tpu.memory_space<vmem>>, %arg4: memref<1x416xf32, #tpu.memory_space<vmem>>, %arg5: memref<4x40x104xf32, #tpu.memory_space<vmem>>, %arg6: memref<4x416x320xf32, #tpu.memory_space<vmem>>, %arg7: memref<1x320xf32, #tpu.memory_space<vmem>>, %arg8: memref<5x8x40xf32, #tpu.memory_space<vmem>>, %arg9: memref<5x320x128xf32, #tpu.memory_space<vmem>>, %arg10: memref<1x128xf32, #tpu.memory_space<vmem>>, %arg11: memref<128x10xf32, #tpu.memory_space<vmem>>, %arg12: memref<1x10xf32, #tpu.memory_space<vmem>>, %arg13: memref<8x10xf32, #tpu.memory_space<vmem>>, %arg14: memref<104x416xf32, #tpu.memory_space<vmem>>, %arg15: memref<40x320xf32, #tpu.memory_space<vmem>>) attributes {dimension_semantics = [#tpu.dimension_semantics<parallel>], iteration_bounds = array<i64: 1>, scalar_prefetch = 0 : i64, scratch_operands = 2 : i64, tpu.core_type = #tpu.core_type<tc>, window_params = [{transform_indices = @transform_0, window_bounds = array<i64: 224, 28>}, {pipeline_mode = #tpu.pipeline_mode<synchronous>, transform_indices = @transform_1, window_bounds = array<i64: 3, 104, 224>}, {pipeline_mode = #tpu.pipeline_mode<synchronous>, transform_indices = @transform_2, window_bounds = array<i64: 3, 28, 416>}, {pipeline_mode = #tpu.pipeline_mode<synchronous>, transform_indices = @transform_3, window_bounds = array<i64: 1, 416>}, {pipeline_mode = #tpu.pipeline_mode<synchronous>, transform_indices = @transform_4, window_bounds = array<i64: 4, 40, 104>}, {pipeline_mode = #tpu.pipeline_mode<synchronous>, transform_indices = @transform_5, window_bounds = array<i64: 4, 416, 320>}, {pipeline_mode = #tpu.pipeline_mode<synchronous>, transform_indices = @transform_6, window_bounds = array<i64: 1, 320>}, {pipeline_mode = #tpu.pipeline_mode<synchronous>, transform_indices = @transform_7, window_bounds = array<i64: 5, 8, 40>}, {pipeline_mode = #tpu.pipeline_mode<synchronous>, transform_indices = @transform_8, window_bounds = array<i64: 5, 320, 128>}, {pipeline_mode = #tpu.pipeline_mode<synchronous>, transform_indices = @transform_9, window_bounds = array<i64: 1, 128>}, {pipeline_mode = #tpu.pipeline_mode<synchronous>, transform_indices = @transform_10, window_bounds = array<i64: 128, 10>}, {pipeline_mode = #tpu.pipeline_mode<synchronous>, transform_indices = @transform_11, window_bounds = array<i64: 1, 10>}, {transform_indices = @transform_12, window_bounds = array<i64: 8, 10>}]} {
    %c0 = arith.constant 0 : index
    %c0_0 = arith.constant 0 : index
    %0 = vector.load %arg1[%c0, %c0_0] : memref<224x28xf32, #tpu.memory_space<vmem>>, vector<224x28xf32>
    %c0_1 = arith.constant 0 : index
    %c0_2 = arith.constant 0 : index
    %c0_3 = arith.constant 0 : index
    %1 = vector.load %arg2[%c0_1, %c0_2, %c0_3] : memref<3x104x224xf32, #tpu.memory_space<vmem>>, vector<1x104x224xf32>
    %2 = vector.shape_cast %1 : vector<1x104x224xf32> to vector<104x224xf32>
    %cst = arith.constant dense<0.000000e+00> : vector<104x28xf32>
    %3 = tpu.matmul %2, %0, %cst {dimension_numbers = #tpu.dot_dimension_numbers<[1], [0], [0], [1], [0, 0, 1, 1], [], []>} : vector<104x224xf32>, vector<224x28xf32>, vector<104x28xf32> -> vector<104x28xf32>
    %c0_4 = arith.constant 0 : index
    %c0_5 = arith.constant 0 : index
    %c0_6 = arith.constant 0 : index
    %4 = vector.load %arg3[%c0_4, %c0_5, %c0_6] : memref<3x28x416xf32, #tpu.memory_space<vmem>>, vector<1x28x416xf32>
    %5 = vector.shape_cast %4 : vector<1x28x416xf32> to vector<28x416xf32>
    %cst_7 = arith.constant dense<0.000000e+00> : vector<104x416xf32>
    %6 = tpu.matmul %3, %5, %cst_7 {dimension_numbers = #tpu.dot_dimension_numbers<[1], [0], [0], [1], [0, 0, 1, 1], [], []>} : vector<104x28xf32>, vector<28x416xf32>, vector<104x416xf32> -> vector<104x416xf32>
    %c1 = arith.constant 1 : index
    %c0_8 = arith.constant 0 : index
    %c0_9 = arith.constant 0 : index
    %7 = vector.load %arg2[%c1, %c0_8, %c0_9] : memref<3x104x224xf32, #tpu.memory_space<vmem>>, vector<1x104x224xf32>
    %8 = vector.shape_cast %7 : vector<1x104x224xf32> to vector<104x224xf32>
    %cst_10 = arith.constant dense<0.000000e+00> : vector<104x28xf32>
    %9 = tpu.matmul %8, %0, %cst_10 {dimension_numbers = #tpu.dot_dimension_numbers<[1], [0], [0], [1], [0, 0, 1, 1], [], []>} : vector<104x224xf32>, vector<224x28xf32>, vector<104x28xf32> -> vector<104x28xf32>
    %c1_11 = arith.constant 1 : index
    %c0_12 = arith.constant 0 : index
    %c0_13 = arith.constant 0 : index
    %10 = vector.load %arg3[%c1_11, %c0_12, %c0_13] : memref<3x28x416xf32, #tpu.memory_space<vmem>>, vector<1x28x416xf32>
    %11 = vector.shape_cast %10 : vector<1x28x416xf32> to vector<28x416xf32>
    %cst_14 = arith.constant dense<0.000000e+00> : vector<104x416xf32>
    %12 = tpu.matmul %9, %11, %cst_14 {dimension_numbers = #tpu.dot_dimension_numbers<[1], [0], [0], [1], [0, 0, 1, 1], [], []>} : vector<104x28xf32>, vector<28x416xf32>, vector<104x416xf32> -> vector<104x416xf32>
    %13 = arith.addf %6, %12 : vector<104x416xf32>
    %c2 = arith.constant 2 : index
    %c0_15 = arith.constant 0 : index
    %c0_16 = arith.constant 0 : index
    %14 = vector.load %arg2[%c2, %c0_15, %c0_16] : memref<3x104x224xf32, #tpu.memory_space<vmem>>, vector<1x104x224xf32>
    %15 = vector.shape_cast %14 : vector<1x104x224xf32> to vector<104x224xf32>
    %cst_17 = arith.constant dense<0.000000e+00> : vector<104x28xf32>
    %16 = tpu.matmul %15, %0, %cst_17 {dimension_numbers = #tpu.dot_dimension_numbers<[1], [0], [0], [1], [0, 0, 1, 1], [], []>} : vector<104x224xf32>, vector<224x28xf32>, vector<104x28xf32> -> vector<104x28xf32>
    %c2_18 = arith.constant 2 : index
    %c0_19 = arith.constant 0 : index
    %c0_20 = arith.constant 0 : index
    %17 = vector.load %arg3[%c2_18, %c0_19, %c0_20] : memref<3x28x416xf32, #tpu.memory_space<vmem>>, vector<1x28x416xf32>
    %18 = vector.shape_cast %17 : vector<1x28x416xf32> to vector<28x416xf32>
    %cst_21 = arith.constant dense<0.000000e+00> : vector<104x416xf32>
    %19 = tpu.matmul %16, %18, %cst_21 {dimension_numbers = #tpu.dot_dimension_numbers<[1], [0], [0], [1], [0, 0, 1, 1], [], []>} : vector<104x28xf32>, vector<28x416xf32>, vector<104x416xf32> -> vector<104x416xf32>
    %20 = arith.addf %13, %19 : vector<104x416xf32>
    %c0_22 = arith.constant 0 : index
    %c0_23 = arith.constant 0 : index
    %21 = vector.load %arg4[%c0_22, %c0_23] : memref<1x416xf32, #tpu.memory_space<vmem>>, vector<1x416xf32>
    %22 = vector.broadcast %21 : vector<1x416xf32> to vector<104x416xf32>
    %23 = arith.addf %20, %22 : vector<104x416xf32>
    %c0_24 = arith.constant 0 : index
    %c0_25 = arith.constant 0 : index
    %24 = vector.load %arg14[%c0_24, %c0_25] : memref<104x416xf32, #tpu.memory_space<vmem>>, vector<104x416xf32>
    tpu.vector_store %arg14[%c0_24, %c0_25], %23 {strides = array<i32>} : memref<104x416xf32, #tpu.memory_space<vmem>>, vector<104x416xf32>,
    %c0_26 = arith.constant 0 : index
    %c0_27 = arith.constant 0 : index
    %25 = vector.load %arg14[%c0_26, %c0_27] : memref<104x416xf32, #tpu.memory_space<vmem>>, vector<104x416xf32>
    %c0_28 = arith.constant 0 : index
    %c0_29 = arith.constant 0 : index
    %c0_30 = arith.constant 0 : index
    %26 = vector.load %arg5[%c0_28, %c0_29, %c0_30] : memref<4x40x104xf32, #tpu.memory_space<vmem>>, vector<1x40x104xf32>
    %27 = vector.shape_cast %26 : vector<1x40x104xf32> to vector<40x104xf32>
    %cst_31 = arith.constant dense<0.000000e+00> : vector<40x416xf32>
    %28 = tpu.matmul %27, %25, %cst_31 {dimension_numbers = #tpu.dot_dimension_numbers<[1], [0], [0], [1], [0, 0, 1, 1], [], []>} : vector<40x104xf32>, vector<104x416xf32>, vector<40x416xf32> -> vector<40x416xf32>
    %c0_32 = arith.constant 0 : index
    %c0_33 = arith.constant 0 : index
    %c0_34 = arith.constant 0 : index
    %29 = vector.load %arg6[%c0_32, %c0_33, %c0_34] : memref<4x416x320xf32, #tpu.memory_space<vmem>>, vector<1x416x320xf32>
    %30 = vector.shape_cast %29 : vector<1x416x320xf32> to vector<416x320xf32>
    %cst_35 = arith.constant dense<0.000000e+00> : vector<40x320xf32>
    %31 = tpu.matmul %28, %30, %cst_35 {dimension_numbers = #tpu.dot_dimension_numbers<[1], [0], [0], [1], [0, 0, 1, 1], [], []>} : vector<40x416xf32>, vector<416x320xf32>, vector<40x320xf32> -> vector<40x320xf32>
    %c1_36 = arith.constant 1 : index
    %c0_37 = arith.constant 0 : index
    %c0_38 = arith.constant 0 : index
    %32 = vector.load %arg5[%c1_36, %c0_37, %c0_38] : memref<4x40x104xf32, #tpu.memory_space<vmem>>, vector<1x40x104xf32>
    %33 = vector.shape_cast %32 : vector<1x40x104xf32> to vector<40x104xf32>
    %cst_39 = arith.constant dense<0.000000e+00> : vector<40x416xf32>
    %34 = tpu.matmul %33, %25, %cst_39 {dimension_numbers = #tpu.dot_dimension_numbers<[1], [0], [0], [1], [0, 0, 1, 1], [], []>} : vector<40x104xf32>, vector<104x416xf32>, vector<40x416xf32> -> vector<40x416xf32>
    %c1_40 = arith.constant 1 : index
    %c0_41 = arith.constant 0 : index
    %c0_42 = arith.constant 0 : index
    %35 = vector.load %arg6[%c1_40, %c0_41, %c0_42] : memref<4x416x320xf32, #tpu.memory_space<vmem>>, vector<1x416x320xf32>
    %36 = vector.shape_cast %35 : vector<1x416x320xf32> to vector<416x320xf32>
    %cst_43 = arith.constant dense<0.000000e+00> : vector<40x320xf32>
    %37 = tpu.matmul %34, %36, %cst_43 {dimension_numbers = #tpu.dot_dimension_numbers<[1], [0], [0], [1], [0, 0, 1, 1], [], []>} : vector<40x416xf32>, vector<416x320xf32>, vector<40x320xf32> -> vector<40x320xf32>
    %38 = arith.addf %31, %37 : vector<40x320xf32>
    %c2_44 = arith.constant 2 : index
    %c0_45 = arith.constant 0 : index
    %c0_46 = arith.constant 0 : index
    %39 = vector.load %arg5[%c2_44, %c0_45, %c0_46] : memref<4x40x104xf32, #tpu.memory_space<vmem>>, vector<1x40x104xf32>
    %40 = vector.shape_cast %39 : vector<1x40x104xf32> to vector<40x104xf32>
    %cst_47 = arith.constant dense<0.000000e+00> : vector<40x416xf32>
    %41 = tpu.matmul %40, %25, %cst_47 {dimension_numbers = #tpu.dot_dimension_numbers<[1], [0], [0], [1], [0, 0, 1, 1], [], []>} : vector<40x104xf32>, vector<104x416xf32>, vector<40x416xf32> -> vector<40x416xf32>
    %c2_48 = arith.constant 2 : index
    %c0_49 = arith.constant 0 : index
    %c0_50 = arith.constant 0 : index
    %42 = vector.load %arg6[%c2_48, %c0_49, %c0_50] : memref<4x416x320xf32, #tpu.memory_space<vmem>>, vector<1x416x320xf32>
    %43 = vector.shape_cast %42 : vector<1x416x320xf32> to vector<416x320xf32>
    %cst_51 = arith.constant dense<0.000000e+00> : vector<40x320xf32>
    %44 = tpu.matmul %41, %43, %cst_51 {dimension_numbers = #tpu.dot_dimension_numbers<[1], [0], [0], [1], [0, 0, 1, 1], [], []>} : vector<40x416xf32>, vector<416x320xf32>, vector<40x320xf32> -> vector<40x320xf32>
    %45 = arith.addf %38, %44 : vector<40x320xf32>
    %c3 = arith.constant 3 : index
    %c0_52 = arith.constant 0 : index
    %c0_53 = arith.constant 0 : index
    %46 = vector.load %arg5[%c3, %c0_52, %c0_53] : memref<4x40x104xf32, #tpu.memory_space<vmem>>, vector<1x40x104xf32>
    %47 = vector.shape_cast %46 : vector<1x40x104xf32> to vector<40x104xf32>
    %cst_54 = arith.constant dense<0.000000e+00> : vector<40x416xf32>
    %48 = tpu.matmul %47, %25, %cst_54 {dimension_numbers = #tpu.dot_dimension_numbers<[1], [0], [0], [1], [0, 0, 1, 1], [], []>} : vector<40x104xf32>, vector<104x416xf32>, vector<40x416xf32> -> vector<40x416xf32>
    %c3_55 = arith.constant 3 : index
    %c0_56 = arith.constant 0 : index
    %c0_57 = arith.constant 0 : index
    %49 = vector.load %arg6[%c3_55, %c0_56, %c0_57] : memref<4x416x320xf32, #tpu.memory_space<vmem>>, vector<1x416x320xf32>
    %50 = vector.shape_cast %49 : vector<1x416x320xf32> to vector<416x320xf32>
    %cst_58 = arith.constant dense<0.000000e+00> : vector<40x320xf32>
    %51 = tpu.matmul %48, %50, %cst_58 {dimension_numbers = #tpu.dot_dimension_numbers<[1], [0], [0], [1], [0, 0, 1, 1], [], []>} : vector<40x416xf32>, vector<416x320xf32>, vector<40x320xf32> -> vector<40x320xf32>
    %52 = arith.addf %45, %51 : vector<40x320xf32>
    %c0_59 = arith.constant 0 : index
    %c0_60 = arith.constant 0 : index
    %53 = vector.load %arg7[%c0_59, %c0_60] : memref<1x320xf32, #tpu.memory_space<vmem>>, vector<1x320xf32>
    %54 = vector.broadcast %53 : vector<1x320xf32> to vector<40x320xf32>
    %55 = arith.addf %52, %54 : vector<40x320xf32>
    %c0_61 = arith.constant 0 : index
    %c0_62 = arith.constant 0 : index
    %56 = vector.load %arg15[%c0_61, %c0_62] : memref<40x320xf32, #tpu.memory_space<vmem>>, vector<40x320xf32>
    tpu.vector_store %arg15[%c0_61, %c0_62], %55 {strides = array<i32>} : memref<40x320xf32, #tpu.memory_space<vmem>>, vector<40x320xf32>,
    %c0_63 = arith.constant 0 : index
    %c0_64 = arith.constant 0 : index
    %57 = vector.load %arg15[%c0_63, %c0_64] : memref<40x320xf32, #tpu.memory_space<vmem>>, vector<40x320xf32>
    %c0_65 = arith.constant 0 : index
    %c0_66 = arith.constant 0 : index
    %c0_67 = arith.constant 0 : index
    %58 = vector.load %arg8[%c0_65, %c0_66, %c0_67] : memref<5x8x40xf32, #tpu.memory_space<vmem>>, vector<1x8x40xf32>
    %59 = vector.shape_cast %58 : vector<1x8x40xf32> to vector<8x40xf32>
    %cst_68 = arith.constant dense<0.000000e+00> : vector<8x320xf32>
    %60 = tpu.matmul %59, %57, %cst_68 {dimension_numbers = #tpu.dot_dimension_numbers<[1], [0], [0], [1], [0, 0, 1, 1], [], []>} : vector<8x40xf32>, vector<40x320xf32>, vector<8x320xf32> -> vector<8x320xf32>
    %c0_69 = arith.constant 0 : index
    %c0_70 = arith.constant 0 : index
    %c0_71 = arith.constant 0 : index
    %61 = vector.load %arg9[%c0_69, %c0_70, %c0_71] : memref<5x320x128xf32, #tpu.memory_space<vmem>>, vector<1x320x128xf32>
    %62 = vector.shape_cast %61 : vector<1x320x128xf32> to vector<320x128xf32>
    %cst_72 = arith.constant dense<0.000000e+00> : vector<8x128xf32>
    %63 = tpu.matmul %60, %62, %cst_72 {dimension_numbers = #tpu.dot_dimension_numbers<[1], [0], [0], [1], [0, 0, 1, 1], [], []>} : vector<8x320xf32>, vector<320x128xf32>, vector<8x128xf32> -> vector<8x128xf32>
    %c1_73 = arith.constant 1 : index
    %c0_74 = arith.constant 0 : index
    %c0_75 = arith.constant 0 : index
    %64 = vector.load %arg8[%c1_73, %c0_74, %c0_75] : memref<5x8x40xf32, #tpu.memory_space<vmem>>, vector<1x8x40xf32>
    %65 = vector.shape_cast %64 : vector<1x8x40xf32> to vector<8x40xf32>
    %cst_76 = arith.constant dense<0.000000e+00> : vector<8x320xf32>
    %66 = tpu.matmul %65, %57, %cst_76 {dimension_numbers = #tpu.dot_dimension_numbers<[1], [0], [0], [1], [0, 0, 1, 1], [], []>} : vector<8x40xf32>, vector<40x320xf32>, vector<8x320xf32> -> vector<8x320xf32>
    %c1_77 = arith.constant 1 : index
    %c0_78 = arith.constant 0 : index
    %c0_79 = arith.constant 0 : index
    %67 = vector.load %arg9[%c1_77, %c0_78, %c0_79] : memref<5x320x128xf32, #tpu.memory_space<vmem>>, vector<1x320x128xf32>
    %68 = vector.shape_cast %67 : vector<1x320x128xf32> to vector<320x128xf32>
    %cst_80 = arith.constant dense<0.000000e+00> : vector<8x128xf32>
    %69 = tpu.matmul %66, %68, %cst_80 {dimension_numbers = #tpu.dot_dimension_numbers<[1], [0], [0], [1], [0, 0, 1, 1], [], []>} : vector<8x320xf32>, vector<320x128xf32>, vector<8x128xf32> -> vector<8x128xf32>
    %70 = arith.addf %63, %69 : vector<8x128xf32>
    %c2_81 = arith.constant 2 : index
    %c0_82 = arith.constant 0 : index
    %c0_83 = arith.constant 0 : index
    %71 = vector.load %arg8[%c2_81, %c0_82, %c0_83] : memref<5x8x40xf32, #tpu.memory_space<vmem>>, vector<1x8x40xf32>
    %72 = vector.shape_cast %71 : vector<1x8x40xf32> to vector<8x40xf32>
    %cst_84 = arith.constant dense<0.000000e+00> : vector<8x320xf32>
    %73 = tpu.matmul %72, %57, %cst_84 {dimension_numbers = #tpu.dot_dimension_numbers<[1], [0], [0], [1], [0, 0, 1, 1], [], []>} : vector<8x40xf32>, vector<40x320xf32>, vector<8x320xf32> -> vector<8x320xf32>
    %c2_85 = arith.constant 2 : index
    %c0_86 = arith.constant 0 : index
    %c0_87 = arith.constant 0 : index
    %74 = vector.load %arg9[%c2_85, %c0_86, %c0_87] : memref<5x320x128xf32, #tpu.memory_space<vmem>>, vector<1x320x128xf32>
    %75 = vector.shape_cast %74 : vector<1x320x128xf32> to vector<320x128xf32>
    %cst_88 = arith.constant dense<0.000000e+00> : vector<8x128xf32>
    %76 = tpu.matmul %73, %75, %cst_88 {dimension_numbers = #tpu.dot_dimension_numbers<[1], [0], [0], [1], [0, 0, 1, 1], [], []>} : vector<8x320xf32>, vector<320x128xf32>, vector<8x128xf32> -> vector<8x128xf32>
    %77 = arith.addf %70, %76 : vector<8x128xf32>
    %c3_89 = arith.constant 3 : index
    %c0_90 = arith.constant 0 : index
    %c0_91 = arith.constant 0 : index
    %78 = vector.load %arg8[%c3_89, %c0_90, %c0_91] : memref<5x8x40xf32, #tpu.memory_space<vmem>>, vector<1x8x40xf32>
    %79 = vector.shape_cast %78 : vector<1x8x40xf32> to vector<8x40xf32>
    %cst_92 = arith.constant dense<0.000000e+00> : vector<8x320xf32>
    %80 = tpu.matmul %79, %57, %cst_92 {dimension_numbers = #tpu.dot_dimension_numbers<[1], [0], [0], [1], [0, 0, 1, 1], [], []>} : vector<8x40xf32>, vector<40x320xf32>, vector<8x320xf32> -> vector<8x320xf32>
    %c3_93 = arith.constant 3 : index
    %c0_94 = arith.constant 0 : index
    %c0_95 = arith.constant 0 : index
    %81 = vector.load %arg9[%c3_93, %c0_94, %c0_95] : memref<5x320x128xf32, #tpu.memory_space<vmem>>, vector<1x320x128xf32>
    %82 = vector.shape_cast %81 : vector<1x320x128xf32> to vector<320x128xf32>
    %cst_96 = arith.constant dense<0.000000e+00> : vector<8x128xf32>
    %83 = tpu.matmul %80, %82, %cst_96 {dimension_numbers = #tpu.dot_dimension_numbers<[1], [0], [0], [1], [0, 0, 1, 1], [], []>} : vector<8x320xf32>, vector<320x128xf32>, vector<8x128xf32> -> vector<8x128xf32>
    %84 = arith.addf %77, %83 : vector<8x128xf32>
    %c4 = arith.constant 4 : index
    %c0_97 = arith.constant 0 : index
    %c0_98 = arith.constant 0 : index
    %85 = vector.load %arg8[%c4, %c0_97, %c0_98] : memref<5x8x40xf32, #tpu.memory_space<vmem>>, vector<1x8x40xf32>
    %86 = vector.shape_cast %85 : vector<1x8x40xf32> to vector<8x40xf32>
    %cst_99 = arith.constant dense<0.000000e+00> : vector<8x320xf32>
    %87 = tpu.matmul %86, %57, %cst_99 {dimension_numbers = #tpu.dot_dimension_numbers<[1], [0], [0], [1], [0, 0, 1, 1], [], []>} : vector<8x40xf32>, vector<40x320xf32>, vector<8x320xf32> -> vector<8x320xf32>
    %c4_100 = arith.constant 4 : index
    %c0_101 = arith.constant 0 : index
    %c0_102 = arith.constant 0 : index
    %88 = vector.load %arg9[%c4_100, %c0_101, %c0_102] : memref<5x320x128xf32, #tpu.memory_space<vmem>>, vector<1x320x128xf32>
    %89 = vector.shape_cast %88 : vector<1x320x128xf32> to vector<320x128xf32>
    %cst_103 = arith.constant dense<0.000000e+00> : vector<8x128xf32>
    %90 = tpu.matmul %87, %89, %cst_103 {dimension_numbers = #tpu.dot_dimension_numbers<[1], [0], [0], [1], [0, 0, 1, 1], [], []>} : vector<8x320xf32>, vector<320x128xf32>, vector<8x128xf32> -> vector<8x128xf32>
    %91 = arith.addf %84, %90 : vector<8x128xf32>
    %c0_104 = arith.constant 0 : index
    %c0_105 = arith.constant 0 : index
    %92 = vector.load %arg10[%c0_104, %c0_105] : memref<1x128xf32, #tpu.memory_space<vmem>>, vector<1x128xf32>
    %93 = vector.broadcast %92 : vector<1x128xf32> to vector<8x128xf32>
    %94 = arith.addf %91, %93 : vector<8x128xf32>
    %cst_106 = arith.constant 0.000000e+00 : f32
    %95 = vector.broadcast %cst_106 : f32 to vector<8x128xf32>
    %96 = arith.maximumf %94, %95 : vector<8x128xf32>
    %c0_107 = arith.constant 0 : index
    %c0_108 = arith.constant 0 : index
    %97 = vector.load %arg11[%c0_107, %c0_108] : memref<128x10xf32, #tpu.memory_space<vmem>>, vector<128x10xf32>
    %cst_109 = arith.constant dense<0.000000e+00> : vector<8x10xf32>
    %98 = tpu.matmul %96, %97, %cst_109 {dimension_numbers = #tpu.dot_dimension_numbers<[1], [0], [0], [1], [0, 0, 1, 1], [], []>} : vector<8x128xf32>, vector<128x10xf32>, vector<8x10xf32> -> vector<8x10xf32>
    %c0_110 = arith.constant 0 : index
    %c0_111 = arith.constant 0 : index
    %99 = vector.load %arg12[%c0_110, %c0_111] : memref<1x10xf32, #tpu.memory_space<vmem>>, vector<1x10xf32>
    %100 = vector.broadcast %99 : vector<1x10xf32> to vector<8x10xf32>
    %101 = arith.addf %98, %100 : vector<8x10xf32>
    %cst_112 = arith.constant dense<0xFF800000> : vector<8xf32>
    %102 = vector.multi_reduction <maximumf>, %101, %cst_112 [1] : vector<8x10xf32> to vector<8xf32>
    %103 = vector.shape_cast %102 : vector<8xf32> to vector<8x1xf32>
    %104 = vector.broadcast %103 : vector<8x1xf32> to vector<8x10xf32>
    %105 = arith.subf %101, %104 : vector<8x10xf32>
    %106 = math.exp %105 : vector<8x10xf32>
    %cst_113 = arith.constant dense<0.000000e+00> : vector<8xf32>
    %107 = vector.multi_reduction <add>, %106, %cst_113 [1] : vector<8x10xf32> to vector<8xf32>
    %108 = vector.shape_cast %107 : vector<8xf32> to vector<8x1xf32>
    %109 = vector.broadcast %108 : vector<8x1xf32> to vector<8x10xf32>
    %110 = arith.divf %106, %109 : vector<8x10xf32>
    %c0_114 = arith.constant 0 : index
    %c0_115 = arith.constant 0 : index
    %111 = vector.load %arg13[%c0_114, %c0_115] : memref<8x10xf32, #tpu.memory_space<vmem>>, vector<8x10xf32>
    tpu.vector_store %arg13[%c0_114, %c0_115], %110 {strides = array<i32>} : memref<8x10xf32, #tpu.memory_space<vmem>>, vector<8x10xf32>,
    return
  }
  func.func @transform_0(%arg0: i32) -> (i32, i32) {
    %c0_i32 = arith.constant 0 : i32
    %c0_i32_0 = arith.constant 0 : i32
    return %arg0, %c0_i32 : i32, i32
  }
  func.func @transform_1(%arg0: i32) -> (i32, i32, i32) {
    %c0_i32 = arith.constant 0 : i32
    %c0_i32_0 = arith.constant 0 : i32
    %c0_i32_1 = arith.constant 0 : i32
    %c0_i32_2 = arith.constant 0 : i32
    return %c0_i32, %c0_i32_0, %c0_i32_1 : i32, i32, i32
  }
  func.func @transform_2(%arg0: i32) -> (i32, i32, i32) {
    %c0_i32 = arith.constant 0 : i32
    %c0_i32_0 = arith.constant 0 : i32
    %c0_i32_1 = arith.constant 0 : i32
    %c0_i32_2 = arith.constant 0 : i32
    return %c0_i32, %c0_i32_0, %c0_i32_1 : i32, i32, i32
  }
  func.func @transform_3(%arg0: i32) -> (i32, i32) {
    %c0_i32 = arith.constant 0 : i32
    %c0_i32_0 = arith.constant 0 : i32
    %c0_i32_1 = arith.constant 0 : i32
    return %c0_i32, %c0_i32_0 : i32, i32
  }
  func.func @transform_4(%arg0: i32) -> (i32, i32, i32) {
    %c0_i32 = arith.constant 0 : i32
    %c0_i32_0 = arith.constant 0 : i32
    %c0_i32_1 = arith.constant 0 : i32
    %c0_i32_2 = arith.constant 0 : i32
    return %c0_i32, %c0_i32_0, %c0_i32_1 : i32, i32, i32
  }
  func.func @transform_5(%arg0: i32) -> (i32, i32, i32) {
    %c0_i32 = arith.constant 0 : i32
    %c0_i32_0 = arith.constant 0 : i32
    %c0_i32_1 = arith.constant 0 : i32
    %c0_i32_2 = arith.constant 0 : i32
    return %c0_i32, %c0_i32_0, %c0_i32_1 : i32, i32, i32
  }
  func.func @transform_6(%arg0: i32) -> (i32, i32) {
    %c0_i32 = arith.constant 0 : i32
    %c0_i32_0 = arith.constant 0 : i32
    %c0_i32_1 = arith.constant 0 : i32
    return %c0_i32, %c0_i32_0 : i32, i32
  }
  func.func @transform_7(%arg0: i32) -> (i32, i32, i32) {
    %c0_i32 = arith.constant 0 : i32
    %c0_i32_0 = arith.constant 0 : i32
    %c0_i32_1 = arith.constant 0 : i32
    %c0_i32_2 = arith.constant 0 : i32
    return %c0_i32, %c0_i32_0, %c0_i32_1 : i32, i32, i32
  }
  func.func @transform_8(%arg0: i32) -> (i32, i32, i32) {
    %c0_i32 = arith.constant 0 : i32
    %c0_i32_0 = arith.constant 0 : i32
    %c0_i32_1 = arith.constant 0 : i32
    %c0_i32_2 = arith.constant 0 : i32
    return %c0_i32, %c0_i32_0, %c0_i32_1 : i32, i32, i32
  }
  func.func @transform_9(%arg0: i32) -> (i32, i32) {
    %c0_i32 = arith.constant 0 : i32
    %c0_i32_0 = arith.constant 0 : i32
    %c0_i32_1 = arith.constant 0 : i32
    return %c0_i32, %c0_i32_0 : i32, i32
  }
  func.func @transform_10(%arg0: i32) -> (i32, i32) {
    %c0_i32 = arith.constant 0 : i32
    %c0_i32_0 = arith.constant 0 : i32
    %c0_i32_1 = arith.constant 0 : i32
    return %c0_i32, %c0_i32_0 : i32, i32
  }
  func.func @transform_11(%arg0: i32) -> (i32, i32) {
    %c0_i32 = arith.constant 0 : i32
    %c0_i32_0 = arith.constant 0 : i32
    %c0_i32_1 = arith.constant 0 : i32
    return %c0_i32, %c0_i32_0 : i32, i32
  }
  func.func @transform_12(%arg0: i32) -> (i32, i32) {
    %c0_i32 = arith.constant 0 : i32
    %c0_i32_0 = arith.constant 0 : i32
    return %arg0, %c0_i32 : i32, i32
  }
}

</mosaic_0001>

<bundles_post_ra>
// kernel: fused_forward.1
= control target key start
LH: loop header
LB: loop body
LE: loop exit
PB: predicated region body
PF: predicated region fallthrough
CT: control target
= control target key end

     0   :  { %17 = vsyncpa [#allocation5], 0  ;;  %s9000_s0 = inlined_call_operand.vmem [shape: f32[224,28], index: 0, kind: input, shape index: {}]   ;;  %s9001_s1 = inlined_call_operand.hbm [shape: f32[3,104,224], index: 1, kind: input, shape index: {}]   ;;  %s9002_s2 = inlined_call_operand.hbm [shape: f32[3,28,416], index: 2, kind: input, shape index: {}]   ;;  %s9003_s3 = inlined_call_operand.hbm [shape: f32[1,416], index: 3, kind: input, shape index: {}]   ;;  %s9004_s4 = inlined_call_operand.hbm [shape: f32[4,40,104], index: 4, kind: input, shape index: {}]   ;;  %s9005_s5 = inlined_call_operand.hbm [shape: f32[4,416,320], index: 5, kind: input, shape index: {}]   ;;  %s9006_s6 = inlined_call_operand.hbm [shape: f32[1,320], index: 6, kind: input, shape index: {}]   ;;  %s9007_s7 = inlined_call_operand.hbm [shape: f32[5,8,40], index: 7, kind: input, shape index: {}]   ;;  %s9008_s8 = inlined_call_operand.hbm [shape: f32[5,320,128], index: 8, kind: input, shape index: {}]   ;;  %s9009_s9 = inlined_call_operand.hbm [shape: f32[1,128], index: 9, kind: input, shape index: {}]   ;;  %s9010_s10 = inlined_call_operand.vmem [shape: f32[128,10], index: 10, kind: input, shape index: {}]   ;;  %s9011_s11 = inlined_call_operand.hbm [shape: f32[1,10], index: 11, kind: input, shape index: {}]   ;;  %s9012_s12 = inlined_call_operand.vmem [shape: f32[8,10], index: 12, kind: output, shape index: {}]  }
   0x1   :  { %18 = vsyncpa [#allocation7], 0 }
   0x2   :  { %19 = vsyncpa [#allocation10], 0 }
   0x3   :  { %20 = vsyncpa [#allocation13], 0 }
   0x4   :  { %21 = vsyncpa [#allocation16], 0  ;;  %s42_s23 = sshll.u32 %s9002_s2, 4  ;;  %s43_s23 = int_to_ptr.hbm [resolvable:$true] %s42_s23 }
   0x5   :  { %22 = vsyncpa [#allocation19], 0  ;;  %s6429_s24 = smov [#allocation6]   ;;  %s66_s28 = sshll.u32 %s9004_s4, 4  ;;  %s67_s28 = int_to_ptr.hbm [resolvable:$true] %s66_s28 }
   0x6   :  { %s44_s25 = sshll.u32 %s6429_s24, 4  ;;  %s6430_s29 = smov 512   ;;  %s45_s25 = int_to_ptr.vmem [resolvable:$true] %s44_s25 }
   0x7   :  { %s6431_s30 = smov 32   ;;  %s6432_s13 = smov [#allocation9]  }
   0x8   :  { %50 = dma.hbm_to_vmem [thread:$0]  %s43_s23, 6144, %s45_s25, [#allocation7], %s6430_s29, %s6430_s29, %s6431_s30  }
   0x9   :  { %s68_s14 = sshll.u32 %s6432_s13, 4  ;;  %s6433_s15 = smov 128   ;;  %s69_s14 = int_to_ptr.vmem [resolvable:$true] %s68_s14 }
   0xa   :  { %s6434_s16 = smov 8   ;;  %s93_s18 = sshll.u32 %s9006_s6, 4  ;;  %s94_s18 = int_to_ptr.hbm [resolvable:$true] %s93_s18 }
   0xb   :  { %74 = dma.hbm_to_vmem [thread:$0]  %s67_s28, 2560, %s69_s14, [#allocation10], %s6433_s15, %s6433_s15, %s6434_s16  }
   0xc   :  { %s6435_s19 = smov [#allocation12]   ;;  %s116_s22 = sshll.u32 %s9008_s8, 4  ;;  %s117_s22 = int_to_ptr.hbm [resolvable:$true] %s116_s22 }
   0xd   :  { %s95_s4 = sshll.u32 %s6435_s19, 4  ;;  %s6436_s23 = smov [#allocation15]   ;;  %s96_s4 = int_to_ptr.vmem [resolvable:$true] %s95_s4 }
   0xe   :  { %98 = dma.hbm_to_vmem [thread:$0]  %s94_s18, 48, %s96_s4, [#allocation13]  }
   0xf   :  { %s118_s24 = sshll.u32 %s6436_s23, 4  ;;  %s29_s27 = sshll.u32 %s9001_s1, 4  ;;  %s119_s24 = int_to_ptr.vmem [resolvable:$true] %s118_s24  ;;  %s30_s27 = int_to_ptr.hbm [resolvable:$true] %s29_s27 }
  0x10   :  { %124 = dma.hbm_to_vmem [thread:$0]  %s117_s22, 25600, %s119_s24, [#allocation16], %s6433_s15, %s6433_s15, %s6434_s16  }
  0x11   :  { %s6437_s6 = smov [#allocation4]   ;;  %s56_s8 = sshll.u32 %s9003_s3, 4  ;;  %s57_s8 = int_to_ptr.hbm [resolvable:$true] %s56_s8 }
  0x12   :  { %s31_s28 = sshll.u32 %s6437_s6, 4  ;;  %s6438_s13 = smov 256   ;;  %s32_s28 = int_to_ptr.vmem [resolvable:$true] %s31_s28 }
  0x13   :  { %s6439_s14 = smov 16   ;;  %s6440_s2 = smov [#allocation8]  }
  0x14   :  { %37 = dma.hbm_to_vmem [thread:$0]  %s30_s27, 9984, %s32_s28, [#allocation5], %s6438_s13, %s6438_s13, %s6439_s14  }
  0x15   :  { %s58_s17 = sshll.u32 %s6440_s2, 4  ;;  %s79_s19 = sshll.u32 %s9005_s5, 4  ;;  %s59_s17 = int_to_ptr.vmem [resolvable:$true] %s58_s17  ;;  %s80_s19 = int_to_ptr.hbm [resolvable:$true] %s79_s19 }
  0x16   :  { %61 = dma.hbm_to_vmem [thread:$0]  %s57_s8, 64, %s59_s17, [#allocation7]  }
  0x17   :  { %s6441_s4 = smov [#allocation11]   ;;  %s103_s3 = sshll.u32 %s9007_s7, 4  ;;  %s104_s3 = int_to_ptr.hbm [resolvable:$true] %s103_s3 }
  0x18   :  { %s81_s20 = sshll.u32 %s6441_s4, 4  ;;  %s6442_s23 = smov 384   ;;  %s82_s20 = int_to_ptr.vmem [resolvable:$true] %s81_s20 }
  0x19   :  { %s6443_s24 = smov 24   ;;  %s6444_s25 = smov [#allocation14]  }
  0x1a   :  { %87 = dma.hbm_to_vmem [thread:$0]  %s80_s19, 79872, %s82_s20, [#allocation10], %s6442_s23, %s6442_s23, %s6443_s24  }
  0x1b   :  { %s105_s26 = sshll.u32 %s6444_s25, 4  ;;  %s130_s5 = sshll.u32 %s9009_s9, 4  ;;  %s106_s26 = int_to_ptr.vmem [resolvable:$true] %s105_s26  ;;  %s131_s5 = int_to_ptr.hbm [resolvable:$true] %s130_s5 }
  0x1c   :  { %111 = dma.hbm_to_vmem [thread:$0]  %s104_s3, 640, %s106_s26, [#allocation13], %s6433_s15, %s6433_s15, %s6434_s16  }
  0x1d   :  { %s143_s7 = sshll.u32 %s9011_s11, 4  ;;  %s6445_s30 = smov [#allocation17]   ;;  %s144_s7 = int_to_ptr.hbm [resolvable:$true] %s143_s7 }
  0x1e   :  { %s132_s8 = sshll.u32 %s6445_s30, 4  ;;  %s6446_s13 = smov [#allocation18]   ;;  %s133_s8 = int_to_ptr.vmem [resolvable:$true] %s132_s8 }
  0x1f   :  { %135 = dma.hbm_to_vmem [thread:$0]  %s131_s5, 16, %s133_s8, [#allocation16]  }
  0x20   :  { %s145_s14 = sshll.u32 %s6446_s13, 4  ;;  %s146_s14 = int_to_ptr.vmem [resolvable:$true] %s145_s14 }
  0x21   :  { %148 = dma.hbm_to_vmem [thread:$0]  %s144_s7, 16, %s146_s14, [#allocation19]  }
  0x22   :  { %6417 = dma.done.wait [#allocation5], 9984  }
  0x23   :  { %6418 = vsyncadd [#allocation5], 4294957312 }
  0x24   :  { %6419 = dma.done.wait [#allocation7], 6208  }
  0x25   :  { %6420 = vsyncadd [#allocation7], 4294961088 }
  0x26   :  { %6421 = dma.done.wait [#allocation10], 82432  }
  0x27   :  { %6422 = vsyncadd [#allocation10], 4294884864 }
  0x28   :  { %6423 = dma.done.wait [#allocation13], 688  }
  0x29   :  { %6424 = vsyncadd [#allocation13], 4294966608 }
  0x2a   :  { %6425 = dma.done.wait [#allocation16], 25616  }
  0x2b   :  { %6426 = vsyncadd [#allocation16], 4294941680 }
  0x2c   :  { %6427 = dma.done.wait [#allocation19], 16  }
  0x2d   :  { %6428 = vsyncadd [#allocation19], 4294967280  ;;  %v6554_v0 = vld [vmem:[%s9000_s0 + $0x78] sm:$0xff]  ;;  %v6559_v1 = vld [vmem:[%s9000_s0 + $0x70] sm:$0xff]  ;;  %vm243_vm0 = vcmask 785408   ;;  %vm646_vm1 = vcmask 1043456  }
  0x2e   :  { %477 = vmatpush.msra.mxu2 %v6554_v0  ;;  %v6565_v2 = vld [vmem:[%s9000_s0 + $0xd8] sm:$0xff]  ;;  %283 = vmatpush.msra.mxu0 %v6554_v0  ;;  %v6571_v3 = vld [vmem:[%s9000_s0 + $0x68] sm:$0xff]  ;;  %v6577_v4 = vld [vmem:[%s9000_s0 + $0xd0] sm:$0xff]  ;;  %vm606_vm2 = vcmask 228352   ;;  %vm1745_vm3 = vcmask 261120   ;;  %vm1852_vm4 = vcmask 850944  }
  0x2f   :  { %537 = vmatpush.msra.mxu3 %v6565_v2  ;;  %343 = vmatpush.msra.mxu1 %v6565_v2  ;;  %v6584_v5 = vld [vmem:[%s9000_s0 + $0xc8] sm:$0xff]  ;;  %v6590_v6 = vld [vmem:[%s9000_s0 + $0x60] sm:$0xff]  ;;  %v6604_v8 = vld [vmem:[%s9000_s0 + $0x58] sm:$0xff]  ;;  %vm4751_vm5 = vcmask 326656   ;;  %vm4721_vm6 = vcmask 523264   ;;  %vm5643_vm7 = vcmask 80896  }
  0x30   :  { %478 = vmatpush.msra.mxu2 %v6559_v1  ;;  %284 = vmatpush.msra.mxu0 %v6559_v1  ;;  %v6598_v7 = vld [vmem:[%s9000_s0 + $0xc0] sm:$0xff]  ;;  %v6612_v9 = vld [vmem:[%s9000_s0 + $0xb8] sm:$0xff]  ;;  %v6618_v10 = vld [vmem:[%s9000_s0 + $0x50] sm:$0xff] }
  0x31   :  { %538 = vmatpush.msra.mxu3 %v6577_v4  ;;  %344 = vmatpush.msra.mxu1 %v6577_v4  ;;  %v6626_v11 = vld [vmem:[%s9000_s0 + $0xb0] sm:$0xff]  ;;  %v6632_v12 = vld [vmem:[%s9000_s0 + $0x48] sm:$0xff]  ;;  %v6646_v14 = vld [vmem:[%s9000_s0 + $0x40] sm:$0xff] }
  0x32   :  { %479 = vmatpush.msra.mxu2 %v6571_v3  ;;  %285 = vmatpush.msra.mxu0 %v6571_v3  ;;  %v6640_v13 = vld [vmem:[%s9000_s0 + $0xa8] sm:$0xff]  ;;  %v6654_v15 = vld [vmem:[%s9000_s0 + $0xa0] sm:$0xff]  ;;  %v6660_v16 = vld [vmem:[%s9000_s0 + $0x38] sm:$0xff] }
  0x33   :  { %539 = vmatpush.msra.mxu3 %v6584_v5  ;;  %345 = vmatpush.msra.mxu1 %v6584_v5  ;;  %v6668_v17 = vld [vmem:[%s9000_s0 + $0x98] sm:$0xff]  ;;  %v6674_v18 = vld [vmem:[%s9000_s0 + $0x30] sm:$0xff]  ;;  %v6688_v20 = vld [vmem:[%s9000_s0 + $0x28] sm:$0xff] }
  0x34   :  { %480 = vmatpush.msra.mxu2 %v6590_v6  ;;  %286 = vmatpush.msra.mxu0 %v6590_v6  ;;  %v6682_v19 = vld [vmem:[%s9000_s0 + $0x90] sm:$0xff]  ;;  %v6696_v21 = vld [vmem:[%s9000_s0 + $0x88] sm:$0xff]  ;;  %v6702_v22 = vld [vmem:[%s9000_s0 + $0x20] sm:$0xff] }
  0x35   :  { %540 = vmatpush.msra.mxu3 %v6598_v7  ;;  %346 = vmatpush.msra.mxu1 %v6598_v7  ;;  %v6710_v23 = vld [vmem:[%s9000_s0 + $0x80] sm:$0xff]  ;;  %v6716_v24 = vld [vmem:[%s9000_s0 + $0x18] sm:$0xff]  ;;  %v413_v25 = vld [vmem:[#allocation4 + $0xd8] sm:$0xff] }
  0x36   :  { %481 = vmatpush.msra.mxu2 %v6604_v8  ;;  %287 = vmatpush.msra.mxu0 %v6604_v8  ;;  %v6725_v26 = vld [vmem:[%s9000_s0 + $0x10] sm:$0xff]  ;;  %v218_v27 = vld [vmem:[#allocation4 + $0x8] sm:$0xff]  ;;  %v6734_v28 = vld [vmem:[%s9000_s0 + $0x8] sm:$0xff] }
  0x37   :  { %541 = vmatpush.msra.mxu3 %v6612_v9  ;;  %347 = vmatpush.msra.mxu1 %v6612_v9  ;;  %v6742_v29 = vld [vmem:[%s9000_s0] sm:$0xff]  ;;  %v412_v30 = vld [vmem:[#allocation4 + $0xd0] sm:$0xff]  ;;  %v217_v32 = vld [vmem:[#allocation4] sm:$0xff] }
  0x38   :  { %482 = vmatpush.msra.mxu2 %v6618_v10  ;;  %288 = vmatpush.msra.mxu0 %v6618_v10  ;;  %v415_v31 = vld [vmem:[#allocation4 + $0xe8] sm:$0xff]  ;;  %v220_v33 = vld [vmem:[#allocation4 + $0x18] sm:$0xff]  ;;  %v414_v34 = vld [vmem:[#allocation4 + $0xe0] sm:$0xff] }
  0x39   :  { %542 = vmatpush.msra.mxu3 %v6626_v11  ;;  %348 = vmatpush.msra.mxu1 %v6626_v11  ;;  %v417_v35 = vld [vmem:[#allocation4 + $0xf8] sm:$0xff]  ;;  %v219_v36 = vld [vmem:[#allocation4 + $0x10] sm:$0xff]  ;;  %v222_v37 = vld [vmem:[#allocation4 + $0x28] sm:$0xff] }
  0x3a   :  { %483 = vmatpush.msra.mxu2 %v6632_v12  ;;  %289 = vmatpush.msra.mxu0 %v6632_v12  ;;  %v416_v38 = vld [vmem:[#allocation4 + $0xf0] sm:$0xff]  ;;  %v419_v39 = vld [vmem:[#allocation4 + $0x108] sm:$0xff]  ;;  %v221_v40 = vld [vmem:[#allocation4 + $0x20] sm:$0xff] }
  0x3b   :  { %543 = vmatpush.msra.mxu3 %v6640_v13  ;;  %349 = vmatpush.msra.mxu1 %v6640_v13  ;;  %v224_v41 = vld [vmem:[#allocation4 + $0x38] sm:$0xff]  ;;  %v418_v42 = vld [vmem:[#allocation4 + $0x100] sm:$0xff]  ;;  %v223_v44 = vld [vmem:[#allocation4 + $0x30] sm:$0xff] }
  0x3c   :  { %484 = vmatpush.msra.mxu2 %v6646_v14  ;;  %290 = vmatpush.msra.mxu0 %v6646_v14  ;;  %v421_v43 = vld [vmem:[#allocation4 + $0x118] sm:$0xff]  ;;  %v226_v45 = vld [vmem:[#allocation4 + $0x48] sm:$0xff]  ;;  %v420_v46 = vld [vmem:[#allocation4 + $0x110] sm:$0xff] }
  0x3d   :  { %544 = vmatpush.msra.mxu3 %v6654_v15  ;;  %350 = vmatpush.msra.mxu1 %v6654_v15  ;;  %v423_v47 = vld [vmem:[#allocation4 + $0x128] sm:$0xff]  ;;  %v225_v48 = vld [vmem:[#allocation4 + $0x40] sm:$0xff]  ;;  %v228_v49 = vld [vmem:[#allocation4 + $0x58] sm:$0xff] }
  0x3e   :  { %485 = vmatpush.msra.mxu2 %v6660_v16  ;;  %291 = vmatpush.msra.mxu0 %v6660_v16  ;;  %v422_v50 = vld [vmem:[#allocation4 + $0x120] sm:$0xff]  ;;  %v425_v51 = vld [vmem:[#allocation4 + $0x138] sm:$0xff]  ;;  %v227_v52 = vld [vmem:[#allocation4 + $0x50] sm:$0xff] }
  0x3f   :  { %545 = vmatpush.msra.mxu3 %v6668_v17  ;;  %351 = vmatpush.msra.mxu1 %v6668_v17  ;;  %v230_v53 = vld [vmem:[#allocation4 + $0x68] sm:$0xff]  ;;  %v424_v54 = vld [vmem:[#allocation4 + $0x130] sm:$0xff]  ;;  %v229_v56 = vld [vmem:[#allocation4 + $0x60] sm:$0xff] }
  0x40   :  { %486 = vmatpush.msra.mxu2 %v6674_v18  ;;  %292 = vmatpush.msra.mxu0 %v6674_v18  ;;  %v427_v55 = vld [vmem:[#allocation4 + $0x148] sm:$0xff]  ;;  %v232_v57 = vld [vmem:[#allocation4 + $0x78] sm:$0xff]  ;;  %v426_v58 = vld [vmem:[#allocation4 + $0x140] sm:$0xff] }
  0x41   :  { %546 = vmatpush.msra.mxu3 %v6682_v19  ;;  %352 = vmatpush.msra.mxu1 %v6682_v19  ;;  %v429_v59 = vld [vmem:[#allocation4 + $0x158] sm:$0xff]  ;;  %v231_v60 = vld [vmem:[#allocation4 + $0x70] sm:$0xff]  ;;  %v234_v61 = vld [vmem:[#allocation4 + $0x88] sm:$0xff] }
  0x42   :  { %487 = vmatpush.msra.mxu2 %v6688_v20  ;;  %293 = vmatpush.msra.mxu0 %v6688_v20  ;;  %v428_v62 = vld [vmem:[#allocation4 + $0x150] sm:$0xff]  ;;  %v431_v63 = vld [vmem:[#allocation4 + $0x168] sm:$0xff] }
  0x43   :  { %547 = vmatpush.msra.mxu3 %v6696_v21  ;;  %353 = vmatpush.msra.mxu1 %v6696_v21 }
  0x44   :  { %488 = vmatpush.msra.mxu2 %v6702_v22  ;;  %294 = vmatpush.msra.mxu0 %v6702_v22 }
  0x45   :  { %548 = vmatpush.msra.mxu3 %v6710_v23  ;;  %354 = vmatpush.msra.mxu1 %v6710_v23 }
  0x46   :  { %489 = vmatpush.msra.mxu2 %v6716_v24  ;;  %5692 = vmatmul.msk.f32.vlgmr.msra.gmra.mxu3 %vm243_vm0, %v413_v25  ;;  %v233_v25 = vld [vmem:[#allocation4 + $0x80] sm:$0xff] }
  0x47   :  { %295 = vmatpush.msra.mxu0 %v6716_v24  ;;  %5679 = vmatmul.msk.f32.vlgmr.msra.gmra.mxu1 %vm243_vm0, %v218_v27  ;;  %v236_v27 = vld [vmem:[#allocation4 + $0x98] sm:$0xff] }
  0x48   :  { %490 = vmatpush.msra.mxu2 %v6725_v26 }
  0x49   :  { %296 = vmatpush.msra.mxu0 %v6725_v26 }
  0x4a   :  { %491 = vmatpush.msra.mxu2 %v6734_v28 }
  0x4b   :  { %297 = vmatpush.msra.mxu0 %v6734_v28 }
  0x4c   :  { %492 = vmatpush.msra.mxu2 %v6742_v29 }
  0x4d   :  { %493 = vmatmul.f32.vlgmr.msra.gmra.mxu2 %v412_v30  ;;  %298 = vmatpush.msra.mxu0 %v6742_v29  ;;  %v603_v30 = vld [vmem:[#allocation6 + $0xe8] sm:$0xf] }
  0x4e   :  { %5693 = vmatmul.msk.f32.gmra.mxu3 %vm243_vm0, %v415_v31  ;;  %299 = vmatmul.f32.vlgmr.msra.gmra.mxu0 %v217_v32  ;;  %v602_v31 = vld [vmem:[#allocation6 + $0xe0] sm:$0xf]  ;;  %v604_v32 = vld [vmem:[#allocation6 + $0xf0] sm:$0xf] }
  0x4f   :  { %5680 = vmatmul.msk.f32.gmra.mxu1 %vm243_vm0, %v220_v33  ;;  %5719 = vmatpush.msk.msrb.mxu3 %vm646_vm1, %v603_v30  ;;  %v605_v33 = vld [vmem:[#allocation6 + $0xf8] sm:$0xf] }
  0x50   :  { %5705 = vmatpush.msk.msrb.mxu1 %vm646_vm1, %v602_v31  ;;  %5733 = vmatpush.msk.msrb.mxu0 %vm646_vm1, %v604_v32 }
  0x51   :  { %5747 = vmatpush.msk.msrb.mxu2 %vm646_vm1, %v605_v33 }
  0x55   :  { %496 = vmatmul.f32.gmra.mxu2 %v414_v34  ;;  %v598_v34 = vld [vmem:[#allocation6 + $0xc0] sm:$0xff] }
  0x56   :  { %5694 = vmatmul.msk.f32.gmra.mxu3 %vm243_vm0, %v417_v35  ;;  %302 = vmatmul.f32.gmra.mxu0 %v219_v36  ;;  %v599_v35 = vld [vmem:[#allocation6 + $0xc8] sm:$0xff]  ;;  %v600_v36 = vld [vmem:[#allocation6 + $0xd0] sm:$0xff] }
  0x57   :  { %5681 = vmatmul.msk.f32.gmra.mxu1 %vm243_vm0, %v222_v37  ;;  %v430_v37 = vld [vmem:[#allocation4 + $0x160] sm:$0xff]  ;;  %728 = vmatpush.msrb.mxu3 %v599_v35 }
  0x58   :  { %672 = vmatpush.msrb.mxu1 %v598_v34  ;;  %784 = vmatpush.msrb.mxu0 %v600_v36 }
  0x5d   :  { %499 = vmatmul.f32.gmra.mxu2 %v416_v38  ;;  %v601_v38 = vld [vmem:[#allocation6 + $0xd8] sm:$0xff] }
  0x5e   :  { %5695 = vmatmul.msk.f32.gmra.mxu3 %vm243_vm0, %v419_v39  ;;  %305 = vmatmul.f32.gmra.mxu0 %v221_v40  ;;  %v433_v39 = vld [vmem:[#allocation4 + $0x178] sm:$0xff]  ;;  %v235_v40 = vld [vmem:[#allocation4 + $0x90] sm:$0xff] }
  0x5f   :  { %5682 = vmatmul.msk.f32.gmra.mxu1 %vm243_vm0, %v224_v41  ;;  %840 = vmatpush.msrb.mxu2 %v601_v38  ;;  %v238_v41 = vld [vmem:[#allocation4 + $0xa8] sm:$0xff] }
  0x65   :  { %502 = vmatmul.f32.gmra.mxu2 %v418_v42  ;;  %v432_v42 = vld [vmem:[#allocation4 + $0x170] sm:$0xff] }
  0x66   :  { %5696 = vmatmul.msk.f32.gmra.mxu3 %vm243_vm0, %v421_v43  ;;  %308 = vmatmul.f32.gmra.mxu0 %v223_v44  ;;  %v435_v43 = vld [vmem:[#allocation4 + $0x188] sm:$0xff]  ;;  %v237_v44 = vld [vmem:[#allocation4 + $0xa0] sm:$0xff] }
  0x67   :  { %5683 = vmatmul.msk.f32.gmra.mxu1 %vm243_vm0, %v226_v45  ;;  %v240_v45 = vld [vmem:[#allocation4 + $0xb8] sm:$0xff] }
  0x6d   :  { %505 = vmatmul.f32.gmra.mxu2 %v420_v46  ;;  %v434_v46 = vld [vmem:[#allocation4 + $0x180] sm:$0xff] }
  0x6e   :  { %5697 = vmatmul.msk.f32.gmra.mxu3 %vm243_vm0, %v423_v47  ;;  %311 = vmatmul.f32.gmra.mxu0 %v225_v48  ;;  %v437_v47 = vld [vmem:[#allocation4 + $0x198] sm:$0xff]  ;;  %v239_v48 = vld [vmem:[#allocation4 + $0xb0] sm:$0xff] }
  0x6f   :  { %5684 = vmatmul.msk.f32.gmra.mxu1 %vm243_vm0, %v228_v49  ;;  %v242_v49 = vld [vmem:[#allocation4 + $0xc8] sm:$0xff] }
  0x75   :  { %508 = vmatmul.f32.gmra.mxu2 %v422_v50  ;;  %v436_v50 = vld [vmem:[#allocation4 + $0x190] sm:$0xff] }
  0x76   :  { %5698 = vmatmul.msk.f32.gmra.mxu3 %vm243_vm0, %v425_v51  ;;  %314 = vmatmul.f32.gmra.mxu0 %v227_v52  ;;  %v241_v51 = vld [vmem:[#allocation4 + $0xc0] sm:$0xff]  ;;  %v594_v52 = vld [vmem:[#allocation6 + $0xa0] sm:$0xff] }
  0x77   :  { %5685 = vmatmul.msk.f32.gmra.mxu1 %vm243_vm0, %v230_v53  ;;  %v595_v53 = vld [vmem:[#allocation6 + $0xa8] sm:$0xff] }
  0x78   :  { %673 = vmatpush.msrb.mxu1 %v594_v52  ;;  %729 = vmatpush.msrb.mxu3 %v595_v53  ;;  %v408_v52 = vld [vmem:[#allocation6 + $0x68] sm:$0xf] }
  0x7d   :  { %511 = vmatmul.f32.gmra.mxu2 %v424_v54  ;;  %v596_v54 = vld [vmem:[#allocation6 + $0xb0] sm:$0xff] }
  0x7e   :  { %5699 = vmatmul.msk.f32.gmra.mxu3 %vm243_vm0, %v427_v55  ;;  %317 = vmatmul.f32.gmra.mxu0 %v229_v56  ;;  %v597_v55 = vld [vmem:[#allocation6 + $0xb8] sm:$0xff]  ;;  %v590_v56 = vld [vmem:[#allocation6 + $0x80] sm:$0xff] }
  0x7f   :  { %5686 = vmatmul.msk.f32.gmra.mxu1 %vm243_vm0, %v232_v57  ;;  %785 = vmatpush.msrb.mxu0 %v596_v54  ;;  %v591_v57 = vld [vmem:[#allocation6 + $0x88] sm:$0xff] }
  0x80   :  { %841 = vmatpush.msrb.mxu2 %v597_v55  ;;  %674 = vmatpush.msrb.mxu1 %v590_v56  ;;  %v407_v56 = vld [vmem:[#allocation6 + $0x60] sm:$0xf] }
  0x81   :  { %730 = vmatpush.msrb.mxu3 %v591_v57 }
  0x82   :  { %5761 = vmatpush.msk.msra.mxu1 %vm646_vm1, %v407_v56 }
  0x83   :  { %5775 = vmatpush.msk.msra.mxu3 %vm646_vm1, %v408_v52 }
  0x85   :  { %514 = vmatmul.f32.gmra.mxu2 %v426_v58  ;;  %v592_v58 = vld [vmem:[#allocation6 + $0x90] sm:$0xff] }
  0x86   :  { %5700 = vmatmul.msk.f32.gmra.mxu3 %vm243_vm0, %v429_v59  ;;  %320 = vmatmul.f32.gmra.mxu0 %v231_v60  ;;  %v593_v59 = vld [vmem:[#allocation6 + $0x98] sm:$0xff] }
  0x87   :  { %5687 = vmatmul.msk.f32.gmra.mxu1 %vm243_vm0, %v234_v61  ;;  %786 = vmatpush.msrb.mxu0 %v592_v58 }
  0x88   :  { %842 = vmatpush.msrb.mxu2 %v593_v59 }
  0x8d   :  { %517 = vmatmul.f32.gmra.mxu2 %v428_v62 }
  0x8e   :  { %5701 = vmatmul.msk.f32.gmra.mxu3 %vm243_vm0, %v431_v63  ;;  %323 = vmatmul.f32.gmra.mxu0 %v233_v25 }
  0x8f   :  { %5688 = vmatmul.msk.f32.gmra.mxu1 %vm243_vm0, %v236_v27 }
  0x95   :  { %520 = vmatmul.f32.gmra.mxu2 %v430_v37 }
  0x96   :  { %5702 = vmatmul.msk.f32.gmra.mxu3 %vm243_vm0, %v433_v39  ;;  %326 = vmatmul.f32.gmra.mxu0 %v235_v40 }
  0x97   :  { %5689 = vmatmul.msk.f32.gmra.mxu1 %vm243_vm0, %v238_v41 }
  0x9d   :  { %523 = vmatmul.f32.gmra.mxu2 %v432_v42 }
  0x9e   :  { %5703 = vmatmul.msk.f32.gmra.mxu3 %vm243_vm0, %v435_v43  ;;  %329 = vmatmul.f32.gmra.mxu0 %v237_v44 }
  0x9f   :  { %5690 = vmatmul.msk.f32.gmra.mxu1 %vm243_vm0, %v240_v45 }
  0xa5   :  { %526 = vmatmul.f32.gmra.mxu2 %v434_v46 }
  0xa6   :  { %5704 = vmatmul.msk.f32.gmra.mxu3 %vm243_vm0, %v437_v47  ;;  %332 = vmatmul.f32.gmra.mxu0 %v239_v48 }
  0xa7   :  { %5691 = vmatmul.msk.f32.gmra.mxu1 %vm243_vm0, %v242_v49 }
  0xad   :  { %529 = vmatmul.f32.gmra.mxu2 %v436_v50 }
  0xae   :  { %335 = vmatmul.f32.gmra.mxu0 %v241_v51 }
  0xc4   :  { %v6777_v61 = vpop.f32.mrf.mxu1 }
  0xc9   :  { %v550_v60 = vpop.f32.mrf.mxu3 }
  0xcb   :  { %v6825_v58 = vpop.f32.mrf.mxu0 }
  0xcc   :  { %v6783_v30 = vpop.f32.mrf.mxu1 }
  0xd0   :  { %v494_v62 = vpop.f32.mrf.mxu2 }
  0xd1   :  { %v551_v63 = vadd.f32 %v550_v60, %v494_v62  ;;  %v553_v25 = vpop.f32.mrf.mxu3 }
  0xd3   :  { %5706 = vmatmul.msk.f32.vlgmr.msrb.gmra.mxu1 %vm606_vm2, %v551_v63  ;;  %5720 = vmatmul.msk.f32.vlgmr.msrb.gmra.mxu3 %vm606_vm2, %v551_v63 }
  0xd4   :  { %5734 = vmatmul.msk.f32.vlgmr.msrb.gmra.mxu0 %vm606_vm2, %v551_v63  ;;  %5748 = vmatmul.msk.f32.vlgmr.msrb.gmra.mxu2 %vm606_vm2, %v551_v63  ;;  %v6789_v36 = vpop.f32.mrf.mxu1 }
  0xd8   :  { %v497_v27 = vpop.f32.mrf.mxu2 }
  0xd9   :  { %v554_v31 = vadd.f32 %v553_v25, %v497_v27  ;;  %v556_v32 = vpop.f32.mrf.mxu3  ;;  %v409_v25 = vld [vmem:[#allocation6 + $0x70] sm:$0xf]  ;;  %v410_v27 = vld [vmem:[#allocation6 + $0x78] sm:$0xf] }
  0xda   :  { %5789 = vmatpush.msk.msra.mxu0 %vm646_vm1, %v409_v25  ;;  %5803 = vmatpush.msk.msra.mxu2 %vm646_vm1, %v410_v27 }
  0xdb   :  { %5707 = vmatmul.msk.f32.gmra.mxu1 %vm606_vm2, %v554_v31  ;;  %5721 = vmatmul.msk.f32.gmra.mxu3 %vm606_vm2, %v554_v31 }
  0xdc   :  { %5735 = vmatmul.msk.f32.gmra.mxu0 %vm606_vm2, %v554_v31  ;;  %5749 = vmatmul.msk.f32.gmra.mxu2 %vm606_vm2, %v554_v31  ;;  %v6799_v40 = vpop.f32.mrf.mxu1  ;;  %v403_v31 = vld [vmem:[#allocation6 + $0x40] sm:$0xff] }
  0xdd   :  { %947 = vmatpush.msra.mxu1 %v403_v31 }
  0xe0   :  { %v500_v33 = vpop.f32.mrf.mxu2 }
  0xe1   :  { %v557_v34 = vadd.f32 %v556_v32, %v500_v33  ;;  %v559_v35 = vpop.f32.mrf.mxu3  ;;  %v404_v32 = vld [vmem:[#allocation6 + $0x48] sm:$0xff]  ;;  %v405_v33 = vld [vmem:[#allocation6 + $0x50] sm:$0xff] }
  0xe2   :  { %1003 = vmatpush.msra.mxu3 %v404_v32  ;;  %1059 = vmatpush.msra.mxu0 %v405_v33 }
  0xe3   :  { %5708 = vmatmul.msk.f32.gmra.mxu1 %vm606_vm2, %v557_v34  ;;  %5722 = vmatmul.msk.f32.gmra.mxu3 %vm606_vm2, %v557_v34 }
  0xe4   :  { %5736 = vmatmul.msk.f32.gmra.mxu0 %vm606_vm2, %v557_v34  ;;  %5750 = vmatmul.msk.f32.gmra.mxu2 %vm606_vm2, %v557_v34  ;;  %v6805_v44 = vpop.f32.mrf.mxu1  ;;  %v406_v34 = vld [vmem:[#allocation6 + $0x58] sm:$0xff] }
  0xe5   :  { %1115 = vmatpush.msra.mxu2 %v406_v34 }
  0xe8   :  { %v503_v37 = vpop.f32.mrf.mxu2 }
  0xe9   :  { %v560_v38 = vadd.f32 %v559_v35, %v503_v37  ;;  %v562_v39 = vpop.f32.mrf.mxu3  ;;  %v399_v35 = vld [vmem:[#allocation6 + $0x20] sm:$0xff]  ;;  %v400_v37 = vld [vmem:[#allocation6 + $0x28] sm:$0xff] }
  0xea   :  { %948 = vmatpush.msra.mxu1 %v399_v35  ;;  %1004 = vmatpush.msra.mxu3 %v400_v37 }
  0xeb   :  { %5709 = vmatmul.msk.f32.gmra.mxu1 %vm606_vm2, %v560_v38  ;;  %5723 = vmatmul.msk.f32.gmra.mxu3 %vm606_vm2, %v560_v38 }
  0xec   :  { %5737 = vmatmul.msk.f32.gmra.mxu0 %vm606_vm2, %v560_v38  ;;  %5751 = vmatmul.msk.f32.gmra.mxu2 %vm606_vm2, %v560_v38  ;;  %v6811_v49 = vpop.f32.mrf.mxu1  ;;  %v401_v38 = vld [vmem:[#allocation6 + $0x30] sm:$0xff] }
  0xed   :  { %1060 = vmatpush.msra.mxu0 %v401_v38 }
  0xf0   :  { %v506_v41 = vpop.f32.mrf.mxu2 }
  0xf1   :  { %v563_v42 = vadd.f32 %v562_v39, %v506_v41  ;;  %v565_v43 = vpop.f32.mrf.mxu3  ;;  %v402_v39 = vld [vmem:[#allocation6 + $0x38] sm:$0xff]  ;;  %v395_v41 = vld [vmem:[#allocation6] sm:$0xff] }
  0xf2   :  { %1116 = vmatpush.msra.mxu2 %v402_v39  ;;  %949 = vmatpush.msra.mxu1 %v395_v41 }
  0xf3   :  { %5710 = vmatmul.msk.f32.gmra.mxu1 %vm606_vm2, %v563_v42  ;;  %5724 = vmatmul.msk.f32.gmra.mxu3 %vm606_vm2, %v563_v42 }
  0xf4   :  { %5738 = vmatmul.msk.f32.gmra.mxu0 %vm606_vm2, %v563_v42  ;;  %5752 = vmatmul.msk.f32.gmra.mxu2 %vm606_vm2, %v563_v42  ;;  %v6818_v57 = vpop.f32.mrf.mxu1  ;;  %v396_v42 = vld [vmem:[#allocation6 + $0x8] sm:$0xff] }
  0xf5   :  { %1005 = vmatpush.msra.mxu3 %v396_v42  ;;  %1224 = vmatpush.msrb.mxu1 %v6554_v0 }
  0xf7   :  { %1284 = vmatpush.msrb.mxu3 %v6565_v2  ;;  %1225 = vmatpush.msrb.mxu1 %v6559_v1 }
  0xf8   :  { %v509_v45 = vpop.f32.mrf.mxu2 }
  0xf9   :  { %v566_v46 = vadd.f32 %v565_v43, %v509_v45  ;;  %v568_v47 = vpop.f32.mrf.mxu3  ;;  %1285 = vmatpush.msrb.mxu3 %v6577_v4  ;;  %1226 = vmatpush.msrb.mxu1 %v6571_v3 }
  0xfb   :  { %5711 = vmatmul.msk.f32.gmra.mxu1 %vm606_vm2, %v566_v46  ;;  %5725 = vmatmul.msk.f32.gmra.mxu3 %vm606_vm2, %v566_v46 }
  0xfc   :  { %5739 = vmatmul.msk.f32.gmra.mxu0 %vm606_vm2, %v566_v46  ;;  %5753 = vmatmul.msk.f32.gmra.mxu2 %vm606_vm2, %v566_v46  ;;  %v6831_v63 = vpop.f32.mrf.mxu1  ;;  %v6835_v46 = vpop.f32.mrf.mxu0 }
  0xfd   :  { %1286 = vmatpush.msrb.mxu3 %v6584_v5  ;;  %1227 = vmatpush.msrb.mxu1 %v6590_v6 }
  0xff   :  { %1287 = vmatpush.msrb.mxu3 %v6598_v7  ;;  %1228 = vmatpush.msrb.mxu1 %v6604_v8 }
 0x100   :  { %v512_v48 = vpop.f32.mrf.mxu2 }
 0x101   :  { %v569_v50 = vadd.f32 %v568_v47, %v512_v48  ;;  %v571_v51 = vpop.f32.mrf.mxu3  ;;  %v397_v48 = vld [vmem:[#allocation6 + $0x10] sm:$0xff]  ;;  %1288 = vmatpush.msrb.mxu3 %v6612_v9  ;;  %1229 = vmatpush.msrb.mxu1 %v6618_v10  ;;  %v357_v10 = vadd.f32 %v6777_v61, %v6825_v58 }
 0x102   :  { %1061 = vmatpush.msra.mxu0 %v397_v48  ;;  %v1160_v48 = vld [vmem:[#allocation4 + $0x1a8] sm:$0xff] }
 0x103   :  { %5712 = vmatmul.msk.f32.gmra.mxu1 %vm606_vm2, %v569_v50  ;;  %5726 = vmatmul.msk.f32.gmra.mxu3 %vm606_vm2, %v569_v50 }
 0x104   :  { %5740 = vmatmul.msk.f32.gmra.mxu0 %vm606_vm2, %v569_v50  ;;  %5754 = vmatmul.msk.f32.gmra.mxu2 %vm606_vm2, %v569_v50  ;;  %v398_v50 = vld [vmem:[#allocation6 + $0x18] sm:$0xff] }
 0x105   :  { %1117 = vmatpush.msra.mxu2 %v398_v50  ;;  %1289 = vmatpush.msrb.mxu3 %v6626_v11  ;;  %v1159_v50 = vld [vmem:[#allocation4 + $0x1a0] sm:$0xff] }
 0x106   :  { %1230 = vmatpush.msrb.mxu1 %v6632_v12  ;;  %v360_v12 = vadd.f32 %v6783_v30, %v6835_v46 }
 0x107   :  { %1290 = vmatpush.msrb.mxu3 %v6640_v13 }
 0x108   :  { %v515_v53 = vpop.f32.mrf.mxu2  ;;  %1231 = vmatpush.msrb.mxu1 %v6646_v14 }
 0x109   :  { %v572_v54 = vadd.f32 %v571_v51, %v515_v53  ;;  %v574_v55 = vpop.f32.mrf.mxu3  ;;  %v6841_v51 = vpop.f32.mrf.mxu1  ;;  %1291 = vmatpush.msrb.mxu3 %v6654_v15 }
 0x10a   :  { %1232 = vmatpush.msrb.mxu1 %v6660_v16 }
 0x10b   :  { %5713 = vmatmul.msk.f32.gmra.mxu1 %vm606_vm2, %v572_v54  ;;  %5727 = vmatmul.msk.f32.gmra.mxu3 %vm606_vm2, %v572_v54 }
 0x10c   :  { %5741 = vmatmul.msk.f32.gmra.mxu0 %vm606_vm2, %v572_v54  ;;  %5755 = vmatmul.msk.f32.gmra.mxu2 %vm606_vm2, %v572_v54  ;;  %v306_v54 = vpop.f32.mrf.mxu0 }
 0x10d   :  { %1292 = vmatpush.msrb.mxu3 %v6668_v17  ;;  %1233 = vmatpush.msrb.mxu1 %v6674_v18  ;;  %v363_v15 = vadd.f32 %v6789_v36, %v306_v54  ;;  %v1161_v54 = vld [vmem:[#allocation4 + $0x1b0] sm:$0xff] }
 0x10f   :  { %1293 = vmatpush.msrb.mxu3 %v6682_v19  ;;  %1234 = vmatpush.msrb.mxu1 %v6688_v20 }
 0x110   :  { %v518_v59 = vpop.f32.mrf.mxu2 }
 0x111   :  { %v575_v60 = vadd.f32 %v574_v55, %v518_v59  ;;  %v577_v62 = vpop.f32.mrf.mxu3  ;;  %v6857_v2 = vpop.f32.mrf.mxu1  ;;  %1294 = vmatpush.msrb.mxu3 %v6696_v21  ;;  %1235 = vmatpush.msrb.mxu1 %v6702_v22 }
 0x113   :  { %5714 = vmatmul.msk.f32.gmra.mxu1 %vm606_vm2, %v575_v60  ;;  %5728 = vmatmul.msk.f32.gmra.mxu3 %vm606_vm2, %v575_v60 }
 0x114   :  { %5742 = vmatmul.msk.f32.gmra.mxu0 %vm606_vm2, %v575_v60  ;;  %5756 = vmatmul.msk.f32.gmra.mxu2 %vm606_vm2, %v575_v60  ;;  %v309_v4 = vpop.f32.mrf.mxu0 }
 0x115   :  { %1295 = vmatpush.msrb.mxu3 %v6710_v23  ;;  %1236 = vmatpush.msrb.mxu1 %v6716_v24  ;;  %v366_v18 = vadd.f32 %v6799_v40, %v309_v4 }
 0x117   :  { %1237 = vmatpush.msrb.mxu1 %v6725_v26 }
 0x118   :  { %v521_v43 = vpop.f32.mrf.mxu2 }
 0x119   :  { %v578_v45 = vadd.f32 %v577_v62, %v521_v43  ;;  %v580_v47 = vpop.f32.mrf.mxu3  ;;  %v6871_v8 = vpop.f32.mrf.mxu1  ;;  %1238 = vmatpush.msrb.mxu1 %v6734_v28 }
 0x11b   :  { %5715 = vmatmul.msk.f32.gmra.mxu1 %vm606_vm2, %v578_v45  ;;  %5729 = vmatmul.msk.f32.gmra.mxu3 %vm606_vm2, %v578_v45 }
 0x11c   :  { %5743 = vmatmul.msk.f32.gmra.mxu0 %vm606_vm2, %v578_v45  ;;  %5757 = vmatmul.msk.f32.gmra.mxu2 %vm606_vm2, %v578_v45  ;;  %v312_v9 = vpop.f32.mrf.mxu0 }
 0x11d   :  { %1239 = vmatpush.msrb.mxu1 %v6742_v29  ;;  %v369_v22 = vadd.f32 %v6805_v44, %v312_v9 }
 0x120   :  { %v524_v52 = vpop.f32.mrf.mxu2 }
 0x121   :  { %v581_v53 = vadd.f32 %v580_v47, %v524_v52  ;;  %v583_v0 = vpop.f32.mrf.mxu3  ;;  %v6889_v11 = vpop.f32.mrf.mxu1 }
 0x123   :  { %5716 = vmatmul.msk.f32.gmra.mxu1 %vm606_vm2, %v581_v53  ;;  %5730 = vmatmul.msk.f32.gmra.mxu3 %vm606_vm2, %v581_v53 }
 0x124   :  { %5744 = vmatmul.msk.f32.gmra.mxu0 %vm606_vm2, %v581_v53  ;;  %5758 = vmatmul.msk.f32.gmra.mxu2 %vm606_vm2, %v581_v53  ;;  %v315_v13 = vpop.f32.mrf.mxu0  ;;  %v1162_v53 = vld [vmem:[#allocation4 + $0x1b8] sm:$0xff] }
 0x125   :  { %v372_v28 = vadd.f32 %v6811_v49, %v315_v13  ;;  %v1167_v13 = vld [vmem:[#allocation4 + $0x1e0] sm:$0xff] }
 0x128   :  { %v527_v1 = vpop.f32.mrf.mxu2 }
 0x129   :  { %v584_v3 = vadd.f32 %v583_v0, %v527_v1  ;;  %v586_v5 = vpop.f32.mrf.mxu3  ;;  %v6901_v14 = vpop.f32.mrf.mxu1 }
 0x12b   :  { %5717 = vmatmul.msk.f32.gmra.mxu1 %vm606_vm2, %v584_v3  ;;  %5731 = vmatmul.msk.f32.gmra.mxu3 %vm606_vm2, %v584_v3 }
 0x12c   :  { %5745 = vmatmul.msk.f32.gmra.mxu0 %vm606_vm2, %v584_v3  ;;  %5759 = vmatmul.msk.f32.gmra.mxu2 %vm606_vm2, %v584_v3  ;;  %v318_v16 = vpop.f32.mrf.mxu0  ;;  %v1163_v3 = vld [vmem:[#allocation4 + $0x1c0] sm:$0xff] }
 0x12d   :  { %v375_v30 = vadd.f32 %v6818_v57, %v318_v16 }
 0x130   :  { %v530_v6 = vpop.f32.mrf.mxu2 }
 0x131   :  { %v587_v7 = vadd.f32 %v586_v5, %v530_v6 }
 0x133   :  { %5718 = vmatmul.msk.f32.gmra.mxu1 %vm606_vm2, %v587_v7  ;;  %5732 = vmatmul.msk.f32.gmra.mxu3 %vm606_vm2, %v587_v7 }
 0x134   :  { %5746 = vmatmul.msk.f32.gmra.mxu0 %vm606_vm2, %v587_v7  ;;  %5760 = vmatmul.msk.f32.gmra.mxu2 %vm606_vm2, %v587_v7  ;;  %v321_v19 = vpop.f32.mrf.mxu0  ;;  %v1166_v7 = vld [vmem:[#allocation4 + $0x1d8] sm:$0xff] }
 0x135   :  { %v378_v49 = vadd.f32 %v6831_v63, %v321_v19  ;;  %v1170_v19 = vld [vmem:[#allocation4 + $0x1f8] sm:$0xff] }
 0x13b   :  { %5762 = vmatmul.msk.f32.vlgmr.msra.gmra.mxu1 %vm606_vm2, %v357_v10  ;;  %5776 = vmatmul.msk.f32.vlgmr.msra.gmra.mxu3 %vm606_vm2, %v357_v10 }
 0x13c   :  { %5790 = vmatmul.msk.f32.vlgmr.msra.gmra.mxu0 %vm606_vm2, %v357_v10  ;;  %5804 = vmatmul.msk.f32.vlgmr.msra.gmra.mxu2 %vm606_vm2, %v357_v10  ;;  %v324_v24 = vpop.f32.mrf.mxu0 }
 0x13d   :  { %v381_v58 = vadd.f32 %v6841_v51, %v324_v24 }
 0x143   :  { %5763 = vmatmul.msk.f32.gmra.mxu1 %vm606_vm2, %v360_v12  ;;  %5777 = vmatmul.msk.f32.gmra.mxu3 %vm606_vm2, %v360_v12 }
 0x144   :  { %5791 = vmatmul.msk.f32.gmra.mxu0 %vm606_vm2, %v360_v12  ;;  %5805 = vmatmul.msk.f32.gmra.mxu2 %vm606_vm2, %v360_v12  ;;  %v327_v36 = vpop.f32.mrf.mxu0  ;;  %v1168_v12 = vld [vmem:[#allocation4 + $0x1e8] sm:$0xff] }
 0x145   :  { %v384_v63 = vadd.f32 %v6857_v2, %v327_v36  ;;  %v1164_v2 = vld [vmem:[#allocation4 + $0x1c8] sm:$0xff] }
 0x146   :  { %v1172_v36 = vld [vmem:[#allocation4 + $0x208] sm:$0xff] }
 0x14b   :  { %5764 = vmatmul.msk.f32.gmra.mxu1 %vm606_vm2, %v363_v15  ;;  %5778 = vmatmul.msk.f32.gmra.mxu3 %vm606_vm2, %v363_v15 }
 0x14c   :  { %5792 = vmatmul.msk.f32.gmra.mxu0 %vm606_vm2, %v363_v15  ;;  %5806 = vmatmul.msk.f32.gmra.mxu2 %vm606_vm2, %v363_v15  ;;  %v330_v55 = vpop.f32.mrf.mxu0 }
 0x14d   :  { %v387_v32 = vadd.f32 %v6871_v8, %v330_v55  ;;  %v1165_v8 = vld [vmem:[#allocation4 + $0x1d0] sm:$0xff] }
 0x150   :  { %v6908_v17 = vpop.f32.mrf.mxu1 }
 0x153   :  { %5765 = vmatmul.msk.f32.gmra.mxu1 %vm606_vm2, %v366_v18  ;;  %5779 = vmatmul.msk.f32.gmra.mxu3 %vm606_vm2, %v366_v18 }
 0x154   :  { %5793 = vmatmul.msk.f32.gmra.mxu0 %vm606_vm2, %v366_v18  ;;  %5807 = vmatmul.msk.f32.gmra.mxu2 %vm606_vm2, %v366_v18  ;;  %v333_v59 = vpop.f32.mrf.mxu0 }
 0x155   :  { %v390_v35 = vadd.f32 %v6889_v11, %v333_v59 }
 0x156   :  { %v6915_v20 = vpop.f32.mrf.mxu3 }
 0x157   :  { %v6985_v38 = vpop.f32.mrf.mxu2 }
 0x158   :  { %v6917_v21 = vpop.f32.mrf.mxu1 }
 0x15b   :  { %5766 = vmatmul.msk.f32.gmra.mxu1 %vm606_vm2, %v369_v22  ;;  %5780 = vmatmul.msk.f32.gmra.mxu3 %vm606_vm2, %v369_v22 }
 0x15c   :  { %5794 = vmatmul.msk.f32.gmra.mxu0 %vm606_vm2, %v369_v22  ;;  %5808 = vmatmul.msk.f32.gmra.mxu2 %vm606_vm2, %v369_v22  ;;  %v336_v27 = vpop.f32.mrf.mxu0  ;;  %v1169_v22 = vld [vmem:[#allocation4 + $0x1f0] sm:$0xff] }
 0x15d   :  { %v393_v42 = vadd.f32 %v6901_v14, %v336_v27  ;;  %v1174_v27 = vld [vmem:[#allocation4 + $0x218] sm:$0xff] }
 0x15e   :  { %v6924_v23 = vpop.f32.mrf.mxu3 }
 0x15f   :  { %v7000_v45 = vpop.f32.mrf.mxu2 }
 0x160   :  { %v6926_v26 = vpop.f32.mrf.mxu1 }
 0x163   :  { %5767 = vmatmul.msk.f32.gmra.mxu1 %vm606_vm2, %v372_v28  ;;  %5781 = vmatmul.msk.f32.gmra.mxu3 %vm606_vm2, %v372_v28 }
 0x164   :  { %5795 = vmatmul.msk.f32.gmra.mxu0 %vm606_vm2, %v372_v28  ;;  %5809 = vmatmul.msk.f32.gmra.mxu2 %vm606_vm2, %v372_v28  ;;  %v6983_v37 = vpop.f32.mrf.mxu0 }
 0x166   :  { %v6933_v29 = vpop.f32.mrf.mxu3 }
 0x167   :  { %v7026_v9 = vpop.f32.mrf.mxu2 }
 0x168   :  { %v6935_v61 = vpop.f32.mrf.mxu1 }
 0x16b   :  { %5768 = vmatmul.msk.f32.gmra.mxu1 %vm606_vm2, %v375_v30  ;;  %5782 = vmatmul.msk.f32.gmra.mxu3 %vm606_vm2, %v375_v30 }
 0x16c   :  { %5796 = vmatmul.msk.f32.gmra.mxu0 %vm606_vm2, %v375_v30  ;;  %5810 = vmatmul.msk.f32.gmra.mxu2 %vm606_vm2, %v375_v30  ;;  %v6998_v43 = vpop.f32.mrf.mxu0 }
 0x16e   :  { %v6942_v40 = vpop.f32.mrf.mxu3 }
 0x16f   :  { %v7037_v16 = vpop.f32.mrf.mxu2 }
 0x170   :  { %v6944_v44 = vpop.f32.mrf.mxu1 }
 0x173   :  { %5769 = vmatmul.msk.f32.gmra.mxu1 %vm606_vm2, %v378_v49  ;;  %5783 = vmatmul.msk.f32.gmra.mxu3 %vm606_vm2, %v378_v49 }
 0x174   :  { %5797 = vmatmul.msk.f32.gmra.mxu0 %vm606_vm2, %v378_v49  ;;  %5811 = vmatmul.msk.f32.gmra.mxu2 %vm606_vm2, %v378_v49  ;;  %v7021_v5 = vpop.f32.mrf.mxu0  ;;  %v1171_v49 = vld [vmem:[#allocation4 + $0x200] sm:$0xff] }
 0x176   :  { %v6951_v56 = vpop.f32.mrf.mxu3 }
 0x177   :  { %v7048_v55 = vpop.f32.mrf.mxu2 }
 0x178   :  { %v6953_v57 = vpop.f32.mrf.mxu1 }
 0x17b   :  { %5770 = vmatmul.msk.f32.gmra.mxu1 %vm606_vm2, %v381_v58  ;;  %5784 = vmatmul.msk.f32.gmra.mxu3 %vm606_vm2, %v381_v58 }
 0x17c   :  { %5798 = vmatmul.msk.f32.gmra.mxu0 %vm606_vm2, %v381_v58  ;;  %5812 = vmatmul.msk.f32.gmra.mxu2 %vm606_vm2, %v381_v58  ;;  %v7032_v14 = vpop.f32.mrf.mxu0 }
 0x17e   :  { %v6960_v60 = vpop.f32.mrf.mxu3 }
 0x180   :  { %v6962_v62 = vpop.f32.mrf.mxu1 }
 0x183   :  { %5771 = vmatmul.msk.f32.gmra.mxu1 %vm606_vm2, %v384_v63  ;;  %5785 = vmatmul.msk.f32.gmra.mxu3 %vm606_vm2, %v384_v63 }
 0x184   :  { %5799 = vmatmul.msk.f32.gmra.mxu0 %vm606_vm2, %v384_v63  ;;  %5813 = vmatmul.msk.f32.gmra.mxu2 %vm606_vm2, %v384_v63  ;;  %v7042_v24 = vpop.f32.mrf.mxu0 }
 0x186   :  { %v6969_v25 = vpop.f32.mrf.mxu3 }
 0x187   :  { %9015 = vst [vmem:[#allocation26_spill] sm:$0xff] %v6969_v25 }
 0x188   :  { %v6971_v31 = vpop.f32.mrf.mxu1 }
 0x189   :  { %9016 = vst [vmem:[#allocation27_spill] sm:$0xff] %v6971_v31 }
 0x18b   :  { %5772 = vmatmul.msk.f32.gmra.mxu1 %vm606_vm2, %v387_v32  ;;  %5786 = vmatmul.msk.f32.gmra.mxu3 %vm606_vm2, %v387_v32 }
 0x18c   :  { %5800 = vmatmul.msk.f32.gmra.mxu0 %vm606_vm2, %v387_v32  ;;  %5814 = vmatmul.msk.f32.gmra.mxu2 %vm606_vm2, %v387_v32  ;;  %v7051_v58 = vpop.f32.mrf.mxu0  ;;  %v1173_v32 = vld [vmem:[#allocation4 + $0x210] sm:$0xff] }
 0x18e   :  { %v6978_v33 = vpop.f32.mrf.mxu3 }
 0x18f   :  { %9017 = vst [vmem:[#allocation28_spill] sm:$0xff] %v6978_v33 }
 0x190   :  { %v6980_v34 = vpop.f32.mrf.mxu1 }
 0x191   :  { %9018 = vst [vmem:[#allocation29_spill] sm:$0xff] %v6980_v34 }
 0x193   :  { %5773 = vmatmul.msk.f32.gmra.mxu1 %vm606_vm2, %v390_v35  ;;  %5787 = vmatmul.msk.f32.gmra.mxu3 %vm606_vm2, %v390_v35 }
 0x194   :  { %5801 = vmatmul.msk.f32.gmra.mxu0 %vm606_vm2, %v390_v35  ;;  %5815 = vmatmul.msk.f32.gmra.mxu2 %vm606_vm2, %v390_v35  ;;  %v7058_v35 = vpop.f32.mrf.mxu2 }
 0x196   :  { %v6991_v39 = vpop.f32.mrf.mxu3 }
 0x197   :  { %9019 = vst [vmem:[#allocation30_spill] sm:$0xff] %v6991_v39  ;;  %v1347_v39 = vld [vmem:[#allocation6 + $0x150] sm:$0xff] }
 0x198   :  { %v6993_v41 = vpop.f32.mrf.mxu1 }
 0x199   :  { %9020 = vst [vmem:[#allocation31_spill] sm:$0xff] %v6993_v41  ;;  %v1345_v41 = vld [vmem:[#allocation6 + $0x140] sm:$0xff] }
 0x19b   :  { %5774 = vmatmul.msk.f32.gmra.mxu1 %vm606_vm2, %v393_v42  ;;  %5788 = vmatmul.msk.f32.gmra.mxu3 %vm606_vm2, %v393_v42 }
 0x19c   :  { %5802 = vmatmul.msk.f32.gmra.mxu0 %vm606_vm2, %v393_v42  ;;  %5816 = vmatmul.msk.f32.gmra.mxu2 %vm606_vm2, %v393_v42 }
 0x19e   :  { %v7004_v46 = vpop.f32.mrf.mxu3 }
 0x19f   :  { %9021 = vst [vmem:[#allocation32_spill] sm:$0xff] %v7004_v46  ;;  %v1352_v46 = vld [vmem:[#allocation6 + $0x178] sm:$0xf] }
 0x1a0   :  { %v7006_v47 = vpop.f32.mrf.mxu1  ;;  %5872 = vmatpush.msk.msra.mxu3 %vm646_vm1, %v1352_v46  ;;  %v1338_v46 = vld [vmem:[#allocation6 + $0x108] sm:$0xff] }
 0x1a1   :  { %9022 = vst [vmem:[#allocation33_spill] sm:$0xff] %v7006_v47  ;;  %v1351_v47 = vld [vmem:[#allocation6 + $0x170] sm:$0xf] }
 0x1a2   :  { %5858 = vmatpush.msk.msra.mxu1 %vm646_vm1, %v1351_v47  ;;  %v1343_v47 = vld [vmem:[#allocation6 + $0x130] sm:$0xff] }
 0x1a3   :  { %5817 = vmatmul.msk.f32.vlgmr.msrb.gmra.mxu3 %vm243_vm0, %v1160_v48  ;;  %1240 = vmatmul.f32.vlgmr.msrb.gmra.mxu1 %v1159_v50  ;;  %v7062_v48 = vpop.f32.mrf.mxu0 }
 0x1a4   :  { %1529 = vmatpush.msra.mxu1 %v1347_v39 }
 0x1a6   :  { %v7009_v51 = vpop.f32.mrf.mxu3  ;;  %1530 = vmatpush.msra.mxu1 %v1343_v47 }
 0x1a7   :  { %9023 = vst [vmem:[#allocation34_spill] sm:$0xff] %v7009_v51 }
 0x1a8   :  { %v7011_v52 = vpop.f32.mrf.mxu1 }
 0x1a9   :  { %9024 = vst [vmem:[#allocation35_spill] sm:$0xff] %v7011_v52 }
 0x1ab   :  { %5818 = vmatmul.msk.f32.gmra.mxu3 %vm243_vm0, %v1162_v53  ;;  %1243 = vmatmul.f32.gmra.mxu1 %v1161_v54  ;;  %v1176_v53 = vld [vmem:[#allocation4 + $0x228] sm:$0xff]  ;;  %v1175_v54 = vld [vmem:[#allocation4 + $0x220] sm:$0xff] }
 0x1ae   :  { %v7014_v0 = vpop.f32.mrf.mxu3 }
 0x1af   :  { %9025 = vst [vmem:[#allocation36_spill] sm:$0xff] %v7014_v0 }
 0x1b0   :  { %v7016_v1 = vpop.f32.mrf.mxu1 }
 0x1b1   :  { %9026 = vst [vmem:[#allocation37_spill] sm:$0xff] %v7016_v1 }
 0x1b3   :  { %5819 = vmatmul.msk.f32.gmra.mxu3 %vm243_vm0, %v1164_v2  ;;  %1246 = vmatmul.f32.gmra.mxu1 %v1163_v3  ;;  %v7067_v2 = vpop.f32.mrf.mxu2 }
 0x1b4   :  { %9028 = vst [vmem:[#allocation39_spill] sm:$0xff] %v7067_v2 }
 0x1b6   :  { %v7019_v4 = vpop.f32.mrf.mxu3 }
 0x1b7   :  { %9027 = vst [vmem:[#allocation38_spill] sm:$0xff] %v7019_v4  ;;  %v1181_v4 = vld [vmem:[#allocation4 + $0x250] sm:$0xff] }
 0x1b8   :  { %v7023_v6 = vpop.f32.mrf.mxu1 }
 0x1bb   :  { %5820 = vmatmul.msk.f32.gmra.mxu3 %vm243_vm0, %v1166_v7  ;;  %1249 = vmatmul.f32.gmra.mxu1 %v1165_v8  ;;  %v1178_v8 = vld [vmem:[#allocation4 + $0x238] sm:$0xff] }
 0x1be   :  { %v7028_v10 = vpop.f32.mrf.mxu3 }
 0x1c0   :  { %v7030_v11 = vpop.f32.mrf.mxu1 }
 0x1c3   :  { %5821 = vmatmul.msk.f32.gmra.mxu3 %vm243_vm0, %v1168_v12  ;;  %1252 = vmatmul.f32.gmra.mxu1 %v1167_v13  ;;  %v1177_v12 = vld [vmem:[#allocation4 + $0x230] sm:$0xff]  ;;  %v7073_v13 = vpop.f32.mrf.mxu0 }
 0x1c4   :  { %9029 = vst [vmem:[#allocation40_spill] sm:$0xff] %v7073_v13 }
 0x1c6   :  { %v7035_v15 = vpop.f32.mrf.mxu3 }
 0x1c8   :  { %v7039_v18 = vpop.f32.mrf.mxu1 }
 0x1cb   :  { %5822 = vmatmul.msk.f32.gmra.mxu3 %vm243_vm0, %v1170_v19  ;;  %1255 = vmatmul.f32.gmra.mxu1 %v1169_v22  ;;  %v7078_v22 = vpop.f32.mrf.mxu2 }
 0x1cc   :  { %9031 = vst [vmem:[#allocation42_spill] sm:$0xff] %v7078_v22 }
 0x1ce   :  { %v7044_v28 = vpop.f32.mrf.mxu3 }
 0x1d0   :  { %v7046_v30 = vpop.f32.mrf.mxu1 }
 0x1d3   :  { %5823 = vmatmul.msk.f32.gmra.mxu3 %vm243_vm0, %v1172_v36  ;;  %1258 = vmatmul.f32.gmra.mxu1 %v1171_v49  ;;  %v1180_v49 = vld [vmem:[#allocation4 + $0x248] sm:$0xff]  ;;  %v7090_v1 = vpop.f32.mrf.mxu2 }
 0x1d4   :  { %9036 = vst [vmem:[#allocation47_spill] sm:$0xff] %v7090_v1  ;;  %v1346_v1 = vld [vmem:[#allocation6 + $0x148] sm:$0xff] }
 0x1d6   :  { %v7053_v59 = vpop.f32.mrf.mxu3 }
 0x1d8   :  { %v7055_v63 = vpop.f32.mrf.mxu1 }
 0x1db   :  { %5824 = vmatmul.msk.f32.gmra.mxu3 %vm243_vm0, %v1174_v27  ;;  %1261 = vmatmul.f32.gmra.mxu1 %v1173_v32  ;;  %v1179_v27 = vld [vmem:[#allocation4 + $0x240] sm:$0xff]  ;;  %v1350_v32 = vld [vmem:[#allocation6 + $0x168] sm:$0xf] }
 0x1dc   :  { %5844 = vmatpush.msk.msrb.mxu2 %vm646_vm1, %v1350_v32  ;;  %v1349_v32 = vld [vmem:[#allocation6 + $0x160] sm:$0xf] }
 0x1dd   :  { %5830 = vmatpush.msk.msrb.mxu0 %vm646_vm1, %v1349_v32  ;;  %v1341_v32 = vld [vmem:[#allocation6 + $0x120] sm:$0xff] }
 0x1de   :  { %v7060_v42 = vpop.f32.mrf.mxu3  ;;  %1473 = vmatpush.msrb.mxu2 %v1346_v1 }
 0x1df   :  { %1417 = vmatpush.msrb.mxu0 %v1345_v41  ;;  %v1340_v41 = vld [vmem:[#allocation6 + $0x118] sm:$0xff] }
 0x1e0   :  { %v7064_v50 = vpop.f32.mrf.mxu1 }
 0x1e1   :  { %1418 = vmatpush.msrb.mxu0 %v1341_v32 }
 0x1e3   :  { %5825 = vmatmul.msk.f32.gmra.mxu3 %vm243_vm0, %v1176_v53  ;;  %1264 = vmatmul.f32.gmra.mxu1 %v1175_v54  ;;  %v7083_v53 = vpop.f32.mrf.mxu0 }
 0x1e4   :  { %9033 = vst [vmem:[#allocation44_spill] sm:$0xff] %v7083_v53  ;;  %v1337_v53 = vld [vmem:[#allocation6 + $0x100] sm:$0xff] }
 0x1e5   :  { %1419 = vmatpush.msrb.mxu0 %v1337_v53 }
 0x1e6   :  { %v7069_v3 = vpop.f32.mrf.mxu3 }
 0x1e8   :  { %v7071_v7 = vpop.f32.mrf.mxu1 }
 0x1eb   :  { %5826 = vmatmul.msk.f32.gmra.mxu3 %vm243_vm0, %v1178_v8  ;;  %1267 = vmatmul.f32.gmra.mxu1 %v1177_v12  ;;  %v1182_v12 = vld [vmem:[#allocation4 + $0x258] sm:$0xff]  ;;  %v7093_v0 = vpop.f32.mrf.mxu0 }
 0x1ec   :  { %9037 = vst [vmem:[#allocation48_spill] sm:$0xff] %v7093_v0 }
 0x1ee   :  { %v7076_v19 = vpop.f32.mrf.mxu3 }
 0x1ef   :  { %9030 = vst [vmem:[#allocation41_spill] sm:$0xff] %v7076_v19 }
 0x1f0   :  { %v7080_v36 = vpop.f32.mrf.mxu1 }
 0x1f1   :  { %9032 = vst [vmem:[#allocation43_spill] sm:$0xff] %v7080_v36 }
 0x1f3   :  { %5827 = vmatmul.msk.f32.gmra.mxu3 %vm243_vm0, %v1180_v49  ;;  %1270 = vmatmul.f32.gmra.mxu1 %v1179_v27  ;;  %v1184_v49 = vld [vmem:[#allocation4 + $0x268] sm:$0xff]  ;;  %v1183_v27 = vld [vmem:[#allocation4 + $0x260] sm:$0xff]  ;;  %v7107_v1 = vpop.f32.mrf.mxu0 }
 0x1f4   :  { %9042 = vst [vmem:[#allocation53_spill] sm:$0xff] %v7107_v1 }
 0x1f6   :  { %v7086_v54 = vpop.f32.mrf.mxu3 }
 0x1f7   :  { %9034 = vst [vmem:[#allocation45_spill] sm:$0xff] %v7086_v54 }
 0x1f8   :  { %v7088_v8 = vpop.f32.mrf.mxu1 }
 0x1f9   :  { %9035 = vst [vmem:[#allocation46_spill] sm:$0xff] %v7088_v8 }
 0x1fb   :  { %5828 = vmatmul.msk.f32.gmra.mxu3 %vm243_vm0, %v1182_v12  ;;  %1273 = vmatmul.f32.gmra.mxu1 %v1181_v4  ;;  %v1348_v4 = vld [vmem:[#allocation6 + $0x158] sm:$0xff]  ;;  %v7103_v12 = vpop.f32.mrf.mxu2 }
 0x1fc   :  { %9040 = vst [vmem:[#allocation51_spill] sm:$0xff] %v7103_v12  ;;  %1585 = vmatpush.msra.mxu3 %v1348_v4  ;;  %v7117_v4 = vpop.f32.mrf.mxu0 }
 0x1fd   :  { %9047 = vst [vmem:[#allocation58_spill] sm:$0xff] %v7117_v4 }
 0x1fe   :  { %v7095_v52 = vpop.f32.mrf.mxu3 }
 0x1ff   :  { %9038 = vst [vmem:[#allocation49_spill] sm:$0xff] %v7095_v52  ;;  %v1344_v52 = vld [vmem:[#allocation6 + $0x138] sm:$0xff] }
 0x200   :  { %v7097_v51 = vpop.f32.mrf.mxu1  ;;  %1586 = vmatpush.msra.mxu3 %v1344_v52 }
 0x201   :  { %9039 = vst [vmem:[#allocation50_spill] sm:$0xff] %v7097_v51  ;;  %v1342_v51 = vld [vmem:[#allocation6 + $0x128] sm:$0xff] }
 0x202   :  { %1474 = vmatpush.msrb.mxu2 %v1342_v51  ;;  %1587 = vmatpush.msra.mxu3 %v1340_v41 }
 0x203   :  { %5829 = vmatmul.msk.f32.gmra.mxu3 %vm243_vm0, %v1184_v49  ;;  %1276 = vmatmul.f32.gmra.mxu1 %v1183_v27  ;;  %v1339_v49 = vld [vmem:[#allocation6 + $0x110] sm:$0xff]  ;;  %v7111_v39 = vpop.f32.mrf.mxu2 }
 0x204   :  { %1475 = vmatpush.msrb.mxu2 %v1338_v46  ;;  %1531 = vmatpush.msra.mxu1 %v1339_v49  ;;  %9044 = vst [vmem:[#allocation55_spill] sm:$0xff] %v7111_v39  ;;  %v7125_v52 = vpop.f32.mrf.mxu0 }
 0x205   :  { %9051 = vst [vmem:[#allocation62_spill] sm:$0xff] %v7125_v52 }
 0x206   :  { %v7105_v0 = vpop.f32.mrf.mxu3 }
 0x207   :  { %9041 = vst [vmem:[#allocation52_spill] sm:$0xff] %v7105_v0 }
 0x208   :  { %v7109_v8 = vpop.f32.mrf.mxu1 }
 0x209   :  { %9043 = vst [vmem:[#allocation54_spill] sm:$0xff] %v7109_v8 }
 0x20b   :  { %v7121_v1 = vpop.f32.mrf.mxu2 }
 0x20c   :  { %9049 = vst [vmem:[#allocation60_spill] sm:$0xff] %v7121_v1  ;;  %v7131_v41 = vpop.f32.mrf.mxu0 }
 0x20e   :  { %v7113_v27 = vpop.f32.mrf.mxu3 }
 0x20f   :  { %9045 = vst [vmem:[#allocation56_spill] sm:$0xff] %v7113_v27 }
 0x210   :  { %v7115_v51 = vpop.f32.mrf.mxu1 }
 0x211   :  { %9046 = vst [vmem:[#allocation57_spill] sm:$0xff] %v7115_v51 }
 0x213   :  { %v7129_v49 = vpop.f32.mrf.mxu2 }
 0x214   :  { %9053 = vst [vmem:[#allocation64_spill] sm:$0xff] %v7129_v49  ;;  %v7139_v1 = vpop.f32.mrf.mxu0 }
 0x216   :  { %v7119_v32 = vpop.f32.mrf.mxu3 }
 0x217   :  { %9048 = vst [vmem:[#allocation59_spill] sm:$0xff] %v7119_v32 }
 0x218   :  { %v7123_v47 = vpop.f32.mrf.mxu1 }
 0x219   :  { %9050 = vst [vmem:[#allocation61_spill] sm:$0xff] %v7123_v47 }
 0x21b   :  { %v7137_v47 = vpop.f32.mrf.mxu2 }
 0x21e   :  { %v7127_v53 = vpop.f32.mrf.mxu3 }
 0x21f   :  { %9052 = vst [vmem:[#allocation63_spill] sm:$0xff] %v7127_v53 }
 0x220   :  { %v1241_v46 = vpop.f32.mrf.mxu1 }
 0x226   :  { %v1297_v39 = vpop.f32.mrf.mxu3 }
 0x227   :  { %v1298_v27 = vadd.f32 %v1297_v39, %v1241_v46  ;;  %v7145_v39 = vpop.f32.mrf.mxu2 }
 0x228   :  { %v1244_v51 = vpop.f32.mrf.mxu1 }
 0x229   :  { %5831 = vmatmul.msk.f32.vlgmr.msrb.gmra.mxu0 %vm606_vm2, %v1298_v27  ;;  %5845 = vmatmul.msk.f32.vlgmr.msrb.gmra.mxu2 %vm606_vm2, %v1298_v27 }
 0x22a   :  { %5859 = vmatmul.msk.f32.vlgmr.msra.gmra.mxu1 %vm606_vm2, %v1298_v27  ;;  %5873 = vmatmul.msk.f32.vlgmr.msra.gmra.mxu3 %vm606_vm2, %v1298_v27 }
 0x22e   :  { %v1300_v52 = vpop.f32.mrf.mxu3 }
 0x22f   :  { %v1301_v53 = vadd.f32 %v1300_v52, %v1244_v51  ;;  %v7149_v51 = vpop.f32.mrf.mxu0  ;;  %v7153_v8 = vpop.f32.mrf.mxu2 }
 0x230   :  { %v1247_v49 = vpop.f32.mrf.mxu1 }
 0x231   :  { %5832 = vmatmul.msk.f32.gmra.mxu0 %vm606_vm2, %v1301_v53  ;;  %5846 = vmatmul.msk.f32.gmra.mxu2 %vm606_vm2, %v1301_v53 }
 0x232   :  { %5860 = vmatmul.msk.f32.gmra.mxu1 %vm606_vm2, %v1301_v53  ;;  %5874 = vmatmul.msk.f32.gmra.mxu3 %vm606_vm2, %v1301_v53 }
 0x236   :  { %v1303_v46 = vpop.f32.mrf.mxu3 }
 0x237   :  { %v1304_v32 = vadd.f32 %v1303_v46, %v1247_v49  ;;  %v7159_v49 = vpop.f32.mrf.mxu0 }
 0x238   :  { %v1250_v27 = vpop.f32.mrf.mxu1 }
 0x239   :  { %5833 = vmatmul.msk.f32.gmra.mxu0 %vm606_vm2, %v1304_v32  ;;  %5847 = vmatmul.msk.f32.gmra.mxu2 %vm606_vm2, %v1304_v32 }
 0x23a   :  { %5861 = vmatmul.msk.f32.gmra.mxu1 %vm606_vm2, %v1304_v32  ;;  %5875 = vmatmul.msk.f32.gmra.mxu3 %vm606_vm2, %v1304_v32  ;;  %v7163_v32 = vpop.f32.mrf.mxu2 }
 0x23e   :  { %v1306_v52 = vpop.f32.mrf.mxu3 }
 0x23f   :  { %v1307_v4 = vadd.f32 %v1306_v52, %v1250_v27  ;;  %v7167_v27 = vpop.f32.mrf.mxu0 }
 0x240   :  { %v1253_v53 = vpop.f32.mrf.mxu1 }
 0x241   :  { %5834 = vmatmul.msk.f32.gmra.mxu0 %vm606_vm2, %v1307_v4  ;;  %5848 = vmatmul.msk.f32.gmra.mxu2 %vm606_vm2, %v1307_v4 }
 0x242   :  { %5862 = vmatmul.msk.f32.gmra.mxu1 %vm606_vm2, %v1307_v4  ;;  %5876 = vmatmul.msk.f32.gmra.mxu3 %vm606_vm2, %v1307_v4 }
 0x246   :  { %v1309_v46 = vpop.f32.mrf.mxu3 }
 0x247   :  { %v1310_v12 = vadd.f32 %v1309_v46, %v1253_v53  ;;  %v7173_v53 = vpop.f32.mrf.mxu2  ;;  %v7175_v54 = vpop.f32.mrf.mxu0 }
 0x248   :  { %v1256_v0 = vpop.f32.mrf.mxu1 }
 0x249   :  { %5835 = vmatmul.msk.f32.gmra.mxu0 %vm606_vm2, %v1310_v12  ;;  %5849 = vmatmul.msk.f32.gmra.mxu2 %vm606_vm2, %v1310_v12 }
 0x24a   :  { %5863 = vmatmul.msk.f32.gmra.mxu1 %vm606_vm2, %v1310_v12  ;;  %5877 = vmatmul.msk.f32.gmra.mxu3 %vm606_vm2, %v1310_v12 }
 0x24e   :  { %v1312_v52 = vpop.f32.mrf.mxu3 }
 0x24f   :  { %v1313_v34 = vadd.f32 %v1312_v52, %v1256_v0  ;;  %v7181_v0 = vpop.f32.mrf.mxu2 }
 0x250   :  { %v1259_v4 = vpop.f32.mrf.mxu1 }
 0x251   :  { %5836 = vmatmul.msk.f32.gmra.mxu0 %vm606_vm2, %v1313_v34  ;;  %5850 = vmatmul.msk.f32.gmra.mxu2 %vm606_vm2, %v1313_v34 }
 0x252   :  { %5864 = vmatmul.msk.f32.gmra.mxu1 %vm606_vm2, %v1313_v34  ;;  %5878 = vmatmul.msk.f32.gmra.mxu3 %vm606_vm2, %v1313_v34 }
 0x256   :  { %v1315_v46 = vpop.f32.mrf.mxu3 }
 0x257   :  { %v1316_v22 = vadd.f32 %v1315_v46, %v1259_v4  ;;  %v7185_v4 = vpop.f32.mrf.mxu0  ;;  %v7189_v36 = vpop.f32.mrf.mxu2 }
 0x258   :  { %v1262_v12 = vpop.f32.mrf.mxu1  ;;  %9054 = vst [vmem:[#allocation65_spill] sm:$0xff] %v7189_v36 }
 0x259   :  { %5837 = vmatmul.msk.f32.gmra.mxu0 %vm606_vm2, %v1316_v22  ;;  %5851 = vmatmul.msk.f32.gmra.mxu2 %vm606_vm2, %v1316_v22 }
 0x25a   :  { %5865 = vmatmul.msk.f32.gmra.mxu1 %vm606_vm2, %v1316_v22  ;;  %5879 = vmatmul.msk.f32.gmra.mxu3 %vm606_vm2, %v1316_v22 }
 0x25e   :  { %v1318_v52 = vpop.f32.mrf.mxu3 }
 0x25f   :  { %v1319_v33 = vadd.f32 %v1318_v52, %v1262_v12  ;;  %v7195_v12 = vpop.f32.mrf.mxu0 }
 0x260   :  { %v1265_v34 = vpop.f32.mrf.mxu1  ;;  %9055 = vst [vmem:[#allocation66_spill] sm:$0xff] %v7195_v12 }
 0x261   :  { %5838 = vmatmul.msk.f32.gmra.mxu0 %vm606_vm2, %v1319_v33  ;;  %5852 = vmatmul.msk.f32.gmra.mxu2 %vm606_vm2, %v1319_v33 }
 0x262   :  { %5866 = vmatmul.msk.f32.gmra.mxu1 %vm606_vm2, %v1319_v33  ;;  %5880 = vmatmul.msk.f32.gmra.mxu3 %vm606_vm2, %v1319_v33  ;;  %v7199_v33 = vpop.f32.mrf.mxu2 }
 0x263   :  { %9056 = vst [vmem:[#allocation67_spill] sm:$0xff] %v7199_v33 }
 0x266   :  { %v1321_v46 = vpop.f32.mrf.mxu3 }
 0x267   :  { %v1322_v13 = vadd.f32 %v1321_v46, %v1265_v34  ;;  %v7203_v34 = vpop.f32.mrf.mxu0 }
 0x268   :  { %v1268_v22 = vpop.f32.mrf.mxu1  ;;  %9057 = vst [vmem:[#allocation68_spill] sm:$0xff] %v7203_v34 }
 0x269   :  { %5839 = vmatmul.msk.f32.gmra.mxu0 %vm606_vm2, %v1322_v13  ;;  %5853 = vmatmul.msk.f32.gmra.mxu2 %vm606_vm2, %v1322_v13 }
 0x26a   :  { %5867 = vmatmul.msk.f32.gmra.mxu1 %vm606_vm2, %v1322_v13  ;;  %5881 = vmatmul.msk.f32.gmra.mxu3 %vm606_vm2, %v1322_v13 }
 0x26e   :  { %v1324_v52 = vpop.f32.mrf.mxu3 }
 0x26f   :  { %v1325_v31 = vadd.f32 %v1324_v52, %v1268_v22  ;;  %v7209_v22 = vpop.f32.mrf.mxu2  ;;  %v7211_v12 = vpop.f32.mrf.mxu0 }
 0x270   :  { %v1271_v2 = vpop.f32.mrf.mxu1  ;;  %9058 = vst [vmem:[#allocation69_spill] sm:$0xff] %v7209_v22 }
 0x271   :  { %5840 = vmatmul.msk.f32.gmra.mxu0 %vm606_vm2, %v1325_v31  ;;  %5854 = vmatmul.msk.f32.gmra.mxu2 %vm606_vm2, %v1325_v31  ;;  %9059 = vst [vmem:[#allocation70_spill] sm:$0xff] %v7211_v12 }
 0x272   :  { %5868 = vmatmul.msk.f32.gmra.mxu1 %vm606_vm2, %v1325_v31  ;;  %5882 = vmatmul.msk.f32.gmra.mxu3 %vm606_vm2, %v1325_v31 }
 0x276   :  { %v1327_v46 = vpop.f32.mrf.mxu3 }
 0x277   :  { %v1328_v36 = vadd.f32 %v1327_v46, %v1271_v2  ;;  %v7217_v2 = vpop.f32.mrf.mxu2 }
 0x278   :  { %v1274_v13 = vpop.f32.mrf.mxu1  ;;  %9060 = vst [vmem:[#allocation71_spill] sm:$0xff] %v7217_v2  ;;  %v1680_v2 = vld [vmem:[#allocation8] sm:$0xf] }
 0x279   :  { %5841 = vmatmul.msk.f32.gmra.mxu0 %vm606_vm2, %v1328_v36  ;;  %5855 = vmatmul.msk.f32.gmra.mxu2 %vm606_vm2, %v1328_v36  ;;  %v7237_v34 = vperm.slane %v1680_v2, 0  ;;  %v7241_v19 = vperm.slane %v1680_v2, 2 }
 0x27a   :  { %5869 = vmatmul.msk.f32.gmra.mxu1 %vm606_vm2, %v1328_v36  ;;  %5883 = vmatmul.msk.f32.gmra.mxu3 %vm606_vm2, %v1328_v36 }
 0x27e   :  { %v1330_v52 = vpop.f32.mrf.mxu3 }
 0x27f   :  { %v1331_v33 = vadd.f32 %v1330_v52, %v1274_v13  ;;  %v7221_v13 = vpop.f32.mrf.mxu0  ;;  %v7225_v52 = vpop.f32.mrf.mxu2 }
 0x280   :  { %v1277_v31 = vpop.f32.mrf.mxu1  ;;  %9061 = vst [vmem:[#allocation72_spill] sm:$0xff] %v7221_v13  ;;  %v1064_v13 = vadd.f32 %v7131_v41, %v6983_v37  ;;  %v1120_v37 = vadd.f32 %v7137_v47, %v6985_v38 }
 0x281   :  { %5842 = vmatmul.msk.f32.gmra.mxu0 %vm606_vm2, %v1331_v33  ;;  %5856 = vmatmul.msk.f32.gmra.mxu2 %vm606_vm2, %v1331_v33  ;;  %9062 = vst [vmem:[#allocation73_spill] sm:$0xff] %v7225_v52 }
 0x282   :  { %5870 = vmatmul.msk.f32.gmra.mxu1 %vm606_vm2, %v1331_v33  ;;  %5884 = vmatmul.msk.f32.gmra.mxu3 %vm606_vm2, %v1331_v33 }
 0x286   :  { %v1333_v46 = vpop.f32.mrf.mxu3 }
 0x287   :  { %v1334_v36 = vadd.f32 %v1333_v46, %v1277_v31  ;;  %v7227_v12 = vpop.f32.mrf.mxu0  ;;  %v7229_v33 = vpop.f32.mrf.mxu2  ;;  %v952_v46 = vadd.f32 %v7023_v6, %v6908_v17  ;;  %v1008_v17 = vadd.f32 %v7028_v10, %v6915_v20  ;;  %v7252_v6 = vperm.slane %v1680_v2, 1 }
 0x288   :  { %9063 = vst [vmem:[#allocation74_spill] sm:$0xff] %v7227_v12  ;;  %v1067_v20 = vadd.f32 %v7139_v1, %v6998_v43  ;;  %v1123_v1 = vadd.f32 %v7145_v39, %v7000_v45 }
 0x289   :  { %5843 = vmatmul.msk.f32.gmra.mxu0 %vm606_vm2, %v1334_v36  ;;  %5857 = vmatmul.msk.f32.gmra.mxu2 %vm606_vm2, %v1334_v36  ;;  %9064 = vst [vmem:[#allocation75_spill] sm:$0xff] %v7229_v33 }
 0x28a   :  { %5871 = vmatmul.msk.f32.gmra.mxu1 %vm606_vm2, %v1334_v36  ;;  %5885 = vmatmul.msk.f32.gmra.mxu3 %vm606_vm2, %v1334_v36 }
 0x28f   :  { %v7231_v22 = vpop.f32.mrf.mxu0  ;;  %v7233_v31 = vpop.f32.mrf.mxu2 }
 0x290   :  { %9065 = vst [vmem:[#allocation76_spill] sm:$0xff] %v7231_v22 }
 0x2a6   :  { %v1421_v36 = vpop.f32.mrf.mxu0 }
 0x2a7   :  { %v1628_v52 = vadd.f32 %v1421_v36, %v952_v46  ;;  %v1533_v12 = vpop.f32.mrf.mxu1 }
 0x2a8   :  { %v1630_v25 = vadd.f32 %v1533_v12, %v1064_v13  ;;  %v7257_v12 = vperm.slane %v1680_v2, 3  ;;  %v955_v13 = vadd.f32 %v7030_v11, %v6917_v21  ;;  %v1011_v11 = vadd.f32 %v7035_v15, %v6924_v23 }
 0x2a9   :  { %v7244_v33 = vadd.f32 %v7237_v34, %v1628_v52 }
 0x2aa   :  { %v7247_v22 = vadd.f32 %v7241_v19, %v1630_v25 }
 0x2ab   :  { %1742 = vst [vmem:[#allocation2] sm:$0xff] %v7244_v33 }
 0x2ac   :  { %9066 = vst [vmem:[#allocation77_spill] sm:$0xff] %v7247_v22  ;;  %v1477_v41 = vpop.f32.mrf.mxu2 }
 0x2ad   :  { %1744 = vst [vmem:[#allocation2 + $0x10] sm:$0xff] %v7247_v22  ;;  %v1629_v25 = vadd.f32 %v1477_v41, %v1008_v17  ;;  %v1589_v52 = vpop.f32.mrf.mxu3 }
 0x2ae   :  { %v1631_v10 = vadd.f32 %v1589_v52, %v1120_v37  ;;  %v1424_v46 = vpop.f32.mrf.mxu0  ;;  %v958_v37 = vadd.f32 %v7039_v18, %v6926_v26  ;;  %v1126_v18 = vadd.f32 %v7153_v8, %v7026_v9 }
 0x2af   :  { %v7264_v36 = vadd.f32 %v7252_v6, %v1629_v25  ;;  %v1632_v38 = vadd.f32 %v1424_v46, %v955_v13  ;;  %v1536_v47 = vpop.f32.mrf.mxu1  ;;  %v961_v46 = vadd.f32 %v7046_v30, %v6935_v61  ;;  %v1129_v30 = vadd.f32 %v7163_v32, %v7037_v16 }
 0x2b0   :  { %v1693_v22 = vadd.f32 %v7257_v12, %v1631_v10  ;;  %v1634_v2 = vadd.f32 %v1536_v47, %v1067_v20 }
 0x2b1   :  { %1743 = vst [vmem:[#allocation2 + $0x8] sm:$0xff] %v7264_v36  ;;  %v7269_v21 = vadd.f32 %v7237_v34, %v1632_v38 }
 0x2b2   :  { %1746 = vst.msk [vmem:[#allocation2 + $0x18] sm:$0xff] %vm1745_vm3, %v1693_v22  ;;  %v7273_v43 = vadd.f32 %v7241_v19, %v1634_v2  ;;  %v1070_v22 = vadd.f32 %v7149_v51, %v7021_v5  ;;  %v1014_v5 = vadd.f32 %v7044_v28, %v6933_v29  ;;  %v1073_v2 = vadd.f32 %v7159_v49, %v7032_v14 }
 0x2b3   :  { %1747 = vst [vmem:[#allocation2 + $0x20] sm:$0xff] %v7269_v21  ;;  %v1017_v14 = vadd.f32 %v7053_v59, %v6942_v40 }
 0x2b4   :  { %1749 = vst [vmem:[#allocation2 + $0x30] sm:$0xff] %v7273_v43  ;;  %v1480_v17 = vpop.f32.mrf.mxu2 }
 0x2b5   :  { %v1633_v41 = vadd.f32 %v1480_v17, %v1011_v11  ;;  %v1592_v13 = vpop.f32.mrf.mxu3 }
 0x2b6   :  { %v1635_v25 = vadd.f32 %v1592_v13, %v1123_v1  ;;  %v1427_v52 = vpop.f32.mrf.mxu0 }
 0x2b7   :  { %v7286_v23 = vadd.f32 %v7252_v6, %v1633_v41  ;;  %v1636_v15 = vadd.f32 %v1427_v52, %v958_v37  ;;  %v1539_v20 = vpop.f32.mrf.mxu1  ;;  %v964_v41 = vadd.f32 %v7055_v63, %v6944_v44  ;;  %v1132_v63 = vadd.f32 %v7173_v53, %v7048_v55 }
 0x2b8   :  { %v1697_v45 = vadd.f32 %v7257_v12, %v1635_v25  ;;  %v1638_v39 = vadd.f32 %v1539_v20, %v1070_v22  ;;  %v1076_v25 = vadd.f32 %v7167_v27, %v7042_v24  ;;  %v1020_v24 = vadd.f32 %v7060_v42, %v6951_v56 }
 0x2b9   :  { %1748 = vst [vmem:[#allocation2 + $0x28] sm:$0xff] %v7286_v23  ;;  %v7291_v10 = vadd.f32 %v7237_v34, %v1636_v15 }
 0x2ba   :  { %1750 = vst.msk [vmem:[#allocation2 + $0x38] sm:$0xff] %vm1745_vm3, %v1697_v45  ;;  %v7295_v26 = vadd.f32 %v7241_v19, %v1638_v39  ;;  %v967_v39 = vadd.f32 %v7064_v50, %v6953_v57  ;;  %v1135_v50 = vadd.f32 %v7181_v0, %v7058_v35 }
 0x2bb   :  { %1751 = vst [vmem:[#allocation2 + $0x40] sm:$0xff] %v7291_v10 }
 0x2bc   :  { %1753 = vst [vmem:[#allocation2 + $0x50] sm:$0xff] %v7295_v26  ;;  %v1483_v51 = vpop.f32.mrf.mxu2 }
 0x2bd   :  { %v1637_v38 = vadd.f32 %v1483_v51, %v1014_v5  ;;  %v1595_v47 = vpop.f32.mrf.mxu3  ;;  %v1079_v51 = vadd.f32 %v7175_v54, %v7051_v58  ;;  %v1023_v58 = vadd.f32 %v7069_v3, %v6960_v60 }
 0x2be   :  { %v1639_v11 = vadd.f32 %v1595_v47, %v1126_v18  ;;  %v1430_v1 = vpop.f32.mrf.mxu0 }
 0x2bf   :  { %v7308_v29 = vadd.f32 %v7252_v6, %v1637_v38  ;;  %v1640_v28 = vadd.f32 %v1430_v1, %v961_v46  ;;  %v1542_v17 = vpop.f32.mrf.mxu1 }
 0x2c0   :  { %v1701_v9 = vadd.f32 %v7257_v12, %v1639_v11  ;;  %v1642_v8 = vadd.f32 %v1542_v17, %v1073_v2  ;;  %v970_v11 = vadd.f32 %v7071_v7, %v6962_v62  ;;  %v1082_v17 = vadd.f32 %v7185_v4, %v7062_v48  ;;  %v9067_v48 = vld [vmem:[#allocation26_spill] sm:$0xff]  ;;  %v9068_v7 = vld [vmem:[#allocation41_spill] sm:$0xff] }
 0x2c1   :  { %1752 = vst [vmem:[#allocation2 + $0x48] sm:$0xff] %v7308_v29  ;;  %v7313_v37 = vadd.f32 %v7237_v34, %v1640_v28  ;;  %v1026_v4 = vadd.f32 %v9068_v7, %v9067_v48 }
 0x2c2   :  { %1754 = vst.msk [vmem:[#allocation2 + $0x58] sm:$0xff] %vm1745_vm3, %v1701_v9  ;;  %v7317_v61 = vadd.f32 %v7241_v19, %v1642_v8 }
 0x2c3   :  { %1755 = vst [vmem:[#allocation2 + $0x60] sm:$0xff] %v7313_v37 }
 0x2c4   :  { %1757 = vst [vmem:[#allocation2 + $0x70] sm:$0xff] %v7317_v61  ;;  %v1486_v49 = vpop.f32.mrf.mxu2 }
 0x2c5   :  { %v1641_v13 = vadd.f32 %v1486_v49, %v1017_v14  ;;  %v1598_v22 = vpop.f32.mrf.mxu3  ;;  %v9069_v49 = vld [vmem:[#allocation39_spill] sm:$0xff] }
 0x2c6   :  { %v1643_v52 = vadd.f32 %v1598_v22, %v1129_v30  ;;  %v1433_v15 = vpop.f32.mrf.mxu0 }
 0x2c7   :  { %v7330_v40 = vadd.f32 %v7252_v6, %v1641_v13  ;;  %v1644_v59 = vadd.f32 %v1433_v15, %v964_v41  ;;  %v1545_v20 = vpop.f32.mrf.mxu1  ;;  %v9070_v41 = vld [vmem:[#allocation65_spill] sm:$0xff] }
 0x2c8   :  { %v1705_v16 = vadd.f32 %v7257_v12, %v1643_v52  ;;  %v1646_v32 = vadd.f32 %v1545_v20, %v1076_v25  ;;  %v1138_v13 = vadd.f32 %v9070_v41, %v9069_v49  ;;  %v9071_v25 = vld [vmem:[#allocation27_spill] sm:$0xff] }
 0x2c9   :  { %1756 = vst [vmem:[#allocation2 + $0x68] sm:$0xff] %v7330_v40  ;;  %v7335_v45 = vadd.f32 %v7237_v34, %v1644_v59  ;;  %v9072_v52 = vld [vmem:[#allocation43_spill] sm:$0xff] }
 0x2ca   :  { %1758 = vst.msk [vmem:[#allocation2 + $0x78] sm:$0xff] %vm1745_vm3, %v1705_v16  ;;  %v7339_v44 = vadd.f32 %v7241_v19, %v1646_v32  ;;  %v973_v15 = vadd.f32 %v9072_v52, %v9071_v25  ;;  %v9073_v16 = vld [vmem:[#allocation40_spill] sm:$0xff]  ;;  %v9074_v32 = vld [vmem:[#allocation66_spill] sm:$0xff] }
 0x2cb   :  { %1759 = vst [vmem:[#allocation2 + $0x80] sm:$0xff] %v7335_v45  ;;  %v9083_v52 = vld [vmem:[#allocation30_spill] sm:$0xff] }
 0x2cc   :  { %1761 = vst [vmem:[#allocation2 + $0x90] sm:$0xff] %v7339_v44  ;;  %v1489_v27 = vpop.f32.mrf.mxu2 }
 0x2cd   :  { %v1645_v5 = vadd.f32 %v1489_v27, %v1020_v24  ;;  %v1601_v18 = vpop.f32.mrf.mxu3  ;;  %v1085_v24 = vadd.f32 %v9074_v32, %v9073_v16  ;;  %v9086_v16 = vld [vmem:[#allocation69_spill] sm:$0xff] }
 0x2ce   :  { %v1647_v46 = vadd.f32 %v1601_v18, %v1132_v63  ;;  %v1436_v38 = vpop.f32.mrf.mxu0 }
 0x2cf   :  { %v7352_v56 = vadd.f32 %v7252_v6, %v1645_v5  ;;  %v1648_v42 = vadd.f32 %v1436_v38, %v967_v39  ;;  %v1548_v47 = vpop.f32.mrf.mxu1 }
 0x2d0   :  { %v1709_v55 = vadd.f32 %v7257_v12, %v1647_v46  ;;  %v1650_v53 = vadd.f32 %v1548_v47, %v1079_v51  ;;  %v9075_v47 = vld [vmem:[#allocation28_spill] sm:$0xff] }
 0x2d1   :  { %1760 = vst [vmem:[#allocation2 + $0x88] sm:$0xff] %v7352_v56  ;;  %v7357_v2 = vadd.f32 %v7237_v34, %v1648_v42 }
 0x2d2   :  { %1762 = vst.msk [vmem:[#allocation2 + $0x98] sm:$0xff] %vm1745_vm3, %v1709_v55  ;;  %v7361_v57 = vadd.f32 %v7241_v19, %v1650_v53  ;;  %v9076_v55 = vld [vmem:[#allocation45_spill] sm:$0xff] }
 0x2d3   :  { %1763 = vst [vmem:[#allocation2 + $0xa0] sm:$0xff] %v7357_v2  ;;  %v1029_v53 = vadd.f32 %v9076_v55, %v9075_v47  ;;  %v9090_v47 = vld [vmem:[#allocation70_spill] sm:$0xff] }
 0x2d4   :  { %1765 = vst [vmem:[#allocation2 + $0xb0] sm:$0xff] %v7361_v57  ;;  %v1492_v54 = vpop.f32.mrf.mxu2 }
 0x2d5   :  { %v1649_v1 = vadd.f32 %v1492_v54, %v1023_v58  ;;  %v1604_v28 = vpop.f32.mrf.mxu3  ;;  %v9077_v58 = vld [vmem:[#allocation42_spill] sm:$0xff] }
 0x2d6   :  { %v1651_v9 = vadd.f32 %v1604_v28, %v1135_v50  ;;  %v1439_v8 = vpop.f32.mrf.mxu0  ;;  %v9078_v50 = vld [vmem:[#allocation67_spill] sm:$0xff]  ;;  %v9080_v28 = vld [vmem:[#allocation46_spill] sm:$0xff] }
 0x2d7   :  { %v7374_v60 = vadd.f32 %v7252_v6, %v1649_v1  ;;  %v1652_v3 = vadd.f32 %v1439_v8, %v970_v11  ;;  %v1551_v14 = vpop.f32.mrf.mxu1  ;;  %v1141_v54 = vadd.f32 %v9078_v50, %v9077_v58  ;;  %v9079_v1 = vld [vmem:[#allocation29_spill] sm:$0xff] }
 0x2d8   :  { %v1713_v35 = vadd.f32 %v7257_v12, %v1651_v9  ;;  %v1654_v0 = vadd.f32 %v1551_v14, %v1082_v17  ;;  %v976_v17 = vadd.f32 %v9080_v28, %v9079_v1  ;;  %v9082_v14 = vld [vmem:[#allocation68_spill] sm:$0xff] }
 0x2d9   :  { %1764 = vst [vmem:[#allocation2 + $0xa8] sm:$0xff] %v7374_v60  ;;  %v7379_v30 = vadd.f32 %v7237_v34, %v1652_v3  ;;  %v9081_v3 = vld [vmem:[#allocation44_spill] sm:$0xff] }
 0x2da   :  { %1766 = vst.msk [vmem:[#allocation2 + $0xb8] sm:$0xff] %vm1745_vm3, %v1713_v35  ;;  %v7383_v62 = vadd.f32 %v7241_v19, %v1654_v0  ;;  %v1088_v35 = vadd.f32 %v9082_v14, %v9081_v3  ;;  %v9092_v3 = vld [vmem:[#allocation52_spill] sm:$0xff] }
 0x2db   :  { %1767 = vst [vmem:[#allocation2 + $0xc0] sm:$0xff] %v7379_v30 }
 0x2dc   :  { %1769 = vst [vmem:[#allocation2 + $0xd0] sm:$0xff] %v7383_v62  ;;  %v1495_v22 = vpop.f32.mrf.mxu2 }
 0x2dd   :  { %v1653_v59 = vadd.f32 %v1495_v22, %v1026_v4  ;;  %v1607_v20 = vpop.f32.mrf.mxu3 }
 0x2de   :  { %v1655_v63 = vadd.f32 %v1607_v20, %v1138_v13  ;;  %v1442_v27 = vpop.f32.mrf.mxu0  ;;  %v9085_v20 = vld [vmem:[#allocation47_spill] sm:$0xff] }
 0x2df   :  { %v7396_v39 = vadd.f32 %v7252_v6, %v1653_v59  ;;  %v1656_v5 = vadd.f32 %v1442_v27, %v973_v15  ;;  %v1554_v18 = vpop.f32.mrf.mxu1  ;;  %v9084_v15 = vld [vmem:[#allocation49_spill] sm:$0xff]  ;;  %v1144_v32 = vadd.f32 %v9086_v16, %v9085_v20  ;;  %v9088_v27 = vld [vmem:[#allocation50_spill] sm:$0xff]  ;;  %v9098_v20 = vld [vmem:[#allocation72_spill] sm:$0xff] }
 0x2e0   :  { %v1717_v51 = vadd.f32 %v7257_v12, %v1655_v63  ;;  %v1658_v46 = vadd.f32 %v1554_v18, %v1085_v24  ;;  %v1032_v59 = vadd.f32 %v9084_v15, %v9083_v52  ;;  %v9087_v63 = vld [vmem:[#allocation31_spill] sm:$0xff] }
 0x2e1   :  { %1768 = vst [vmem:[#allocation2 + $0xc8] sm:$0xff] %v7396_v39  ;;  %v7401_v38 = vadd.f32 %v7237_v34, %v1656_v5  ;;  %v979_v5 = vadd.f32 %v9088_v27, %v9087_v63 }
 0x2e2   :  { %1770 = vst.msk [vmem:[#allocation2 + $0xd8] sm:$0xff] %vm1745_vm3, %v1717_v51  ;;  %v7405_v42 = vadd.f32 %v7241_v19, %v1658_v46  ;;  %v9089_v46 = vld [vmem:[#allocation48_spill] sm:$0xff] }
 0x2e3   :  { %1771 = vst [vmem:[#allocation2 + $0xe0] sm:$0xff] %v7401_v38  ;;  %v1091_v55 = vadd.f32 %v9090_v47, %v9089_v46 }
 0x2e4   :  { %1773 = vst [vmem:[#allocation2 + $0xf0] sm:$0xff] %v7405_v42  ;;  %v1498_v11 = vpop.f32.mrf.mxu2 }
 0x2e5   :  { %v1657_v9 = vadd.f32 %v1498_v11, %v1029_v53  ;;  %v1610_v8 = vpop.f32.mrf.mxu3 }
 0x2e6   :  { %v1659_v0 = vadd.f32 %v1610_v8, %v1141_v54  ;;  %v1445_v48 = vpop.f32.mrf.mxu0  ;;  %v9091_v8 = vld [vmem:[#allocation32_spill] sm:$0xff] }
 0x2e7   :  { %v7418_v7 = vadd.f32 %v7252_v6, %v1657_v9  ;;  %v1660_v4 = vadd.f32 %v1445_v48, %v976_v17  ;;  %v1557_v49 = vpop.f32.mrf.mxu1  ;;  %v1035_v14 = vadd.f32 %v9092_v3, %v9091_v8  ;;  %v9103_v8 = vld [vmem:[#allocation35_spill] sm:$0xff]  ;;  %v9104_v3 = vld [vmem:[#allocation57_spill] sm:$0xff] }
 0x2e8   :  { %v1721_v41 = vadd.f32 %v7257_v12, %v1659_v0  ;;  %v1662_v13 = vadd.f32 %v1557_v49, %v1088_v35  ;;  %v9093_v35 = vld [vmem:[#allocation51_spill] sm:$0xff]  ;;  %v9095_v49 = vld [vmem:[#allocation33_spill] sm:$0xff] }
 0x2e9   :  { %1772 = vst [vmem:[#allocation2 + $0xe8] sm:$0xff] %v7418_v7  ;;  %v7423_v22 = vadd.f32 %v7237_v34, %v1660_v4  ;;  %v9094_v0 = vld [vmem:[#allocation71_spill] sm:$0xff] }
 0x2ea   :  { %1774 = vst.msk [vmem:[#allocation2 + $0xf8] sm:$0xff] %vm1745_vm3, %v1721_v41  ;;  %v7427_v25 = vadd.f32 %v7241_v19, %v1662_v13  ;;  %v1147_v48 = vadd.f32 %v9094_v0, %v9093_v35  ;;  %v9096_v41 = vld [vmem:[#allocation54_spill] sm:$0xff] }
 0x2eb   :  { %1775 = vst [vmem:[#allocation2 + $0x100] sm:$0xff] %v7423_v22  ;;  %v982_v13 = vadd.f32 %v9096_v41, %v9095_v49 }
 0x2ec   :  { %1777 = vst [vmem:[#allocation2 + $0x110] sm:$0xff] %v7427_v25  ;;  %v1501_v24 = vpop.f32.mrf.mxu2 }
 0x2ed   :  { %v1661_v18 = vadd.f32 %v1501_v24, %v1032_v59  ;;  %v1613_v51 = vpop.f32.mrf.mxu3  ;;  %v9097_v59 = vld [vmem:[#allocation53_spill] sm:$0xff] }
 0x2ee   :  { %v1663_v53 = vadd.f32 %v1613_v51, %v1144_v32  ;;  %v1448_v58 = vpop.f32.mrf.mxu0  ;;  %v1094_v16 = vadd.f32 %v9098_v20, %v9097_v59 }
 0x2ef   :  { %v7440_v50 = vadd.f32 %v7252_v6, %v1661_v18  ;;  %v1664_v54 = vadd.f32 %v1448_v58, %v979_v5  ;;  %v1560_v11 = vpop.f32.mrf.mxu1 }
 0x2f0   :  { %v1725_v1 = vadd.f32 %v7257_v12, %v1663_v53  ;;  %v1666_v28 = vadd.f32 %v1560_v11, %v1091_v55  ;;  %v9099_v55 = vld [vmem:[#allocation34_spill] sm:$0xff]  ;;  %v9100_v53 = vld [vmem:[#allocation56_spill] sm:$0xff]  ;;  %v9102_v11 = vld [vmem:[#allocation73_spill] sm:$0xff] }
 0x2f1   :  { %1776 = vst [vmem:[#allocation2 + $0x108] sm:$0xff] %v7440_v50  ;;  %v7445_v17 = vadd.f32 %v7237_v34, %v1664_v54  ;;  %v1038_v58 = vadd.f32 %v9100_v53, %v9099_v55  ;;  %v9101_v54 = vld [vmem:[#allocation55_spill] sm:$0xff] }
 0x2f2   :  { %1778 = vst.msk [vmem:[#allocation2 + $0x118] sm:$0xff] %vm1745_vm3, %v1725_v1  ;;  %v7449_v9 = vadd.f32 %v7241_v19, %v1666_v28  ;;  %v1150_v1 = vadd.f32 %v9102_v11, %v9101_v54  ;;  %v9110_v55 = vld [vmem:[#allocation75_spill] sm:$0xff]  ;;  %v9111_v54 = vld [vmem:[#allocation37_spill] sm:$0xff] }
 0x2f3   :  { %1779 = vst [vmem:[#allocation2 + $0x120] sm:$0xff] %v7445_v17  ;;  %v9112_v11 = vld [vmem:[#allocation61_spill] sm:$0xff] }
 0x2f4   :  { %1781 = vst [vmem:[#allocation2 + $0x130] sm:$0xff] %v7449_v9  ;;  %v1504_v4 = vpop.f32.mrf.mxu2 }
 0x2f5   :  { %v1665_v52 = vadd.f32 %v1504_v4, %v1035_v14  ;;  %v1616_v15 = vpop.f32.mrf.mxu3  ;;  %v985_v14 = vadd.f32 %v9104_v3, %v9103_v8  ;;  %v9106_v4 = vld [vmem:[#allocation74_spill] sm:$0xff] }
 0x2f6   :  { %v1667_v32 = vadd.f32 %v1616_v15, %v1147_v48  ;;  %v1451_v24 = vpop.f32.mrf.mxu0  ;;  %v9105_v48 = vld [vmem:[#allocation58_spill] sm:$0xff] }
 0x2f7   :  { %v7462_v63 = vadd.f32 %v7252_v6, %v1665_v52  ;;  %v1668_v27 = vadd.f32 %v1451_v24, %v982_v13  ;;  %v1563_v5 = vpop.f32.mrf.mxu1  ;;  %v1097_v49 = vadd.f32 %v9106_v4, %v9105_v48  ;;  %v9113_v3 = vld [vmem:[#allocation62_spill] sm:$0xff] }
 0x2f8   :  { %v1729_v18 = vadd.f32 %v7257_v12, %v1667_v32  ;;  %v1670_v51 = vadd.f32 %v1563_v5, %v1094_v16  ;;  %v9108_v5 = vld [vmem:[#allocation59_spill] sm:$0xff] }
 0x2f9   :  { %1780 = vst [vmem:[#allocation2 + $0x128] sm:$0xff] %v7462_v63  ;;  %v7467_v46 = vadd.f32 %v7237_v34, %v1668_v27  ;;  %v9107_v27 = vld [vmem:[#allocation36_spill] sm:$0xff] }
 0x2fa   :  { %1782 = vst.msk [vmem:[#allocation2 + $0x138] sm:$0xff] %vm1745_vm3, %v1729_v18  ;;  %v7471_v47 = vadd.f32 %v7241_v19, %v1670_v51  ;;  %v1041_v18 = vadd.f32 %v9108_v5, %v9107_v27  ;;  %v9109_v51 = vld [vmem:[#allocation60_spill] sm:$0xff]  ;;  %v9116_v27 = vld [vmem:[#allocation63_spill] sm:$0xff] }
 0x2fb   :  { %1783 = vst [vmem:[#allocation2 + $0x140] sm:$0xff] %v7467_v46  ;;  %v1153_v53 = vadd.f32 %v9110_v55, %v9109_v51 }
 0x2fc   :  { %1785 = vst [vmem:[#allocation2 + $0x150] sm:$0xff] %v7471_v47  ;;  %v1507_v28 = vpop.f32.mrf.mxu2 }
 0x2fd   :  { %v1669_v35 = vadd.f32 %v1507_v28, %v1038_v58  ;;  %v1619_v0 = vpop.f32.mrf.mxu3 }
 0x2fe   :  { %v1671_v41 = vadd.f32 %v1619_v0, %v1150_v1  ;;  %v1454_v13 = vpop.f32.mrf.mxu0  ;;  %v988_v1 = vadd.f32 %v9112_v11, %v9111_v54 }
 0x2ff   :  { %v7484_v52 = vadd.f32 %v7252_v6, %v1669_v35  ;;  %v1672_v15 = vadd.f32 %v1454_v13, %v985_v14  ;;  %v1566_v59 = vpop.f32.mrf.mxu1  ;;  %v9114_v14 = vld [vmem:[#allocation76_spill] sm:$0xff] }
 0x300   :  { %v1733_v20 = vadd.f32 %v7257_v12, %v1671_v41  ;;  %v1674_v16 = vadd.f32 %v1566_v59, %v1097_v49  ;;  %v1100_v35 = vadd.f32 %v9114_v14, %v9113_v3  ;;  %v1826_v3 = vld [vmem:[#allocation2 + $0xf8] sm:$0xff] }
 0x301   :  { %1784 = vst [vmem:[#allocation2 + $0x148] sm:$0xff] %v7484_v52  ;;  %v7489_v32 = vadd.f32 %v7237_v34, %v1672_v15  ;;  %v1834_v11 = vld [vmem:[#allocation2 + $0x138] sm:$0xff] }
 0x302   :  { %1786 = vst.msk [vmem:[#allocation2 + $0x158] sm:$0xff] %vm1745_vm3, %v1733_v20  ;;  %v7493_v24 = vadd.f32 %v7241_v19, %v1674_v16  ;;  %v9115_v16 = vld [vmem:[#allocation38_spill] sm:$0xff]  ;;  %v9118_v14 = vld [vmem:[#allocation77_spill] sm:$0xff] }
 0x303   :  { %1787 = vst [vmem:[#allocation2 + $0x160] sm:$0xff] %v7489_v32  ;;  %v1044_v5 = vadd.f32 %v9116_v27, %v9115_v16  ;;  %v2417_v16 = vld [vmem:[#allocation11 + $0x878] sm:$0xff]  ;;  %v2414_v27 = vld [vmem:[#allocation11 + $0x860] sm:$0xff] }
 0x304   :  { %1789 = vst [vmem:[#allocation2 + $0x170] sm:$0xff] %v7493_v24  ;;  %v1510_v58 = vpop.f32.mrf.mxu2 }
 0x305   :  { %v1673_v28 = vadd.f32 %v1510_v58, %v1041_v18  ;;  %v1622_v8 = vpop.f32.mrf.mxu3  ;;  %v9117_v18 = vld [vmem:[#allocation64_spill] sm:$0xff] }
 0x306   :  { %v1675_v0 = vadd.f32 %v1622_v8, %v1153_v53  ;;  %v1457_v48 = vpop.f32.mrf.mxu0  ;;  %v1156_v51 = vadd.f32 %v7233_v31, %v9117_v18  ;;  %v7564_v8 = vld [vmem:[#allocation9 + $0x28] sm:$0xff] }
 0x307   :  { %v7506_v4 = vadd.f32 %v7252_v6, %v1673_v28  ;;  %v1676_v49 = vadd.f32 %v1457_v48, %v988_v1  ;;  %v1569_v41 = vpop.f32.mrf.mxu1  ;;  %v1830_v1 = vld [vmem:[#allocation2 + $0x118] sm:$0xff]  ;;  %v7562_v28 = vld [vmem:[#allocation9] sm:$0xff] }
 0x308   :  { %v1737_v13 = vadd.f32 %v7257_v12, %v1675_v0  ;;  %v1678_v15 = vadd.f32 %v1569_v41, %v1100_v35  ;;  %v1822_v35 = vld [vmem:[#allocation2 + $0xd8] sm:$0xff] }
 0x309   :  { %1788 = vst [vmem:[#allocation2 + $0x168] sm:$0xff] %v7506_v4  ;;  %v7511_v59 = vadd.f32 %v7237_v34, %v1676_v49  ;;  %v1818_v0 = vld [vmem:[#allocation2 + $0xb8] sm:$0xff] }
 0x30a   :  { %1790 = vst.msk [vmem:[#allocation2 + $0x178] sm:$0xff] %vm1745_vm3, %v1737_v13  ;;  %v7515_v20 = vadd.f32 %v7241_v19, %v1678_v15  ;;  %v1814_v48 = vld [vmem:[#allocation2 + $0x98] sm:$0xff] }
 0x30b   :  { %1791 = vst [vmem:[#allocation2 + $0x180] sm:$0xff] %v7511_v59  ;;  %1871 = vmatpush.msra.mxu0 %v7511_v59  ;;  %v1810_v49 = vld [vmem:[#allocation2 + $0x78] sm:$0xff] }
 0x30c   :  { %1793 = vst [vmem:[#allocation2 + $0x190] sm:$0xff] %v7515_v20  ;;  %v1513_v55 = vpop.f32.mrf.mxu2  ;;  %2240 = vmatpush.msrb.mxu1 %v7515_v20  ;;  %v7579_v41 = vld [vmem:[#allocation9 + $0x8] sm:$0xff] }
 0x30d   :  { %v1677_v34 = vadd.f32 %v1513_v55, %v1044_v5  ;;  %v1625_v53 = vpop.f32.mrf.mxu3  ;;  %1872 = vmatpush.msra.mxu0 %v7489_v32  ;;  %v1806_v13 = vld [vmem:[#allocation2 + $0x58] sm:$0xff] }
 0x30e   :  { %v1679_v19 = vadd.f32 %v1625_v53, %v1156_v51  ;;  %2241 = vmatpush.msrb.mxu1 %v7493_v24  ;;  %v1798_v15 = vld [vmem:[#allocation2 + $0x18] sm:$0xff]  ;;  %v2402_v53 = vld [vmem:[#allocation11 + $0x800] sm:$0xff] }
 0x30f   :  { %v7528_v58 = vadd.f32 %v7252_v6, %v1677_v34  ;;  %1873 = vmatpush.msra.mxu0 %v7467_v46  ;;  %v2411_v5 = vld [vmem:[#allocation11 + $0x848] sm:$0xff]  ;;  %v2408_v55 = vld [vmem:[#allocation11 + $0x830] sm:$0xff]  ;;  %v2405_v34 = vld [vmem:[#allocation11 + $0x818] sm:$0xff] }
 0x310   :  { %v1741_v54 = vadd.f32 %v7257_v12, %v1679_v19  ;;  %2242 = vmatpush.msrb.mxu1 %v7471_v47  ;;  %v1838_v12 = vld [vmem:[#allocation2 + $0x158] sm:$0xff] }
 0x311   :  { %1792 = vst [vmem:[#allocation2 + $0x188] sm:$0xff] %v7528_v58  ;;  %1874 = vmatpush.msra.mxu0 %v7445_v17  ;;  %1903 = vmatpush.msra.mxu2 %v7528_v58  ;;  %v1842_v6 = vld [vmem:[#allocation2 + $0x178] sm:$0xff] }
 0x312   :  { %1794 = vst.msk [vmem:[#allocation2 + $0x198] sm:$0xff] %vm1745_vm3, %v1741_v54  ;;  %2243 = vmatpush.msrb.mxu1 %v7449_v9  ;;  %v2399_v19 = vld [vmem:[#allocation11 + $0x7e8] sm:$0xff] }
 0x313   :  { %1875 = vmatpush.msra.mxu0 %v7423_v22  ;;  %1904 = vmatpush.msra.mxu2 %v7506_v4 }
 0x314   :  { %2244 = vmatpush.msrb.mxu1 %v7427_v25 }
 0x315   :  { %1876 = vmatpush.msra.mxu0 %v7401_v38  ;;  %1905 = vmatpush.msra.mxu2 %v7484_v52 }
 0x316   :  { %2245 = vmatpush.msrb.mxu1 %v7405_v42 }
 0x317   :  { %1877 = vmatpush.msra.mxu0 %v7379_v30  ;;  %1906 = vmatpush.msra.mxu2 %v7462_v63 }
 0x318   :  { %2246 = vmatpush.msrb.mxu1 %v7383_v62 }
 0x319   :  { %v1846_v31 = vld [vmem:[#allocation2 + $0x198] sm:$0xff]  ;;  %1878 = vmatpush.msra.mxu0 %v7357_v2  ;;  %1907 = vmatpush.msra.mxu2 %v7440_v50 }
 0x31a   :  { %2272 = vmatpush.msrb.mxu3 %v1846_v31  ;;  %2247 = vmatpush.msrb.mxu1 %v7361_v57 }
 0x31b   :  { %1879 = vmatpush.msra.mxu0 %v7335_v45  ;;  %1908 = vmatpush.msra.mxu2 %v7418_v7 }
 0x31c   :  { %2273 = vmatpush.msrb.mxu3 %v1842_v6  ;;  %2248 = vmatpush.msrb.mxu1 %v7339_v44 }
 0x31d   :  { %1880 = vmatpush.msra.mxu0 %v7313_v37  ;;  %1909 = vmatpush.msra.mxu2 %v7396_v39 }
 0x31e   :  { %2274 = vmatpush.msrb.mxu3 %v1838_v12  ;;  %2249 = vmatpush.msrb.mxu1 %v7317_v61 }
 0x31f   :  { %1881 = vmatpush.msra.mxu0 %v7291_v10  ;;  %1910 = vmatpush.msra.mxu2 %v7374_v60 }
 0x320   :  { %2275 = vmatpush.msrb.mxu3 %v1834_v11  ;;  %2250 = vmatpush.msrb.mxu1 %v7295_v26 }
 0x321   :  { %1882 = vmatpush.msra.mxu0 %v7269_v21  ;;  %1911 = vmatpush.msra.mxu2 %v7352_v56 }
 0x322   :  { %2276 = vmatpush.msrb.mxu3 %v1830_v1  ;;  %2251 = vmatpush.msrb.mxu1 %v7273_v43 }
 0x323   :  { %1883 = vmatpush.msra.mxu0 %v7244_v33  ;;  %1912 = vmatpush.msra.mxu2 %v7330_v40 }
 0x324   :  { %2277 = vmatpush.msrb.mxu3 %v1826_v3  ;;  %2252 = vmatpush.msrb.mxu1 %v9118_v14 }
 0x325   :  { %5886 = vmatmul.msk.f32.vlgmr.msra.gmra.mxu0 %vm1852_vm4, %v7562_v28  ;;  %5916 = vmatmul.msk.f32.vlgmr.msrb.gmra.mxu1 %vm1852_vm4, %v7564_v8 }
 0x326   :  { %2278 = vmatpush.msrb.mxu3 %v1822_v35  ;;  %1935 = vmatpush.msrb.mxu0 %v7515_v20  ;;  %v2420_v20 = vld [vmem:[#allocation11 + $0x890] sm:$0xff] }
 0x327   :  { %1913 = vmatpush.msra.mxu2 %v7308_v29 }
 0x328   :  { %2279 = vmatpush.msrb.mxu3 %v1818_v0  ;;  %1936 = vmatpush.msrb.mxu0 %v7493_v24  ;;  %v7584_v24 = vld [vmem:[#allocation9 + $0x30] sm:$0xff] }
 0x329   :  { %1914 = vmatpush.msra.mxu2 %v7286_v23 }
 0x32a   :  { %2280 = vmatpush.msrb.mxu3 %v1814_v48  ;;  %1937 = vmatpush.msrb.mxu0 %v7471_v47  ;;  %v1802_v47 = vld [vmem:[#allocation2 + $0x38] sm:$0xff] }
 0x32b   :  { %1915 = vmatpush.msra.mxu2 %v7264_v36 }
 0x32c   :  { %2281 = vmatpush.msrb.mxu3 %v1810_v49  ;;  %5891 = vmatmul.msk.f32.vlgmr.msra.gmra.mxu2 %vm1852_vm4, %v7562_v28 }
 0x32d   :  { %1938 = vmatpush.msrb.mxu0 %v7449_v9  ;;  %1967 = vmatpush.msrb.mxu2 %v1846_v31  ;;  %v7595_v9 = vld [vmem:[#allocation9 + $0x10] sm:$0xff]  ;;  %v2442_v31 = vld [vmem:[#allocation11 + $0x940] sm:$0xff] }
 0x32e   :  { %2282 = vmatpush.msrb.mxu3 %v1806_v13  ;;  %5887 = vmatmul.msk.f32.gmra.mxu0 %vm1852_vm4, %v7579_v41 }
 0x32f   :  { %1939 = vmatpush.msrb.mxu0 %v7427_v25  ;;  %1968 = vmatpush.msrb.mxu2 %v1842_v6  ;;  %v7600_v25 = vld [vmem:[#allocation9 + $0x38] sm:$0xff] }
 0x330   :  { %2283 = vmatpush.msrb.mxu3 %v1802_v47  ;;  %5917 = vmatmul.msk.f32.gmra.mxu1 %vm1852_vm4, %v7584_v24 }
 0x331   :  { %1940 = vmatpush.msrb.mxu0 %v7405_v42  ;;  %1969 = vmatpush.msrb.mxu2 %v1838_v12  ;;  %v2444_v42 = vld [vmem:[#allocation11 + $0x950] sm:$0xff]  ;;  %v2439_v12 = vld [vmem:[#allocation11 + $0x928] sm:$0xff] }
 0x332   :  { %2284 = vmatpush.msrb.mxu3 %v1798_v15 }
 0x333   :  { %5921 = vmatmul.msk.f32.vlgmr.msrb.gmra.mxu3 %vm1852_vm4, %v7564_v8  ;;  %1941 = vmatpush.msrb.mxu0 %v7383_v62  ;;  %v2401_v62 = vld [vmem:[#allocation11 + $0x7f8] sm:$0xff] }
 0x334   :  { %1970 = vmatpush.msrb.mxu2 %v1834_v11 }
 0x335   :  { %5892 = vmatmul.msk.f32.gmra.mxu2 %vm1852_vm4, %v7579_v41  ;;  %1942 = vmatpush.msrb.mxu0 %v7361_v57  ;;  %v7611_v57 = vld [vmem:[#allocation9 + $0x18] sm:$0xff] }
 0x336   :  { %1971 = vmatpush.msrb.mxu2 %v1830_v1  ;;  %5888 = vmatmul.msk.f32.gmra.mxu0 %vm1852_vm4, %v7595_v9  ;;  %v2436_v1 = vld [vmem:[#allocation11 + $0x910] sm:$0xff] }
 0x337   :  { %1943 = vmatpush.msrb.mxu0 %v7339_v44  ;;  %v7616_v44 = vld [vmem:[#allocation9 + $0x40] sm:$0xff] }
 0x338   :  { %1972 = vmatpush.msrb.mxu2 %v1826_v3  ;;  %5918 = vmatmul.msk.f32.gmra.mxu1 %vm1852_vm4, %v7600_v25  ;;  %v2430_v3 = vld [vmem:[#allocation11 + $0x8e0] sm:$0xff] }
 0x339   :  { %1944 = vmatpush.msrb.mxu0 %v7317_v61  ;;  %v2422_v61 = vld [vmem:[#allocation11 + $0x8a0] sm:$0xff] }
 0x33a   :  { %1973 = vmatpush.msrb.mxu2 %v1822_v35 }
 0x33b   :  { %5922 = vmatmul.msk.f32.gmra.mxu3 %vm1852_vm4, %v7584_v24  ;;  %1945 = vmatpush.msrb.mxu0 %v7295_v26  ;;  %v7630_v26 = vld [vmem:[#allocation9 + $0x48] sm:$0xff] }
 0x33c   :  { %1974 = vmatpush.msrb.mxu2 %v1818_v0  ;;  %v2427_v0 = vld [vmem:[#allocation11 + $0x8c8] sm:$0xff] }
 0x33d   :  { %5893 = vmatmul.msk.f32.gmra.mxu2 %vm1852_vm4, %v7595_v9  ;;  %1946 = vmatpush.msrb.mxu0 %v7273_v43  ;;  %v1851_v43 = vld [vmem:[#allocation9 + $0x20] sm:$0xff] }
 0x33e   :  { %1975 = vmatpush.msrb.mxu2 %v1814_v48  ;;  %5889 = vmatmul.msk.f32.gmra.mxu0 %vm1852_vm4, %v7611_v57  ;;  %v2456_v48 = vld [vmem:[#allocation11 + $0x9b0] sm:$0xff] }
 0x33f   :  { %1947 = vmatpush.msrb.mxu0 %v9118_v14 }
 0x340   :  { %1976 = vmatpush.msrb.mxu2 %v1810_v49  ;;  %5919 = vmatmul.msk.f32.gmra.mxu1 %vm1852_vm4, %v7616_v44  ;;  %v2453_v49 = vld [vmem:[#allocation11 + $0x998] sm:$0xff] }
 0x341   :  { %2176 = vmatpush.msra.mxu0 %v7511_v59  ;;  %v2423_v59 = vld [vmem:[#allocation11 + $0x8a8] sm:$0xff] }
 0x342   :  { %1977 = vmatpush.msrb.mxu2 %v1806_v13 }
 0x343   :  { %5923 = vmatmul.msk.f32.gmra.mxu3 %vm1852_vm4, %v7600_v25  ;;  %2177 = vmatpush.msra.mxu0 %v7489_v32  ;;  %v2446_v32 = vld [vmem:[#allocation11 + $0x960] sm:$0xff] }
 0x344   :  { %1978 = vmatpush.msrb.mxu2 %v1802_v47  ;;  %v2344_v47 = vld [vmem:[#allocation11 + $0x630] sm:$0xff] }
 0x345   :  { %2178 = vmatpush.msra.mxu0 %v7467_v46  ;;  %5894 = vmatmul.msk.f32.gmra.mxu2 %vm1852_vm4, %v7611_v57  ;;  %v2432_v46 = vld [vmem:[#allocation11 + $0x8f0] sm:$0xff] }
 0x346   :  { %1979 = vmatpush.msrb.mxu2 %v1798_v15  ;;  %5890 = vmatmul.msk.f32.gmra.mxu0 %vm1852_vm4, %v1851_v43  ;;  %v2450_v15 = vld [vmem:[#allocation11 + $0x980] sm:$0xff] }
 0x347   :  { %2179 = vmatpush.msra.mxu0 %v7445_v17  ;;  %v2438_v17 = vld [vmem:[#allocation11 + $0x920] sm:$0xff] }
 0x348   :  { %2208 = vmatpush.msra.mxu2 %v7528_v58  ;;  %5920 = vmatmul.msk.f32.gmra.mxu1 %vm1852_vm4, %v7630_v26  ;;  %v2445_v58 = vld [vmem:[#allocation11 + $0x958] sm:$0xff] }
 0x349   :  { %2180 = vmatpush.msra.mxu0 %v7423_v22  ;;  %v2441_v22 = vld [vmem:[#allocation11 + $0x938] sm:$0xff] }
 0x34a   :  { %2209 = vmatpush.msra.mxu2 %v7506_v4  ;;  %v2426_v4 = vld [vmem:[#allocation11 + $0x8c0] sm:$0xff] }
 0x34b   :  { %5924 = vmatmul.msk.f32.gmra.mxu3 %vm1852_vm4, %v7616_v44  ;;  %2181 = vmatpush.msra.mxu0 %v7401_v38  ;;  %v2455_v38 = vld [vmem:[#allocation11 + $0x9a8] sm:$0xff] }
 0x34c   :  { %2210 = vmatpush.msra.mxu2 %v7484_v52  ;;  %2581 = vmatpush.msra.mxu3 %v2455_v38  ;;  %v2429_v52 = vld [vmem:[#allocation11 + $0x8d8] sm:$0xff]  ;;  %v2403_v38 = vld [vmem:[#allocation11 + $0x808] sm:$0xff] }
 0x34d   :  { %2182 = vmatpush.msra.mxu0 %v7379_v30  ;;  %5895 = vmatmul.msk.f32.gmra.mxu2 %vm1852_vm4, %v1851_v43  ;;  %v2404_v30 = vld [vmem:[#allocation11 + $0x810] sm:$0xff] }
 0x34e   :  { %2211 = vmatpush.msra.mxu2 %v7462_v63  ;;  %5896 = vmatmul.msk.f32.vlgmr.msrb.gmra.mxu0 %vm1852_vm4, %v7562_v28  ;;  %v2435_v63 = vld [vmem:[#allocation11 + $0x908] sm:$0xff] }
 0x34f   :  { %2183 = vmatpush.msra.mxu0 %v7357_v2  ;;  %v2410_v2 = vld [vmem:[#allocation11 + $0x840] sm:$0xff] }
 0x350   :  { %2212 = vmatpush.msra.mxu2 %v7440_v50  ;;  %v2449_v50 = vld [vmem:[#allocation11 + $0x978] sm:$0xff] }
 0x351   :  { %2184 = vmatpush.msra.mxu0 %v7335_v45  ;;  %v2416_v45 = vld [vmem:[#allocation11 + $0x870] sm:$0xff] }
 0x352   :  { %2213 = vmatpush.msra.mxu2 %v7418_v7  ;;  %v2452_v7 = vld [vmem:[#allocation11 + $0x990] sm:$0xff] }
 0x353   :  { %5925 = vmatmul.msk.f32.gmra.mxu3 %vm1852_vm4, %v7630_v26  ;;  %2185 = vmatpush.msra.mxu0 %v7313_v37  ;;  %v2425_v37 = vld [vmem:[#allocation11 + $0x8b8] sm:$0xff] }
 0x354   :  { %2214 = vmatpush.msra.mxu2 %v7396_v39  ;;  %v2398_v39 = vld [vmem:[#allocation11 + $0x7e0] sm:$0xff]  ;;  %2582 = vmatpush.msra.mxu3 %v2452_v7  ;;  %v2389_v7 = vld [vmem:[#allocation11 + $0x798] sm:$0xff] }
 0x355   :  { %2186 = vmatpush.msra.mxu0 %v7291_v10  ;;  %5901 = vmatmul.msk.f32.vlgmr.msrb.gmra.mxu2 %vm1852_vm4, %v7562_v28  ;;  %v2437_v10 = vld [vmem:[#allocation11 + $0x918] sm:$0xff] }
 0x356   :  { %2215 = vmatpush.msra.mxu2 %v7374_v60  ;;  %5897 = vmatmul.msk.f32.gmra.mxu0 %vm1852_vm4, %v7579_v41  ;;  %v2407_v60 = vld [vmem:[#allocation11 + $0x828] sm:$0xff]  ;;  %v2433_v28 = vld [vmem:[#allocation11 + $0x8f8] sm:$0xff] }
 0x357   :  { %2187 = vmatpush.msra.mxu0 %v7269_v21  ;;  %v2443_v21 = vld [vmem:[#allocation11 + $0x948] sm:$0xff]  ;;  %2583 = vmatpush.msra.mxu3 %v2449_v50  ;;  %v2400_v50 = vld [vmem:[#allocation11 + $0x7f0] sm:$0xff] }
 0x358   :  { %2216 = vmatpush.msra.mxu2 %v7352_v56  ;;  %2537 = vmatpush.msra.mxu1 %v2443_v21  ;;  %v2413_v56 = vld [vmem:[#allocation11 + $0x858] sm:$0xff]  ;;  %v2338_v21 = vld [vmem:[#allocation11 + $0x600] sm:$0xff] }
 0x359   :  { %2188 = vmatpush.msra.mxu0 %v7244_v33  ;;  %v2440_v33 = vld [vmem:[#allocation11 + $0x930] sm:$0xff]  ;;  %2584 = vmatpush.msra.mxu3 %v2446_v32  ;;  %v2137_v32 = vld [vmem:[#allocation11 + $0x468] sm:$0xff] }
 0x35a   :  { %2217 = vmatpush.msra.mxu2 %v7330_v40  ;;  %2538 = vmatpush.msra.mxu1 %v2440_v33  ;;  %v2419_v40 = vld [vmem:[#allocation11 + $0x888] sm:$0xff] }
 0x35b   :  { %2709 = vmatpush.msrb.mxu3 %v2456_v48  ;;  %v2122_v48 = vld [vmem:[#allocation11 + $0x3f0] sm:$0xff] }
 0x35c   :  { %2218 = vmatpush.msra.mxu2 %v7308_v29  ;;  %v2434_v29 = vld [vmem:[#allocation11 + $0x900] sm:$0xff]  ;;  %2539 = vmatpush.msra.mxu1 %v2437_v10  ;;  %v2415_v10 = vld [vmem:[#allocation11 + $0x868] sm:$0xff] }
 0x35d   :  { %5902 = vmatmul.msk.f32.gmra.mxu2 %vm1852_vm4, %v7579_v41  ;;  %v2347_v41 = vld [vmem:[#allocation11 + $0x648] sm:$0xff]  ;;  %2710 = vmatpush.msrb.mxu3 %v2453_v49  ;;  %v2302_v49 = vld [vmem:[#allocation11 + $0x4e0] sm:$0xff] }
 0x35e   :  { %2219 = vmatpush.msra.mxu2 %v7286_v23  ;;  %5898 = vmatmul.msk.f32.gmra.mxu0 %vm1852_vm4, %v7595_v9  ;;  %v2431_v23 = vld [vmem:[#allocation11 + $0x8e8] sm:$0xff] }
 0x35f   :  { %2540 = vmatpush.msra.mxu1 %v2434_v29  ;;  %2473 = vmatpush.msrb.mxu0 %v2347_v41  ;;  %v2335_v29 = vld [vmem:[#allocation11 + $0x5e8] sm:$0xff]  ;;  %v2368_v41 = vld [vmem:[#allocation11 + $0x6f0] sm:$0xff] }
 0x360   :  { %2220 = vmatpush.msra.mxu2 %v7264_v36  ;;  %v2428_v36 = vld [vmem:[#allocation11 + $0x8d0] sm:$0xff]  ;;  %2711 = vmatpush.msrb.mxu3 %v2450_v15  ;;  %v2365_v15 = vld [vmem:[#allocation11 + $0x6d8] sm:$0xff] }
 0x361   :  { %2541 = vmatpush.msra.mxu1 %v2431_v23  ;;  %2474 = vmatpush.msrb.mxu0 %v2344_v47  ;;  %v2119_v47 = vld [vmem:[#allocation11 + $0x3d8] sm:$0xff] }
 0x363   :  { %2542 = vmatpush.msra.mxu1 %v2428_v36  ;;  %v2412_v36 = vld [vmem:[#allocation11 + $0x850] sm:$0xff] }
 0x365   :  { %5903 = vmatmul.msk.f32.gmra.mxu2 %vm1852_vm4, %v7595_v9  ;;  %2543 = vmatpush.msra.mxu1 %v2425_v37  ;;  %v2421_v9 = vld [vmem:[#allocation11 + $0x898] sm:$0xff]  ;;  %v2332_v37 = vld [vmem:[#allocation11 + $0x5d0] sm:$0xff] }
 0x366   :  { %5899 = vmatmul.msk.f32.gmra.mxu0 %vm1852_vm4, %v7611_v57 }
 0x367   :  { %2544 = vmatpush.msra.mxu1 %v2422_v61  ;;  %v2409_v61 = vld [vmem:[#allocation11 + $0x838] sm:$0xff] }
 0x369   :  { %2545 = vmatpush.msra.mxu1 %v2419_v40 }
 0x36b   :  { %2546 = vmatpush.msra.mxu1 %v2416_v45  ;;  %v2329_v45 = vld [vmem:[#allocation11 + $0x5b8] sm:$0xff] }
 0x36d   :  { %5904 = vmatmul.msk.f32.gmra.mxu2 %vm1852_vm4, %v7611_v57  ;;  %2547 = vmatpush.msra.mxu1 %v2413_v56  ;;  %v2447_v57 = vld [vmem:[#allocation11 + $0x968] sm:$0xff] }
 0x36e   :  { %5900 = vmatmul.msk.f32.gmra.mxu0 %vm1852_vm4, %v1851_v43  ;;  %2712 = vmatpush.msrb.mxu3 %v2447_v57  ;;  %v2395_v56 = vld [vmem:[#allocation11 + $0x7c8] sm:$0xff] }
 0x36f   :  { %2548 = vmatpush.msra.mxu1 %v2410_v2  ;;  %2505 = vmatpush.msrb.mxu2 %v2395_v56  ;;  %v2406_v2 = vld [vmem:[#allocation11 + $0x820] sm:$0xff] }
 0x371   :  { %2549 = vmatpush.msra.mxu1 %v2407_v60 }
 0x373   :  { %2550 = vmatpush.msra.mxu1 %v2404_v30  ;;  %v2326_v30 = vld [vmem:[#allocation11 + $0x5a0] sm:$0xff] }
 0x375   :  { %5905 = vmatmul.msk.f32.gmra.mxu2 %vm1852_vm4, %v1851_v43  ;;  %2551 = vmatpush.msra.mxu1 %v2401_v62  ;;  %v2418_v43 = vld [vmem:[#allocation11 + $0x880] sm:$0xff]  ;;  %v2392_v62 = vld [vmem:[#allocation11 + $0x7b0] sm:$0xff] }
 0x376   :  { %5906 = vmatmul.msk.f32.vlgmr.msra.gmra.mxu0 %vm1852_vm4, %v7564_v8  ;;  %2506 = vmatpush.msrb.mxu2 %v2392_v62  ;;  %v2353_v62 = vld [vmem:[#allocation11 + $0x678] sm:$0xff] }
 0x377   :  { %2552 = vmatpush.msra.mxu1 %v2398_v39 }
 0x378   :  { %2507 = vmatpush.msrb.mxu2 %v2389_v7  ;;  %v2339_v7 = vld [vmem:[#allocation11 + $0x608] sm:$0xff] }
 0x379   :  { %2665 = vmatpush.msrb.mxu1 %v2444_v42  ;;  %v2323_v42 = vld [vmem:[#allocation11 + $0x588] sm:$0xff] }
 0x37b   :  { %2666 = vmatpush.msrb.mxu1 %v2441_v22 }
 0x37d   :  { %5911 = vmatmul.msk.f32.vlgmr.msra.gmra.mxu2 %vm1852_vm4, %v7564_v8  ;;  %2667 = vmatpush.msrb.mxu1 %v2438_v17  ;;  %v2320_v17 = vld [vmem:[#allocation11 + $0x570] sm:$0xff] }
 0x37e   :  { %5907 = vmatmul.msk.f32.gmra.mxu0 %vm1852_vm4, %v7584_v24 }
 0x37f   :  { %2668 = vmatpush.msrb.mxu1 %v2435_v63  ;;  %v2386_v63 = vld [vmem:[#allocation11 + $0x780] sm:$0xff] }
 0x380   :  { %2508 = vmatpush.msrb.mxu2 %v2386_v63  ;;  %v2101_v63 = vld [vmem:[#allocation11 + $0x348] sm:$0xff] }
 0x381   :  { %2669 = vmatpush.msrb.mxu1 %v2432_v46 }
 0x383   :  { %2670 = vmatpush.msrb.mxu1 %v2429_v52  ;;  %v2317_v52 = vld [vmem:[#allocation11 + $0x558] sm:$0xff] }
 0x385   :  { %5912 = vmatmul.msk.f32.gmra.mxu2 %vm1852_vm4, %v7584_v24  ;;  %2671 = vmatpush.msrb.mxu1 %v2426_v4  ;;  %v2424_v24 = vld [vmem:[#allocation11 + $0x8b0] sm:$0xff]  ;;  %v2383_v4 = vld [vmem:[#allocation11 + $0x768] sm:$0xff] }
 0x386   :  { %5908 = vmatmul.msk.f32.gmra.mxu0 %vm1852_vm4, %v7600_v25  ;;  %2509 = vmatpush.msrb.mxu2 %v2383_v4  ;;  %v2098_v4 = vld [vmem:[#allocation11 + $0x330] sm:$0xff] }
 0x387   :  { %2672 = vmatpush.msrb.mxu1 %v2423_v59  ;;  %v2314_v59 = vld [vmem:[#allocation11 + $0x540] sm:$0xff] }
 0x389   :  { %2673 = vmatpush.msrb.mxu1 %v2420_v20 }
 0x38b   :  { %2674 = vmatpush.msrb.mxu1 %v2417_v16  ;;  %v2134_v16 = vld [vmem:[#allocation11 + $0x450] sm:$0xff] }
 0x38d   :  { %5913 = vmatmul.msk.f32.gmra.mxu2 %vm1852_vm4, %v7600_v25  ;;  %2675 = vmatpush.msrb.mxu1 %v2414_v27  ;;  %v2380_v27 = vld [vmem:[#allocation11 + $0x750] sm:$0xff] }
 0x38e   :  { %5909 = vmatmul.msk.f32.gmra.mxu0 %vm1852_vm4, %v7616_v44  ;;  %2510 = vmatpush.msrb.mxu2 %v2380_v27 }
 0x38f   :  { %2676 = vmatpush.msrb.mxu1 %v2411_v5  ;;  %v2311_v5 = vld [vmem:[#allocation11 + $0x528] sm:$0xff] }
 0x391   :  { %2677 = vmatpush.msrb.mxu1 %v2408_v55 }
 0x393   :  { %2678 = vmatpush.msrb.mxu1 %v2405_v34  ;;  %v2131_v34 = vld [vmem:[#allocation11 + $0x438] sm:$0xff] }
 0x395   :  { %5914 = vmatmul.msk.f32.gmra.mxu2 %vm1852_vm4, %v7616_v44  ;;  %2679 = vmatpush.msrb.mxu1 %v2402_v53  ;;  %v2341_v44 = vld [vmem:[#allocation11 + $0x618] sm:$0xff] }
 0x396   :  { %5910 = vmatmul.msk.f32.gmra.mxu0 %vm1852_vm4, %v7630_v26  ;;  %v2377_v53 = vld [vmem:[#allocation11 + $0x738] sm:$0xff] }
 0x397   :  { %2680 = vmatpush.msrb.mxu1 %v2399_v19  ;;  %2475 = vmatpush.msrb.mxu0 %v2341_v44  ;;  %v2308_v19 = vld [vmem:[#allocation11 + $0x510] sm:$0xff]  ;;  %v2362_v44 = vld [vmem:[#allocation11 + $0x6c0] sm:$0xff] }
 0x398   :  { %2511 = vmatpush.msrb.mxu2 %v2377_v53  ;;  %v2330_v53 = vld [vmem:[#allocation11 + $0x5c0] sm:$0xff] }
 0x399   :  { %2476 = vmatpush.msrb.mxu0 %v2338_v21  ;;  %v2113_v21 = vld [vmem:[#allocation11 + $0x3a8] sm:$0xff] }
 0x39b   :  { %2477 = vmatpush.msrb.mxu0 %v2335_v29  ;;  %v2110_v29 = vld [vmem:[#allocation11 + $0x390] sm:$0xff] }
 0x39d   :  { %5915 = vmatmul.msk.f32.gmra.mxu2 %vm1852_vm4, %v7630_v26  ;;  %2478 = vmatpush.msrb.mxu0 %v2332_v37  ;;  %v2457_v37 = vld [vmem:[#allocation11 + $0x9b8] sm:$0xff] }
 0x39f   :  { %2479 = vmatpush.msrb.mxu0 %v2329_v45  ;;  %v2454_v45 = vld [vmem:[#allocation11 + $0x9a0] sm:$0xff] }
 0x3a1   :  { %2480 = vmatpush.msrb.mxu0 %v2326_v30  ;;  %v2342_v30 = vld [vmem:[#allocation11 + $0x620] sm:$0xff] }
 0x3a2   :  { %v7701_v18 = vpop.f32.mrf.mxu0  ;;  %v7703_v51 = vpop.f32.mrf.mxu1 }
 0x3a3   :  { %2553 = vmatmul.f32.vlgmr.msra.gmra.mxu1 %v7703_v51  ;;  %2481 = vmatpush.msrb.mxu0 %v2323_v42  ;;  %v2104_v42 = vld [vmem:[#allocation11 + $0x360] sm:$0xff] }
 0x3a4   :  { %2793 = vmatpush.msra.mxu1 %v2445_v58  ;;  %v2128_v58 = vld [vmem:[#allocation11 + $0x420] sm:$0xff] }
 0x3a5   :  { %2482 = vmatpush.msrb.mxu0 %v2320_v17  ;;  %v2350_v17 = vld [vmem:[#allocation11 + $0x660] sm:$0xff] }
 0x3a6   :  { %2794 = vmatpush.msra.mxu1 %v2442_v31 }
 0x3a7   :  { %2483 = vmatpush.msrb.mxu0 %v2317_v52  ;;  %v2448_v52 = vld [vmem:[#allocation11 + $0x970] sm:$0xff] }
 0x3a8   :  { %2795 = vmatpush.msra.mxu1 %v2439_v12  ;;  %v2374_v12 = vld [vmem:[#allocation11 + $0x720] sm:$0xff] }
 0x3a9   :  { %2484 = vmatpush.msrb.mxu0 %v2314_v59  ;;  %2512 = vmatpush.msrb.mxu2 %v2374_v12  ;;  %v2333_v59 = vld [vmem:[#allocation11 + $0x5d8] sm:$0xff]  ;;  %v2327_v12 = vld [vmem:[#allocation11 + $0x5a8] sm:$0xff] }
 0x3aa   :  { %2796 = vmatpush.msra.mxu1 %v2436_v1  ;;  %v2125_v1 = vld [vmem:[#allocation11 + $0x408] sm:$0xff] }
 0x3ab   :  { %v7706_v54 = vpop.f32.mrf.mxu0  ;;  %2485 = vmatpush.msrb.mxu0 %v2311_v5  ;;  %v2095_v5 = vld [vmem:[#allocation11 + $0x318] sm:$0xff] }
 0x3ac   :  { %2797 = vmatpush.msra.mxu1 %v2433_v28  ;;  %v2305_v28 = vld [vmem:[#allocation11 + $0x4f8] sm:$0xff] }
 0x3ad   :  { %v7708_v6 = vpop.f32.mrf.mxu1  ;;  %2486 = vmatpush.msrb.mxu0 %v2308_v19  ;;  %v2092_v19 = vld [vmem:[#allocation11 + $0x300] sm:$0xff] }
 0x3ae   :  { %2556 = vmatmul.f32.gmra.mxu1 %v7708_v6 }
 0x3af   :  { %v7711_v11 = vpop.f32.mrf.mxu2  ;;  %2798 = vmatpush.msra.mxu1 %v2430_v3  ;;  %v2371_v3 = vld [vmem:[#allocation11 + $0x708] sm:$0xff]  ;;  %2487 = vmatpush.msrb.mxu0 %v2305_v28  ;;  %v2324_v28 = vld [vmem:[#allocation11 + $0x590] sm:$0xff] }
 0x3b0   :  { %2513 = vmatpush.msrb.mxu2 %v2371_v3  ;;  %v2387_v3 = vld [vmem:[#allocation11 + $0x788] sm:$0xff] }
 0x3b1   :  { %2799 = vmatpush.msra.mxu1 %v2427_v0  ;;  %2488 = vmatpush.msrb.mxu0 %v2302_v49  ;;  %v2384_v49 = vld [vmem:[#allocation11 + $0x770] sm:$0xff] }
 0x3b2   :  { %2514 = vmatpush.msrb.mxu2 %v2368_v41 }
 0x3b3   :  { %v7713_v8 = vpop.f32.mrf.mxu0  ;;  %2800 = vmatpush.msra.mxu1 %v2424_v24 }
 0x3b4   :  { %2515 = vmatpush.msrb.mxu2 %v2365_v15  ;;  %v2318_v15 = vld [vmem:[#allocation11 + $0x560] sm:$0xff] }
 0x3b5   :  { %v7715_v14 = vpop.f32.mrf.mxu1  ;;  %2801 = vmatpush.msra.mxu1 %v2421_v9  ;;  %v2116_v9 = vld [vmem:[#allocation11 + $0x3c0] sm:$0xff] }
 0x3b6   :  { %v7717_v35 = vpop.f32.mrf.mxu3  ;;  %2559 = vmatmul.f32.gmra.mxu1 %v7715_v14  ;;  %2516 = vmatpush.msrb.mxu2 %v2362_v44  ;;  %v2378_v44 = vld [vmem:[#allocation11 + $0x740] sm:$0xff] }
 0x3b7   :  { %5926 = vmatmul.msk.f32.vlgmr.msra.gmra.mxu3 %vm1745_vm3, %v7717_v35  ;;  %2802 = vmatpush.msra.mxu1 %v2418_v43  ;;  %v2348_v43 = vld [vmem:[#allocation11 + $0x650] sm:$0xff] }
 0x3b8   :  { %v7722_v13 = vpop.f32.mrf.mxu2  ;;  %2601 = vmatpush.msra.mxu0 %v2348_v43  ;;  %2837 = vmatpush.msra.mxu3 %v2457_v37  ;;  %v2138_v43 = vld [vmem:[#allocation11 + $0x470] sm:$0xff] }
 0x3b9   :  { %2803 = vmatpush.msra.mxu1 %v2415_v10  ;;  %v2359_v10 = vld [vmem:[#allocation11 + $0x6a8] sm:$0xff]  ;;  %v2372_v37 = vld [vmem:[#allocation11 + $0x710] sm:$0xff] }
 0x3ba   :  { %2517 = vmatpush.msrb.mxu2 %v2359_v10  ;;  %2838 = vmatpush.msra.mxu3 %v2454_v45  ;;  %v2375_v10 = vld [vmem:[#allocation11 + $0x728] sm:$0xff]  ;;  %v2132_v45 = vld [vmem:[#allocation11 + $0x440] sm:$0xff] }
 0x3bb   :  { %v7724_v25 = vpop.f32.mrf.mxu0  ;;  %2804 = vmatpush.msra.mxu1 %v2412_v36  ;;  %v2345_v36 = vld [vmem:[#allocation11 + $0x638] sm:$0xff] }
 0x3bc   :  { %2602 = vmatpush.msra.mxu0 %v2345_v36  ;;  %v2312_v36 = vld [vmem:[#allocation11 + $0x530] sm:$0xff] }
 0x3bd   :  { %v7726_v26 = vpop.f32.mrf.mxu1  ;;  %2805 = vmatpush.msra.mxu1 %v2409_v61  ;;  %v2356_v61 = vld [vmem:[#allocation11 + $0x690] sm:$0xff] }
 0x3be   :  { %v7728_v33 = vpop.f32.mrf.mxu3  ;;  %2562 = vmatmul.f32.gmra.mxu1 %v7726_v26  ;;  %2518 = vmatpush.msrb.mxu2 %v2356_v61 }
 0x3bf   :  { %5927 = vmatmul.msk.f32.gmra.mxu3 %vm1745_vm3, %v7728_v33  ;;  %2806 = vmatpush.msra.mxu1 %v2406_v2  ;;  %v2107_v2 = vld [vmem:[#allocation11 + $0x378] sm:$0xff] }
 0x3c0   :  { %v7733_v23 = vpop.f32.mrf.mxu2  ;;  %2603 = vmatpush.msra.mxu0 %v2342_v30  ;;  %2519 = vmatpush.msrb.mxu2 %v2353_v62  ;;  %v2129_v30 = vld [vmem:[#allocation11 + $0x428] sm:$0xff]  ;;  %v2309_v62 = vld [vmem:[#allocation11 + $0x518] sm:$0xff] }
 0x3c1   :  { %2807 = vmatpush.msra.mxu1 %v2403_v38  ;;  %v2451_v38 = vld [vmem:[#allocation11 + $0x988] sm:$0xff] }
 0x3c2   :  { %2839 = vmatpush.msra.mxu3 %v2451_v38  ;;  %2604 = vmatpush.msra.mxu0 %v2339_v7  ;;  %v2306_v7 = vld [vmem:[#allocation11 + $0x500] sm:$0xff] }
 0x3c3   :  { %v7735_v40 = vpop.f32.mrf.mxu0  ;;  %2808 = vmatpush.msra.mxu1 %v2400_v50  ;;  %2520 = vmatpush.msrb.mxu2 %v2350_v17  ;;  %v2363_v17 = vld [vmem:[#allocation11 + $0x6c8] sm:$0xff] }
 0x3c4   :  { %2840 = vmatpush.msra.mxu3 %v2448_v52  ;;  %v2303_v52 = vld [vmem:[#allocation11 + $0x4e8] sm:$0xff] }
 0x3c5   :  { %v7737_v60 = vpop.f32.mrf.mxu1 }
 0x3c6   :  { %v7739_v39 = vpop.f32.mrf.mxu3  ;;  %2565 = vmatmul.f32.gmra.mxu1 %v7737_v60 }
 0x3c7   :  { %5928 = vmatmul.msk.f32.gmra.mxu3 %vm1745_vm3, %v7739_v39 }
 0x3c8   :  { %v7744_v22 = vpop.f32.mrf.mxu2 }
 0x3cb   :  { %v7746_v46 = vpop.f32.mrf.mxu0 }
 0x3ce   :  { %v7748_v20 = vpop.f32.mrf.mxu3  ;;  %2681 = vmatmul.f32.vlgmr.msrb.gmra.mxu1 %v7703_v51 }
 0x3cf   :  { %5929 = vmatmul.msk.f32.gmra.mxu3 %vm1745_vm3, %v7748_v20  ;;  %2936 = vmatpush.msrb.mxu1 %v2137_v32  ;;  %v2336_v32 = vld [vmem:[#allocation11 + $0x5f0] sm:$0xff] }
 0x3d0   :  { %v7753_v55 = vpop.f32.mrf.mxu2  ;;  %2605 = vmatpush.msra.mxu0 %v2336_v32  ;;  %v2360_v32 = vld [vmem:[#allocation11 + $0x6b0] sm:$0xff] }
 0x3d1   :  { %2937 = vmatpush.msrb.mxu1 %v2134_v16  ;;  %v2396_v16 = vld [vmem:[#allocation11 + $0x7d0] sm:$0xff] }
 0x3d2   :  { %2633 = vmatpush.msra.mxu2 %v2396_v16  ;;  %2606 = vmatpush.msra.mxu0 %v2333_v59  ;;  %v2120_v59 = vld [vmem:[#allocation11 + $0x3e0] sm:$0xff]  ;;  %v2349_v16 = vld [vmem:[#allocation11 + $0x658] sm:$0xff] }
 0x3d3   :  { %v7755_v31 = vpop.f32.mrf.mxu0  ;;  %2938 = vmatpush.msrb.mxu1 %v2131_v34  ;;  %v2393_v34 = vld [vmem:[#allocation11 + $0x7b8] sm:$0xff] }
 0x3d4   :  { %2634 = vmatpush.msra.mxu2 %v2393_v34  ;;  %2607 = vmatpush.msra.mxu0 %v2330_v53  ;;  %v2117_v34 = vld [vmem:[#allocation11 + $0x3c8] sm:$0xff] }
 0x3d5   :  { %2939 = vmatpush.msrb.mxu1 %v2128_v58 }
 0x3d6   :  { %v7757_v0 = vpop.f32.mrf.mxu3  ;;  %2684 = vmatmul.f32.gmra.mxu1 %v7708_v6  ;;  %2608 = vmatpush.msra.mxu0 %v2327_v12  ;;  %v2114_v12 = vld [vmem:[#allocation11 + $0x3b0] sm:$0xff] }
 0x3d7   :  { %5930 = vmatmul.msk.f32.gmra.mxu3 %vm1745_vm3, %v7757_v0  ;;  %2940 = vmatpush.msrb.mxu1 %v2125_v1  ;;  %v2390_v1 = vld [vmem:[#allocation11 + $0x7a0] sm:$0xff] }
 0x3d8   :  { %v7762_v24 = vpop.f32.mrf.mxu2  ;;  %2635 = vmatpush.msra.mxu2 %v2390_v1  ;;  %2609 = vmatpush.msra.mxu0 %v2324_v28  ;;  %v2343_v1 = vld [vmem:[#allocation11 + $0x628] sm:$0xff]  ;;  %v2111_v28 = vld [vmem:[#allocation11 + $0x398] sm:$0xff] }
 0x3d9   :  { %2941 = vmatpush.msrb.mxu1 %v2122_v48  ;;  %v2321_v48 = vld [vmem:[#allocation11 + $0x578] sm:$0xff] }
 0x3da   :  { %2636 = vmatpush.msra.mxu2 %v2387_v3  ;;  %2610 = vmatpush.msra.mxu0 %v2321_v48  ;;  %v2340_v3 = vld [vmem:[#allocation11 + $0x610] sm:$0xff]  ;;  %v2149_v48 = vld [vmem:[#allocation11 + $0x4c8] sm:$0xff] }
 0x3db   :  { %v7764_v57 = vpop.f32.mrf.mxu0  ;;  %2942 = vmatpush.msrb.mxu1 %v2119_v47  ;;  %v2381_v47 = vld [vmem:[#allocation11 + $0x758] sm:$0xff] }
 0x3dc   :  { %2637 = vmatpush.msra.mxu2 %v2384_v49  ;;  %2611 = vmatpush.msra.mxu0 %v2318_v15  ;;  %v2351_v49 = vld [vmem:[#allocation11 + $0x668] sm:$0xff]  ;;  %v2108_v15 = vld [vmem:[#allocation11 + $0x380] sm:$0xff] }
 0x3dd   :  { %2943 = vmatpush.msrb.mxu1 %v2116_v9 }
 0x3de   :  { %2687 = vmatmul.f32.gmra.mxu1 %v7715_v14  ;;  %2638 = vmatpush.msra.mxu2 %v2381_v47 }
 0x3df   :  { %5931 = vmatmul.msk.f32.vlgmr.msrb.gmra.mxu3 %vm1745_vm3, %v7717_v35  ;;  %2944 = vmatpush.msrb.mxu1 %v2113_v21  ;;  %v2315_v21 = vld [vmem:[#allocation11 + $0x548] sm:$0xff] }
 0x3e0   :  { %v7769_v56 = vpop.f32.mrf.mxu2  ;;  %2639 = vmatpush.msra.mxu2 %v2378_v44  ;;  %2612 = vmatpush.msra.mxu0 %v2315_v21  ;;  %v2146_v44 = vld [vmem:[#allocation11 + $0x4b0] sm:$0xff]  ;;  %v2337_v21 = vld [vmem:[#allocation11 + $0x5f8] sm:$0xff] }
 0x3e1   :  { %2945 = vmatpush.msrb.mxu1 %v2110_v29  ;;  %v2135_v29 = vld [vmem:[#allocation11 + $0x458] sm:$0xff]  ;;  %2980 = vmatpush.msrb.mxu3 %v2149_v48 }
 0x3e2   :  { %2640 = vmatpush.msra.mxu2 %v2375_v10  ;;  %2613 = vmatpush.msra.mxu0 %v2312_v36  ;;  %v2334_v36 = vld [vmem:[#allocation11 + $0x5e0] sm:$0xff] }
 0x3e3   :  { %v7771_v50 = vpop.f32.mrf.mxu0  ;;  %2946 = vmatpush.msrb.mxu1 %v2107_v2  ;;  %v2369_v2 = vld [vmem:[#allocation11 + $0x6f8] sm:$0xff]  ;;  %2981 = vmatpush.msrb.mxu3 %v2146_v44  ;;  %v2367_v44 = vld [vmem:[#allocation11 + $0x6e8] sm:$0xff] }
 0x3e4   :  { %2641 = vmatpush.msra.mxu2 %v2372_v37  ;;  %2614 = vmatpush.msra.mxu0 %v2309_v62  ;;  %v2394_v37 = vld [vmem:[#allocation11 + $0x7c0] sm:$0xff] }
 0x3e5   :  { %2947 = vmatpush.msrb.mxu1 %v2104_v42  ;;  %v2126_v42 = vld [vmem:[#allocation11 + $0x410] sm:$0xff] }
 0x3e6   :  { %2690 = vmatmul.f32.gmra.mxu1 %v7726_v26  ;;  %2642 = vmatpush.msra.mxu2 %v2369_v2  ;;  %v2331_v2 = vld [vmem:[#allocation11 + $0x5c8] sm:$0xff] }
 0x3e7   :  { %5932 = vmatmul.msk.f32.gmra.mxu3 %vm1745_vm3, %v7728_v33  ;;  %2948 = vmatpush.msrb.mxu1 %v2101_v63  ;;  %v2123_v63 = vld [vmem:[#allocation11 + $0x3f8] sm:$0xff] }
 0x3e8   :  { %v7776_v27 = vpop.f32.mrf.mxu2  ;;  %2615 = vmatpush.msra.mxu0 %v2306_v7  ;;  %v2093_v7 = vld [vmem:[#allocation11 + $0x308] sm:$0xff] }
 0x3e9   :  { %2949 = vmatpush.msrb.mxu1 %v2098_v4 }
 0x3ea   :  { %2616 = vmatpush.msra.mxu0 %v2303_v52  ;;  %v2385_v52 = vld [vmem:[#allocation11 + $0x778] sm:$0xff] }
 0x3eb   :  { %v7778_v58 = vpop.f32.mrf.mxu0  ;;  %2950 = vmatpush.msrb.mxu1 %v2095_v5  ;;  %v2357_v5 = vld [vmem:[#allocation11 + $0x698] sm:$0xff] }
 0x3ed   :  { %2951 = vmatpush.msrb.mxu1 %v2092_v19  ;;  %v2354_v19 = vld [vmem:[#allocation11 + $0x680] sm:$0xff] }
 0x3ee   :  { %2693 = vmatmul.f32.gmra.mxu1 %v7737_v60 }
 0x3ef   :  { %5933 = vmatmul.msk.f32.gmra.mxu3 %vm1745_vm3, %v7739_v39 }
 0x3f0   :  { %v7783_v41 = vpop.f32.mrf.mxu2 }
 0x3f3   :  { %v7785_v9 = vpop.f32.mrf.mxu0 }
 0x3f4   :  { %2489 = vmatmul.f32.vlgmr.msrb.gmra.mxu0 %v7785_v9 }
 0x3f5   :  { %2729 = vmatpush.msrb.mxu0 %v2349_v16 }
 0x3f6   :  { %2809 = vmatmul.f32.vlgmr.msra.gmra.mxu1 %v7703_v51  ;;  %v2366_v51 = vld [vmem:[#allocation11 + $0x6e0] sm:$0xff] }
 0x3f7   :  { %5934 = vmatmul.msk.f32.gmra.mxu3 %vm1745_vm3, %v7748_v20  ;;  %3064 = vmatpush.msra.mxu1 %v2138_v43  ;;  %v2397_v43 = vld [vmem:[#allocation11 + $0x7d8] sm:$0xff] }
 0x3f8   :  { %v7791_v61 = vpop.f32.mrf.mxu2  ;;  %2643 = vmatpush.msra.mxu2 %v2366_v51  ;;  %v2096_v51 = vld [vmem:[#allocation11 + $0x320] sm:$0xff] }
 0x3f9   :  { %3065 = vmatpush.msra.mxu1 %v2135_v29  ;;  %v2102_v29 = vld [vmem:[#allocation11 + $0x350] sm:$0xff] }
 0x3fa   :  { %2644 = vmatpush.msra.mxu2 %v2363_v17 }
 0x3fb   :  { %v7793_v38 = vpop.f32.mrf.mxu0  ;;  %3066 = vmatpush.msra.mxu1 %v2132_v45  ;;  %v2099_v45 = vld [vmem:[#allocation11 + $0x338] sm:$0xff] }
 0x3fc   :  { %2492 = vmatmul.f32.gmra.mxu0 %v7793_v38  ;;  %2645 = vmatpush.msra.mxu2 %v2360_v32  ;;  %v2322_v32 = vld [vmem:[#allocation11 + $0x580] sm:$0xff] }
 0x3fd   :  { %3067 = vmatpush.msra.mxu1 %v2129_v30  ;;  %v2140_v30 = vld [vmem:[#allocation11 + $0x480] sm:$0xff] }
 0x3fe   :  { %2812 = vmatmul.f32.gmra.mxu1 %v7708_v6  ;;  %v2346_v6 = vld [vmem:[#allocation11 + $0x640] sm:$0xff]  ;;  %2646 = vmatpush.msra.mxu2 %v2357_v5  ;;  %v2319_v5 = vld [vmem:[#allocation11 + $0x568] sm:$0xff] }
 0x3ff   :  { %5935 = vmatmul.msk.f32.gmra.mxu3 %vm1745_vm3, %v7757_v0  ;;  %3068 = vmatpush.msra.mxu1 %v2126_v42  ;;  %v2391_v42 = vld [vmem:[#allocation11 + $0x7a8] sm:$0xff] }
 0x400   :  { %v7799_v4 = vpop.f32.mrf.mxu2  ;;  %2730 = vmatpush.msrb.mxu0 %v2346_v6  ;;  %2647 = vmatpush.msra.mxu2 %v2354_v19  ;;  %v2316_v6 = vld [vmem:[#allocation11 + $0x550] sm:$0xff] }
 0x401   :  { %2521 = vmatmul.f32.vlgmr.msrb.gmra.mxu2 %v7799_v4  ;;  %3069 = vmatpush.msra.mxu1 %v2123_v63  ;;  %v2325_v63 = vld [vmem:[#allocation11 + $0x598] sm:$0xff]  ;;  %v2376_v19 = vld [vmem:[#allocation11 + $0x730] sm:$0xff] }
 0x402   :  { %2731 = vmatpush.msrb.mxu0 %v2343_v1  ;;  %2648 = vmatpush.msra.mxu2 %v2351_v49  ;;  %v2136_v1 = vld [vmem:[#allocation11 + $0x460] sm:$0xff]  ;;  %v2133_v49 = vld [vmem:[#allocation11 + $0x448] sm:$0xff] }
 0x403   :  { %v7802_v53 = vpop.f32.mrf.mxu0  ;;  %3070 = vmatpush.msra.mxu1 %v2120_v59  ;;  %v2382_v59 = vld [vmem:[#allocation11 + $0x760] sm:$0xff] }
 0x404   :  { %2495 = vmatmul.f32.gmra.mxu0 %v7802_v53  ;;  %2761 = vmatpush.msrb.mxu2 %v2397_v43  ;;  %v2130_v43 = vld [vmem:[#allocation11 + $0x430] sm:$0xff] }
 0x405   :  { %3071 = vmatpush.msra.mxu1 %v2117_v34  ;;  %2732 = vmatpush.msrb.mxu0 %v2340_v3  ;;  %v2379_v34 = vld [vmem:[#allocation11 + $0x748] sm:$0xff]  ;;  %v2370_v3 = vld [vmem:[#allocation11 + $0x700] sm:$0xff] }
 0x406   :  { %2815 = vmatmul.f32.gmra.mxu1 %v7715_v14  ;;  %v2105_v14 = vld [vmem:[#allocation11 + $0x368] sm:$0xff]  ;;  %2762 = vmatpush.msrb.mxu2 %v2394_v37 }
 0x407   :  { %5936 = vmatmul.msk.f32.vlgmr.msra.gmra.mxu3 %vm1745_vm3, %v7717_v35  ;;  %3072 = vmatpush.msra.mxu1 %v2114_v12  ;;  %v2143_v35 = vld [vmem:[#allocation11 + $0x498] sm:$0xff]  ;;  %v2041_v37 = vld [vmem:[#allocation11 + $0x168] sm:$0xff] }
 0x408   :  { %v7808_v47 = vpop.f32.mrf.mxu2  ;;  %2733 = vmatpush.msrb.mxu0 %v2337_v21  ;;  %2982 = vmatpush.msrb.mxu3 %v2143_v35  ;;  %v2373_v12 = vld [vmem:[#allocation11 + $0x718] sm:$0xff]  ;;  %v2304_v35 = vld [vmem:[#allocation11 + $0x4f0] sm:$0xff] }
 0x409   :  { %2524 = vmatmul.f32.gmra.mxu2 %v7808_v47  ;;  %3073 = vmatpush.msra.mxu1 %v2111_v28  ;;  %v2310_v28 = vld [vmem:[#allocation11 + $0x520] sm:$0xff]  ;;  %v2127_v21 = vld [vmem:[#allocation11 + $0x418] sm:$0xff] }
 0x40a   :  { %2734 = vmatpush.msrb.mxu0 %v2334_v36  ;;  %2983 = vmatpush.msrb.mxu3 %v2140_v30  ;;  %v2124_v36 = vld [vmem:[#allocation11 + $0x400] sm:$0xff]  ;;  %v2150_v30 = vld [vmem:[#allocation11 + $0x4d0] sm:$0xff] }
 0x40b   :  { %v7811_v10 = vpop.f32.mrf.mxu0  ;;  %3074 = vmatpush.msra.mxu1 %v2108_v15  ;;  %2763 = vmatpush.msrb.mxu2 %v2391_v42  ;;  %v2118_v42 = vld [vmem:[#allocation11 + $0x3d0] sm:$0xff] }
 0x40c   :  { %2498 = vmatmul.f32.gmra.mxu0 %v7811_v10  ;;  %3108 = vmatpush.msra.mxu3 %v2150_v30  ;;  %v2017_v30 = vld [vmem:[#allocation11 + $0xa8] sm:$0xff] }
 0x40d   :  { %3075 = vmatpush.msra.mxu1 %v2105_v14  ;;  %2735 = vmatpush.msrb.mxu0 %v2331_v2  ;;  %v2307_v14 = vld [vmem:[#allocation11 + $0x508] sm:$0xff] }
 0x40e   :  { %2818 = vmatmul.f32.gmra.mxu1 %v7726_v26  ;;  %v2328_v26 = vld [vmem:[#allocation11 + $0x5b0] sm:$0xff]  ;;  %v2121_v2 = vld [vmem:[#allocation11 + $0x3e8] sm:$0xff] }
 0x40f   :  { %5937 = vmatmul.msk.f32.gmra.mxu3 %vm1745_vm3, %v7728_v33  ;;  %3076 = vmatpush.msra.mxu1 %v2102_v29  ;;  %v2388_v33 = vld [vmem:[#allocation11 + $0x790] sm:$0xff]  ;;  %v2361_v29 = vld [vmem:[#allocation11 + $0x6b8] sm:$0xff] }
 0x410   :  { %v7817_v62 = vpop.f32.mrf.mxu2  ;;  %2736 = vmatpush.msrb.mxu0 %v2328_v26  ;;  %2764 = vmatpush.msrb.mxu2 %v2388_v33  ;;  %v2352_v33 = vld [vmem:[#allocation11 + $0x670] sm:$0xff] }
 0x411   :  { %2527 = vmatmul.f32.gmra.mxu2 %v7817_v62  ;;  %3077 = vmatpush.msra.mxu1 %v2099_v45  ;;  %v2358_v45 = vld [vmem:[#allocation11 + $0x6a0] sm:$0xff] }
 0x412   :  { %2737 = vmatpush.msrb.mxu0 %v2325_v63  ;;  %2765 = vmatpush.msrb.mxu2 %v2385_v52  ;;  %v2035_v63 = vld [vmem:[#allocation11 + $0x138] sm:$0xff]  ;;  %v2089_v52 = vld [vmem:[#allocation11 + $0x2e8] sm:$0xff] }
 0x413   :  { %v7820_v17 = vpop.f32.mrf.mxu0  ;;  %3078 = vmatpush.msra.mxu1 %v2096_v51  ;;  %v2355_v51 = vld [vmem:[#allocation11 + $0x688] sm:$0xff] }
 0x414   :  { %2501 = vmatmul.f32.gmra.mxu0 %v7820_v17  ;;  %2766 = vmatpush.msrb.mxu2 %v2382_v59  ;;  %v2032_v59 = vld [vmem:[#allocation11 + $0x120] sm:$0xff] }
 0x415   :  { %3079 = vmatpush.msra.mxu1 %v2093_v7  ;;  %2738 = vmatpush.msrb.mxu0 %v2322_v32  ;;  %v2038_v7 = vld [vmem:[#allocation11 + $0x150] sm:$0xff]  ;;  %v2112_v32 = vld [vmem:[#allocation11 + $0x3a0] sm:$0xff] }
 0x416   :  { %2821 = vmatmul.f32.gmra.mxu1 %v7737_v60  ;;  %v2139_v60 = vld [vmem:[#allocation11 + $0x478] sm:$0xff]  ;;  %2767 = vmatpush.msrb.mxu2 %v2379_v34  ;;  %v2109_v34 = vld [vmem:[#allocation11 + $0x388] sm:$0xff] }
 0x417   :  { %5938 = vmatmul.msk.f32.gmra.mxu3 %vm1745_vm3, %v7739_v39  ;;  %2739 = vmatpush.msrb.mxu0 %v2319_v5  ;;  %v2313_v39 = vld [vmem:[#allocation11 + $0x538] sm:$0xff] }
 0x418   :  { %v7826_v16 = vpop.f32.mrf.mxu2  ;;  %2768 = vmatpush.msrb.mxu2 %v2376_v19  ;;  %v2147_v5 = vld [vmem:[#allocation11 + $0x4b8] sm:$0xff]  ;;  %v2144_v19 = vld [vmem:[#allocation11 + $0x4a0] sm:$0xff] }
 0x419   :  { %2530 = vmatmul.f32.gmra.mxu2 %v7826_v16  ;;  %2740 = vmatpush.msrb.mxu0 %v2316_v6  ;;  %v2086_v6 = vld [vmem:[#allocation11 + $0x2d0] sm:$0xff] }
 0x41a   :  { %2769 = vmatpush.msrb.mxu2 %v2373_v12  ;;  %3109 = vmatpush.msra.mxu3 %v2147_v5 }
 0x41b   :  { %2741 = vmatpush.msrb.mxu0 %v2313_v39  ;;  %v2029_v39 = vld [vmem:[#allocation11 + $0x108] sm:$0xff] }
 0x41c   :  { %2617 = vmatmul.f32.vlgmr.msra.gmra.mxu0 %v7785_v9  ;;  %2770 = vmatpush.msrb.mxu2 %v2370_v3  ;;  %v2026_v3 = vld [vmem:[#allocation11 + $0xf0] sm:$0xff] }
 0x41d   :  { %2742 = vmatpush.msrb.mxu0 %v2310_v28  ;;  %v2103_v28 = vld [vmem:[#allocation11 + $0x358] sm:$0xff]  ;;  %3110 = vmatpush.msra.mxu3 %v2144_v19  ;;  %v2062_v19 = vld [vmem:[#allocation11 + $0x210] sm:$0xff] }
 0x41e   :  { %2952 = vmatmul.f32.vlgmr.msrb.gmra.mxu1 %v7746_v46  ;;  %2771 = vmatpush.msrb.mxu2 %v2367_v44  ;;  %v2100_v44 = vld [vmem:[#allocation11 + $0x340] sm:$0xff] }
 0x41f   :  { %5939 = vmatmul.msk.f32.gmra.mxu3 %vm1745_vm3, %v7748_v20  ;;  %3192 = vmatpush.msrb.mxu1 %v2139_v60  ;;  %v2364_v20 = vld [vmem:[#allocation11 + $0x6d0] sm:$0xff] }
 0x420   :  { %v7833_v48 = vpop.f32.mrf.mxu2  ;;  %v7836_v15 = vpop.f32.mrf.mxu1  ;;  %2743 = vmatpush.msrb.mxu0 %v2307_v14  ;;  %2772 = vmatpush.msrb.mxu2 %v2364_v20  ;;  %v2106_v60 = vld [vmem:[#allocation11 + $0x370] sm:$0xff]  ;;  %v2080_v14 = vld [vmem:[#allocation11 + $0x2a0] sm:$0xff]  ;;  %v2097_v20 = vld [vmem:[#allocation11 + $0x328] sm:$0xff] }
 0x421   :  { %2533 = vmatmul.f32.gmra.mxu2 %v7833_v48  ;;  %3193 = vmatpush.msrb.mxu1 %v2136_v1  ;;  %v2083_v1 = vld [vmem:[#allocation11 + $0x2b8] sm:$0xff] }
 0x422   :  { %2744 = vmatpush.msrb.mxu0 %v2304_v35  ;;  %2773 = vmatpush.msrb.mxu2 %v2361_v29  ;;  %v2077_v35 = vld [vmem:[#allocation11 + $0x288] sm:$0xff] }
 0x423   :  { %3194 = vmatpush.msrb.mxu1 %v2133_v49  ;;  %v2141_v49 = vld [vmem:[#allocation11 + $0x488] sm:$0xff] }
 0x424   :  { %2620 = vmatmul.f32.gmra.mxu0 %v7793_v38  ;;  %2774 = vmatpush.msrb.mxu2 %v2358_v45 }
 0x425   :  { %3195 = vmatpush.msrb.mxu1 %v2130_v43  ;;  %2872 = vmatpush.msra.mxu0 %v2041_v37  ;;  %v2023_v43 = vld [vmem:[#allocation11 + $0xd8] sm:$0xff]  ;;  %v2020_v37 = vld [vmem:[#allocation11 + $0xc0] sm:$0xff] }
 0x426   :  { %2955 = vmatmul.f32.gmra.mxu1 %v7755_v31  ;;  %2775 = vmatpush.msrb.mxu2 %v2355_v51  ;;  %v2074_v51 = vld [vmem:[#allocation11 + $0x270] sm:$0xff] }
 0x427   :  { %5940 = vmatmul.msk.f32.gmra.mxu3 %vm1745_vm3, %v7757_v0  ;;  %3196 = vmatpush.msrb.mxu1 %v2127_v21  ;;  %v2115_v0 = vld [vmem:[#allocation11 + $0x3b8] sm:$0xff] }
 0x428   :  { %2873 = vmatpush.msra.mxu0 %v2038_v7  ;;  %2776 = vmatpush.msrb.mxu2 %v2352_v33  ;;  %v2151_v21 = vld [vmem:[#allocation11 + $0x4d8] sm:$0xff]  ;;  %v2014_v7 = vld [vmem:[#allocation11 + $0x90] sm:$0xff] }
 0x429   :  { %2649 = vmatmul.f32.vlgmr.msra.gmra.mxu2 %v7799_v4  ;;  %3197 = vmatpush.msrb.mxu1 %v2124_v36  ;;  %v2094_v36 = vld [vmem:[#allocation11 + $0x310] sm:$0xff]  ;;  %v2071_v33 = vld [vmem:[#allocation11 + $0x258] sm:$0xff] }
 0x42a   :  { %2874 = vmatpush.msra.mxu0 %v2035_v63  ;;  %2904 = vmatpush.msra.mxu2 %v2089_v52  ;;  %v2011_v63 = vld [vmem:[#allocation11 + $0x78] sm:$0xff]  ;;  %v2068_v52 = vld [vmem:[#allocation11 + $0x240] sm:$0xff] }
 0x42b   :  { %v7843_v26 = vpop.f32.mrf.mxu1  ;;  %3198 = vmatpush.msrb.mxu1 %v2121_v2  ;;  %3111 = vmatpush.msra.mxu3 %v2141_v49  ;;  %v2148_v2 = vld [vmem:[#allocation11 + $0x4c0] sm:$0xff]  ;;  %v1999_v49 = vld [vmem:[#allocation11 + $0x18] sm:$0xff] }
 0x42c   :  { %2623 = vmatmul.f32.gmra.mxu0 %v7802_v53  ;;  %2905 = vmatpush.msra.mxu2 %v2086_v6  ;;  %v2005_v6 = vld [vmem:[#allocation11 + $0x48] sm:$0xff] }
 0x42d   :  { %3199 = vmatpush.msrb.mxu1 %v2118_v42  ;;  %2875 = vmatpush.msra.mxu0 %v2032_v59  ;;  %v2145_v42 = vld [vmem:[#allocation11 + $0x4a8] sm:$0xff]  ;;  %v2008_v59 = vld [vmem:[#allocation11 + $0x60] sm:$0xff] }
 0x42e   :  { %2958 = vmatmul.f32.gmra.mxu1 %v7764_v57  ;;  %2906 = vmatpush.msra.mxu2 %v2083_v1  ;;  %v2059_v1 = vld [vmem:[#allocation11 + $0x1f8] sm:$0xff] }
 0x42f   :  { %5941 = vmatmul.msk.f32.vlgmr.msrb.gmra.mxu3 %vm1745_vm3, %v7762_v24  ;;  %3200 = vmatpush.msrb.mxu1 %v2115_v0  ;;  %v2142_v0 = vld [vmem:[#allocation11 + $0x490] sm:$0xff] }
 0x430   :  { %2876 = vmatpush.msra.mxu0 %v2029_v39  ;;  %2907 = vmatpush.msra.mxu2 %v2080_v14  ;;  %v2002_v39 = vld [vmem:[#allocation11 + $0x30] sm:$0xff]  ;;  %v2053_v14 = vld [vmem:[#allocation11 + $0x1c8] sm:$0xff] }
 0x431   :  { %2652 = vmatmul.f32.gmra.mxu2 %v7808_v47  ;;  %3201 = vmatpush.msrb.mxu1 %v2112_v32 }
 0x432   :  { %2877 = vmatpush.msra.mxu0 %v2026_v3  ;;  %3236 = vmatpush.msrb.mxu3 %v2151_v21  ;;  %v1996_v21 = vld [vmem:[#allocation11] sm:$0xff] }
 0x433   :  { %v7850_v12 = vpop.f32.mrf.mxu1  ;;  %3202 = vmatpush.msrb.mxu1 %v2109_v34  ;;  %2908 = vmatpush.msra.mxu2 %v2077_v35  ;;  %v2065_v34 = vld [vmem:[#allocation11 + $0x228] sm:$0xff]  ;;  %v2050_v35 = vld [vmem:[#allocation11 + $0x1b0] sm:$0xff] }
 0x434   :  { %2626 = vmatmul.f32.gmra.mxu0 %v7811_v10  ;;  %3237 = vmatpush.msrb.mxu3 %v2148_v2  ;;  %v2047_v2 = vld [vmem:[#allocation11 + $0x198] sm:$0xff] }
 0x435   :  { %3203 = vmatpush.msrb.mxu1 %v2106_v60  ;;  %2878 = vmatpush.msra.mxu0 %v2023_v43  ;;  %v6070_v60 = vld [vmem:[#allocation2 + $0x190] sm:$0xff] }
 0x436   :  { %2961 = vmatmul.f32.gmra.mxu1 %v7771_v50  ;;  %2909 = vmatpush.msra.mxu2 %v2074_v51 }
 0x437   :  { %5942 = vmatmul.msk.f32.gmra.mxu3 %vm1745_vm3, %v7769_v56  ;;  %3204 = vmatpush.msrb.mxu1 %v2103_v28  ;;  %v6071_v28 = vld [vmem:[#allocation2 + $0x170] sm:$0xff] }
 0x438   :  { %2879 = vmatpush.msra.mxu0 %v2020_v37  ;;  %3238 = vmatpush.msrb.mxu3 %v2145_v42  ;;  %v2042_v37 = vld [vmem:[#allocation11 + $0x170] sm:$0xff]  ;;  %v2039_v42 = vld [vmem:[#allocation11 + $0x158] sm:$0xff] }
 0x439   :  { %2655 = vmatmul.f32.gmra.mxu2 %v7817_v62  ;;  %3205 = vmatpush.msrb.mxu1 %v2100_v44  ;;  %v6072_v44 = vld [vmem:[#allocation2 + $0x150] sm:$0xff] }
 0x43a   :  { %v7857_v29 = vpop.f32.mrf.mxu3  ;;  %2880 = vmatpush.msra.mxu0 %v2017_v30  ;;  %2910 = vmatpush.msra.mxu2 %v2071_v33  ;;  %v6075_v30 = vld [vmem:[#allocation2 + $0xf0] sm:$0xff] }
 0x43b   :  { %v7859_v45 = vpop.f32.mrf.mxu1  ;;  %3206 = vmatpush.msrb.mxu1 %v2097_v20  ;;  %3239 = vmatpush.msrb.mxu3 %v2142_v0  ;;  %v6073_v20 = vld [vmem:[#allocation2 + $0x130] sm:$0xff]  ;;  %v2090_v0 = vld [vmem:[#allocation11 + $0x2f0] sm:$0xff] }
 0x43c   :  { %2629 = vmatmul.f32.gmra.mxu0 %v7820_v17  ;;  %2911 = vmatpush.msra.mxu2 %v2068_v52  ;;  %v2036_v52 = vld [vmem:[#allocation11 + $0x140] sm:$0xff] }
 0x43d   :  { %3207 = vmatpush.msrb.mxu1 %v2094_v36  ;;  %2881 = vmatpush.msra.mxu0 %v2014_v7  ;;  %v6074_v36 = vld [vmem:[#allocation2 + $0x110] sm:$0xff] }
 0x43e   :  { %2964 = vmatmul.f32.gmra.mxu1 %v7778_v58  ;;  %2912 = vmatpush.msra.mxu2 %v2065_v34  ;;  %v6076_v7 = vld [vmem:[#allocation2 + $0xd0] sm:$0xff]  ;;  %v6079_v34 = vld [vmem:[#allocation2 + $0x198] sm:$0xff] }
 0x43f   :  { %5943 = vmatmul.msk.f32.gmra.mxu3 %vm1745_vm3, %v7776_v27  ;;  %2882 = vmatpush.msra.mxu0 %v2011_v63  ;;  %v6077_v63 = vld [vmem:[#allocation2 + $0xb0] sm:$0xff] }
 0x440   :  { %2913 = vmatpush.msra.mxu2 %v2062_v19  ;;  %v6080_v19 = vld [vmem:[#allocation2 + $0x70] sm:$0xff] }
 0x441   :  { %2658 = vmatmul.f32.gmra.mxu2 %v7826_v16  ;;  %2883 = vmatpush.msra.mxu0 %v2008_v59  ;;  %v2033_v59 = vld [vmem:[#allocation11 + $0x128] sm:$0xff] }
 0x442   :  { %v7866_v32 = vpop.f32.mrf.mxu3  ;;  %2914 = vmatpush.msra.mxu2 %v2059_v1  ;;  %v6082_v1 = vld [vmem:[#allocation2 + $0x50] sm:$0xff] }
 0x443   :  { %v7868_v5 = vpop.f32.mrf.mxu1  ;;  %2884 = vmatpush.msra.mxu0 %v2005_v6  ;;  %v2087_v6 = vld [vmem:[#allocation11 + $0x2d8] sm:$0xff] }
 0x444   :  { %9119 = vst [vmem:[#allocation26_spill] sm:$0xff] %v7868_v5  ;;  %2745 = vmatmul.f32.vlgmr.msrb.gmra.mxu0 %v7785_v9  ;;  %v2056_v9 = vld [vmem:[#allocation11 + $0x1e0] sm:$0xff] }
 0x445   :  { %2885 = vmatpush.msra.mxu0 %v2002_v39  ;;  %2915 = vmatpush.msra.mxu2 %v2056_v9  ;;  %v2030_v39 = vld [vmem:[#allocation11 + $0x110] sm:$0xff] }
 0x446   :  { %3080 = vmatmul.f32.vlgmr.msra.gmra.mxu1 %v7746_v46  ;;  %v6083_v9 = vld [vmem:[#allocation2 + $0x158] sm:$0xff] }
 0x447   :  { %5944 = vmatmul.msk.f32.gmra.mxu3 %vm1745_vm3, %v7783_v41  ;;  %3344 = vmatpush.msra.mxu1 %v6070_v60 }
 0x448   :  { %2886 = vmatpush.msra.mxu0 %v1999_v49  ;;  %2916 = vmatpush.msra.mxu2 %v2053_v14  ;;  %v6084_v49 = vld [vmem:[#allocation2 + $0x30] sm:$0xff] }
 0x449   :  { %3345 = vmatpush.msra.mxu1 %v6071_v28  ;;  %2661 = vmatmul.f32.gmra.mxu2 %v7833_v48  ;;  %v6086_v14 = vld [vmem:[#allocation2 + $0x10] sm:$0xff] }
 0x44a   :  { %v7875_v3 = vpop.f32.mrf.mxu3  ;;  %2887 = vmatpush.msra.mxu0 %v1996_v21  ;;  %2917 = vmatpush.msra.mxu2 %v2050_v35  ;;  %v6087_v21 = vld [vmem:[#allocation2 + $0x118] sm:$0xff]  ;;  %v2084_v35 = vld [vmem:[#allocation11 + $0x2c0] sm:$0xff] }
 0x44b   :  { %3346 = vmatpush.msra.mxu1 %v6072_v44  ;;  %v7877_v43 = vpop.f32.mrf.mxu1  ;;  %v2027_v44 = vld [vmem:[#allocation11 + $0xf8] sm:$0xff] }
 0x44c   :  { %9120 = vst [vmem:[#allocation41_spill] sm:$0xff] %v7877_v43  ;;  %2748 = vmatmul.f32.gmra.mxu0 %v7793_v38  ;;  %v2044_v38 = vld [vmem:[#allocation11 + $0x180] sm:$0xff]  ;;  %2918 = vmatpush.msra.mxu2 %v2047_v2  ;;  %v2081_v2 = vld [vmem:[#allocation11 + $0x2a8] sm:$0xff] }
 0x44d   :  { %3347 = vmatpush.msra.mxu1 %v6073_v20  ;;  %3000 = vmatpush.msrb.mxu0 %v2042_v37  ;;  %v2024_v20 = vld [vmem:[#allocation11 + $0xe0] sm:$0xff]  ;;  %v2021_v37 = vld [vmem:[#allocation11 + $0xc8] sm:$0xff] }
 0x44e   :  { %3083 = vmatmul.f32.gmra.mxu1 %v7755_v31  ;;  %2919 = vmatpush.msra.mxu2 %v2044_v38  ;;  %v6089_v38 = vld [vmem:[#allocation2 + $0xd8] sm:$0xff] }
 0x44f   :  { %5945 = vmatmul.msk.f32.gmra.mxu3 %vm1745_vm3, %v7791_v61  ;;  %3348 = vmatpush.msra.mxu1 %v6074_v36 }
 0x450   :  { %3001 = vmatpush.msrb.mxu0 %v2039_v42  ;;  %v2018_v42 = vld [vmem:[#allocation11 + $0xb0] sm:$0xff] }
 0x451   :  { %3349 = vmatpush.msra.mxu1 %v6075_v30  ;;  %2777 = vmatmul.f32.vlgmr.msrb.gmra.mxu2 %v7799_v4  ;;  %v6078_v4 = vld [vmem:[#allocation2 + $0x90] sm:$0xff] }
 0x452   :  { %v7884_v51 = vpop.f32.mrf.mxu3  ;;  %3032 = vmatpush.msrb.mxu2 %v2090_v0  ;;  %3002 = vmatpush.msrb.mxu0 %v2036_v52  ;;  %v6090_v0 = vld [vmem:[#allocation2 + $0xb8] sm:$0xff] }
 0x453   :  { %3350 = vmatpush.msra.mxu1 %v6076_v7  ;;  %v7886_v33 = vpop.f32.mrf.mxu1  ;;  %v2078_v7 = vld [vmem:[#allocation11 + $0x290] sm:$0xff] }
 0x454   :  { %9121 = vst [vmem:[#allocation39_spill] sm:$0xff] %v7886_v33  ;;  %2751 = vmatmul.f32.gmra.mxu0 %v7802_v53  ;;  %v6081_v53 = vld [vmem:[#allocation2 + $0x178] sm:$0xff]  ;;  %3033 = vmatpush.msrb.mxu2 %v2087_v6  ;;  %v2072_v6 = vld [vmem:[#allocation11 + $0x260] sm:$0xff] }
 0x455   :  { %3351 = vmatpush.msra.mxu1 %v6077_v63  ;;  %3003 = vmatpush.msrb.mxu0 %v2033_v59  ;;  %v2075_v63 = vld [vmem:[#allocation11 + $0x278] sm:$0xff]  ;;  %v6091_v52 = vld [vmem:[#allocation2 + $0x98] sm:$0xff] }
 0x456   :  { %3086 = vmatmul.f32.gmra.mxu1 %v7764_v57  ;;  %3034 = vmatpush.msrb.mxu2 %v2084_v35  ;;  %v1997_v35 = vld [vmem:[#allocation11 + $0x8] sm:$0xff] }
 0x457   :  { %5946 = vmatmul.msk.f32.vlgmr.msra.gmra.mxu3 %vm1745_vm3, %v7762_v24  ;;  %3352 = vmatpush.msra.mxu1 %v6078_v4  ;;  %v2012_v4 = vld [vmem:[#allocation11 + $0x80] sm:$0xff] }
 0x458   :  { %3376 = vmatpush.msra.mxu3 %v6079_v34  ;;  %3004 = vmatpush.msrb.mxu0 %v2030_v39  ;;  %v2009_v34 = vld [vmem:[#allocation11 + $0x68] sm:$0xff]  ;;  %v2006_v39 = vld [vmem:[#allocation11 + $0x50] sm:$0xff] }
 0x459   :  { %3353 = vmatpush.msra.mxu1 %v6080_v19  ;;  %2780 = vmatmul.f32.gmra.mxu2 %v7808_v47  ;;  %v6085_v47 = vld [vmem:[#allocation2 + $0x138] sm:$0xff] }
 0x45a   :  { %3377 = vmatpush.msra.mxu3 %v6081_v53  ;;  %v7893_v60 = vpop.f32.mrf.mxu3  ;;  %3005 = vmatpush.msrb.mxu0 %v2027_v44  ;;  %v6093_v53 = vld [vmem:[#allocation2 + $0x58] sm:$0xff] }
 0x45b   :  { %9122 = vst [vmem:[#allocation65_spill] sm:$0xff] %v7893_v60  ;;  %3354 = vmatpush.msra.mxu1 %v6082_v1  ;;  %v7895_v28 = vpop.f32.mrf.mxu1  ;;  %3035 = vmatpush.msrb.mxu2 %v2081_v2  ;;  %v2069_v1 = vld [vmem:[#allocation11 + $0x248] sm:$0xff]  ;;  %v2040_v2 = vld [vmem:[#allocation11 + $0x160] sm:$0xff] }
 0x45c   :  { %9123 = vst [vmem:[#allocation27_spill] sm:$0xff] %v7895_v28  ;;  %3378 = vmatpush.msra.mxu3 %v6083_v9  ;;  %2754 = vmatmul.f32.gmra.mxu0 %v7811_v10  ;;  %v6088_v10 = vld [vmem:[#allocation2 + $0xf8] sm:$0xff]  ;;  %v2003_v9 = vld [vmem:[#allocation11 + $0x38] sm:$0xff] }
 0x45d   :  { %3355 = vmatpush.msra.mxu1 %v6084_v49  ;;  %3006 = vmatpush.msrb.mxu0 %v2024_v20  ;;  %v2066_v49 = vld [vmem:[#allocation11 + $0x230] sm:$0xff]  ;;  %v2063_v20 = vld [vmem:[#allocation11 + $0x218] sm:$0xff]  ;;  %v4163_v60 = vld [vmem:[#allocation11 + $0xfc8] sm:$0xff] }
 0x45e   :  { %3379 = vmatpush.msra.mxu3 %v6085_v47  ;;  %3089 = vmatmul.f32.gmra.mxu1 %v7771_v50  ;;  %v6095_v44 = vld [vmem:[#allocation2 + $0x18] sm:$0xff]  ;;  %v2000_v47 = vld [vmem:[#allocation11 + $0x20] sm:$0xff]  ;;  %v3409_v28 = vld [vmem:[#allocation11 + $0x9d8] sm:$0xff] }
 0x45f   :  { %5947 = vmatmul.msk.f32.gmra.mxu3 %vm1745_vm3, %v7769_v56  ;;  %3356 = vmatpush.msra.mxu1 %v6086_v14 }
 0x460   :  { %3380 = vmatpush.msra.mxu3 %v6087_v21  ;;  %3007 = vmatpush.msrb.mxu0 %v2021_v37  ;;  %v2060_v37 = vld [vmem:[#allocation11 + $0x200] sm:$0xff] }
 0x461   :  { %2783 = vmatmul.f32.gmra.mxu2 %v7817_v62  ;;  %v2015_v62 = vld [vmem:[#allocation11 + $0x98] sm:$0xff] }
 0x462   :  { %3381 = vmatpush.msra.mxu3 %v6088_v10  ;;  %v7902_v36 = vpop.f32.mrf.mxu3  ;;  %3008 = vmatpush.msrb.mxu0 %v2018_v42  ;;  %v2043_v10 = vld [vmem:[#allocation11 + $0x178] sm:$0xff] }
 0x463   :  { %9124 = vst [vmem:[#allocation43_spill] sm:$0xff] %v7902_v36  ;;  %v7904_v30 = vpop.f32.mrf.mxu1  ;;  %3036 = vmatpush.msrb.mxu2 %v2078_v7  ;;  %v2054_v7 = vld [vmem:[#allocation11 + $0x1d0] sm:$0xff]  ;;  %v4222_v36 = vld [vmem:[#allocation11 + $0x11a0] sm:$0xff] }
 0x464   :  { %9125 = vst [vmem:[#allocation40_spill] sm:$0xff] %v7904_v30  ;;  %3382 = vmatpush.msra.mxu3 %v6089_v38  ;;  %2757 = vmatmul.f32.gmra.mxu0 %v7820_v17  ;;  %v6092_v17 = vld [vmem:[#allocation2 + $0x78] sm:$0xff]  ;;  %v3557_v30 = vld [vmem:[#allocation11 + $0xe78] sm:$0xff] }
 0x465   :  { %3009 = vmatpush.msrb.mxu0 %v2015_v62  ;;  %3037 = vmatpush.msrb.mxu2 %v2075_v63  ;;  %v2037_v38 = vld [vmem:[#allocation11 + $0x148] sm:$0xff] }
 0x466   :  { %3383 = vmatpush.msra.mxu3 %v6090_v0  ;;  %3092 = vmatmul.f32.gmra.mxu1 %v7778_v58  ;;  %v2034_v0 = vld [vmem:[#allocation11 + $0x130] sm:$0xff] }
 0x467   :  { %5948 = vmatmul.msk.f32.gmra.mxu3 %vm1745_vm3, %v7776_v27  ;;  %3010 = vmatpush.msrb.mxu0 %v2012_v4  ;;  %v2048_v4 = vld [vmem:[#allocation11 + $0x1a0] sm:$0xff] }
 0x468   :  { %3384 = vmatpush.msra.mxu3 %v6091_v52  ;;  %3038 = vmatpush.msrb.mxu2 %v2072_v6  ;;  %v2031_v52 = vld [vmem:[#allocation11 + $0x118] sm:$0xff]  ;;  %v2025_v6 = vld [vmem:[#allocation11 + $0xe8] sm:$0xff] }
 0x469   :  { %2786 = vmatmul.f32.gmra.mxu2 %v7826_v16  ;;  %3011 = vmatpush.msrb.mxu0 %v2009_v34  ;;  %v6094_v16 = vld [vmem:[#allocation2 + $0x38] sm:$0xff] }
 0x46a   :  { %3385 = vmatpush.msra.mxu3 %v6092_v17  ;;  %v7911_v59 = vpop.f32.mrf.mxu3  ;;  %3039 = vmatpush.msrb.mxu2 %v2069_v1  ;;  %v2028_v17 = vld [vmem:[#allocation11 + $0x100] sm:$0xff]  ;;  %v2045_v34 = vld [vmem:[#allocation11 + $0x188] sm:$0xff] }
 0x46b   :  { %9126 = vst [vmem:[#allocation66_spill] sm:$0xff] %v7911_v59  ;;  %v7913_v19 = vpop.f32.mrf.mxu1  ;;  %3012 = vmatpush.msrb.mxu0 %v2006_v39  ;;  %v6126_v59 = vld [vmem:[#allocation2 + $0x110] sm:$0xff] }
 0x46c   :  { %9127 = vst [vmem:[#allocation28_spill] sm:$0xff] %v7913_v19  ;;  %3386 = vmatpush.msra.mxu3 %v6093_v53  ;;  %2888 = vmatmul.f32.vlgmr.msra.gmra.mxu0 %v7701_v18  ;;  %v2091_v53 = vld [vmem:[#allocation11 + $0x2f8] sm:$0xff]  ;;  %v3436_v19 = vld [vmem:[#allocation11 + $0xab0] sm:$0xff] }
 0x46d   :  { %3013 = vmatpush.msrb.mxu0 %v2003_v9  ;;  %3040 = vmatpush.msrb.mxu2 %v2066_v49  ;;  %v2088_v9 = vld [vmem:[#allocation11 + $0x2e0] sm:$0xff] }
 0x46e   :  { %3387 = vmatpush.msra.mxu3 %v6094_v16  ;;  %3208 = vmatmul.f32.vlgmr.msrb.gmra.mxu1 %v7746_v46  ;;  %v2022_v16 = vld [vmem:[#allocation11 + $0xd0] sm:$0xff] }
 0x46f   :  { %5949 = vmatmul.msk.f32.gmra.mxu3 %vm1745_vm3, %v7783_v41  ;;  %3014 = vmatpush.msrb.mxu0 %v2000_v47  ;;  %v2085_v47 = vld [vmem:[#allocation11 + $0x2c8] sm:$0xff] }
 0x470   :  { %3388 = vmatpush.msra.mxu3 %v6095_v44  ;;  %3041 = vmatpush.msrb.mxu2 %v2063_v20  ;;  %v2016_v20 = vld [vmem:[#allocation11 + $0xa0] sm:$0xff] }
 0x471   :  { %2789 = vmatmul.f32.gmra.mxu2 %v7833_v48  ;;  %v2490_v14 = vpop.f32.mrf.mxu0  ;;  %3015 = vmatpush.msrb.mxu0 %v1997_v35  ;;  %v2057_v48 = vld [vmem:[#allocation11 + $0x1e8] sm:$0xff]  ;;  %v2082_v35 = vld [vmem:[#allocation11 + $0x2b0] sm:$0xff] }
 0x472   :  { %v7920_v21 = vpop.f32.mrf.mxu3  ;;  %3042 = vmatpush.msrb.mxu2 %v2060_v37  ;;  %v2079_v37 = vld [vmem:[#allocation11 + $0x298] sm:$0xff] }
 0x473   :  { %9128 = vst [vmem:[#allocation45_spill] sm:$0xff] %v7920_v21  ;;  %v7922_v46 = vpop.f32.mrf.mxu1  ;;  %3128 = vmatpush.msra.mxu0 %v2043_v10  ;;  %v2013_v10 = vld [vmem:[#allocation11 + $0x88] sm:$0xff] }
 0x474   :  { %9129 = vst [vmem:[#allocation42_spill] sm:$0xff] %v7922_v46  ;;  %2891 = vmatmul.f32.gmra.mxu0 %v7706_v54  ;;  %3043 = vmatpush.msrb.mxu2 %v2057_v48  ;;  %v2010_v48 = vld [vmem:[#allocation11 + $0x70] sm:$0xff]  ;;  %v3526_v46 = vld [vmem:[#allocation11 + $0xd80] sm:$0xff]  ;;  %v3551_v21 = vld [vmem:[#allocation11 + $0xe48] sm:$0xff] }
 0x475   :  { %3129 = vmatpush.msra.mxu0 %v2040_v2 }
 0x476   :  { %3211 = vmatmul.f32.gmra.mxu1 %v7755_v31  ;;  %v2051_v31 = vld [vmem:[#allocation11 + $0x1b8] sm:$0xff]  ;;  %3044 = vmatpush.msrb.mxu2 %v2054_v7 }
 0x477   :  { %5950 = vmatmul.msk.f32.gmra.mxu3 %vm1745_vm3, %v7791_v61  ;;  %3130 = vmatpush.msra.mxu0 %v2037_v38 }
 0x478   :  { %3045 = vmatpush.msrb.mxu2 %v2051_v31  ;;  %v2073_v31 = vld [vmem:[#allocation11 + $0x268] sm:$0xff] }
 0x479   :  { %2920 = vmatmul.f32.vlgmr.msra.gmra.mxu2 %v7711_v11  ;;  %v2493_v42 = vpop.f32.mrf.mxu0  ;;  %3131 = vmatpush.msra.mxu0 %v2034_v0  ;;  %v2007_v0 = vld [vmem:[#allocation11 + $0x58] sm:$0xff] }
 0x47a   :  { %v7929_v62 = vpop.f32.mrf.mxu3  ;;  %3046 = vmatpush.msrb.mxu2 %v2048_v4  ;;  %v2070_v4 = vld [vmem:[#allocation11 + $0x250] sm:$0xff] }
 0x47b   :  { %9130 = vst [vmem:[#allocation67_spill] sm:$0xff] %v7929_v62  ;;  %v7931_v63 = vpop.f32.mrf.mxu1  ;;  %3132 = vmatpush.msra.mxu0 %v2031_v52  ;;  %v2004_v52 = vld [vmem:[#allocation11 + $0x40] sm:$0xff]  ;;  %v3560_v62 = vld [vmem:[#allocation11 + $0xe90] sm:$0xff] }
 0x47c   :  { %9131 = vst [vmem:[#allocation29_spill] sm:$0xff] %v7931_v63  ;;  %2894 = vmatmul.f32.gmra.mxu0 %v7713_v8  ;;  %3047 = vmatpush.msrb.mxu2 %v2045_v34  ;;  %v2067_v34 = vld [vmem:[#allocation11 + $0x238] sm:$0xff] }
 0x47d   :  { %3133 = vmatpush.msra.mxu0 %v2028_v17 }
 0x47e   :  { %3214 = vmatmul.f32.gmra.mxu1 %v7764_v57  ;;  %3160 = vmatpush.msra.mxu2 %v2091_v53 }
 0x47f   :  { %5951 = vmatmul.msk.f32.vlgmr.msrb.gmra.mxu3 %vm1745_vm3, %v7762_v24  ;;  %3134 = vmatpush.msra.mxu0 %v2025_v6  ;;  %v2019_v24 = vld [vmem:[#allocation11 + $0xb8] sm:$0xff] }
 0x480   :  { %3161 = vmatpush.msra.mxu2 %v2088_v9  ;;  %v2064_v9 = vld [vmem:[#allocation11 + $0x220] sm:$0xff] }
 0x481   :  { %2923 = vmatmul.f32.gmra.mxu2 %v7722_v13  ;;  %v2496_v39 = vpop.f32.mrf.mxu0  ;;  %3135 = vmatpush.msra.mxu0 %v2022_v16  ;;  %v1998_v16 = vld [vmem:[#allocation11 + $0x10] sm:$0xff] }
 0x482   :  { %v7938_v1 = vpop.f32.mrf.mxu3  ;;  %3162 = vmatpush.msra.mxu2 %v2085_v47  ;;  %v6096_v47 = vld [vmem:[#allocation2 + $0x180] sm:$0xff] }
 0x483   :  { %9132 = vst [vmem:[#allocation46_spill] sm:$0xff] %v7938_v1  ;;  %v7940_v49 = vpop.f32.mrf.mxu1  ;;  %3136 = vmatpush.msra.mxu0 %v2019_v24  ;;  %v2061_v24 = vld [vmem:[#allocation11 + $0x208] sm:$0xff]  ;;  %v3517_v1 = vld [vmem:[#allocation11 + $0xd38] sm:$0xff] }
 0x484   :  { %9133 = vst [vmem:[#allocation44_spill] sm:$0xff] %v7940_v49  ;;  %v2522_v57 = vpop.f32.mrf.mxu2  ;;  %2897 = vmatmul.f32.gmra.mxu0 %v7724_v25  ;;  %3163 = vmatpush.msra.mxu2 %v2082_v35 }
 0x485   :  { %v7942_v44 = vadd.f32 %v2522_v57, %v2490_v14  ;;  %3137 = vmatpush.msra.mxu0 %v2016_v20  ;;  %v7966_v57 = vld [vmem:[#allocation9 + $0x50] sm:$0xff] }
 0x486   :  { %3217 = vmatmul.f32.gmra.mxu1 %v7771_v50  ;;  %v2076_v50 = vld [vmem:[#allocation11 + $0x280] sm:$0xff]  ;;  %3164 = vmatpush.msra.mxu2 %v2079_v37  ;;  %v2058_v20 = vld [vmem:[#allocation11 + $0x1f0] sm:$0xff]  ;;  %v2055_v37 = vld [vmem:[#allocation11 + $0x1d8] sm:$0xff] }
 0x487   :  { %5952 = vmatmul.msk.f32.gmra.mxu3 %vm1745_vm3, %v7769_v56  ;;  %3138 = vmatpush.msra.mxu0 %v2013_v10  ;;  %v6097_v10 = vld [vmem:[#allocation2 + $0x160] sm:$0xff] }
 0x488   :  { %3165 = vmatpush.msra.mxu2 %v2076_v50 }
 0x489   :  { %2926 = vmatmul.f32.gmra.mxu2 %v7733_v23  ;;  %v2499_v14 = vpop.f32.mrf.mxu0  ;;  %3139 = vmatpush.msra.mxu0 %v2010_v48  ;;  %v6098_v48 = vld [vmem:[#allocation2 + $0x140] sm:$0xff] }
 0x48a   :  { %v7949_v2 = vpop.f32.mrf.mxu3  ;;  %3166 = vmatpush.msra.mxu2 %v2073_v31  ;;  %v7982_v31 = vld [vmem:[#allocation9 + $0x58] sm:$0xff] }
 0x48b   :  { %9134 = vst [vmem:[#allocation68_spill] sm:$0xff] %v7949_v2  ;;  %v7951_v38 = vpop.f32.mrf.mxu1  ;;  %3140 = vmatpush.msra.mxu0 %v2007_v0  ;;  %v3532_v2 = vld [vmem:[#allocation11 + $0xdb0] sm:$0xff] }
 0x48c   :  { %9135 = vst [vmem:[#allocation30_spill] sm:$0xff] %v7951_v38  ;;  %v2525_v7 = vpop.f32.mrf.mxu2  ;;  %2900 = vmatmul.f32.gmra.mxu0 %v7735_v40  ;;  %3167 = vmatpush.msra.mxu2 %v2070_v4  ;;  %v2049_v4 = vld [vmem:[#allocation11 + $0x1a8] sm:$0xff] }
 0x48d   :  { %v7953_v56 = vadd.f32 %v2525_v7, %v2493_v42  ;;  %v2001_v42 = vld [vmem:[#allocation11 + $0x28] sm:$0xff]  ;;  %3141 = vmatpush.msra.mxu0 %v2004_v52  ;;  %v2052_v7 = vld [vmem:[#allocation11 + $0x1c0] sm:$0xff]  ;;  %v6099_v52 = vld [vmem:[#allocation2 + $0x120] sm:$0xff] }
 0x48e   :  { %3220 = vmatmul.f32.gmra.mxu1 %v7778_v58  ;;  %3168 = vmatpush.msra.mxu2 %v2067_v34  ;;  %v6100_v34 = vld [vmem:[#allocation2 + $0x100] sm:$0xff]  ;;  %v3547_v38 = vld [vmem:[#allocation11 + $0xe28] sm:$0xff] }
 0x48f   :  { %5953 = vmatmul.msk.f32.gmra.mxu3 %vm1745_vm3, %v7776_v27  ;;  %3142 = vmatpush.msra.mxu0 %v2001_v42  ;;  %v2046_v42 = vld [vmem:[#allocation11 + $0x190] sm:$0xff] }
 0x490   :  { %3169 = vmatpush.msra.mxu2 %v2064_v9  ;;  %v6101_v9 = vld [vmem:[#allocation2 + $0xe0] sm:$0xff]  ;;  %3641 = vmatpush.msrb.mxu1 %v3547_v38  ;;  %v3535_v38 = vld [vmem:[#allocation11 + $0xdc8] sm:$0xff] }
 0x491   :  { %2929 = vmatmul.f32.gmra.mxu2 %v7744_v22  ;;  %v2502_v17 = vpop.f32.mrf.mxu0  ;;  %3143 = vmatpush.msra.mxu0 %v1998_v16 }
 0x492   :  { %v7960_v6 = vpop.f32.mrf.mxu3  ;;  %3170 = vmatpush.msra.mxu2 %v2061_v24 }
 0x493   :  { %9136 = vst [vmem:[#allocation49_spill] sm:$0xff] %v7960_v6  ;;  %v7962_v53 = vpop.f32.mrf.mxu1  ;;  %v3541_v6 = vld [vmem:[#allocation11 + $0xdf8] sm:$0xff] }
 0x494   :  { %9137 = vst [vmem:[#allocation47_spill] sm:$0xff] %v7962_v53  ;;  %v2528_v27 = vpop.f32.mrf.mxu2  ;;  %3016 = vmatmul.f32.vlgmr.msrb.gmra.mxu0 %v7701_v18  ;;  %3171 = vmatpush.msra.mxu2 %v2058_v20 }
 0x495   :  { %v7964_v58 = vadd.f32 %v2528_v27, %v2496_v39  ;;  %3280 = vmatpush.msrb.mxu0 %v6096_v47  ;;  %v6103_v47 = vld [vmem:[#allocation2 + $0xc0] sm:$0xff] }
 0x496   :  { %5966 = vmatmul.msk.f32.vlgmr.msra.gmra.mxu1 %vm1852_vm4, %v7966_v57  ;;  %3172 = vmatpush.msra.mxu2 %v2055_v37  ;;  %v7996_v37 = vld [vmem:[#allocation9 + $0x60] sm:$0xff] }
 0x497   :  { %5954 = vmatmul.msk.f32.gmra.mxu3 %vm1745_vm3, %v7783_v41  ;;  %3281 = vmatpush.msrb.mxu0 %v6097_v10  ;;  %v6104_v10 = vld [vmem:[#allocation2 + $0x168] sm:$0xff] }
 0x498   :  { %3173 = vmatpush.msra.mxu2 %v2052_v7  ;;  %v6107_v7 = vld [vmem:[#allocation2 + $0x80] sm:$0xff] }
 0x499   :  { %v7973_v35 = vpop.f32.mrf.mxu0  ;;  %2932 = vmatmul.f32.gmra.mxu2 %v7753_v55  ;;  %3282 = vmatpush.msrb.mxu0 %v6098_v48  ;;  %v6105_v48 = vld [vmem:[#allocation2 + $0xa0] sm:$0xff] }
 0x49a   :  { %v7975_v39 = vpop.f32.mrf.mxu3  ;;  %3174 = vmatpush.msra.mxu2 %v2049_v4  ;;  %v6108_v4 = vld [vmem:[#allocation2 + $0x128] sm:$0xff] }
 0x49b   :  { %9138 = vst [vmem:[#allocation69_spill] sm:$0xff] %v7975_v39  ;;  %v7978_v41 = vpop.f32.mrf.mxu1  ;;  %3283 = vmatpush.msrb.mxu0 %v6099_v52 }
 0x49c   :  { %v2531_v50 = vpop.f32.mrf.mxu2  ;;  %3019 = vmatmul.f32.gmra.mxu0 %v7706_v54  ;;  %3175 = vmatpush.msra.mxu2 %v2046_v42  ;;  %v6109_v42 = vld [vmem:[#allocation2 + $0x60] sm:$0xff] }
 0x49d   :  { %v7980_v0 = vadd.f32 %v2531_v50, %v2499_v14  ;;  %3284 = vmatpush.msrb.mxu0 %v6100_v34  ;;  %v6106_v50 = vld [vmem:[#allocation2 + $0x148] sm:$0xff] }
 0x49e   :  { %5967 = vmatmul.msk.f32.gmra.mxu1 %vm1852_vm4, %v7982_v31 }
 0x49f   :  { %5955 = vmatmul.msk.f32.gmra.mxu3 %vm1745_vm3, %v7791_v61  ;;  %3285 = vmatpush.msrb.mxu0 %v6101_v9  ;;  %v6102_v61 = vld [vmem:[#allocation2 + $0x188] sm:$0xff] }
 0x4a0   :  { %v6110_v9 = vld [vmem:[#allocation2 + $0x108] sm:$0xff] }
 0x4a1   :  { %v2621_v14 = vpop.f32.mrf.mxu0  ;;  %3048 = vmatmul.f32.vlgmr.msrb.gmra.mxu2 %v7711_v11  ;;  %3286 = vmatpush.msrb.mxu0 %v6103_v47 }
 0x4a2   :  { %v7989_v16 = vpop.f32.mrf.mxu3  ;;  %3312 = vmatpush.msrb.mxu2 %v6102_v61 }
 0x4a3   :  { %9139 = vst [vmem:[#allocation31_spill] sm:$0xff] %v7989_v16  ;;  %v7992_v27 = vpop.f32.mrf.mxu1  ;;  %3287 = vmatpush.msrb.mxu0 %v6105_v48  ;;  %v8011_v48 = vld [vmem:[#allocation9 + $0x68] sm:$0xff] }
 0x4a4   :  { %v2534_v24 = vpop.f32.mrf.mxu2  ;;  %3313 = vmatpush.msrb.mxu2 %v6104_v10  ;;  %3022 = vmatmul.f32.gmra.mxu0 %v7713_v8  ;;  %v6112_v10 = vld [vmem:[#allocation2 + $0xe8] sm:$0xff] }
 0x4a5   :  { %v7994_v20 = vadd.f32 %v2534_v24, %v2502_v17  ;;  %3288 = vmatpush.msrb.mxu0 %v6107_v7  ;;  %v6111_v24 = vld [vmem:[#allocation2 + $0x40] sm:$0xff]  ;;  %v6114_v7 = vld [vmem:[#allocation2 + $0xc8] sm:$0xff] }
 0x4a6   :  { %3314 = vmatpush.msrb.mxu2 %v6106_v50  ;;  %5968 = vmatmul.msk.f32.gmra.mxu1 %vm1852_vm4, %v7996_v37  ;;  %v6113_v50 = vld [vmem:[#allocation2 + $0x20] sm:$0xff] }
 0x4a7   :  { %5971 = vmatmul.msk.f32.vlgmr.msra.gmra.mxu3 %vm1852_vm4, %v7966_v57  ;;  %3289 = vmatpush.msrb.mxu0 %v6109_v42 }
 0x4a8   :  { %3315 = vmatpush.msrb.mxu2 %v6108_v4  ;;  %v6115_v4 = vld [vmem:[#allocation2] sm:$0xff] }
 0x4a9   :  { %v2624_v17 = vpop.f32.mrf.mxu0  ;;  %3051 = vmatmul.f32.gmra.mxu2 %v7722_v13  ;;  %3290 = vmatpush.msrb.mxu0 %v6111_v24  ;;  %v6117_v24 = vld [vmem:[#allocation2 + $0x88] sm:$0xff] }
 0x4aa   :  { %v8003_v52 = vpop.f32.mrf.mxu3  ;;  %3316 = vmatpush.msrb.mxu2 %v6110_v9  ;;  %v6116_v9 = vld [vmem:[#allocation2 + $0xa8] sm:$0xff] }
 0x4ab   :  { %9140 = vst [vmem:[#allocation50_spill] sm:$0xff] %v8003_v52  ;;  %v8006_v34 = vpop.f32.mrf.mxu1  ;;  %3291 = vmatpush.msrb.mxu0 %v6113_v50  ;;  %v6119_v52 = vld [vmem:[#allocation2 + $0x48] sm:$0xff] }
 0x4ac   :  { %v2650_v61 = vpop.f32.mrf.mxu2  ;;  %3317 = vmatpush.msrb.mxu2 %v6112_v10  ;;  %3025 = vmatmul.f32.gmra.mxu0 %v7724_v25 }
 0x4ad   :  { %v8009_v47 = vadd.f32 %v2650_v61, %v7973_v35  ;;  %3292 = vmatpush.msrb.mxu0 %v6115_v4  ;;  %v8025_v4 = vld [vmem:[#allocation9 + $0x70] sm:$0xff] }
 0x4ae   :  { %3318 = vmatpush.msrb.mxu2 %v6114_v7  ;;  %5969 = vmatmul.msk.f32.gmra.mxu1 %vm1852_vm4, %v8011_v48  ;;  %v6118_v7 = vld [vmem:[#allocation2 + $0x68] sm:$0xff] }
 0x4af   :  { %9141 = vst [vmem:[#allocation48_spill] sm:$0xff] %v8009_v47  ;;  %5972 = vmatmul.msk.f32.gmra.mxu3 %vm1852_vm4, %v7982_v31  ;;  %v4147_v47 = vld [vmem:[#allocation11 + $0xf48] sm:$0xff] }
 0x4b0   :  { %3319 = vmatpush.msrb.mxu2 %v6116_v9 }
 0x4b1   :  { %v2627_v35 = vpop.f32.mrf.mxu0  ;;  %3054 = vmatmul.f32.gmra.mxu2 %v7733_v23 }
 0x4b2   :  { %v8018_v42 = vpop.f32.mrf.mxu3  ;;  %3320 = vmatpush.msrb.mxu2 %v6117_v24  ;;  %v6120_v24 = vld [vmem:[#allocation2 + $0x28] sm:$0xff] }
 0x4b3   :  { %v8021_v61 = vpop.f32.mrf.mxu1 }
 0x4b4   :  { %9142 = vst [vmem:[#allocation70_spill] sm:$0xff] %v8021_v61  ;;  %v2653_v10 = vpop.f32.mrf.mxu2  ;;  %3321 = vmatpush.msrb.mxu2 %v6118_v7  ;;  %3028 = vmatmul.f32.gmra.mxu0 %v7735_v40 }
 0x4b5   :  { %v8023_v50 = vadd.f32 %v2653_v10, %v2621_v14  ;;  %v6121_v10 = vld [vmem:[#allocation2 + $0x8] sm:$0xff] }
 0x4b6   :  { %3322 = vmatpush.msrb.mxu2 %v6119_v52  ;;  %5970 = vmatmul.msk.f32.gmra.mxu1 %vm1852_vm4, %v8025_v4 }
 0x4b7   :  { %9143 = vst [vmem:[#allocation32_spill] sm:$0xff] %v8023_v50  ;;  %5973 = vmatmul.msk.f32.gmra.mxu3 %vm1852_vm4, %v7996_v37 }
 0x4b8   :  { %3323 = vmatpush.msrb.mxu2 %v6120_v24  ;;  %v3544_v24 = vld [vmem:[#allocation11 + $0xe10] sm:$0xff] }
 0x4b9   :  { %v2630_v9 = vpop.f32.mrf.mxu0  ;;  %3057 = vmatmul.f32.gmra.mxu2 %v7744_v22  ;;  %3642 = vmatpush.msrb.mxu1 %v3544_v24 }
 0x4ba   :  { %v8032_v53 = vpop.f32.mrf.mxu3  ;;  %3324 = vmatpush.msrb.mxu2 %v6121_v10 }
 0x4bb   :  { %v8035_v14 = vpop.f32.mrf.mxu1  ;;  %3643 = vmatpush.msrb.mxu1 %v3541_v6 }
 0x4bc   :  { %9144 = vst [vmem:[#allocation52_spill] sm:$0xff] %v8035_v14  ;;  %v2656_v7 = vpop.f32.mrf.mxu2  ;;  %3144 = vmatmul.f32.vlgmr.msra.gmra.mxu0 %v7701_v18  ;;  %v3538_v18 = vld [vmem:[#allocation11 + $0xde0] sm:$0xff]  ;;  %v4273_v14 = vld [vmem:[#allocation11 + $0x1338] sm:$0xff] }
 0x4bd   :  { %v8037_v16 = vadd.f32 %v2656_v7, %v2624_v17  ;;  %3644 = vmatpush.msrb.mxu1 %v3538_v18  ;;  %v3523_v18 = vld [vmem:[#allocation11 + $0xd68] sm:$0xff] }
 0x4bf   :  { %9145 = vst [vmem:[#allocation51_spill] sm:$0xff] %v8037_v16  ;;  %5974 = vmatmul.msk.f32.gmra.mxu3 %vm1852_vm4, %v8011_v48  ;;  %3645 = vmatpush.msrb.mxu1 %v3535_v38  ;;  %v3520_v38 = vld [vmem:[#allocation11 + $0xd50] sm:$0xff] }
 0x4c0   :  { %v3484_v16 = vld [vmem:[#allocation11 + $0xc30] sm:$0xff] }
 0x4c1   :  { %v2746_v52 = vpop.f32.mrf.mxu0  ;;  %3060 = vmatmul.f32.gmra.mxu2 %v7753_v55  ;;  %3646 = vmatpush.msrb.mxu1 %v3532_v2 }
 0x4c2   :  { %v8042_v39 = vpop.f32.mrf.mxu3 }
 0x4c3   :  { %9146 = vst [vmem:[#allocation71_spill] sm:$0xff] %v8042_v39  ;;  %v8045_v49 = vpop.f32.mrf.mxu1 }
 0x4c4   :  { %9147 = vst [vmem:[#allocation33_spill] sm:$0xff] %v8045_v49  ;;  %v2659_v10 = vpop.f32.mrf.mxu2  ;;  %3147 = vmatmul.f32.gmra.mxu0 %v7706_v54  ;;  %v6123_v49 = vld [vmem:[#allocation2 + $0x170] sm:$0xff] }
 0x4c5   :  { %v8047_v17 = vadd.f32 %v2659_v10, %v2627_v35  ;;  %v3529_v35 = vld [vmem:[#allocation11 + $0xd98] sm:$0xff] }
 0x4c6   :  { %3647 = vmatpush.msrb.mxu1 %v3529_v35  ;;  %v3514_v35 = vld [vmem:[#allocation11 + $0xd20] sm:$0xff] }
 0x4c7   :  { %9148 = vst [vmem:[#allocation54_spill] sm:$0xff] %v8047_v17  ;;  %5975 = vmatmul.msk.f32.gmra.mxu3 %vm1852_vm4, %v8025_v4 }
 0x4c8   :  { %3648 = vmatpush.msrb.mxu1 %v3526_v46  ;;  %v3511_v46 = vld [vmem:[#allocation11 + $0xd08] sm:$0xff] }
 0x4c9   :  { %v8052_v7 = vpop.f32.mrf.mxu0  ;;  %3176 = vmatmul.f32.vlgmr.msra.gmra.mxu2 %v7711_v11 }
 0x4ca   :  { %9149 = vst [vmem:[#allocation53_spill] sm:$0xff] %v8052_v7  ;;  %v8054_v63 = vpop.f32.mrf.mxu3  ;;  %3649 = vmatpush.msrb.mxu1 %v3523_v18  ;;  %v3508_v18 = vld [vmem:[#allocation11 + $0xcf0] sm:$0xff] }
 0x4cb   :  { %9150 = vst [vmem:[#allocation72_spill] sm:$0xff] %v8054_v63  ;;  %v8057_v24 = vpop.f32.mrf.mxu1 }
 0x4cc   :  { %9151 = vst [vmem:[#allocation34_spill] sm:$0xff] %v8057_v24  ;;  %v2662_v6 = vpop.f32.mrf.mxu2  ;;  %3150 = vmatmul.f32.gmra.mxu0 %v7713_v8  ;;  %3650 = vmatpush.msrb.mxu1 %v3520_v38  ;;  %v3516_v24 = vld [vmem:[#allocation11 + $0xd30] sm:$0xff] }
 0x4cd   :  { %v8059_v10 = vadd.f32 %v2662_v6, %v2630_v9 }
 0x4ce   :  { %3651 = vmatpush.msrb.mxu1 %v3517_v1  ;;  %v3502_v1 = vld [vmem:[#allocation11 + $0xcc0] sm:$0xff] }
 0x4cf   :  { %9152 = vst [vmem:[#allocation56_spill] sm:$0xff] %v8059_v10 }
 0x4d0   :  { %3652 = vmatpush.msrb.mxu1 %v3514_v35  ;;  %v3545_v35 = vld [vmem:[#allocation11 + $0xe18] sm:$0xff] }
 0x4d1   :  { %v8062_v54 = vpop.f32.mrf.mxu0  ;;  %3179 = vmatmul.f32.gmra.mxu2 %v7722_v13 }
 0x4d2   :  { %9153 = vst [vmem:[#allocation55_spill] sm:$0xff] %v8062_v54  ;;  %v8064_v7 = vpop.f32.mrf.mxu3  ;;  %3653 = vmatpush.msrb.mxu1 %v3511_v46  ;;  %v3505_v54 = vld [vmem:[#allocation11 + $0xcd8] sm:$0xff]  ;;  %v3542_v46 = vld [vmem:[#allocation11 + $0xe00] sm:$0xff] }
 0x4d3   :  { %9154 = vst [vmem:[#allocation73_spill] sm:$0xff] %v8064_v7  ;;  %v8067_v11 = vpop.f32.mrf.mxu1  ;;  %v8337_v7 = vld [vmem:[#allocation9 + $0x98] sm:$0xff] }
 0x4d4   :  { %9155 = vst [vmem:[#allocation35_spill] sm:$0xff] %v8067_v11  ;;  %v2778_v2 = vpop.f32.mrf.mxu2  ;;  %3153 = vmatmul.f32.gmra.mxu0 %v7724_v25  ;;  %3654 = vmatpush.msrb.mxu1 %v3508_v18  ;;  %v3548_v25 = vld [vmem:[#allocation11 + $0xe30] sm:$0xff] }
 0x4d5   :  { %v8069_v9 = vadd.f32 %v2778_v2, %v2746_v52 }
 0x4d6   :  { %3655 = vmatpush.msrb.mxu1 %v3505_v54  ;;  %v3539_v54 = vld [vmem:[#allocation11 + $0xde8] sm:$0xff] }
 0x4d7   :  { %9156 = vst [vmem:[#allocation57_spill] sm:$0xff] %v8069_v9 }
 0x4d8   :  { %3656 = vmatpush.msrb.mxu1 %v3502_v1 }
 0x4d9   :  { %v8072_v8 = vpop.f32.mrf.mxu0  ;;  %3182 = vmatmul.f32.gmra.mxu2 %v7733_v23 }
 0x4da   :  { %9157 = vst [vmem:[#allocation58_spill] sm:$0xff] %v8072_v8  ;;  %v8074_v6 = vpop.f32.mrf.mxu3  ;;  %3769 = vmatpush.msra.mxu1 %v3548_v25  ;;  %v3533_v25 = vld [vmem:[#allocation11 + $0xdb8] sm:$0xff] }
 0x4db   :  { %9158 = vst [vmem:[#allocation74_spill] sm:$0xff] %v8074_v6  ;;  %v8077_v13 = vpop.f32.mrf.mxu1 }
 0x4dc   :  { %9159 = vst [vmem:[#allocation36_spill] sm:$0xff] %v8077_v13  ;;  %v8079_v38 = vpop.f32.mrf.mxu2  ;;  %3156 = vmatmul.f32.gmra.mxu0 %v7735_v40  ;;  %3770 = vmatpush.msra.mxu1 %v3545_v35  ;;  %v3536_v40 = vld [vmem:[#allocation11 + $0xdd0] sm:$0xff]  ;;  %v3530_v35 = vld [vmem:[#allocation11 + $0xda0] sm:$0xff] }
 0x4dd   :  { %9160 = vst [vmem:[#allocation59_spill] sm:$0xff] %v8079_v38  ;;  %v3509_v38 = vld [vmem:[#allocation11 + $0xcf8] sm:$0xff] }
 0x4de   :  { %3771 = vmatpush.msra.mxu1 %v3542_v46  ;;  %v3527_v46 = vld [vmem:[#allocation11 + $0xd88] sm:$0xff] }
 0x4e0   :  { %3772 = vmatpush.msra.mxu1 %v3539_v54  ;;  %v3524_v54 = vld [vmem:[#allocation11 + $0xd70] sm:$0xff] }
 0x4e1   :  { %v8082_v52 = vpop.f32.mrf.mxu0  ;;  %3185 = vmatmul.f32.gmra.mxu2 %v7744_v22 }
 0x4e2   :  { %9161 = vst [vmem:[#allocation60_spill] sm:$0xff] %v8082_v52  ;;  %v8084_v2 = vpop.f32.mrf.mxu3  ;;  %3773 = vmatpush.msra.mxu1 %v3536_v40 }
 0x4e3   :  { %9162 = vst [vmem:[#allocation75_spill] sm:$0xff] %v8084_v2  ;;  %v8087_v23 = vpop.f32.mrf.mxu1  ;;  %v3499_v2 = vld [vmem:[#allocation11 + $0xca8] sm:$0xff] }
 0x4e4   :  { %9163 = vst [vmem:[#allocation37_spill] sm:$0xff] %v8087_v23  ;;  %v8089_v8 = vpop.f32.mrf.mxu2  ;;  %5956 = vmatmul.msk.f32.vlgmr.msrb.gmra.mxu0 %vm1852_vm4, %v7966_v57  ;;  %3774 = vmatpush.msra.mxu1 %v3533_v25  ;;  %v3521_v23 = vld [vmem:[#allocation11 + $0xd58] sm:$0xff]  ;;  %v3518_v25 = vld [vmem:[#allocation11 + $0xd40] sm:$0xff] }
 0x4e5   :  { %9164 = vst [vmem:[#allocation61_spill] sm:$0xff] %v8089_v8  ;;  %3609 = vmatpush.msra.mxu2 %v3499_v2  ;;  %v3415_v2 = vld [vmem:[#allocation11 + $0xa08] sm:$0xff] }
 0x4e6   :  { %3775 = vmatpush.msra.mxu1 %v3530_v35  ;;  %v3515_v35 = vld [vmem:[#allocation11 + $0xd28] sm:$0xff] }
 0x4e8   :  { %3776 = vmatpush.msra.mxu1 %v3527_v46  ;;  %v3512_v46 = vld [vmem:[#allocation11 + $0xd10] sm:$0xff] }
 0x4e9   :  { %v8093_v18 = vpop.f32.mrf.mxu0  ;;  %3188 = vmatmul.f32.gmra.mxu2 %v7753_v55 }
 0x4ea   :  { %v8095_v1 = vpop.f32.mrf.mxu3  ;;  %3777 = vmatpush.msra.mxu1 %v3524_v54 }
 0x4eb   :  { %9165 = vst [vmem:[#allocation62_spill] sm:$0xff] %v8095_v1  ;;  %v8098_v22 = vpop.f32.mrf.mxu1  ;;  %v3540_v1 = vld [vmem:[#allocation11 + $0xdf0] sm:$0xff] }
 0x4ec   :  { %9166 = vst [vmem:[#allocation76_spill] sm:$0xff] %v8098_v22  ;;  %v8100_v52 = vpop.f32.mrf.mxu2  ;;  %5957 = vmatmul.msk.f32.gmra.mxu0 %vm1852_vm4, %v7982_v31  ;;  %3778 = vmatpush.msra.mxu1 %v3521_v23 }
 0x4ed   :  { %9167 = vst [vmem:[#allocation38_spill] sm:$0xff] %v8100_v52 }
 0x4ee   :  { %3779 = vmatpush.msra.mxu1 %v3518_v25 }
 0x4f0   :  { %3780 = vmatpush.msra.mxu1 %v3515_v35  ;;  %v3503_v35 = vld [vmem:[#allocation11 + $0xcc8] sm:$0xff] }
 0x4f1   :  { %v8104_v8 = vpop.f32.mrf.mxu0  ;;  %5961 = vmatmul.msk.f32.vlgmr.msrb.gmra.mxu2 %vm1852_vm4, %v7966_v57  ;;  %v3506_v57 = vld [vmem:[#allocation11 + $0xce0] sm:$0xff] }
 0x4f2   :  { %v8106_v40 = vpop.f32.mrf.mxu3  ;;  %3781 = vmatpush.msra.mxu1 %v3512_v46 }
 0x4f3   :  { %9168 = vst [vmem:[#allocation63_spill] sm:$0xff] %v8106_v40  ;;  %v8110_v55 = vpop.f32.mrf.mxu1 }
 0x4f4   :  { %9169 = vst [vmem:[#allocation64_spill] sm:$0xff] %v8110_v55  ;;  %v8112_v52 = vpop.f32.mrf.mxu2  ;;  %5958 = vmatmul.msk.f32.gmra.mxu0 %vm1852_vm4, %v7996_v37  ;;  %3782 = vmatpush.msra.mxu1 %v3509_v38 }
 0x4f5   :  { %9170 = vst [vmem:[#allocation77_spill] sm:$0xff] %v8112_v52 }
 0x4f6   :  { %3783 = vmatpush.msra.mxu1 %v3506_v57  ;;  %v3553_v57 = vld [vmem:[#allocation11 + $0xe58] sm:$0xff] }
 0x4f8   :  { %3784 = vmatpush.msra.mxu1 %v3503_v35 }
 0x4f9   :  { %v8118_v22 = vpop.f32.mrf.mxu0  ;;  %5962 = vmatmul.msk.f32.gmra.mxu2 %vm1852_vm4, %v7982_v31  ;;  %v3559_v31 = vld [vmem:[#allocation11 + $0xe88] sm:$0xff] }
 0x4fa   :  { %v8116_v54 = vpop.f32.mrf.mxu3  ;;  %3685 = vmatpush.msrb.mxu3 %v3559_v31  ;;  %v3451_v31 = vld [vmem:[#allocation11 + $0xb28] sm:$0xff] }
 0x4fb   :  { %9171 = vst [vmem:[#allocation78_spill] sm:$0xff] %v8116_v54  ;;  %v8122_v23 = vpop.f32.mrf.mxu1  ;;  %3577 = vmatpush.msra.mxu0 %v3451_v31  ;;  %v3543_v31 = vld [vmem:[#allocation11 + $0xe08] sm:$0xff] }
 0x4fc   :  { %9172 = vst [vmem:[#allocation79_spill] sm:$0xff] %v8122_v23  ;;  %v8124_v25 = vpop.f32.mrf.mxu2  ;;  %5959 = vmatmul.msk.f32.gmra.mxu0 %vm1852_vm4, %v8011_v48  ;;  %v3556_v23 = vld [vmem:[#allocation11 + $0xe70] sm:$0xff] }
 0x4fd   :  { %3686 = vmatpush.msrb.mxu3 %v3556_v23 }
 0x4ff   :  { %3687 = vmatpush.msrb.mxu3 %v3553_v57  ;;  %v3448_v57 = vld [vmem:[#allocation11 + $0xb10] sm:$0xff] }
 0x500   :  { %3578 = vmatpush.msra.mxu0 %v3448_v57  ;;  %v3537_v57 = vld [vmem:[#allocation11 + $0xdd8] sm:$0xff] }
 0x501   :  { %5963 = vmatmul.msk.f32.gmra.mxu2 %vm1852_vm4, %v7996_v37  ;;  %v8132_v52 = vpop.f32.mrf.mxu0 }
 0x502   :  { %v8128_v46 = vpop.f32.mrf.mxu3 }
 0x503   :  { %9173 = vst [vmem:[#allocation80_spill] sm:$0xff] %v8128_v46  ;;  %v8134_v55 = vpop.f32.mrf.mxu1  ;;  %v3550_v46 = vld [vmem:[#allocation11 + $0xe40] sm:$0xff] }
 0x504   :  { %9174 = vst [vmem:[#allocation81_spill] sm:$0xff] %v8134_v55  ;;  %v8136_v38 = vpop.f32.mrf.mxu2  ;;  %5960 = vmatmul.msk.f32.gmra.mxu0 %vm1852_vm4, %v8025_v4  ;;  %3688 = vmatpush.msrb.mxu3 %v3550_v46  ;;  %v3546_v46 = vld [vmem:[#allocation11 + $0xe20] sm:$0xff] }
 0x506   :  { %3813 = vmatpush.msra.mxu3 %v3560_v62  ;;  %v3522_v62 = vld [vmem:[#allocation11 + $0xd60] sm:$0xff] }
 0x508   :  { %3814 = vmatpush.msra.mxu3 %v3557_v30  ;;  %v3490_v30 = vld [vmem:[#allocation11 + $0xc60] sm:$0xff] }
 0x509   :  { %5964 = vmatmul.msk.f32.gmra.mxu2 %vm1852_vm4, %v8011_v48  ;;  %v8144_v37 = vpop.f32.mrf.mxu0  ;;  %v3549_v48 = vld [vmem:[#allocation11 + $0xe38] sm:$0xff] }
 0x50a   :  { %v8140_v35 = vpop.f32.mrf.mxu3  ;;  %9176 = vst [vmem:[#allocation83_spill] sm:$0xff] %v8144_v37  ;;  %v4219_v37 = vld [vmem:[#allocation11 + $0x1188] sm:$0xff] }
 0x50b   :  { %9175 = vst [vmem:[#allocation82_spill] sm:$0xff] %v8140_v35  ;;  %v8146_v55 = vpop.f32.mrf.mxu1 }
 0x50c   :  { %9177 = vst [vmem:[#allocation84_spill] sm:$0xff] %v8146_v55  ;;  %v8148_v54 = vpop.f32.mrf.mxu2  ;;  %v3445_v55 = vld [vmem:[#allocation11 + $0xaf8] sm:$0xff] }
 0x50d   :  { %3579 = vmatpush.msra.mxu0 %v3445_v55  ;;  %v3433_v55 = vld [vmem:[#allocation11 + $0xa98] sm:$0xff] }
 0x511   :  { %5965 = vmatmul.msk.f32.gmra.mxu2 %vm1852_vm4, %v8025_v4  ;;  %v8154_v35 = vpop.f32.mrf.mxu0  ;;  %v3439_v4 = vld [vmem:[#allocation11 + $0xac8] sm:$0xff] }
 0x512   :  { %v8150_v23 = vpop.f32.mrf.mxu3  ;;  %9179 = vst [vmem:[#allocation86_spill] sm:$0xff] %v8154_v35  ;;  %v4231_v35 = vld [vmem:[#allocation11 + $0x11e8] sm:$0xff] }
 0x513   :  { %9178 = vst [vmem:[#allocation85_spill] sm:$0xff] %v8150_v23  ;;  %v8158_v9 = vpop.f32.mrf.mxu1  ;;  %v3442_v23 = vld [vmem:[#allocation11 + $0xae0] sm:$0xff] }
 0x514   :  { %v8156_v40 = vpop.f32.mrf.mxu2  ;;  %3657 = vmatmul.f32.vlgmr.msrb.gmra.mxu1 %v8158_v9  ;;  %3580 = vmatpush.msra.mxu0 %v3442_v23  ;;  %v3534_v23 = vld [vmem:[#allocation11 + $0xdc0] sm:$0xff] }
 0x515   :  { %9180 = vst [vmem:[#allocation87_spill] sm:$0xff] %v8156_v40  ;;  %3897 = vmatpush.msrb.mxu1 %v3549_v48  ;;  %v4130_v40 = vld [vmem:[#allocation11 + $0xec0] sm:$0xff] }
 0x516   :  { %3581 = vmatpush.msra.mxu0 %v3439_v4  ;;  %v3427_v4 = vld [vmem:[#allocation11 + $0xa68] sm:$0xff] }
 0x517   :  { %3898 = vmatpush.msrb.mxu1 %v3546_v46  ;;  %v3531_v46 = vld [vmem:[#allocation11 + $0xda8] sm:$0xff] }
 0x518   :  { %3582 = vmatpush.msra.mxu0 %v3436_v19  ;;  %v3528_v19 = vld [vmem:[#allocation11 + $0xd90] sm:$0xff] }
 0x519   :  { %3899 = vmatpush.msrb.mxu1 %v3543_v31  ;;  %v8163_v10 = vpop.f32.mrf.mxu0 }
 0x51a   :  { %v8161_v13 = vpop.f32.mrf.mxu3  ;;  %9182 = vst [vmem:[#allocation89_spill] sm:$0xff] %v8163_v10  ;;  %3583 = vmatpush.msra.mxu0 %v3433_v55  ;;  %v3525_v55 = vld [vmem:[#allocation11 + $0xd78] sm:$0xff] }
 0x51b   :  { %9181 = vst [vmem:[#allocation88_spill] sm:$0xff] %v8161_v13  ;;  %v8165_v11 = vpop.f32.mrf.mxu1  ;;  %3900 = vmatpush.msrb.mxu1 %v3540_v1  ;;  %v3430_v13 = vld [vmem:[#allocation11 + $0xa80] sm:$0xff]  ;;  %v3424_v1 = vld [vmem:[#allocation11 + $0xa50] sm:$0xff] }
 0x51c   :  { %3660 = vmatmul.f32.gmra.mxu1 %v8165_v11  ;;  %v8168_v48 = vpop.f32.mrf.mxu2  ;;  %3584 = vmatpush.msra.mxu0 %v3430_v13  ;;  %v3421_v13 = vld [vmem:[#allocation11 + $0xa38] sm:$0xff] }
 0x51d   :  { %9183 = vst [vmem:[#allocation90_spill] sm:$0xff] %v8168_v48  ;;  %3901 = vmatpush.msrb.mxu1 %v3537_v57 }
 0x51e   :  { %3585 = vmatpush.msra.mxu0 %v3427_v4  ;;  %v3418_v4 = vld [vmem:[#allocation11 + $0xa20] sm:$0xff] }
 0x51f   :  { %3902 = vmatpush.msrb.mxu1 %v3534_v23 }
 0x520   :  { %3586 = vmatpush.msra.mxu0 %v3424_v1 }
 0x521   :  { %3903 = vmatpush.msrb.mxu1 %v3531_v46  ;;  %v8172_v17 = vpop.f32.mrf.mxu0  ;;  %v3554_v46 = vld [vmem:[#allocation11 + $0xe60] sm:$0xff] }
 0x522   :  { %v8170_v31 = vpop.f32.mrf.mxu3  ;;  %9185 = vst [vmem:[#allocation92_spill] sm:$0xff] %v8172_v17  ;;  %3587 = vmatpush.msra.mxu0 %v3421_v13  ;;  %v3493_v17 = vld [vmem:[#allocation11 + $0xc78] sm:$0xff]  ;;  %3815 = vmatpush.msra.mxu3 %v3554_v46 }
 0x523   :  { %9184 = vst [vmem:[#allocation91_spill] sm:$0xff] %v8170_v31  ;;  %3904 = vmatpush.msrb.mxu1 %v3528_v19  ;;  %v8174_v57 = vpop.f32.mrf.mxu1  ;;  %v3496_v31 = vld [vmem:[#allocation11 + $0xc90] sm:$0xff]  ;;  %v3519_v19 = vld [vmem:[#allocation11 + $0xd48] sm:$0xff]  ;;  %v3561_v13 = vld [vmem:[#allocation11 + $0xe98] sm:$0xff] }
 0x524   :  { %v8176_v23 = vpop.f32.mrf.mxu2  ;;  %3663 = vmatmul.f32.gmra.mxu1 %v8174_v57  ;;  %3610 = vmatpush.msra.mxu2 %v3496_v31  ;;  %v3412_v31 = vld [vmem:[#allocation11 + $0x9f0] sm:$0xff]  ;;  %v3513_v46 = vld [vmem:[#allocation11 + $0xd18] sm:$0xff] }
 0x525   :  { %9186 = vst [vmem:[#allocation93_spill] sm:$0xff] %v8176_v23  ;;  %3905 = vmatpush.msrb.mxu1 %v3525_v55  ;;  %3588 = vmatpush.msra.mxu0 %v3418_v4  ;;  %v3487_v55 = vld [vmem:[#allocation11 + $0xc48] sm:$0xff] }
 0x526   :  { %3611 = vmatpush.msra.mxu2 %v3493_v17  ;;  %3816 = vmatpush.msra.mxu3 %v3551_v21  ;;  %v3555_v21 = vld [vmem:[#allocation11 + $0xe68] sm:$0xff] }
 0x527   :  { %3906 = vmatpush.msrb.mxu1 %v3522_v62  ;;  %3589 = vmatpush.msra.mxu0 %v3415_v2  ;;  %v3558_v62 = vld [vmem:[#allocation11 + $0xe80] sm:$0xff] }
 0x528   :  { %3612 = vmatpush.msra.mxu2 %v3490_v30  ;;  %v3406_v2 = vld [vmem:[#allocation11 + $0x9c0] sm:$0xff]  ;;  %v3481_v30 = vld [vmem:[#allocation11 + $0xc18] sm:$0xff] }
 0x529   :  { %3907 = vmatpush.msrb.mxu1 %v3519_v19  ;;  %v8183_v6 = vpop.f32.mrf.mxu0  ;;  %3590 = vmatpush.msra.mxu0 %v3412_v31  ;;  %v3510_v19 = vld [vmem:[#allocation11 + $0xd00] sm:$0xff]  ;;  %v3504_v31 = vld [vmem:[#allocation11 + $0xcd0] sm:$0xff] }
 0x52a   :  { %v8179_v1 = vpop.f32.mrf.mxu3  ;;  %9187 = vst [vmem:[#allocation94_spill] sm:$0xff] %v8183_v6  ;;  %3613 = vmatpush.msra.mxu2 %v3487_v55  ;;  %v3507_v6 = vld [vmem:[#allocation11 + $0xce8] sm:$0xff]  ;;  %v3478_v55 = vld [vmem:[#allocation11 + $0xc00] sm:$0xff] }
 0x52b   :  { %5976 = vmatmul.msk.f32.vlgmr.msrb.gmra.mxu3 %vm1745_vm3, %v8179_v1  ;;  %v8185_v17 = vpop.f32.mrf.mxu1  ;;  %3908 = vmatpush.msrb.mxu1 %v3516_v24  ;;  %v3452_v24 = vld [vmem:[#allocation11 + $0xb30] sm:$0xff]  ;;  %v6127_v23 = vld [vmem:[#allocation2 + $0xf0] sm:$0xff] }
 0x52c   :  { %3941 = vmatpush.msrb.mxu3 %v3561_v13  ;;  %v8187_v4 = vpop.f32.mrf.mxu2  ;;  %3666 = vmatmul.f32.gmra.mxu1 %v8185_v17 }
 0x52d   :  { %9188 = vst [vmem:[#allocation95_spill] sm:$0xff] %v8187_v4  ;;  %3909 = vmatpush.msrb.mxu1 %v3513_v46  ;;  %3591 = vmatpush.msra.mxu0 %v3409_v28  ;;  %v3552_v4 = vld [vmem:[#allocation11 + $0xe50] sm:$0xff]  ;;  %v3449_v46 = vld [vmem:[#allocation11 + $0xb18] sm:$0xff]  ;;  %v3475_v28 = vld [vmem:[#allocation11 + $0xbe8] sm:$0xff] }
 0x52e   :  { %3942 = vmatpush.msrb.mxu3 %v3558_v62  ;;  %3614 = vmatpush.msra.mxu2 %v3484_v16 }
 0x52f   :  { %3910 = vmatpush.msrb.mxu1 %v3510_v19  ;;  %3592 = vmatpush.msra.mxu0 %v3406_v2  ;;  %v3472_v2 = vld [vmem:[#allocation11 + $0xbd0] sm:$0xff] }
 0x530   :  { %3943 = vmatpush.msrb.mxu3 %v3555_v21  ;;  %3615 = vmatpush.msra.mxu2 %v3481_v30  ;;  %v3446_v21 = vld [vmem:[#allocation11 + $0xb00] sm:$0xff]  ;;  %v3469_v30 = vld [vmem:[#allocation11 + $0xbb8] sm:$0xff] }
 0x531   :  { %3911 = vmatpush.msrb.mxu1 %v3507_v6  ;;  %v8194_v62 = vpop.f32.mrf.mxu0  ;;  %3705 = vmatpush.msrb.mxu0 %v3452_v24  ;;  %v3443_v6 = vld [vmem:[#allocation11 + $0xae8] sm:$0xff]  ;;  %v3466_v24 = vld [vmem:[#allocation11 + $0xba0] sm:$0xff] }
 0x532   :  { %v8190_v13 = vpop.f32.mrf.mxu3  ;;  %9189 = vst [vmem:[#allocation96_spill] sm:$0xff] %v8194_v62  ;;  %3944 = vmatpush.msrb.mxu3 %v3552_v4  ;;  %3616 = vmatpush.msra.mxu2 %v3478_v55  ;;  %v3440_v4 = vld [vmem:[#allocation11 + $0xad0] sm:$0xff] }
 0x533   :  { %5977 = vmatmul.msk.f32.gmra.mxu3 %vm1745_vm3, %v8190_v13  ;;  %v8196_v16 = vpop.f32.mrf.mxu1  ;;  %3912 = vmatpush.msrb.mxu1 %v3504_v31  ;;  %v3437_v31 = vld [vmem:[#allocation11 + $0xab8] sm:$0xff] }
 0x534   :  { %v8198_v19 = vpop.f32.mrf.mxu2  ;;  %3669 = vmatmul.f32.gmra.mxu1 %v8196_v16  ;;  %3706 = vmatpush.msrb.mxu0 %v3449_v46  ;;  %v3463_v46 = vld [vmem:[#allocation11 + $0xb88] sm:$0xff] }
 0x535   :  { %9190 = vst [vmem:[#allocation97_spill] sm:$0xff] %v8198_v19  ;;  %3617 = vmatpush.msra.mxu2 %v3475_v28  ;;  %v3434_v28 = vld [vmem:[#allocation11 + $0xaa0] sm:$0xff]  ;;  %v3431_v19 = vld [vmem:[#allocation11 + $0xa88] sm:$0xff] }
 0x536   :  { %3707 = vmatpush.msrb.mxu0 %v3446_v21  ;;  %v3460_v21 = vld [vmem:[#allocation11 + $0xb70] sm:$0xff] }
 0x537   :  { %3618 = vmatpush.msra.mxu2 %v3472_v2  ;;  %v6122_v2 = vld [vmem:[#allocation2 + $0x190] sm:$0xff] }
 0x538   :  { %3708 = vmatpush.msrb.mxu0 %v3443_v6  ;;  %v3457_v6 = vld [vmem:[#allocation11 + $0xb58] sm:$0xff] }
 0x539   :  { %3619 = vmatpush.msra.mxu2 %v3469_v30  ;;  %v8205_v55 = vpop.f32.mrf.mxu0 }
 0x53a   :  { %v8201_v10 = vpop.f32.mrf.mxu3  ;;  %9191 = vst [vmem:[#allocation98_spill] sm:$0xff] %v8205_v55  ;;  %3709 = vmatpush.msrb.mxu0 %v3440_v4  ;;  %v3428_v4 = vld [vmem:[#allocation11 + $0xa70] sm:$0xff]  ;;  %v6124_v55 = vld [vmem:[#allocation2 + $0x150] sm:$0xff] }
 0x53b   :  { %5978 = vmatmul.msk.f32.gmra.mxu3 %vm1745_vm3, %v8201_v10  ;;  %3620 = vmatpush.msra.mxu2 %v3466_v24  ;;  %v3454_v24 = vld [vmem:[#allocation11 + $0xb40] sm:$0xff] }
 0x53c   :  { %v8207_v62 = vpop.f32.mrf.mxu2  ;;  %3785 = vmatmul.f32.vlgmr.msra.gmra.mxu1 %v8158_v9  ;;  %3710 = vmatpush.msrb.mxu0 %v3437_v31  ;;  %v3425_v31 = vld [vmem:[#allocation11 + $0xa58] sm:$0xff] }
 0x53d   :  { %9192 = vst [vmem:[#allocation99_spill] sm:$0xff] %v8207_v62  ;;  %4064 = vmatpush.msra.mxu1 %v6122_v2  ;;  %3621 = vmatpush.msra.mxu2 %v3463_v46  ;;  %v3500_v2 = vld [vmem:[#allocation11 + $0xcb0] sm:$0xff] }
 0x53e   :  { %3711 = vmatpush.msrb.mxu0 %v3434_v28  ;;  %v6125_v28 = vld [vmem:[#allocation2 + $0x130] sm:$0xff] }
 0x53f   :  { %4065 = vmatpush.msra.mxu1 %v6123_v49  ;;  %3622 = vmatpush.msra.mxu2 %v3460_v21  ;;  %v3422_v49 = vld [vmem:[#allocation11 + $0xa40] sm:$0xff]  ;;  %v3497_v21 = vld [vmem:[#allocation11 + $0xc98] sm:$0xff] }
 0x540   :  { %3712 = vmatpush.msrb.mxu0 %v3431_v19  ;;  %v3419_v19 = vld [vmem:[#allocation11 + $0xa28] sm:$0xff] }
 0x541   :  { %4066 = vmatpush.msra.mxu1 %v6124_v55  ;;  %3623 = vmatpush.msra.mxu2 %v3457_v6  ;;  %v8214_v46 = vpop.f32.mrf.mxu0  ;;  %v3494_v55 = vld [vmem:[#allocation11 + $0xc80] sm:$0xff] }
 0x542   :  { %v8210_v30 = vpop.f32.mrf.mxu3  ;;  %9193 = vst [vmem:[#allocation100_spill] sm:$0xff] %v8214_v46  ;;  %3713 = vmatpush.msrb.mxu0 %v3428_v4  ;;  %v3416_v4 = vld [vmem:[#allocation11 + $0xa10] sm:$0xff]  ;;  %v3485_v46 = vld [vmem:[#allocation11 + $0xc38] sm:$0xff] }
 0x543   :  { %5979 = vmatmul.msk.f32.gmra.mxu3 %vm1745_vm3, %v8210_v30  ;;  %4067 = vmatpush.msra.mxu1 %v6125_v28  ;;  %v6128_v28 = vld [vmem:[#allocation2 + $0xd0] sm:$0xff] }
 0x544   :  { %v8216_v62 = vpop.f32.mrf.mxu2  ;;  %3624 = vmatpush.msra.mxu2 %v3454_v24  ;;  %3714 = vmatpush.msrb.mxu0 %v3425_v31  ;;  %v3491_v24 = vld [vmem:[#allocation11 + $0xc68] sm:$0xff]  ;;  %v3413_v31 = vld [vmem:[#allocation11 + $0x9f8] sm:$0xff] }
 0x545   :  { %9194 = vst [vmem:[#allocation101_spill] sm:$0xff] %v8216_v62  ;;  %4068 = vmatpush.msra.mxu1 %v6126_v59  ;;  %v3488_v59 = vld [vmem:[#allocation11 + $0xc50] sm:$0xff]  ;;  %v3489_v62 = vld [vmem:[#allocation11 + $0xc58] sm:$0xff] }
 0x546   :  { %3737 = vmatpush.msrb.mxu2 %v3500_v2  ;;  %3715 = vmatpush.msrb.mxu0 %v3422_v49  ;;  %v6129_v49 = vld [vmem:[#allocation2 + $0xb0] sm:$0xff] }
 0x547   :  { %4069 = vmatpush.msra.mxu1 %v6127_v23  ;;  %v3410_v23 = vld [vmem:[#allocation11 + $0x9e0] sm:$0xff] }
 0x548   :  { %3738 = vmatpush.msrb.mxu2 %v3497_v21  ;;  %3716 = vmatpush.msrb.mxu0 %v3419_v19  ;;  %v6130_v19 = vld [vmem:[#allocation2 + $0x90] sm:$0xff] }
 0x549   :  { %4070 = vmatpush.msra.mxu1 %v6128_v28  ;;  %v8222_v2 = vpop.f32.mrf.mxu0  ;;  %v3407_v28 = vld [vmem:[#allocation11 + $0x9c8] sm:$0xff] }
 0x54a   :  { %v8218_v6 = vpop.f32.mrf.mxu3  ;;  %3739 = vmatpush.msrb.mxu2 %v3494_v55  ;;  %9195 = vst [vmem:[#allocation102_spill] sm:$0xff] %v8222_v2  ;;  %3717 = vmatpush.msrb.mxu0 %v3416_v4  ;;  %v6131_v55 = vld [vmem:[#allocation2 + $0x70] sm:$0xff] }
 0x54b   :  { %5980 = vmatmul.msk.f32.gmra.mxu3 %vm1745_vm3, %v8218_v6  ;;  %3788 = vmatmul.f32.gmra.mxu1 %v8165_v11  ;;  %v3482_v4 = vld [vmem:[#allocation11 + $0xc20] sm:$0xff] }
 0x54c   :  { %4071 = vmatpush.msra.mxu1 %v6129_v49  ;;  %v8225_v21 = vpop.f32.mrf.mxu2  ;;  %3740 = vmatpush.msrb.mxu2 %v3491_v24  ;;  %v6132_v49 = vld [vmem:[#allocation2 + $0x198] sm:$0xff]  ;;  %v6133_v2 = vld [vmem:[#allocation2 + $0x50] sm:$0xff] }
 0x54d   :  { %9196 = vst [vmem:[#allocation103_spill] sm:$0xff] %v8225_v21  ;;  %3718 = vmatpush.msrb.mxu0 %v3413_v31  ;;  %v3479_v24 = vld [vmem:[#allocation11 + $0xc08] sm:$0xff] }
 0x54e   :  { %4072 = vmatpush.msra.mxu1 %v6130_v19  ;;  %3741 = vmatpush.msrb.mxu2 %v3488_v59  ;;  %v6134_v59 = vld [vmem:[#allocation2 + $0x178] sm:$0xff] }
 0x54f   :  { %3719 = vmatpush.msrb.mxu0 %v3410_v23  ;;  %v6135_v23 = vld [vmem:[#allocation2 + $0x30] sm:$0xff]  ;;  %v3476_v19 = vld [vmem:[#allocation11 + $0xbf0] sm:$0xff] }
 0x550   :  { %4073 = vmatpush.msra.mxu1 %v6131_v55  ;;  %3742 = vmatpush.msrb.mxu2 %v3485_v46  ;;  %v6136_v55 = vld [vmem:[#allocation2 + $0x158] sm:$0xff] }
 0x551   :  { %3720 = vmatpush.msrb.mxu0 %v3407_v28  ;;  %v8229_v31 = vpop.f32.mrf.mxu0  ;;  %v6137_v28 = vld [vmem:[#allocation2 + $0x10] sm:$0xff] }
 0x552   :  { %4074 = vmatpush.msra.mxu1 %v6133_v2  ;;  %9197 = vst [vmem:[#allocation104_spill] sm:$0xff] %v8229_v31  ;;  %3743 = vmatpush.msrb.mxu2 %v3482_v4  ;;  %v6138_v2 = vld [vmem:[#allocation2 + $0x138] sm:$0xff]  ;;  %v3470_v31 = vld [vmem:[#allocation11 + $0xbc0] sm:$0xff] }
 0x553   :  { %5981 = vmatmul.msk.f32.vlgmr.msra.gmra.mxu3 %vm1745_vm3, %v8179_v1  ;;  %3791 = vmatmul.f32.gmra.mxu1 %v8174_v57  ;;  %v6139_v4 = vld [vmem:[#allocation2 + $0x118] sm:$0xff] }
 0x554   :  { %4096 = vmatpush.msra.mxu3 %v6132_v49  ;;  %4075 = vmatpush.msra.mxu1 %v6135_v23  ;;  %v8232_v46 = vpop.f32.mrf.mxu2  ;;  %v3473_v49 = vld [vmem:[#allocation11 + $0xbd8] sm:$0xff] }
 0x555   :  { %9198 = vst [vmem:[#allocation105_spill] sm:$0xff] %v8232_v46  ;;  %3744 = vmatpush.msrb.mxu2 %v3479_v24  ;;  %v6140_v24 = vld [vmem:[#allocation2 + $0xf8] sm:$0xff]  ;;  %v3458_v46 = vld [vmem:[#allocation11 + $0xb60] sm:$0xff] }
 0x556   :  { %4097 = vmatpush.msra.mxu3 %v6134_v59  ;;  %4076 = vmatpush.msra.mxu1 %v6137_v28  ;;  %v3467_v59 = vld [vmem:[#allocation11 + $0xba8] sm:$0xff] }
 0x557   :  { %3745 = vmatpush.msrb.mxu2 %v3476_v19  ;;  %v3464_v19 = vld [vmem:[#allocation11 + $0xb90] sm:$0xff] }
 0x558   :  { %4098 = vmatpush.msra.mxu3 %v6136_v55  ;;  %v6141_v28 = vld [vmem:[#allocation2 + $0xd8] sm:$0xff] }
 0x559   :  { %3746 = vmatpush.msrb.mxu2 %v3473_v49  ;;  %v8236_v23 = vpop.f32.mrf.mxu0  ;;  %v3461_v49 = vld [vmem:[#allocation11 + $0xb78] sm:$0xff] }
 0x55a   :  { %4099 = vmatpush.msra.mxu3 %v6138_v2  ;;  %9199 = vst [vmem:[#allocation106_spill] sm:$0xff] %v8236_v23  ;;  %v6142_v2 = vld [vmem:[#allocation2 + $0xb8] sm:$0xff] }
 0x55b   :  { %5982 = vmatmul.msk.f32.gmra.mxu3 %vm1745_vm3, %v8190_v13  ;;  %3747 = vmatpush.msrb.mxu2 %v3470_v31  ;;  %v6143_v31 = vld [vmem:[#allocation2 + $0x98] sm:$0xff] }
 0x55c   :  { %4100 = vmatpush.msra.mxu3 %v6139_v4  ;;  %3794 = vmatmul.f32.gmra.mxu1 %v8185_v17  ;;  %v8239_v55 = vpop.f32.mrf.mxu2  ;;  %v3453_v4 = vld [vmem:[#allocation11 + $0xb38] sm:$0xff]  ;;  %v3455_v23 = vld [vmem:[#allocation11 + $0xb48] sm:$0xff] }
 0x55d   :  { %9200 = vst [vmem:[#allocation107_spill] sm:$0xff] %v8239_v55  ;;  %3748 = vmatpush.msrb.mxu2 %v3467_v59  ;;  %v6144_v59 = vld [vmem:[#allocation2 + $0x78] sm:$0xff] }
 0x55e   :  { %4101 = vmatpush.msra.mxu3 %v6140_v24  ;;  %v3444_v55 = vld [vmem:[#allocation11 + $0xaf0] sm:$0xff] }
 0x55f   :  { %3749 = vmatpush.msrb.mxu2 %v3464_v19 }
 0x560   :  { %4102 = vmatpush.msra.mxu3 %v6141_v28  ;;  %v3450_v28 = vld [vmem:[#allocation11 + $0xb20] sm:$0xff] }
 0x561   :  { %3750 = vmatpush.msrb.mxu2 %v3461_v49  ;;  %v8243_v24 = vpop.f32.mrf.mxu0  ;;  %v6145_v49 = vld [vmem:[#allocation2 + $0x58] sm:$0xff] }
 0x562   :  { %4103 = vmatpush.msra.mxu3 %v6142_v2  ;;  %3593 = vmatmul.f32.vlgmr.msra.gmra.mxu0 %v8243_v24  ;;  %v3447_v2 = vld [vmem:[#allocation11 + $0xb08] sm:$0xff] }
 0x563   :  { %5983 = vmatmul.msk.f32.gmra.mxu3 %vm1745_vm3, %v8201_v10  ;;  %3751 = vmatpush.msrb.mxu2 %v3458_v46  ;;  %v6147_v46 = vld [vmem:[#allocation2 + $0x18] sm:$0xff] }
 0x564   :  { %4104 = vmatpush.msra.mxu3 %v6143_v31  ;;  %3797 = vmatmul.f32.gmra.mxu1 %v8196_v16  ;;  %v8247_v19 = vpop.f32.mrf.mxu2  ;;  %v6146_v31 = vld [vmem:[#allocation2 + $0x38] sm:$0xff] }
 0x565   :  { %9201 = vst [vmem:[#allocation108_spill] sm:$0xff] %v8247_v19  ;;  %3833 = vmatpush.msra.mxu0 %v3453_v4  ;;  %3752 = vmatpush.msrb.mxu2 %v3455_v23  ;;  %v3438_v4 = vld [vmem:[#allocation11 + $0xac0] sm:$0xff] }
 0x566   :  { %4105 = vmatpush.msra.mxu3 %v6144_v59  ;;  %v3441_v59 = vld [vmem:[#allocation11 + $0xad8] sm:$0xff] }
 0x567   :  { %3834 = vmatpush.msra.mxu0 %v3450_v28  ;;  %v3435_v28 = vld [vmem:[#allocation11 + $0xaa8] sm:$0xff] }
 0x568   :  { %4106 = vmatpush.msra.mxu3 %v6145_v49  ;;  %v3432_v49 = vld [vmem:[#allocation11 + $0xa90] sm:$0xff] }
 0x569   :  { %3835 = vmatpush.msra.mxu0 %v3447_v2  ;;  %v8251_v21 = vpop.f32.mrf.mxu0  ;;  %v3429_v2 = vld [vmem:[#allocation11 + $0xa78] sm:$0xff] }
 0x56a   :  { %4107 = vmatpush.msra.mxu3 %v6146_v31  ;;  %3596 = vmatmul.f32.gmra.mxu0 %v8251_v21 }
 0x56b   :  { %5984 = vmatmul.msk.f32.gmra.mxu3 %vm1745_vm3, %v8210_v30  ;;  %3836 = vmatpush.msra.mxu0 %v3444_v55  ;;  %v3501_v55 = vld [vmem:[#allocation11 + $0xcb8] sm:$0xff] }
 0x56c   :  { %4108 = vmatpush.msra.mxu3 %v6147_v46  ;;  %3913 = vmatmul.f32.vlgmr.msrb.gmra.mxu1 %v8158_v9  ;;  %v8255_v23 = vpop.f32.mrf.mxu2  ;;  %v3426_v46 = vld [vmem:[#allocation11 + $0xa60] sm:$0xff] }
 0x56d   :  { %9202 = vst [vmem:[#allocation109_spill] sm:$0xff] %v8255_v23  ;;  %3837 = vmatpush.msra.mxu0 %v3441_v59  ;;  %v3498_v59 = vld [vmem:[#allocation11 + $0xca0] sm:$0xff]  ;;  %v3420_v23 = vld [vmem:[#allocation11 + $0xa30] sm:$0xff] }
 0x56f   :  { %3838 = vmatpush.msra.mxu0 %v3438_v4  ;;  %v3423_v4 = vld [vmem:[#allocation11 + $0xa48] sm:$0xff] }
 0x571   :  { %3839 = vmatpush.msra.mxu0 %v3435_v28  ;;  %v8259_v31 = vpop.f32.mrf.mxu0  ;;  %v3495_v28 = vld [vmem:[#allocation11 + $0xc88] sm:$0xff] }
 0x572   :  { %3599 = vmatmul.f32.gmra.mxu0 %v8259_v31 }
 0x573   :  { %5985 = vmatmul.msk.f32.gmra.mxu3 %vm1745_vm3, %v8218_v6  ;;  %3840 = vmatpush.msra.mxu0 %v3432_v49  ;;  %v3492_v49 = vld [vmem:[#allocation11 + $0xc70] sm:$0xff] }
 0x574   :  { %3916 = vmatmul.f32.gmra.mxu1 %v8165_v11  ;;  %v8263_v9 = vpop.f32.mrf.mxu2  ;;  %v3417_v11 = vld [vmem:[#allocation11 + $0xa18] sm:$0xff] }
 0x575   :  { %3625 = vmatmul.f32.vlgmr.msra.gmra.mxu2 %v8263_v9  ;;  %3841 = vmatpush.msra.mxu0 %v3429_v2 }
 0x576   :  { %3865 = vmatpush.msra.mxu2 %v3501_v55  ;;  %v3414_v55 = vld [vmem:[#allocation11 + $0xa00] sm:$0xff] }
 0x577   :  { %3842 = vmatpush.msra.mxu0 %v3426_v46  ;;  %v3486_v46 = vld [vmem:[#allocation11 + $0xc40] sm:$0xff] }
 0x578   :  { %3866 = vmatpush.msra.mxu2 %v3498_v59  ;;  %v3483_v59 = vld [vmem:[#allocation11 + $0xc28] sm:$0xff] }
 0x579   :  { %3843 = vmatpush.msra.mxu0 %v3423_v4  ;;  %v8268_v19 = vpop.f32.mrf.mxu0  ;;  %v3408_v4 = vld [vmem:[#allocation11 + $0x9d0] sm:$0xff] }
 0x57a   :  { %3867 = vmatpush.msra.mxu2 %v3495_v28  ;;  %3602 = vmatmul.f32.gmra.mxu0 %v8268_v19  ;;  %v3477_v28 = vld [vmem:[#allocation11 + $0xbf8] sm:$0xff] }
 0x57b   :  { %5986 = vmatmul.msk.f32.vlgmr.msrb.gmra.mxu3 %vm1745_vm3, %v8179_v1  ;;  %3844 = vmatpush.msra.mxu0 %v3420_v23  ;;  %v3411_v1 = vld [vmem:[#allocation11 + $0x9e8] sm:$0xff]  ;;  %v3480_v23 = vld [vmem:[#allocation11 + $0xc10] sm:$0xff] }
 0x57c   :  { %3919 = vmatmul.f32.gmra.mxu1 %v8174_v57  ;;  %v8272_v2 = vpop.f32.mrf.mxu2  ;;  %3868 = vmatpush.msra.mxu2 %v3492_v49  ;;  %v3474_v49 = vld [vmem:[#allocation11 + $0xbe0] sm:$0xff] }
 0x57d   :  { %3628 = vmatmul.f32.gmra.mxu2 %v8272_v2  ;;  %3845 = vmatpush.msra.mxu0 %v3417_v11  ;;  %v3471_v11 = vld [vmem:[#allocation11 + $0xbc8] sm:$0xff] }
 0x57e   :  { %3869 = vmatpush.msra.mxu2 %v3489_v62 }
 0x57f   :  { %3846 = vmatpush.msra.mxu0 %v3414_v55  ;;  %v3468_v55 = vld [vmem:[#allocation11 + $0xbb0] sm:$0xff] }
 0x580   :  { %3870 = vmatpush.msra.mxu2 %v3486_v46  ;;  %v6148_v46 = vld [vmem:[#allocation2 + $0x180] sm:$0xff] }
 0x581   :  { %3847 = vmatpush.msra.mxu0 %v3411_v1  ;;  %v8277_v57 = vpop.f32.mrf.mxu0  ;;  %v3462_v1 = vld [vmem:[#allocation11 + $0xb80] sm:$0xff] }
 0x582   :  { %3871 = vmatpush.msra.mxu2 %v3483_v59  ;;  %3605 = vmatmul.f32.gmra.mxu0 %v8277_v57  ;;  %v6149_v59 = vld [vmem:[#allocation2 + $0x160] sm:$0xff] }
 0x583   :  { %5987 = vmatmul.msk.f32.gmra.mxu3 %vm1745_vm3, %v8190_v13  ;;  %3848 = vmatpush.msra.mxu0 %v3408_v4  ;;  %v3465_v13 = vld [vmem:[#allocation11 + $0xb98] sm:$0xff]  ;;  %v3459_v4 = vld [vmem:[#allocation11 + $0xb68] sm:$0xff] }
 0x584   :  { %3922 = vmatmul.f32.gmra.mxu1 %v8185_v17  ;;  %v8281_v62 = vpop.f32.mrf.mxu2  ;;  %3872 = vmatpush.msra.mxu2 %v3480_v23  ;;  %v3456_v23 = vld [vmem:[#allocation11 + $0xb50] sm:$0xff] }
 0x585   :  { %3631 = vmatmul.f32.gmra.mxu2 %v8281_v62 }
 0x586   :  { %3873 = vmatpush.msra.mxu2 %v3477_v28  ;;  %v6151_v28 = vld [vmem:[#allocation2 + $0x120] sm:$0xff] }
 0x588   :  { %3874 = vmatpush.msra.mxu2 %v3474_v49 }
 0x58a   :  { %3875 = vmatpush.msra.mxu2 %v3471_v11  ;;  %3721 = vmatmul.f32.vlgmr.msrb.gmra.mxu0 %v8243_v24 }
 0x58b   :  { %5988 = vmatmul.msk.f32.gmra.mxu3 %vm1745_vm3, %v8201_v10  ;;  %4000 = vmatpush.msrb.mxu0 %v6148_v46  ;;  %v6150_v10 = vld [vmem:[#allocation2 + $0x140] sm:$0xff]  ;;  %v8305_v46 = vld [vmem:[#allocation9 + $0x80] sm:$0xff] }
 0x58c   :  { %3925 = vmatmul.f32.gmra.mxu1 %v8196_v16  ;;  %v8288_v17 = vpop.f32.mrf.mxu2  ;;  %3876 = vmatpush.msra.mxu2 %v3468_v55  ;;  %v8293_v16 = vld [vmem:[#allocation9 + $0x78] sm:$0xff] }
 0x58d   :  { %3634 = vmatmul.f32.gmra.mxu2 %v8288_v17  ;;  %4001 = vmatpush.msrb.mxu0 %v6149_v59  ;;  %v6152_v55 = vld [vmem:[#allocation2 + $0x100] sm:$0xff] }
 0x58e   :  { %3877 = vmatpush.msra.mxu2 %v3465_v13  ;;  %v6154_v13 = vld [vmem:[#allocation2 + $0xc0] sm:$0xff] }
 0x58f   :  { %4002 = vmatpush.msrb.mxu0 %v6150_v10  ;;  %v6157_v10 = vld [vmem:[#allocation2 + $0x188] sm:$0xff] }
 0x590   :  { %3878 = vmatpush.msra.mxu2 %v3462_v1  ;;  %v6155_v1 = vld [vmem:[#allocation2 + $0xa0] sm:$0xff] }
 0x591   :  { %4003 = vmatpush.msrb.mxu0 %v6151_v28  ;;  %v8297_v49 = vpop.f32.mrf.mxu1  ;;  %v6160_v28 = vld [vmem:[#allocation2 + $0x40] sm:$0xff] }
 0x592   :  { %3879 = vmatpush.msra.mxu2 %v3459_v4  ;;  %3724 = vmatmul.f32.gmra.mxu0 %v8251_v21  ;;  %v6156_v4 = vld [vmem:[#allocation2 + $0x80] sm:$0xff] }
 0x593   :  { %5989 = vmatmul.msk.f32.gmra.mxu3 %vm1745_vm3, %v8210_v30  ;;  %4004 = vmatpush.msrb.mxu0 %v6152_v55  ;;  %v6153_v30 = vld [vmem:[#allocation2 + $0xe0] sm:$0xff]  ;;  %v6161_v55 = vld [vmem:[#allocation2 + $0x148] sm:$0xff] }
 0x594   :  { %6001 = vmatmul.msk.f32.vlgmr.msra.gmra.mxu1 %vm1852_vm4, %v8293_v16  ;;  %v8300_v11 = vpop.f32.mrf.mxu2  ;;  %3880 = vmatpush.msra.mxu2 %v3456_v23  ;;  %v6158_v23 = vld [vmem:[#allocation2 + $0x60] sm:$0xff] }
 0x595   :  { %3637 = vmatmul.f32.gmra.mxu2 %v8300_v11  ;;  %4005 = vmatpush.msrb.mxu0 %v6153_v30  ;;  %v8315_v30 = vld [vmem:[#allocation9 + $0x88] sm:$0xff] }
 0x597   :  { %4006 = vmatpush.msrb.mxu0 %v6154_v13  ;;  %v6162_v13 = vld [vmem:[#allocation2 + $0x20] sm:$0xff] }
 0x599   :  { %4007 = vmatpush.msrb.mxu0 %v6155_v1  ;;  %v8309_v59 = vpop.f32.mrf.mxu1 }
 0x59a   :  { %3727 = vmatmul.f32.gmra.mxu0 %v8259_v31 }
 0x59b   :  { %5990 = vmatmul.msk.f32.gmra.mxu3 %vm1745_vm3, %v8218_v6  ;;  %4008 = vmatpush.msrb.mxu0 %v6156_v4  ;;  %v6159_v6 = vld [vmem:[#allocation2 + $0x168] sm:$0xff] }
 0x59c   :  { %6002 = vmatmul.msk.f32.gmra.mxu1 %vm1852_vm4, %v8305_v46  ;;  %v6163_v4 = vld [vmem:[#allocation2 + $0x128] sm:$0xff] }
 0x59d   :  { %3753 = vmatmul.f32.vlgmr.msrb.gmra.mxu2 %v8263_v9  ;;  %4009 = vmatpush.msrb.mxu0 %v6158_v23  ;;  %v6165_v23 = vld [vmem:[#allocation2 + $0x108] sm:$0xff] }
 0x59e   :  { %4032 = vmatpush.msrb.mxu2 %v6157_v10  ;;  %v6164_v10 = vld [vmem:[#allocation2] sm:$0xff] }
 0x59f   :  { %4010 = vmatpush.msrb.mxu0 %v6160_v28  ;;  %v6167_v28 = vld [vmem:[#allocation2 + $0xc8] sm:$0xff] }
 0x5a0   :  { %4033 = vmatpush.msrb.mxu2 %v6159_v6  ;;  %v6166_v6 = vld [vmem:[#allocation2 + $0xe8] sm:$0xff] }
 0x5a1   :  { %4011 = vmatpush.msrb.mxu0 %v6162_v13  ;;  %v8319_v1 = vpop.f32.mrf.mxu1 }
 0x5a2   :  { %4034 = vmatpush.msrb.mxu2 %v6161_v55  ;;  %3730 = vmatmul.f32.gmra.mxu0 %v8268_v19  ;;  %v8325_v55 = vld [vmem:[#allocation9 + $0x90] sm:$0xff] }
 0x5a3   :  { %6006 = vmatmul.msk.f32.vlgmr.msra.gmra.mxu3 %vm1852_vm4, %v8293_v16  ;;  %4012 = vmatpush.msrb.mxu0 %v6164_v10 }
 0x5a4   :  { %6003 = vmatmul.msk.f32.gmra.mxu1 %vm1852_vm4, %v8315_v30  ;;  %4035 = vmatpush.msrb.mxu2 %v6163_v4  ;;  %v6168_v4 = vld [vmem:[#allocation2 + $0xa8] sm:$0xff] }
 0x5a5   :  { %3756 = vmatmul.f32.gmra.mxu2 %v8272_v2 }
 0x5a6   :  { %4036 = vmatpush.msrb.mxu2 %v6165_v23  ;;  %v6169_v23 = vld [vmem:[#allocation2 + $0x88] sm:$0xff] }
 0x5a8   :  { %4037 = vmatpush.msrb.mxu2 %v6166_v6  ;;  %v6170_v6 = vld [vmem:[#allocation2 + $0x68] sm:$0xff] }
 0x5a9   :  { %v8329_v13 = vpop.f32.mrf.mxu1 }
 0x5aa   :  { %4038 = vmatpush.msrb.mxu2 %v6167_v28  ;;  %9203 = vst [vmem:[#allocation110_spill] sm:$0xff] %v8329_v13  ;;  %3733 = vmatmul.f32.gmra.mxu0 %v8277_v57  ;;  %v6171_v28 = vld [vmem:[#allocation2 + $0x48] sm:$0xff]  ;;  %v4183_v13 = vld [vmem:[#allocation11 + $0x1068] sm:$0xff] }
 0x5ab   :  { %6007 = vmatmul.msk.f32.gmra.mxu3 %vm1852_vm4, %v8305_v46 }
 0x5ac   :  { %6004 = vmatmul.msk.f32.gmra.mxu1 %vm1852_vm4, %v8325_v55  ;;  %4039 = vmatpush.msrb.mxu2 %v6168_v4  ;;  %v6172_v4 = vld [vmem:[#allocation2 + $0x28] sm:$0xff] }
 0x5ad   :  { %3759 = vmatmul.f32.gmra.mxu2 %v8281_v62 }
 0x5ae   :  { %v8332_v10 = vpop.f32.mrf.mxu3  ;;  %4040 = vmatpush.msrb.mxu2 %v6169_v23  ;;  %v6173_v23 = vld [vmem:[#allocation2 + $0x8] sm:$0xff] }
 0x5b0   :  { %4041 = vmatpush.msrb.mxu2 %v6170_v6 }
 0x5b1   :  { %v8344_v50 = vpop.f32.mrf.mxu1 }
 0x5b2   :  { %4042 = vmatpush.msrb.mxu2 %v6171_v28  ;;  %3849 = vmatmul.f32.vlgmr.msra.gmra.mxu0 %v8243_v24  ;;  %9204 = vst [vmem:[#allocation111_spill] sm:$0xff] %v8344_v50  ;;  %v4165_v50 = vld [vmem:[#allocation11 + $0xfd8] sm:$0xff] }
 0x5b3   :  { %6008 = vmatmul.msk.f32.gmra.mxu3 %vm1852_vm4, %v8315_v30 }
 0x5b4   :  { %6005 = vmatmul.msk.f32.gmra.mxu1 %vm1852_vm4, %v8337_v7  ;;  %4043 = vmatpush.msrb.mxu2 %v6172_v4 }
 0x5b5   :  { %3762 = vmatmul.f32.gmra.mxu2 %v8288_v17 }
 0x5b6   :  { %v8342_v33 = vpop.f32.mrf.mxu3  ;;  %4044 = vmatpush.msrb.mxu2 %v6173_v23 }
 0x5b9   :  { %v8353_v24 = vpop.f32.mrf.mxu1 }
 0x5ba   :  { %3852 = vmatmul.f32.gmra.mxu0 %v8251_v21  ;;  %9205 = vst [vmem:[#allocation112_spill] sm:$0xff] %v8353_v24 }
 0x5bb   :  { %6009 = vmatmul.msk.f32.gmra.mxu3 %vm1852_vm4, %v8325_v55 }
 0x5bd   :  { %3765 = vmatmul.f32.gmra.mxu2 %v8300_v11 }
 0x5be   :  { %v8350_v6 = vpop.f32.mrf.mxu3 }
 0x5c2   :  { %3855 = vmatmul.f32.gmra.mxu0 %v8259_v31 }
 0x5c3   :  { %6010 = vmatmul.msk.f32.gmra.mxu3 %vm1852_vm4, %v8337_v7 }
 0x5c5   :  { %3881 = vmatmul.f32.vlgmr.msra.gmra.mxu2 %v8263_v9 }
 0x5c6   :  { %v8358_v28 = vpop.f32.mrf.mxu3  ;;  %4329 = vmatpush.msra.mxu2 %v4219_v37  ;;  %v4207_v37 = vld [vmem:[#allocation11 + $0x1128] sm:$0xff] }
 0x5c7   :  { %9206 = vst [vmem:[#allocation113_spill] sm:$0xff] %v8358_v28 }
 0x5c8   :  { %v8361_v4 = vpop.f32.mrf.mxu1 }
 0x5c9   :  { %9207 = vst [vmem:[#allocation114_spill] sm:$0xff] %v8361_v4 }
 0x5ca   :  { %3858 = vmatmul.f32.gmra.mxu0 %v8268_v19 }
 0x5cd   :  { %3884 = vmatmul.f32.gmra.mxu2 %v8272_v2 }
 0x5ce   :  { %v8364_v21 = vpop.f32.mrf.mxu3 }
 0x5cf   :  { %9208 = vst [vmem:[#allocation115_spill] sm:$0xff] %v8364_v21 }
 0x5d0   :  { %v8367_v23 = vpop.f32.mrf.mxu1 }
 0x5d1   :  { %9209 = vst [vmem:[#allocation116_spill] sm:$0xff] %v8367_v23 }
 0x5d2   :  { %3861 = vmatmul.f32.gmra.mxu0 %v8277_v57 }
 0x5d5   :  { %3887 = vmatmul.f32.gmra.mxu2 %v8281_v62 }
 0x5d6   :  { %v8370_v24 = vpop.f32.mrf.mxu3 }
 0x5d7   :  { %9210 = vst [vmem:[#allocation117_spill] sm:$0xff] %v8370_v24  ;;  %v4243_v24 = vld [vmem:[#allocation11 + $0x1248] sm:$0xff] }
 0x5d9   :  { %v8373_v31 = vpop.f32.mrf.mxu1 }
 0x5da   :  { %9211 = vst [vmem:[#allocation118_spill] sm:$0xff] %v8373_v31  ;;  %5991 = vmatmul.msk.f32.vlgmr.msrb.gmra.mxu0 %vm1852_vm4, %v8293_v16 }
 0x5dd   :  { %3890 = vmatmul.f32.gmra.mxu2 %v8288_v17  ;;  %v4267_v17 = vld [vmem:[#allocation11 + $0x1308] sm:$0xff] }
 0x5de   :  { %v8377_v9 = vpop.f32.mrf.mxu3  ;;  %4361 = vmatpush.msrb.mxu1 %v4267_v17 }
 0x5df   :  { %9212 = vst [vmem:[#allocation119_spill] sm:$0xff] %v8377_v9  ;;  %v8382_v2 = vpop.f32.mrf.mxu0 }
 0x5e1   :  { %v8380_v19 = vpop.f32.mrf.mxu1 }
 0x5e2   :  { %9213 = vst [vmem:[#allocation120_spill] sm:$0xff] %v8380_v19  ;;  %5992 = vmatmul.msk.f32.gmra.mxu0 %vm1852_vm4, %v8305_v46  ;;  %v4264_v19 = vld [vmem:[#allocation11 + $0x12f0] sm:$0xff] }
 0x5e3   :  { %4362 = vmatpush.msrb.mxu1 %v4264_v19 }
 0x5e5   :  { %3893 = vmatmul.f32.gmra.mxu2 %v8300_v11 }
 0x5e6   :  { %v8386_v57 = vpop.f32.mrf.mxu3 }
 0x5e7   :  { %9214 = vst [vmem:[#allocation121_spill] sm:$0xff] %v8386_v57  ;;  %v8391_v31 = vpop.f32.mrf.mxu0  ;;  %v4261_v57 = vld [vmem:[#allocation11 + $0x12d8] sm:$0xff] }
 0x5e8   :  { %4363 = vmatpush.msrb.mxu1 %v4261_v57 }
 0x5e9   :  { %v8389_v62 = vpop.f32.mrf.mxu1 }
 0x5ea   :  { %9215 = vst [vmem:[#allocation122_spill] sm:$0xff] %v8389_v62  ;;  %5993 = vmatmul.msk.f32.gmra.mxu0 %vm1852_vm4, %v8315_v30  ;;  %v4258_v62 = vld [vmem:[#allocation11 + $0x12c0] sm:$0xff] }
 0x5eb   :  { %4364 = vmatpush.msrb.mxu1 %v4258_v62  ;;  %v4246_v62 = vld [vmem:[#allocation11 + $0x1260] sm:$0xff] }
 0x5ed   :  { %5996 = vmatmul.msk.f32.vlgmr.msrb.gmra.mxu2 %vm1852_vm4, %v8293_v16  ;;  %v4252_v16 = vld [vmem:[#allocation11 + $0x1290] sm:$0xff] }
 0x5ee   :  { %v8395_v23 = vpop.f32.mrf.mxu3 }
 0x5ef   :  { %9216 = vst [vmem:[#allocation123_spill] sm:$0xff] %v8395_v23  ;;  %v8401_v11 = vpop.f32.mrf.mxu0  ;;  %v4255_v23 = vld [vmem:[#allocation11 + $0x12a8] sm:$0xff] }
 0x5f0   :  { %4365 = vmatpush.msrb.mxu1 %v4255_v23 }
 0x5f1   :  { %v8399_v9 = vpop.f32.mrf.mxu1 }
 0x5f2   :  { %9217 = vst [vmem:[#allocation124_spill] sm:$0xff] %v8399_v9  ;;  %5994 = vmatmul.msk.f32.gmra.mxu0 %vm1852_vm4, %v8325_v55  ;;  %4366 = vmatpush.msrb.mxu1 %v4252_v16  ;;  %v4249_v9 = vld [vmem:[#allocation11 + $0x1278] sm:$0xff] }
 0x5f4   :  { %4367 = vmatpush.msrb.mxu1 %v4249_v9 }
 0x5f5   :  { %5997 = vmatmul.msk.f32.gmra.mxu2 %vm1852_vm4, %v8305_v46  ;;  %v4240_v46 = vld [vmem:[#allocation11 + $0x1230] sm:$0xff] }
 0x5f6   :  { %v8405_v4 = vpop.f32.mrf.mxu3  ;;  %4368 = vmatpush.msrb.mxu1 %v4246_v62  ;;  %v4234_v62 = vld [vmem:[#allocation11 + $0x1200] sm:$0xff] }
 0x5f7   :  { %9218 = vst [vmem:[#allocation125_spill] sm:$0xff] %v8405_v4  ;;  %v8413_v57 = vpop.f32.mrf.mxu0 }
 0x5f8   :  { %v8409_v19 = vpop.f32.mrf.mxu2  ;;  %4369 = vmatpush.msrb.mxu1 %v4243_v24  ;;  %v4228_v24 = vld [vmem:[#allocation11 + $0x11d0] sm:$0xff] }
 0x5f9   :  { %v8411_v17 = vpop.f32.mrf.mxu1 }
 0x5fa   :  { %9219 = vst [vmem:[#allocation126_spill] sm:$0xff] %v8411_v17  ;;  %5995 = vmatmul.msk.f32.gmra.mxu0 %vm1852_vm4, %v8337_v7  ;;  %4370 = vmatpush.msrb.mxu1 %v4240_v46  ;;  %v4237_v17 = vld [vmem:[#allocation11 + $0x1218] sm:$0xff] }
 0x5fc   :  { %4371 = vmatpush.msrb.mxu1 %v4237_v17  ;;  %v4225_v17 = vld [vmem:[#allocation11 + $0x11b8] sm:$0xff] }
 0x5fd   :  { %5998 = vmatmul.msk.f32.gmra.mxu2 %vm1852_vm4, %v8315_v30  ;;  %v4276_v30 = vld [vmem:[#allocation11 + $0x1350] sm:$0xff] }
 0x5fe   :  { %v8417_v4 = vpop.f32.mrf.mxu3  ;;  %4372 = vmatpush.msrb.mxu1 %v4234_v62 }
 0x5ff   :  { %9220 = vst [vmem:[#allocation127_spill] sm:$0xff] %v8417_v4  ;;  %v8425_v9 = vpop.f32.mrf.mxu0  ;;  %v4279_v4 = vld [vmem:[#allocation11 + $0x1368] sm:$0xff] }
 0x600   :  { %v8421_v23 = vpop.f32.mrf.mxu2  ;;  %9222 = vst [vmem:[#allocation129_spill] sm:$0xff] %v8425_v9  ;;  %4405 = vmatpush.msrb.mxu3 %v4279_v4  ;;  %4373 = vmatpush.msrb.mxu1 %v4231_v35  ;;  %v4274_v9 = vld [vmem:[#allocation11 + $0x1340] sm:$0xff] }
 0x601   :  { %v8423_v16 = vpop.f32.mrf.mxu1 }
 0x602   :  { %9221 = vst [vmem:[#allocation128_spill] sm:$0xff] %v8423_v16  ;;  %4406 = vmatpush.msrb.mxu3 %v4276_v30  ;;  %4374 = vmatpush.msrb.mxu1 %v4228_v24 }
 0x604   :  { %4407 = vmatpush.msrb.mxu3 %v4273_v14  ;;  %4375 = vmatpush.msrb.mxu1 %v4225_v17  ;;  %v4268_v14 = vld [vmem:[#allocation11 + $0x1310] sm:$0xff]  ;;  %v4265_v17 = vld [vmem:[#allocation11 + $0x12f8] sm:$0xff] }
 0x605   :  { %5999 = vmatmul.msk.f32.gmra.mxu2 %vm1852_vm4, %v8325_v55 }
 0x606   :  { %v8427_v21 = vpop.f32.mrf.mxu3  ;;  %4376 = vmatpush.msrb.mxu1 %v4222_v36 }
 0x607   :  { %9223 = vst [vmem:[#allocation130_spill] sm:$0xff] %v8427_v21  ;;  %v8435_v62 = vpop.f32.mrf.mxu0  ;;  %v4270_v21 = vld [vmem:[#allocation11 + $0x1320] sm:$0xff] }
 0x608   :  { %v8431_v46 = vpop.f32.mrf.mxu2  ;;  %9225 = vst [vmem:[#allocation132_spill] sm:$0xff] %v8435_v62  ;;  %4408 = vmatpush.msrb.mxu3 %v4270_v21  ;;  %4489 = vmatpush.msra.mxu1 %v4268_v14  ;;  %v4168_v14 = vld [vmem:[#allocation11 + $0xff0] sm:$0xff] }
 0x609   :  { %v8433_v16 = vpop.f32.mrf.mxu1 }
 0x60a   :  { %9224 = vst [vmem:[#allocation131_spill] sm:$0xff] %v8433_v16  ;;  %4490 = vmatpush.msra.mxu1 %v4265_v17  ;;  %v4262_v16 = vld [vmem:[#allocation11 + $0x12e0] sm:$0xff]  ;;  %v4253_v17 = vld [vmem:[#allocation11 + $0x1298] sm:$0xff] }
 0x60c   :  { %4491 = vmatpush.msra.mxu1 %v4262_v16  ;;  %v4162_v16 = vld [vmem:[#allocation11 + $0xfc0] sm:$0xff] }
 0x60d   :  { %6000 = vmatmul.msk.f32.gmra.mxu2 %vm1852_vm4, %v8337_v7 }
 0x60e   :  { %v8437_v55 = vpop.f32.mrf.mxu3 }
 0x60f   :  { %9226 = vst [vmem:[#allocation133_spill] sm:$0xff] %v8437_v55  ;;  %v8445_v30 = vpop.f32.mrf.mxu0  ;;  %v4259_v55 = vld [vmem:[#allocation11 + $0x12c8] sm:$0xff] }
 0x610   :  { %v8441_v35 = vpop.f32.mrf.mxu2  ;;  %9227 = vst [vmem:[#allocation134_spill] sm:$0xff] %v8445_v30  ;;  %v4171_v30 = vld [vmem:[#allocation11 + $0x1008] sm:$0xff]  ;;  %4492 = vmatpush.msra.mxu1 %v4259_v55 }
 0x611   :  { %v8443_v4 = vpop.f32.mrf.mxu1  ;;  %4297 = vmatpush.msra.mxu0 %v4171_v30  ;;  %v4247_v55 = vld [vmem:[#allocation11 + $0x1268] sm:$0xff] }
 0x612   :  { %4377 = vmatmul.f32.vlgmr.msrb.gmra.mxu1 %v8443_v4  ;;  %v4159_v30 = vld [vmem:[#allocation11 + $0xfa8] sm:$0xff] }
 0x613   :  { %4298 = vmatpush.msra.mxu0 %v4168_v14  ;;  %v4244_v14 = vld [vmem:[#allocation11 + $0x1250] sm:$0xff] }
 0x615   :  { %4299 = vmatpush.msra.mxu0 %v4165_v50  ;;  %v4153_v50 = vld [vmem:[#allocation11 + $0xf78] sm:$0xff] }
 0x616   :  { %v8448_v24 = vpop.f32.mrf.mxu3 }
 0x617   :  { %9228 = vst [vmem:[#allocation135_spill] sm:$0xff] %v8448_v24  ;;  %v8454_v7 = vpop.f32.mrf.mxu0  ;;  %v4256_v24 = vld [vmem:[#allocation11 + $0x12b0] sm:$0xff]  ;;  %4300 = vmatpush.msra.mxu0 %v4162_v16 }
 0x618   :  { %v8450_v21 = vpop.f32.mrf.mxu2  ;;  %9230 = vst [vmem:[#allocation137_spill] sm:$0xff] %v8454_v7  ;;  %4493 = vmatpush.msra.mxu1 %v4256_v24  ;;  %v4250_v7 = vld [vmem:[#allocation11 + $0x1280] sm:$0xff] }
 0x619   :  { %9229 = vst [vmem:[#allocation136_spill] sm:$0xff] %v8450_v21  ;;  %v8452_v36 = vpop.f32.mrf.mxu1  ;;  %4301 = vmatpush.msra.mxu0 %v4159_v30  ;;  %v4235_v30 = vld [vmem:[#allocation11 + $0x1208] sm:$0xff]  ;;  %v4232_v21 = vld [vmem:[#allocation11 + $0x11f0] sm:$0xff] }
 0x61a   :  { %4380 = vmatmul.f32.gmra.mxu1 %v8452_v36 }
 0x61b   :  { %4494 = vmatpush.msra.mxu1 %v4253_v17  ;;  %v4156_v17 = vld [vmem:[#allocation11 + $0xf90] sm:$0xff] }
 0x61c   :  { %4302 = vmatpush.msra.mxu0 %v4156_v17  ;;  %v4280_v17 = vld [vmem:[#allocation11 + $0x1370] sm:$0xff] }
 0x61d   :  { %4495 = vmatpush.msra.mxu1 %v4250_v7  ;;  %v4238_v7 = vld [vmem:[#allocation11 + $0x1220] sm:$0xff]  ;;  %4533 = vmatpush.msra.mxu3 %v4280_v17  ;;  %v4271_v17 = vld [vmem:[#allocation11 + $0x1328] sm:$0xff] }
 0x61e   :  { %v8457_v62 = vpop.f32.mrf.mxu3  ;;  %4303 = vmatpush.msra.mxu0 %v4153_v50  ;;  %v4229_v50 = vld [vmem:[#allocation11 + $0x11d8] sm:$0xff] }
 0x61f   :  { %9231 = vst [vmem:[#allocation138_spill] sm:$0xff] %v8457_v62  ;;  %v8463_v43 = vpop.f32.mrf.mxu0  ;;  %4496 = vmatpush.msra.mxu1 %v4247_v55  ;;  %v4241_v62 = vld [vmem:[#allocation11 + $0x1238] sm:$0xff]  ;;  %v4150_v55 = vld [vmem:[#allocation11 + $0xf60] sm:$0xff] }
 0x620   :  { %v8459_v48 = vpop.f32.mrf.mxu2  ;;  %9233 = vst [vmem:[#allocation140_spill] sm:$0xff] %v8463_v43  ;;  %4304 = vmatpush.msra.mxu0 %v4150_v55 }
 0x621   :  { %9232 = vst [vmem:[#allocation139_spill] sm:$0xff] %v8459_v48  ;;  %v8461_v63 = vpop.f32.mrf.mxu1  ;;  %4497 = vmatpush.msra.mxu1 %v4244_v14 }
 0x622   :  { %4383 = vmatmul.f32.gmra.mxu1 %v8461_v63  ;;  %4305 = vmatpush.msra.mxu0 %v4147_v47  ;;  %v4138_v47 = vld [vmem:[#allocation11 + $0xf00] sm:$0xff] }
 0x623   :  { %4498 = vmatpush.msra.mxu1 %v4241_v62  ;;  %v4144_v62 = vld [vmem:[#allocation11 + $0xf30] sm:$0xff] }
 0x624   :  { %4306 = vmatpush.msra.mxu0 %v4144_v62  ;;  %v4135_v62 = vld [vmem:[#allocation11 + $0xee8] sm:$0xff] }
 0x625   :  { %4499 = vmatpush.msra.mxu1 %v4238_v7 }
 0x626   :  { %v8466_v24 = vpop.f32.mrf.mxu3 }
 0x627   :  { %6011 = vmatmul.msk.f32.vlgmr.msrb.gmra.mxu3 %vm1745_vm3, %v8466_v24  ;;  %v8474_v16 = vpop.f32.mrf.mxu0  ;;  %4500 = vmatpush.msra.mxu1 %v4235_v30  ;;  %v4226_v30 = vld [vmem:[#allocation11 + $0x11c0] sm:$0xff] }
 0x628   :  { %v8470_v43 = vpop.f32.mrf.mxu2  ;;  %9235 = vst [vmem:[#allocation142_spill] sm:$0xff] %v8474_v16  ;;  %v4277_v16 = vld [vmem:[#allocation11 + $0x1358] sm:$0xff] }
 0x629   :  { %9234 = vst [vmem:[#allocation141_spill] sm:$0xff] %v8470_v43  ;;  %v8472_v48 = vpop.f32.mrf.mxu1  ;;  %4501 = vmatpush.msra.mxu1 %v4232_v21  ;;  %v4141_v43 = vld [vmem:[#allocation11 + $0xf18] sm:$0xff]  ;;  %4534 = vmatpush.msra.mxu3 %v4277_v16  ;;  %v4223_v21 = vld [vmem:[#allocation11 + $0x11a8] sm:$0xff]  ;;  %v4132_v16 = vld [vmem:[#allocation11 + $0xed0] sm:$0xff] }
 0x62a   :  { %4386 = vmatmul.f32.gmra.mxu1 %v8472_v48  ;;  %4307 = vmatpush.msra.mxu0 %v4141_v43  ;;  %v4129_v43 = vld [vmem:[#allocation11 + $0xeb8] sm:$0xff] }
 0x62b   :  { %4502 = vmatpush.msra.mxu1 %v4229_v50  ;;  %4535 = vmatpush.msra.mxu3 %v4274_v9  ;;  %v4216_v50 = vld [vmem:[#allocation11 + $0x1170] sm:$0xff]  ;;  %v4213_v9 = vld [vmem:[#allocation11 + $0x1158] sm:$0xff] }
 0x62c   :  { %4308 = vmatpush.msra.mxu0 %v4138_v47  ;;  %4330 = vmatpush.msra.mxu2 %v4216_v50  ;;  %v4266_v50 = vld [vmem:[#allocation11 + $0x1300] sm:$0xff] }
 0x62d   :  { %4503 = vmatpush.msra.mxu1 %v4226_v30  ;;  %4536 = vmatpush.msra.mxu3 %v4271_v17  ;;  %v4210_v17 = vld [vmem:[#allocation11 + $0x1140] sm:$0xff] }
 0x62e   :  { %v8477_v14 = vpop.f32.mrf.mxu3  ;;  %4309 = vmatpush.msra.mxu0 %v4135_v62  ;;  %4331 = vmatpush.msra.mxu2 %v4213_v9  ;;  %v4269_v62 = vld [vmem:[#allocation11 + $0x1318] sm:$0xff] }
 0x62f   :  { %6012 = vmatmul.msk.f32.gmra.mxu3 %vm1745_vm3, %v8477_v14  ;;  %v8485_v28 = vpop.f32.mrf.mxu0  ;;  %4504 = vmatpush.msra.mxu1 %v4223_v21 }
 0x630   :  { %v8481_v7 = vpop.f32.mrf.mxu2  ;;  %9237 = vst [vmem:[#allocation144_spill] sm:$0xff] %v8485_v28  ;;  %4310 = vmatpush.msra.mxu0 %v4132_v16  ;;  %v4126_v28 = vld [vmem:[#allocation11 + $0xea0] sm:$0xff]  ;;  %4332 = vmatpush.msra.mxu2 %v4210_v17  ;;  %v4204_v16 = vld [vmem:[#allocation11 + $0x1110] sm:$0xff] }
 0x631   :  { %9236 = vst [vmem:[#allocation143_spill] sm:$0xff] %v8481_v7  ;;  %v8483_v55 = vpop.f32.mrf.mxu1  ;;  %4617 = vmatpush.msrb.mxu1 %v4269_v62  ;;  %v4260_v17 = vld [vmem:[#allocation11 + $0x12d0] sm:$0xff] }
 0x632   :  { %4389 = vmatmul.f32.gmra.mxu1 %v8483_v55  ;;  %4311 = vmatpush.msra.mxu0 %v4129_v43  ;;  %v4201_v43 = vld [vmem:[#allocation11 + $0x10f8] sm:$0xff]  ;;  %v4172_v62 = vld [vmem:[#allocation11 + $0x1010] sm:$0xff] }
 0x633   :  { %4333 = vmatpush.msra.mxu2 %v4207_v37  ;;  %4618 = vmatpush.msrb.mxu1 %v4266_v50  ;;  %v4195_v37 = vld [vmem:[#allocation11 + $0x10c8] sm:$0xff]  ;;  %v4192_v50 = vld [vmem:[#allocation11 + $0x10b0] sm:$0xff] }
 0x634   :  { %4312 = vmatpush.msra.mxu0 %v4126_v28  ;;  %v4198_v28 = vld [vmem:[#allocation11 + $0x10e0] sm:$0xff] }
 0x635   :  { %4334 = vmatpush.msra.mxu2 %v4204_v16  ;;  %v4257_v16 = vld [vmem:[#allocation11 + $0x12b8] sm:$0xff] }
 0x636   :  { %v8488_v7 = vpop.f32.mrf.mxu3  ;;  %4425 = vmatpush.msrb.mxu0 %v4172_v62  ;;  %v4186_v62 = vld [vmem:[#allocation11 + $0x1080] sm:$0xff] }
 0x637   :  { %6013 = vmatmul.msk.f32.gmra.mxu3 %vm1745_vm3, %v8488_v7  ;;  %v8494_v47 = vpop.f32.mrf.mxu0  ;;  %4335 = vmatpush.msra.mxu2 %v4201_v43  ;;  %v4189_v43 = vld [vmem:[#allocation11 + $0x1098] sm:$0xff] }
 0x638   :  { %v8492_v30 = vpop.f32.mrf.mxu2  ;;  %9239 = vst [vmem:[#allocation146_spill] sm:$0xff] %v8494_v47  ;;  %v4263_v47 = vld [vmem:[#allocation11 + $0x12e8] sm:$0xff] }
 0x639   :  { %9238 = vst [vmem:[#allocation145_spill] sm:$0xff] %v8492_v30  ;;  %4619 = vmatpush.msrb.mxu1 %v4263_v47  ;;  %4336 = vmatpush.msra.mxu2 %v4198_v28  ;;  %v4254_v47 = vld [vmem:[#allocation11 + $0x12a0] sm:$0xff] }
 0x63a   :  { %4505 = vmatmul.f32.vlgmr.msra.gmra.mxu1 %v8443_v4 }
 0x63b   :  { %4620 = vmatpush.msrb.mxu1 %v4260_v17  ;;  %4337 = vmatpush.msra.mxu2 %v4195_v37  ;;  %v4251_v37 = vld [vmem:[#allocation11 + $0x1288] sm:$0xff] }
 0x63d   :  { %4621 = vmatpush.msrb.mxu1 %v4257_v16  ;;  %4338 = vmatpush.msra.mxu2 %v4192_v50  ;;  %v4248_v16 = vld [vmem:[#allocation11 + $0x1270] sm:$0xff] }
 0x63e   :  { %v8497_v21 = vpop.f32.mrf.mxu3  ;;  %v4160_v50 = vld [vmem:[#allocation11 + $0xfb0] sm:$0xff] }
 0x63f   :  { %6014 = vmatmul.msk.f32.gmra.mxu3 %vm1745_vm3, %v8497_v21  ;;  %v8503_v30 = vpop.f32.mrf.mxu0  ;;  %4622 = vmatpush.msrb.mxu1 %v4254_v47  ;;  %v4157_v47 = vld [vmem:[#allocation11 + $0xf98] sm:$0xff] }
 0x640   :  { %v8501_v9 = vpop.f32.mrf.mxu2  ;;  %9241 = vst [vmem:[#allocation148_spill] sm:$0xff] %v8503_v30  ;;  %v4166_v30 = vld [vmem:[#allocation11 + $0xfe0] sm:$0xff]  ;;  %4339 = vmatpush.msra.mxu2 %v4189_v43 }
 0x641   :  { %9240 = vst [vmem:[#allocation147_spill] sm:$0xff] %v8501_v9  ;;  %v4169_v9 = vld [vmem:[#allocation11 + $0xff8] sm:$0xff]  ;;  %4623 = vmatpush.msrb.mxu1 %v4251_v37  ;;  %v4154_v43 = vld [vmem:[#allocation11 + $0xf80] sm:$0xff]  ;;  %v4151_v37 = vld [vmem:[#allocation11 + $0xf68] sm:$0xff] }
 0x642   :  { %4508 = vmatmul.f32.gmra.mxu1 %v8452_v36  ;;  %4426 = vmatpush.msrb.mxu0 %v4169_v9  ;;  %v4245_v9 = vld [vmem:[#allocation11 + $0x1258] sm:$0xff] }
 0x643   :  { %4340 = vmatpush.msra.mxu2 %v4186_v62  ;;  %4624 = vmatpush.msrb.mxu1 %v4248_v16  ;;  %v4242_v62 = vld [vmem:[#allocation11 + $0x1240] sm:$0xff]  ;;  %v4239_v16 = vld [vmem:[#allocation11 + $0x1228] sm:$0xff] }
 0x644   :  { %4427 = vmatpush.msrb.mxu0 %v4166_v30  ;;  %v4177_v30 = vld [vmem:[#allocation11 + $0x1038] sm:$0xff] }
 0x645   :  { %4341 = vmatpush.msra.mxu2 %v4183_v13  ;;  %4625 = vmatpush.msrb.mxu1 %v4245_v9  ;;  %v4174_v13 = vld [vmem:[#allocation11 + $0x1020] sm:$0xff] }
 0x646   :  { %v8506_v61 = vpop.f32.mrf.mxu3  ;;  %4428 = vmatpush.msrb.mxu0 %v4163_v60  ;;  %v4142_v9 = vld [vmem:[#allocation11 + $0xf20] sm:$0xff] }
 0x647   :  { %6015 = vmatmul.msk.f32.gmra.mxu3 %vm1745_vm3, %v8506_v61  ;;  %v8512_v17 = vpop.f32.mrf.mxu0  ;;  %4626 = vmatpush.msrb.mxu1 %v4242_v62  ;;  %v4139_v62 = vld [vmem:[#allocation11 + $0xf08] sm:$0xff] }
 0x648   :  { %v8510_v28 = vpop.f32.mrf.mxu2  ;;  %9243 = vst [vmem:[#allocation150_spill] sm:$0xff] %v8512_v17  ;;  %4429 = vmatpush.msrb.mxu0 %v4160_v50  ;;  %v4148_v50 = vld [vmem:[#allocation11 + $0xf50] sm:$0xff] }
 0x649   :  { %9242 = vst [vmem:[#allocation149_spill] sm:$0xff] %v8510_v28  ;;  %v4180_v28 = vld [vmem:[#allocation11 + $0x1050] sm:$0xff]  ;;  %4627 = vmatpush.msrb.mxu1 %v4239_v16  ;;  %v4217_v16 = vld [vmem:[#allocation11 + $0x1178] sm:$0xff] }
 0x64a   :  { %4511 = vmatmul.f32.gmra.mxu1 %v8461_v63  ;;  %4342 = vmatpush.msra.mxu2 %v4180_v28  ;;  %v4145_v28 = vld [vmem:[#allocation11 + $0xf38] sm:$0xff] }
 0x64b   :  { %4430 = vmatpush.msrb.mxu0 %v4157_v47  ;;  %v4281_v47 = vld [vmem:[#allocation11 + $0x1378] sm:$0xff] }
 0x64c   :  { %4343 = vmatpush.msra.mxu2 %v4177_v30  ;;  %4661 = vmatpush.msrb.mxu3 %v4281_v47  ;;  %v4278_v30 = vld [vmem:[#allocation11 + $0x1360] sm:$0xff]  ;;  %v4220_v47 = vld [vmem:[#allocation11 + $0x1190] sm:$0xff] }
 0x64d   :  { %4431 = vmatpush.msrb.mxu0 %v4154_v43 }
 0x64e   :  { %4344 = vmatpush.msra.mxu2 %v4174_v13  ;;  %4662 = vmatpush.msrb.mxu3 %v4278_v30  ;;  %v4275_v13 = vld [vmem:[#allocation11 + $0x1348] sm:$0xff]  ;;  %v4133_v30 = vld [vmem:[#allocation11 + $0xed8] sm:$0xff] }
 0x64f   :  { %6016 = vmatmul.msk.f32.vlgmr.msra.gmra.mxu3 %vm1745_vm3, %v8466_v24  ;;  %v8519_v60 = vpop.f32.mrf.mxu0  ;;  %4432 = vmatpush.msrb.mxu0 %v4151_v37 }
 0x650   :  { %v8517_v17 = vpop.f32.mrf.mxu2  ;;  %9245 = vst [vmem:[#allocation152_spill] sm:$0xff] %v8519_v60  ;;  %v4233_v60 = vld [vmem:[#allocation11 + $0x11f8] sm:$0xff]  ;;  %4663 = vmatpush.msrb.mxu3 %v4275_v13  ;;  %4457 = vmatpush.msrb.mxu2 %v4220_v47  ;;  %v4224_v13 = vld [vmem:[#allocation11 + $0x11b0] sm:$0xff]  ;;  %v4211_v47 = vld [vmem:[#allocation11 + $0x1148] sm:$0xff] }
 0x651   :  { %9244 = vst [vmem:[#allocation151_spill] sm:$0xff] %v8517_v17  ;;  %4433 = vmatpush.msrb.mxu0 %v4148_v50  ;;  %v4236_v17 = vld [vmem:[#allocation11 + $0x1210] sm:$0xff] }
 0x652   :  { %4514 = vmatmul.f32.gmra.mxu1 %v8472_v48  ;;  %v4136_v50 = vld [vmem:[#allocation11 + $0xef0] sm:$0xff]  ;;  %4458 = vmatpush.msrb.mxu2 %v4217_v16  ;;  %v4202_v16 = vld [vmem:[#allocation11 + $0x1100] sm:$0xff] }
 0x653   :  { %4434 = vmatpush.msrb.mxu0 %v4145_v28  ;;  %4628 = vmatpush.msrb.mxu1 %v4236_v17  ;;  %v4230_v28 = vld [vmem:[#allocation11 + $0x11e0] sm:$0xff]  ;;  %v4272_v17 = vld [vmem:[#allocation11 + $0x1330] sm:$0xff] }
 0x654   :  { %4664 = vmatpush.msrb.mxu3 %v4272_v17  ;;  %v4173_v17 = vld [vmem:[#allocation11 + $0x1018] sm:$0xff] }
 0x655   :  { %4435 = vmatpush.msrb.mxu0 %v4142_v9  ;;  %4629 = vmatpush.msrb.mxu1 %v4233_v60  ;;  %v4227_v9 = vld [vmem:[#allocation11 + $0x11c8] sm:$0xff]  ;;  %v4208_v60 = vld [vmem:[#allocation11 + $0x1130] sm:$0xff] }
 0x657   :  { %6017 = vmatmul.msk.f32.gmra.mxu3 %vm1745_vm3, %v8477_v14  ;;  %v8526_v37 = vpop.f32.mrf.mxu0  ;;  %4436 = vmatpush.msrb.mxu0 %v4139_v62  ;;  %v4127_v62 = vld [vmem:[#allocation11 + $0xea8] sm:$0xff] }
 0x658   :  { %v8524_v43 = vpop.f32.mrf.mxu2  ;;  %4313 = vmatmul.f32.vlgmr.msra.gmra.mxu0 %v8526_v37  ;;  %4630 = vmatpush.msrb.mxu1 %v4230_v28  ;;  %v4199_v28 = vld [vmem:[#allocation11 + $0x10e8] sm:$0xff] }
 0x659   :  { %9246 = vst [vmem:[#allocation153_spill] sm:$0xff] %v8524_v43  ;;  %v4214_v43 = vld [vmem:[#allocation11 + $0x1160] sm:$0xff]  ;;  %4437 = vmatpush.msrb.mxu0 %v4136_v50  ;;  %v4205_v50 = vld [vmem:[#allocation11 + $0x1118] sm:$0xff] }
 0x65a   :  { %4517 = vmatmul.f32.gmra.mxu1 %v8483_v55  ;;  %4459 = vmatpush.msrb.mxu2 %v4214_v43 }
 0x65b   :  { %4438 = vmatpush.msrb.mxu0 %v4133_v30  ;;  %4631 = vmatpush.msrb.mxu1 %v4227_v9  ;;  %v4196_v30 = vld [vmem:[#allocation11 + $0x10d0] sm:$0xff]  ;;  %v4193_v9 = vld [vmem:[#allocation11 + $0x10b8] sm:$0xff] }
 0x65c   :  { %4460 = vmatpush.msrb.mxu2 %v4211_v47 }
 0x65d   :  { %4439 = vmatpush.msrb.mxu0 %v4130_v40  ;;  %4632 = vmatpush.msrb.mxu1 %v4224_v13  ;;  %v4170_v13 = vld [vmem:[#allocation11 + $0x1000] sm:$0xff] }
 0x65e   :  { %4461 = vmatpush.msrb.mxu2 %v4208_v60  ;;  %v4187_v60 = vld [vmem:[#allocation11 + $0x1088] sm:$0xff] }
 0x65f   :  { %6018 = vmatmul.msk.f32.gmra.mxu3 %vm1745_vm3, %v8488_v7  ;;  %v8534_v5 = vpop.f32.mrf.mxu0  ;;  %4440 = vmatpush.msrb.mxu0 %v4127_v62  ;;  %v4167_v62 = vld [vmem:[#allocation11 + $0xfe8] sm:$0xff] }
 0x660   :  { %v8532_v39 = vpop.f32.mrf.mxu2  ;;  %4316 = vmatmul.f32.gmra.mxu0 %v8534_v5  ;;  %4462 = vmatpush.msrb.mxu2 %v4205_v50  ;;  %v4164_v50 = vld [vmem:[#allocation11 + $0xfd0] sm:$0xff] }
 0x661   :  { %4553 = vmatpush.msra.mxu0 %v4173_v17  ;;  %v4158_v17 = vld [vmem:[#allocation11 + $0xfa0] sm:$0xff] }
 0x662   :  { %4633 = vmatmul.f32.vlgmr.msrb.gmra.mxu1 %v8443_v4  ;;  %4463 = vmatpush.msrb.mxu2 %v4202_v16  ;;  %v4190_v4 = vld [vmem:[#allocation11 + $0x10a0] sm:$0xff] }
 0x663   :  { %4554 = vmatpush.msra.mxu0 %v4170_v13  ;;  %v4178_v13 = vld [vmem:[#allocation11 + $0x1040] sm:$0xff] }
 0x664   :  { %4464 = vmatpush.msrb.mxu2 %v4199_v28  ;;  %v4161_v28 = vld [vmem:[#allocation11 + $0xfb8] sm:$0xff] }
 0x665   :  { %4555 = vmatpush.msra.mxu0 %v4167_v62  ;;  %v4175_v62 = vld [vmem:[#allocation11 + $0x1028] sm:$0xff] }
 0x666   :  { %4465 = vmatpush.msrb.mxu2 %v4196_v30  ;;  %v4181_v30 = vld [vmem:[#allocation11 + $0x1058] sm:$0xff] }
 0x667   :  { %6019 = vmatmul.msk.f32.gmra.mxu3 %vm1745_vm3, %v8497_v21  ;;  %v8542_v40 = vpop.f32.mrf.mxu0  ;;  %4556 = vmatpush.msra.mxu0 %v4164_v50 }
 0x668   :  { %v8540_v43 = vpop.f32.mrf.mxu2  ;;  %4319 = vmatmul.f32.gmra.mxu0 %v8542_v40  ;;  %4466 = vmatpush.msrb.mxu2 %v4193_v9  ;;  %v4155_v9 = vld [vmem:[#allocation11 + $0xf88] sm:$0xff] }
 0x669   :  { %4557 = vmatpush.msra.mxu0 %v4161_v28  ;;  %v4143_v28 = vld [vmem:[#allocation11 + $0xf28] sm:$0xff] }
 0x66a   :  { %4636 = vmatmul.f32.gmra.mxu1 %v8452_v36  ;;  %4467 = vmatpush.msrb.mxu2 %v4190_v4  ;;  %v4184_v36 = vld [vmem:[#allocation11 + $0x1070] sm:$0xff] }
 0x66b   :  { %4558 = vmatpush.msra.mxu0 %v4158_v17  ;;  %v4152_v4 = vld [vmem:[#allocation11 + $0xf70] sm:$0xff]  ;;  %v4137_v17 = vld [vmem:[#allocation11 + $0xef8] sm:$0xff] }
 0x66c   :  { %4468 = vmatpush.msrb.mxu2 %v4187_v60 }
 0x66d   :  { %4559 = vmatpush.msra.mxu0 %v4155_v9  ;;  %v4221_v9 = vld [vmem:[#allocation11 + $0x1198] sm:$0xff] }
 0x66e   :  { %4469 = vmatpush.msrb.mxu2 %v4184_v36  ;;  %v4146_v36 = vld [vmem:[#allocation11 + $0xf40] sm:$0xff] }
 0x66f   :  { %6020 = vmatmul.msk.f32.gmra.mxu3 %vm1745_vm3, %v8506_v61  ;;  %v8550_v16 = vpop.f32.mrf.mxu0  ;;  %4560 = vmatpush.msra.mxu0 %v4152_v4  ;;  %v4218_v4 = vld [vmem:[#allocation11 + $0x1180] sm:$0xff] }
 0x670   :  { %v8548_v47 = vpop.f32.mrf.mxu2  ;;  %4322 = vmatmul.f32.gmra.mxu0 %v8550_v16  ;;  %4470 = vmatpush.msrb.mxu2 %v4181_v30 }
 0x671   :  { %4345 = vmatmul.f32.vlgmr.msra.gmra.mxu2 %v8548_v47 }
 0x672   :  { %4639 = vmatmul.f32.gmra.mxu1 %v8461_v63  ;;  %4471 = vmatpush.msrb.mxu2 %v4178_v13  ;;  %v4149_v63 = vld [vmem:[#allocation11 + $0xf58] sm:$0xff]  ;;  %v4134_v13 = vld [vmem:[#allocation11 + $0xee0] sm:$0xff] }
 0x673   :  { %4561 = vmatpush.msra.mxu0 %v4149_v63  ;;  %v4212_v63 = vld [vmem:[#allocation11 + $0x1150] sm:$0xff] }
 0x674   :  { %4472 = vmatpush.msrb.mxu2 %v4175_v62  ;;  %v4215_v62 = vld [vmem:[#allocation11 + $0x1168] sm:$0xff] }
 0x675   :  { %4562 = vmatpush.msra.mxu0 %v4146_v36 }
 0x676   :  { %4585 = vmatpush.msra.mxu2 %v4221_v9 }
 0x677   :  { %6021 = vmatmul.msk.f32.vlgmr.msrb.gmra.mxu3 %vm1745_vm3, %v8466_v24  ;;  %v8559_v60 = vpop.f32.mrf.mxu0  ;;  %v4140_v24 = vld [vmem:[#allocation11 + $0xf10] sm:$0xff]  ;;  %4563 = vmatpush.msra.mxu0 %v4143_v28  ;;  %v4209_v28 = vld [vmem:[#allocation11 + $0x1138] sm:$0xff] }
 0x678   :  { %v8557_v50 = vpop.f32.mrf.mxu2  ;;  %4325 = vmatmul.f32.gmra.mxu0 %v8559_v60  ;;  %4586 = vmatpush.msra.mxu2 %v4218_v4  ;;  %v4191_v4 = vld [vmem:[#allocation11 + $0x10a8] sm:$0xff] }
 0x679   :  { %4348 = vmatmul.f32.gmra.mxu2 %v8557_v50  ;;  %4564 = vmatpush.msra.mxu0 %v4140_v24  ;;  %v4206_v24 = vld [vmem:[#allocation11 + $0x1120] sm:$0xff] }
 0x67a   :  { %4642 = vmatmul.f32.gmra.mxu1 %v8472_v48  ;;  %v4131_v48 = vld [vmem:[#allocation11 + $0xec8] sm:$0xff]  ;;  %4587 = vmatpush.msra.mxu2 %v4215_v62  ;;  %v4182_v62 = vld [vmem:[#allocation11 + $0x1060] sm:$0xff] }
 0x67b   :  { %4565 = vmatpush.msra.mxu0 %v4137_v17  ;;  %v4203_v17 = vld [vmem:[#allocation11 + $0x1108] sm:$0xff] }
 0x67c   :  { %4588 = vmatpush.msra.mxu2 %v4212_v63  ;;  %v4176_v63 = vld [vmem:[#allocation11 + $0x1030] sm:$0xff] }
 0x67d   :  { %4566 = vmatpush.msra.mxu0 %v4134_v13  ;;  %v4194_v13 = vld [vmem:[#allocation11 + $0x10c0] sm:$0xff] }
 0x67e   :  { %4589 = vmatpush.msra.mxu2 %v4209_v28 }
 0x67f   :  { %6022 = vmatmul.msk.f32.gmra.mxu3 %vm1745_vm3, %v8477_v14  ;;  %v4128_v14 = vld [vmem:[#allocation11 + $0xeb0] sm:$0xff]  ;;  %4567 = vmatpush.msra.mxu0 %v4131_v48 }
 0x680   :  { %v8566_v30 = vpop.f32.mrf.mxu2  ;;  %4441 = vmatmul.f32.vlgmr.msrb.gmra.mxu0 %v8526_v37  ;;  %4590 = vmatpush.msra.mxu2 %v4206_v24  ;;  %v4188_v48 = vld [vmem:[#allocation11 + $0x1090] sm:$0xff] }
 0x681   :  { %4351 = vmatmul.f32.gmra.mxu2 %v8566_v30  ;;  %4568 = vmatpush.msra.mxu0 %v4128_v14  ;;  %v4179_v14 = vld [vmem:[#allocation11 + $0x1048] sm:$0xff] }
 0x682   :  { %4645 = vmatmul.f32.gmra.mxu1 %v8483_v55  ;;  %v4200_v55 = vld [vmem:[#allocation11 + $0x10f0] sm:$0xff]  ;;  %4591 = vmatpush.msra.mxu2 %v4203_v17 }
 0x684   :  { %4592 = vmatpush.msra.mxu2 %v4200_v55 }
 0x687   :  { %6023 = vmatmul.msk.f32.gmra.mxu3 %vm1745_vm3, %v8488_v7  ;;  %v4197_v7 = vld [vmem:[#allocation11 + $0x10d8] sm:$0xff] }
 0x688   :  { %v4055_v36 = vpop.f32.mrf.mxu2  ;;  %4444 = vmatmul.f32.gmra.mxu0 %v8534_v5  ;;  %4593 = vmatpush.msra.mxu2 %v4197_v7 }
 0x689   :  { %4354 = vmatmul.f32.gmra.mxu2 %v4055_v36 }
 0x68a   :  { %4594 = vmatpush.msra.mxu2 %v4194_v13 }
 0x68c   :  { %4595 = vmatpush.msra.mxu2 %v4191_v4 }
 0x68e   :  { %4596 = vmatpush.msra.mxu2 %v4188_v48 }
 0x68f   :  { %6024 = vmatmul.msk.f32.gmra.mxu3 %vm1745_vm3, %v8497_v21  ;;  %v4185_v21 = vld [vmem:[#allocation11 + $0x1078] sm:$0xff]  ;;  %v4378_v28 = vpop.f32.mrf.mxu1 }
 0x690   :  { %v4058_v9 = vpop.f32.mrf.mxu2  ;;  %4447 = vmatmul.f32.gmra.mxu0 %v8542_v40  ;;  %4597 = vmatpush.msra.mxu2 %v4185_v21 }
 0x691   :  { %4357 = vmatmul.f32.gmra.mxu2 %v4058_v9 }
 0x692   :  { %4598 = vmatpush.msra.mxu2 %v4182_v62 }
 0x694   :  { %4599 = vmatpush.msra.mxu2 %v4179_v14  ;;  %v3633_v14 = vadd.f32 %v8431_v46, %v8401_v11 }
 0x696   :  { %4600 = vmatpush.msra.mxu2 %v4176_v63 }
 0x697   :  { %6025 = vmatmul.msk.f32.gmra.mxu3 %vm1745_vm3, %v8506_v61 }
 0x698   :  { %4450 = vmatmul.f32.gmra.mxu0 %v8550_v16 }
 0x699   :  { %4473 = vmatmul.f32.vlgmr.msrb.gmra.mxu2 %v8548_v47 }
 0x6a0   :  { %4453 = vmatmul.f32.gmra.mxu0 %v8559_v60 }
 0x6a1   :  { %4476 = vmatmul.f32.gmra.mxu2 %v8557_v50 }
 0x6a8   :  { %4569 = vmatmul.f32.vlgmr.msra.gmra.mxu0 %v8526_v37 }
 0x6a9   :  { %4479 = vmatmul.f32.gmra.mxu2 %v8566_v30 }
 0x6aa   :  { %v4410_v37 = vpop.f32.mrf.mxu3 }
 0x6b0   :  { %4572 = vmatmul.f32.gmra.mxu0 %v8534_v5  ;;  %v4381_v5 = vpop.f32.mrf.mxu1 }
 0x6b1   :  { %4482 = vmatmul.f32.gmra.mxu2 %v4055_v36 }
 0x6b2   :  { %v4413_v17 = vpop.f32.mrf.mxu3 }
 0x6b8   :  { %4575 = vmatmul.f32.gmra.mxu0 %v8542_v40  ;;  %v2555_v40 = vadd.f32 %v7836_v15, %v7942_v44 }
 0x6b9   :  { %4485 = vmatmul.f32.gmra.mxu2 %v4058_v9 }
 0x6c0   :  { %4578 = vmatmul.f32.gmra.mxu0 %v8550_v16 }
 0x6c1   :  { %4601 = vmatmul.f32.vlgmr.msra.gmra.mxu2 %v8548_v47  ;;  %v2587_v47 = vadd.f32 %v7857_v29, %v2555_v40 }
 0x6c8   :  { %4581 = vmatmul.f32.gmra.mxu0 %v8559_v60  ;;  %v3627_v60 = vadd.f32 %v8409_v19, %v8382_v2  ;;  %v3630_v2 = vadd.f32 %v8421_v23, %v8391_v31 }
 0x6c9   :  { %4604 = vmatmul.f32.gmra.mxu2 %v8557_v50  ;;  %v2890_v50 = vadd.f32 %v8093_v18, %v2587_v47 }
 0x6ca   :  { %v3659_v7 = vadd.f32 %v8297_v49, %v3627_v60  ;;  %v9248_v60 = vld [vmem:[#allocation71_spill] sm:$0xff] }
 0x6cb   :  { %v2922_v55 = vadd.f32 %v8124_v25, %v2890_v50  ;;  %v8610_v25 = vld [vmem:[#allocation12] sm:$0x7] }
 0x6cc   :  { %v3691_v18 = vadd.f32 %v8332_v10, %v3659_v7  ;;  %v8616_v21 = vperm.slane %v8610_v25, 0 }
 0x6cd   :  { %v2954_v15 = vadd.f32 %v7978_v41, %v2922_v55 }
 0x6cf   :  { %v2986_v49 = vadd.f32 %v8018_v42, %v2954_v15 }
 0x6d1   :  { %4607 = vmatmul.f32.gmra.mxu2 %v8566_v30  ;;  %v4384_v30 = vpop.f32.mrf.mxu1  ;;  %v3961_v48 = vadd.f32 %v3691_v18, %v2986_v49  ;;  %v9254_v49 = vld [vmem:[#allocation113_spill] sm:$0xff] }
 0x6d5   :  { %v4314_v61 = vpop.f32.mrf.mxu0 }
 0x6d9   :  { %4610 = vmatmul.f32.gmra.mxu2 %v4055_v36  ;;  %v2558_v36 = vadd.f32 %v7843_v26, %v7953_v56  ;;  %v2561_v26 = vadd.f32 %v7850_v12, %v7964_v58  ;;  %v4387_v4 = vpop.f32.mrf.mxu1 }
 0x6db   :  { %v2590_v13 = vadd.f32 %v7866_v32, %v2558_v36  ;;  %v2593_v31 = vadd.f32 %v7875_v3, %v2561_v26 }
 0x6dd   :  { %v4317_v24 = vpop.f32.mrf.mxu0  ;;  %v2893_v44 = vadd.f32 %v8104_v8, %v2590_v13  ;;  %v3662_v8 = vadd.f32 %v8309_v59, %v3630_v2  ;;  %v2896_v62 = vadd.f32 %v8118_v22, %v2593_v31  ;;  %v9250_v13 = vld [vmem:[#allocation110_spill] sm:$0xff]  ;;  %v9253_v2 = vld [vmem:[#allocation83_spill] sm:$0xff]  ;;  %v9258_v31 = vld [vmem:[#allocation41_spill] sm:$0xff] }
 0x6df   :  { %v2925_v32 = vadd.f32 %v8136_v38, %v2893_v44  ;;  %v3694_v38 = vadd.f32 %v8342_v33, %v3662_v8  ;;  %v3665_v33 = vadd.f32 %v8319_v1, %v3633_v14  ;;  %v9252_v44 = vld [vmem:[#allocation70_spill] sm:$0xff] }
 0x6e1   :  { %4613 = vmatmul.f32.gmra.mxu2 %v4058_v9  ;;  %v4416_v9 = vpop.f32.mrf.mxu3  ;;  %v2957_v12 = vadd.f32 %v7992_v27, %v2925_v32  ;;  %v2928_v27 = vadd.f32 %v8148_v54, %v2896_v62  ;;  %v4390_v46 = vpop.f32.mrf.mxu1  ;;  %v3697_v54 = vadd.f32 %v8350_v6, %v3665_v33  ;;  %v9259_v62 = vld [vmem:[#allocation72_spill] sm:$0xff] }
 0x6e3   :  { %v2989_v3 = vadd.f32 %v8032_v53, %v2957_v12 }
 0x6e5   :  { %v4320_v16 = vpop.f32.mrf.mxu0 }
 0x6e9   :  { %v4419_v23 = vpop.f32.mrf.mxu3 }
 0x6ed   :  { %v4323_v56 = vpop.f32.mrf.mxu0 }
 0x6f4   :  { %v4346_v29 = vpop.f32.mrf.mxu2 }
 0x6f5   :  { %v4347_v19 = vadd.f32 %v4346_v29, %v4314_v61  ;;  %v2564_v61 = vadd.f32 %v7859_v45, %v7980_v0  ;;  %v4422_v0 = vpop.f32.mrf.mxu3  ;;  %v9251_v29 = vld [vmem:[#allocation65_spill] sm:$0xff] }
 0x6f7   :  { %v4379_v41 = vadd.f32 %v4378_v28, %v4347_v19  ;;  %v4326_v28 = vpop.f32.mrf.mxu0  ;;  %v2596_v11 = vadd.f32 %v7884_v51, %v2564_v61 }
 0x6f9   :  { %v4411_v10 = vadd.f32 %v4410_v37, %v4379_v41  ;;  %v3964_v37 = vadd.f32 %v3694_v38, %v2989_v3  ;;  %v2899_v45 = vadd.f32 %v8132_v52, %v2596_v11  ;;  %v9255_v41 = vld [vmem:[#allocation129_spill] sm:$0xff]  ;;  %v9260_v38 = vld [vmem:[#allocation90_spill] sm:$0xff]  ;;  %v9261_v3 = vld [vmem:[#allocation111_spill] sm:$0xff] }
 0x6fb   :  { %v4681_v58 = vadd.f32 %v4411_v10, %v3961_v48  ;;  %v9256_v48 = vld [vmem:[#allocation136_spill] sm:$0xff] }
 0x6fc   :  { %v4349_v42 = vpop.f32.mrf.mxu2  ;;  %v3639_v8 = vadd.f32 %v9256_v48, %v9255_v41  ;;  %v9276_v41 = vld [vmem:[#allocation141_spill] sm:$0xff] }
 0x6fd   :  { %v8625_v59 = vadd.f32 %v8616_v21, %v4681_v58  ;;  %v4350_v63 = vadd.f32 %v4349_v42, %v4317_v24  ;;  %v2960_v24 = vadd.f32 %v8006_v34, %v2928_v27  ;;  %v9249_v34 = vld [vmem:[#allocation87_spill] sm:$0xff]  ;;  %v4538_v58 = vpop.f32.mrf.mxu3 }
 0x6fe   :  { %v2931_v55 = vadd.f32 %v9249_v34, %v2899_v45  ;;  %v3671_v27 = vadd.f32 %v9261_v3, %v3639_v8  ;;  %v9269_v34 = vld [vmem:[#allocation39_spill] sm:$0xff] }
 0x6ff   :  { %4719 = vst [vmem:[#allocation3] sm:$0xff] %v8625_v59  ;;  %v4382_v22 = vadd.f32 %v4381_v5, %v4350_v63  ;;  %v3636_v5 = vadd.f32 %v8441_v35, %v8413_v57  ;;  %v2992_v36 = vadd.f32 %v9248_v60, %v2960_v24  ;;  %v4442_v35 = vpop.f32.mrf.mxu0  ;;  %v9264_v24 = vld [vmem:[#allocation86_spill] sm:$0xff]  ;;  %v9282_v3 = vld [vmem:[#allocation95_spill] sm:$0xff] }
 0x700   :  { %v2963_v18 = vadd.f32 %v9252_v44, %v2931_v55  ;;  %v9272_v44 = vld [vmem:[#allocation112_spill] sm:$0xff] }
 0x701   :  { %v4414_v40 = vadd.f32 %v4413_v17, %v4382_v22  ;;  %v9247_v17 = vld [vmem:[#allocation26_spill] sm:$0xff]  ;;  %v3967_v7 = vadd.f32 %v3697_v54, %v2992_v36  ;;  %v3668_v6 = vadd.f32 %v9250_v13, %v3636_v5  ;;  %v9265_v54 = vld [vmem:[#allocation115_spill] sm:$0xff]  ;;  %v9271_v13 = vld [vmem:[#allocation93_spill] sm:$0xff] }
 0x702   :  { %v2567_v51 = vadd.f32 %v9247_v17, %v7994_v20  ;;  %v4506_v20 = vpop.f32.mrf.mxu1  ;;  %v2995_v42 = vadd.f32 %v9259_v62, %v2963_v18  ;;  %v3703_v5 = vadd.f32 %v9265_v54, %v3671_v27  ;;  %v9267_v17 = vld [vmem:[#allocation139_spill] sm:$0xff] }
 0x703   :  { %v4684_v47 = vadd.f32 %v4414_v40, %v3964_v37  ;;  %v3700_v32 = vadd.f32 %v9254_v49, %v3668_v6  ;;  %v9262_v37 = vld [vmem:[#allocation43_spill] sm:$0xff]  ;;  %v9263_v40 = vld [vmem:[#allocation52_spill] sm:$0xff] }
 0x704   :  { %v4352_v53 = vpop.f32.mrf.mxu2  ;;  %v2599_v57 = vadd.f32 %v9251_v29, %v2567_v51 }
 0x705   :  { %v8640_v50 = vadd.f32 %v8616_v21, %v4684_v47  ;;  %v4353_v1 = vadd.f32 %v4352_v53, %v4320_v16  ;;  %v3970_v61 = vadd.f32 %v3700_v32, %v2995_v42  ;;  %v4541_v29 = vpop.f32.mrf.mxu3  ;;  %v9279_v42 = vld [vmem:[#allocation51_spill] sm:$0xff] }
 0x706   :  { %v2902_v19 = vadd.f32 %v9253_v2, %v2599_v57  ;;  %v9273_v2 = vld [vmem:[#allocation66_spill] sm:$0xff] }
 0x707   :  { %4723 = vst [vmem:[#allocation3 + $0x18] sm:$0xff] %v8640_v50  ;;  %v4385_v52 = vadd.f32 %v4384_v30, %v4353_v1  ;;  %v4445_v45 = vpop.f32.mrf.mxu0  ;;  %v9266_v1 = vld [vmem:[#allocation132_spill] sm:$0xff] }
 0x708   :  { %v2934_v14 = vadd.f32 %v9260_v38, %v2902_v19  ;;  %v3755_v51 = vadd.f32 %v9267_v17, %v9266_v1  ;;  %v9280_v38 = vld [vmem:[#allocation27_spill] sm:$0xff] }
 0x709   :  { %v4417_v15 = vadd.f32 %v4416_v9, %v4385_v52  ;;  %v9257_v9 = vld [vmem:[#allocation48_spill] sm:$0xff]  ;;  %v9270_v52 = vld [vmem:[#allocation73_spill] sm:$0xff] }
 0x70a   :  { %v2683_v12 = vadd.f32 %v9258_v31, %v9257_v9  ;;  %v2966_v11 = vadd.f32 %v9263_v40, %v2934_v14  ;;  %v4509_v36 = vpop.f32.mrf.mxu1  ;;  %v3787_v18 = vadd.f32 %v9272_v44, %v3755_v51  ;;  %v9278_v31 = vld [vmem:[#allocation117_spill] sm:$0xff]  ;;  %v9292_v44 = vld [vmem:[#allocation75_spill] sm:$0xff] }
 0x70b   :  { %v4687_v16 = vadd.f32 %v4417_v15, %v3967_v7 }
 0x70c   :  { %v4355_v26 = vpop.f32.mrf.mxu2  ;;  %v2715_v33 = vadd.f32 %v9262_v37, %v2683_v12  ;;  %v2998_v7 = vadd.f32 %v9270_v52, %v2966_v11  ;;  %v3819_v12 = vadd.f32 %v9278_v31, %v3787_v18  ;;  %v9283_v37 = vld [vmem:[#allocation114_spill] sm:$0xff]  ;;  %v9296_v31 = vld [vmem:[#allocation35_spill] sm:$0xff] }
 0x70d   :  { %v8655_v30 = vadd.f32 %v8616_v21, %v4687_v16  ;;  %v4356_v10 = vadd.f32 %v4355_v26, %v4323_v56  ;;  %v9274_v26 = vld [vmem:[#allocation33_spill] sm:$0xff] }
 0x70e   :  { %v3018_v47 = vadd.f32 %v9264_v24, %v2715_v33  ;;  %v3973_v57 = vadd.f32 %v3703_v5, %v2998_v7  ;;  %v9286_v5 = vld [vmem:[#allocation92_spill] sm:$0xff] }
 0x70f   :  { %4726 = vst [vmem:[#allocation3 + $0x30] sm:$0xff] %v8655_v30  ;;  %v4388_v63 = vadd.f32 %v4387_v4, %v4356_v10  ;;  %v9277_v10 = vld [vmem:[#allocation89_spill] sm:$0xff]  ;;  %v4448_v14 = vpop.f32.mrf.mxu0 }
 0x710   :  { %v3050_v6 = vadd.f32 %v9271_v13, %v3018_v47  ;;  %v4544_v47 = vpop.f32.mrf.mxu3  ;;  %v8711_v7 = vld [vmem:[#allocation14] sm:$0xff] }
 0x711   :  { %v4420_v22 = vadd.f32 %v4419_v23, %v4388_v63  ;;  %v9268_v23 = vld [vmem:[#allocation32_spill] sm:$0xff]  ;;  %v9281_v63 = vld [vmem:[#allocation74_spill] sm:$0xff] }
 0x712   :  { %v2686_v55 = vadd.f32 %v9269_v34, %v9268_v23  ;;  %v3082_v49 = vadd.f32 %v9274_v26, %v3050_v6  ;;  %v4512_v40 = vpop.f32.mrf.mxu1  ;;  %v9289_v23 = vld [vmem:[#allocation143_spill] sm:$0xff]  ;;  %v4952_v13 = vld [vmem:[#allocation15 + $0x238] sm:$0xff]  ;;  %v9290_v6 = vld [vmem:[#allocation54_spill] sm:$0xff] }
 0x713   :  { %v4690_v56 = vadd.f32 %v4420_v22, %v3970_v61 }
 0x714   :  { %v4358_v53 = vpop.f32.mrf.mxu2  ;;  %v2718_v19 = vadd.f32 %v9273_v2, %v2686_v55  ;;  %v3114_v61 = vadd.f32 %v9281_v63, %v3082_v49 }
 0x715   :  { %v8670_v4 = vadd.f32 %v8616_v21, %v4690_v56  ;;  %v4359_v60 = vadd.f32 %v4358_v53, %v4326_v28  ;;  %v9275_v28 = vld [vmem:[#allocation134_spill] sm:$0xff]  ;;  %v9284_v56 = vld [vmem:[#allocation45_spill] sm:$0xff] }
 0x716   :  { %v3758_v48 = vadd.f32 %v9276_v41, %v9275_v28  ;;  %v3021_v9 = vadd.f32 %v9277_v10, %v2718_v19  ;;  %v3962_v11 = vadd.f32 %v3819_v12, %v3114_v61  ;;  %v9295_v10 = vld [vmem:[#allocation67_spill] sm:$0xff] }
 0x717   :  { %v4391_v15 = vadd.f32 %v4390_v46, %v4359_v60  ;;  %v9288_v60 = vld [vmem:[#allocation137_spill] sm:$0xff]  ;;  %v4451_v26 = vpop.f32.mrf.mxu0 }
 0x718   :  { %v3053_v27 = vadd.f32 %v9282_v3, %v3021_v9  ;;  %v3790_v33 = vadd.f32 %v9283_v37, %v3758_v48  ;;  %v3761_v34 = vadd.f32 %v9289_v23, %v9288_v60  ;;  %v4950_v48 = vld [vmem:[#allocation15 + $0x228] sm:$0xff]  ;;  %v4547_v63 = vpop.f32.mrf.mxu3 }
 0x719   :  { %v4423_v16 = vadd.f32 %v4422_v0, %v4391_v15  ;;  %v2689_v0 = vadd.f32 %v9280_v38, %v9279_v42  ;;  %v9291_v15 = vld [vmem:[#allocation40_spill] sm:$0xff]  ;;  %v4949_v42 = vld [vmem:[#allocation15 + $0x220] sm:$0xff] }
 0x71a   :  { %v9297_v38 = vld [vmem:[#allocation94_spill] sm:$0xff] }
 0x71b   :  { %v4693_v32 = vadd.f32 %v4423_v16, %v3973_v57  ;;  %v2721_v24 = vadd.f32 %v9284_v56, %v2689_v0  ;;  %v2692_v57 = vadd.f32 %v9291_v15, %v9290_v6  ;;  %v9293_v16 = vld [vmem:[#allocation97_spill] sm:$0xff]  ;;  %v9301_v56 = vld [vmem:[#allocation56_spill] sm:$0xff]  ;;  %v9305_v60 = vld [vmem:[#allocation118_spill] sm:$0xff] }
 0x71c   :  { %v4474_v8 = vpop.f32.mrf.mxu2  ;;  %v9307_v15 = vld [vmem:[#allocation36_spill] sm:$0xff] }
 0x71d   :  { %v8684_v46 = vadd.f32 %v8616_v21, %v4693_v32  ;;  %v4475_v62 = vadd.f32 %v4474_v8, %v4442_v35  ;;  %v8694_v35 = vperm.slane %v8610_v25, 1  ;;  %v3024_v1 = vadd.f32 %v9286_v5, %v2721_v24  ;;  %v9294_v32 = vld [vmem:[#allocation116_spill] sm:$0xff]  ;;  %v8722_v8 = vld [vmem:[#allocation14 + $0x8] sm:$0xff]  ;;  %v9304_v5 = vld [vmem:[#allocation99_spill] sm:$0xff] }
 0x71e   :  { %v3793_v28 = vadd.f32 %v9294_v32, %v3761_v34  ;;  %v2724_v9 = vadd.f32 %v9295_v10, %v2692_v57  ;;  %v9302_v24 = vld [vmem:[#allocation28_spill] sm:$0xff]  ;;  %v9310_v32 = vld [vmem:[#allocation142_spill] sm:$0xff] }
 0x71f   :  { %v4507_v22 = vadd.f32 %v4506_v20, %v4475_v62  ;;  %4766 = vmatpush.msrb.mxu0 %v8684_v46  ;;  %4871 = vmatpush.msrb.mxu2 %v8684_v46  ;;  %v9285_v20 = vld [vmem:[#allocation34_spill] sm:$0xff]  ;;  %v3056_v2 = vadd.f32 %v9293_v16, %v3024_v1  ;;  %v9308_v16 = vld [vmem:[#allocation96_spill] sm:$0xff] }
 0x720   :  { %v3085_v53 = vadd.f32 %v9285_v20, %v3053_v27  ;;  %v3027_v0 = vadd.f32 %v9297_v38, %v2724_v9  ;;  %v9299_v27 = vld [vmem:[#allocation140_spill] sm:$0xff]  ;;  %v2695_v20 = vadd.f32 %v9302_v24, %v9301_v56  ;;  %v9312_v9 = vld [vmem:[#allocation57_spill] sm:$0xff] }
 0x721   :  { %v4539_v21 = vadd.f32 %v4538_v58, %v4507_v22  ;;  %4767 = vmatpush.msrb.mxu0 %v8670_v4  ;;  %4872 = vmatpush.msrb.mxu2 %v8670_v4  ;;  %v9287_v58 = vld [vmem:[#allocation119_spill] sm:$0xff]  ;;  %v3088_v12 = vadd.f32 %v9296_v31, %v3056_v2  ;;  %v9300_v22 = vld [vmem:[#allocation145_spill] sm:$0xff]  ;;  %v9313_v31 = vld [vmem:[#allocation42_spill] sm:$0xff] }
 0x722   :  { %v3822_v17 = vadd.f32 %v9287_v58, %v3790_v33  ;;  %v3117_v18 = vadd.f32 %v9292_v44, %v3085_v53  ;;  %v3764_v37 = vadd.f32 %v9300_v22, %v9299_v27  ;;  %v9303_v53 = vld [vmem:[#allocation62_spill] sm:$0xff]  ;;  %v3059_v1 = vadd.f32 %v9304_v5, %v3027_v0  ;;  %v4944_v10 = vld [vmem:[#allocation15 + $0x1f8] sm:$0xff] }
 0x723   :  { %v4682_v54 = vadd.f32 %v4539_v21, %v3962_v11  ;;  %4768 = vmatpush.msrb.mxu0 %v8655_v30  ;;  %4873 = vmatpush.msrb.mxu2 %v8655_v30  ;;  %v4948_v21 = vld [vmem:[#allocation15 + $0x218] sm:$0xff] }
 0x724   :  { %v4477_v51 = vpop.f32.mrf.mxu2  ;;  %v3965_v49 = vadd.f32 %v3822_v17, %v3117_v18  ;;  %v4947_v17 = vld [vmem:[#allocation15 + $0x210] sm:$0xff]  ;;  %v3796_v23 = vadd.f32 %v9305_v60, %v3764_v37  ;;  %v3091_v57 = vadd.f32 %v9307_v15, %v3059_v1  ;;  %v4945_v18 = vld [vmem:[#allocation15 + $0x200] sm:$0xff] }
 0x725   :  { %v8707_v55 = vadd.f32 %v8694_v35, %v4682_v54  ;;  %v4478_v52 = vadd.f32 %v4477_v51, %v4445_v45  ;;  %4769 = vmatpush.msrb.mxu0 %v8640_v50  ;;  %4874 = vmatpush.msrb.mxu2 %v8640_v50  ;;  %v4951_v45 = vld [vmem:[#allocation15 + $0x230] sm:$0xff]  ;;  %v3120_v54 = vadd.f32 %v9303_v53, %v3088_v12  ;;  %v9315_v0 = vld [vmem:[#allocation101_spill] sm:$0xff] }
 0x726   :  { %v2811_v12 = vadd.f32 %v9313_v31, %v9312_v9  ;;  %v9316_v22 = vld [vmem:[#allocation120_spill] sm:$0xff]  ;;  %v9318_v24 = vld [vmem:[#allocation53_spill] sm:$0xff] }
 0x727   :  { %v4510_v19 = vadd.f32 %v4509_v36, %v4478_v52  ;;  %4770 = vmatpush.msrb.mxu0 %v8625_v59  ;;  %4875 = vmatpush.msrb.mxu2 %v8625_v59  ;;  %v4515_v36 = vpop.f32.mrf.mxu1  ;;  %v4946_v52 = vld [vmem:[#allocation15 + $0x208] sm:$0xff]  ;;  %v9317_v56 = vld [vmem:[#allocation68_spill] sm:$0xff] }
 0x728   :  { %6026 = vmatmul.msk.f32.vlgmr.msrb.gmra.mxu0 %vm4751_vm5, %v8711_v7  ;;  %6029 = vmatmul.msk.f32.vlgmr.msrb.gmra.mxu2 %vm4751_vm5, %v8722_v8 }
 0x729   :  { %4984 = vmatpush.msra.mxu2 %v4952_v13  ;;  %v4542_v41 = vadd.f32 %v4541_v29, %v4510_v19  ;;  %v9298_v29 = vld [vmem:[#allocation121_spill] sm:$0xff]  ;;  %v9306_v13 = vld [vmem:[#allocation46_spill] sm:$0xff] }
 0x72a   :  { %v3825_v3 = vadd.f32 %v9298_v29, %v3793_v28  ;;  %v2727_v6 = vadd.f32 %v9306_v13, %v2695_v20  ;;  %v9311_v28 = vld [vmem:[#allocation147_spill] sm:$0xff] }
 0x72b   :  { %4985 = vmatpush.msra.mxu2 %v4951_v45  ;;  %v4685_v62 = vadd.f32 %v4542_v41, %v3965_v49  ;;  %v3767_v41 = vadd.f32 %v9311_v28, %v9310_v32  ;;  %v9319_v20 = vld [vmem:[#allocation59_spill] sm:$0xff] }
 0x72c   :  { %v4480_v61 = vpop.f32.mrf.mxu2  ;;  %v3968_v51 = vadd.f32 %v3825_v3, %v3120_v54  ;;  %v3030_v2 = vadd.f32 %v9308_v16, %v2727_v6  ;;  %v4943_v3 = vld [vmem:[#allocation15 + $0x1f0] sm:$0xff]  ;;  %v2782_v53 = vadd.f32 %v9319_v20, %v9318_v24  ;;  %v9320_v54 = vld [vmem:[#allocation37_spill] sm:$0xff] }
 0x72d   :  { %4986 = vmatpush.msra.mxu2 %v4950_v48  ;;  %v8733_v33 = vadd.f32 %v8694_v35, %v4685_v62  ;;  %v4481_v11 = vadd.f32 %v4480_v61, %v4448_v14  ;;  %v4454_v14 = vpop.f32.mrf.mxu0  ;;  %v4550_v62 = vpop.f32.mrf.mxu3  ;;  %v3799_v37 = vadd.f32 %v9316_v22, %v3767_v41  ;;  %v4939_v28 = vld [vmem:[#allocation15 + $0x1d0] sm:$0xff]  ;;  %v4937_v22 = vld [vmem:[#allocation15 + $0x1c0] sm:$0xff] }
 0x72e   :  { %v3062_v61 = vadd.f32 %v9315_v0, %v3030_v2  ;;  %v9326_v2 = vld [vmem:[#allocation78_spill] sm:$0xff]  ;;  %v9331_v0 = vld [vmem:[#allocation49_spill] sm:$0xff]  ;;  %v9336_v24 = vld [vmem:[#allocation127_spill] sm:$0xff] }
 0x72f   :  { %4987 = vmatpush.msra.mxu2 %v4949_v42  ;;  %v4513_v58 = vadd.f32 %v4512_v40, %v4481_v11  ;;  %v4518_v19 = vpop.f32.mrf.mxu1  ;;  %v9309_v40 = vld [vmem:[#allocation123_spill] sm:$0xff] }
 0x730   :  { %v3828_v49 = vadd.f32 %v9309_v40, %v3796_v23  ;;  %v9314_v42 = vld [vmem:[#allocation63_spill] sm:$0xff]  ;;  %v3094_v5 = vadd.f32 %v9320_v54, %v3062_v61  ;;  %v9322_v23 = vld [vmem:[#allocation125_spill] sm:$0xff]  ;;  %v9337_v54 = vld [vmem:[#allocation44_spill] sm:$0xff] }
 0x731   :  { %4988 = vmatpush.msra.mxu2 %v4948_v21  ;;  %v4545_v34 = vadd.f32 %v4544_v47, %v4513_v58  ;;  %v3123_v38 = vadd.f32 %v9314_v42, %v3091_v57  ;;  %v4942_v21 = vld [vmem:[#allocation15 + $0x1e8] sm:$0xff]  ;;  %v4941_v58 = vld [vmem:[#allocation15 + $0x1e0] sm:$0xff]  ;;  %v4940_v57 = vld [vmem:[#allocation15 + $0x1d8] sm:$0xff] }
 0x732   :  { %v9327_v40 = vld [vmem:[#allocation103_spill] sm:$0xff] }
 0x733   :  { %4989 = vmatpush.msra.mxu2 %v4947_v17  ;;  %v4688_v44 = vadd.f32 %v4545_v34, %v3968_v51  ;;  %v3971_v27 = vadd.f32 %v3828_v49, %v3123_v38  ;;  %v9321_v17 = vld [vmem:[#allocation98_spill] sm:$0xff]  ;;  %v3831_v34 = vadd.f32 %v9322_v23, %v3799_v37  ;;  %v9329_v42 = vld [vmem:[#allocation55_spill] sm:$0xff] }
 0x734   :  { %v4483_v45 = vpop.f32.mrf.mxu2  ;;  %v9333_v37 = vld [vmem:[#allocation146_spill] sm:$0xff] }
 0x735   :  { %4990 = vmatpush.msra.mxu2 %v4946_v52  ;;  %v8747_v47 = vadd.f32 %v8694_v35, %v4688_v44  ;;  %v4484_v48 = vadd.f32 %v4483_v45, %v4451_v26  ;;  %v2843_v26 = vadd.f32 %v9317_v56, %v2811_v12  ;;  %v9323_v52 = vld [vmem:[#allocation144_spill] sm:$0xff]  ;;  %v3126_v45 = vadd.f32 %v9326_v2, %v3094_v5  ;;  %v4666_v41 = vpop.f32.mrf.mxu3  ;;  %v4938_v12 = vld [vmem:[#allocation15 + $0x1c8] sm:$0xff] }
 0x736   :  { %v9335_v56 = vld [vmem:[#allocation100_spill] sm:$0xff] }
 0x737   :  { %4991 = vmatpush.msra.mxu2 %v4945_v18  ;;  %v4516_v29 = vadd.f32 %v4515_v36, %v4484_v48  ;;  %v3146_v51 = vadd.f32 %v9321_v17, %v2843_v26  ;;  %v4570_v36 = vpop.f32.mrf.mxu0  ;;  %v4634_v44 = vpop.f32.mrf.mxu1  ;;  %v9325_v18 = vld [vmem:[#allocation29_spill] sm:$0xff]  ;;  %v3974_v48 = vadd.f32 %v3831_v34, %v3126_v45  ;;  %v9340_v34 = vld [vmem:[#allocation124_spill] sm:$0xff] }
 0x738   :  { %v2814_v16 = vadd.f32 %v9325_v18, %v2782_v53  ;;  %v9344_v45 = vld [vmem:[#allocation64_spill] sm:$0xff] }
 0x739   :  { %4992 = vmatpush.msra.mxu2 %v4944_v10  ;;  %v4548_v11 = vadd.f32 %v4547_v63, %v4516_v29  ;;  %v9324_v63 = vld [vmem:[#allocation149_spill] sm:$0xff]  ;;  %v3178_v49 = vadd.f32 %v9327_v40, %v3146_v51  ;;  %v9328_v10 = vld [vmem:[#allocation122_spill] sm:$0xff]  ;;  %v9332_v29 = vld [vmem:[#allocation76_spill] sm:$0xff] }
 0x73a   :  { %v3883_v13 = vadd.f32 %v9324_v63, %v9323_v52  ;;  %v2846_v61 = vadd.f32 %v9331_v0, %v2814_v16  ;;  %v9339_v51 = vld [vmem:[#allocation105_spill] sm:$0xff]  ;;  %v9350_v0 = vld [vmem:[#allocation82_spill] sm:$0xff] }
 0x73b   :  { %4993 = vmatpush.msra.mxu2 %v4943_v3  ;;  %v4691_v1 = vadd.f32 %v4548_v11, %v3971_v27  ;;  %v3210_v3 = vadd.f32 %v9332_v29, %v3178_v49  ;;  %v9351_v29 = vld [vmem:[#allocation107_spill] sm:$0xff] }
 0x73c   :  { %v4486_v60 = vpop.f32.mrf.mxu2  ;;  %v3915_v9 = vadd.f32 %v9328_v10, %v3883_v13  ;;  %v3149_v26 = vadd.f32 %v9335_v56, %v2846_v61  ;;  %v9347_v10 = vld [vmem:[#allocation148_spill] sm:$0xff] }
 0x73d   :  { %4994 = vmatpush.msra.mxu2 %v4942_v21  ;;  %v8763_v6 = vadd.f32 %v8694_v35, %v4691_v1  ;;  %v4487_v15 = vadd.f32 %v4486_v60, %v4454_v14  ;;  %v9330_v14 = vld [vmem:[#allocation61_spill] sm:$0xff]  ;;  %v4669_v2 = vpop.f32.mrf.mxu3  ;;  %v9353_v56 = vld [vmem:[#allocation60_spill] sm:$0xff] }
 0x73e   :  { %v2785_v38 = vadd.f32 %v9330_v14, %v9329_v42  ;;  %v3181_v60 = vadd.f32 %v9339_v51, %v3149_v26  ;;  %v9349_v14 = vld [vmem:[#allocation30_spill] sm:$0xff]  ;;  %v9354_v26 = vld [vmem:[#allocation77_spill] sm:$0xff] }
 0x73f   :  { %4995 = vmatpush.msra.mxu2 %v4941_v58  ;;  %v4519_v32 = vadd.f32 %v4518_v19, %v4487_v15  ;;  %v9334_v19 = vld [vmem:[#allocation151_spill] sm:$0xff]  ;;  %v4573_v1 = vpop.f32.mrf.mxu0  ;;  %v9338_v58 = vld [vmem:[#allocation80_spill] sm:$0xff]  ;;  %v4637_v63 = vpop.f32.mrf.mxu1  ;;  %v9341_v15 = vld [vmem:[#allocation58_spill] sm:$0xff] }
 0x740   :  { %v3886_v11 = vadd.f32 %v9334_v19, %v9333_v37  ;;  %v2817_v5 = vadd.f32 %v9337_v54, %v2785_v38  ;;  %v3242_v17 = vadd.f32 %v9338_v58, %v3210_v3  ;;  %v3213_v40 = vadd.f32 %v9344_v45, %v3181_v60  ;;  %v9352_v19 = vld [vmem:[#allocation126_spill] sm:$0xff] }
 0x741   :  { %4996 = vmatpush.msra.mxu2 %v4940_v57  ;;  %v4551_v31 = vadd.f32 %v4550_v62, %v4519_v32  ;;  %v3947_v62 = vadd.f32 %v9336_v24, %v3915_v9  ;;  %v9342_v57 = vld [vmem:[#allocation38_spill] sm:$0xff]  ;;  %v9348_v9 = vld [vmem:[#allocation153_spill] sm:$0xff]  ;;  %v2791_v24 = vadd.f32 %v9354_v26, %v9353_v56 }
 0x742   :  { %v3918_v52 = vadd.f32 %v9340_v34, %v3886_v11  ;;  %v2788_v18 = vadd.f32 %v9342_v57, %v9341_v15  ;;  %v9345_v32 = vld [vmem:[#allocation102_spill] sm:$0xff]  ;;  %v3245_v61 = vadd.f32 %v9350_v0, %v3213_v40  ;;  %v9358_v34 = vld [vmem:[#allocation133_spill] sm:$0xff]  ;;  %v9360_v57 = vld [vmem:[#allocation47_spill] sm:$0xff] }
 0x743   :  { %4997 = vmatpush.msra.mxu2 %v4939_v28  ;;  %v4694_v27 = vadd.f32 %v4551_v31, %v3974_v48  ;;  %v3963_v13 = vadd.f32 %v3947_v62, %v3242_v17  ;;  %v9346_v28 = vld [vmem:[#allocation130_spill] sm:$0xff]  ;;  %v3889_v31 = vadd.f32 %v9348_v9, %v9347_v10  ;;  %v9355_v62 = vld [vmem:[#allocation31_spill] sm:$0xff]  ;;  %v9357_v17 = vld [vmem:[#allocation104_spill] sm:$0xff] }
 0x744   :  { %v4602_v21 = vpop.f32.mrf.mxu2  ;;  %v2820_v38 = vadd.f32 %v9349_v14, %v2788_v18  ;;  %v2823_v18 = vadd.f32 %v9360_v57, %v2791_v24  ;;  %v9365_v10 = vld [vmem:[#allocation81_spill] sm:$0xff]  ;;  %v9367_v0 = vld [vmem:[#allocation135_spill] sm:$0xff] }
 0x745   :  { %4998 = vmatpush.msra.mxu2 %v4938_v12  ;;  %v8778_v20 = vadd.f32 %v8694_v35, %v4694_v27  ;;  %v4603_v53 = vadd.f32 %v4602_v21, %v4570_v36  ;;  %v8787_v36 = vperm.slane %v8610_v25, 2  ;;  %v3921_v11 = vadd.f32 %v9352_v19, %v3889_v31  ;;  %v4672_v60 = vpop.f32.mrf.mxu3  ;;  %v9369_v19 = vld [vmem:[#allocation88_spill] sm:$0xff] }
 0x747   :  { %4999 = vmatpush.msra.mxu2 %v4937_v22  ;;  %v4635_v23 = vadd.f32 %v4634_v44, %v4603_v53  ;;  %4786 = vmatpush.msra.mxu1 %v8778_v20  ;;  %v9343_v44 = vld [vmem:[#allocation69_spill] sm:$0xff]  ;;  %v4576_v22 = vpop.f32.mrf.mxu0  ;;  %v2852_v53 = vadd.f32 %v9355_v62, %v2820_v38  ;;  %v4640_v54 = vpop.f32.mrf.mxu1  ;;  %v9371_v62 = vld [vmem:[#allocation131_spill] sm:$0xff] }
 0x748   :  { %v2849_v16 = vadd.f32 %v9343_v44, %v2817_v5  ;;  %v9356_v5 = vld [vmem:[#allocation79_spill] sm:$0xff]  ;;  %v9361_v44 = vld [vmem:[#allocation85_spill] sm:$0xff] }
 0x749   :  { %5103 = vmatpush.msrb.mxu2 %v8684_v46  ;;  %v4667_v35 = vadd.f32 %v4666_v41, %v4635_v23  ;;  %4787 = vmatpush.msra.mxu1 %v8763_v6  ;;  %v3950_v41 = vadd.f32 %v9346_v28, %v3918_v52  ;;  %v3155_v51 = vadd.f32 %v9357_v17, %v2852_v53  ;;  %v9364_v28 = vld [vmem:[#allocation50_spill] sm:$0xff] }
 0x74a   :  { %v3152_v25 = vadd.f32 %v9345_v32, %v2849_v16  ;;  %v3953_v52 = vadd.f32 %v9358_v34, %v3921_v11  ;;  %v9363_v32 = vld [vmem:[#allocation128_spill] sm:$0xff] }
 0x74b   :  { %5104 = vmatpush.msrb.mxu2 %v8670_v4  ;;  %v4683_v49 = vadd.f32 %v4667_v35, %v3963_v13  ;;  %4788 = vmatpush.msra.mxu1 %v8747_v47  ;;  %v3966_v37 = vadd.f32 %v3950_v41, %v3245_v61  ;;  %v2855_v41 = vadd.f32 %v9364_v28, %v2823_v18  ;;  %v4827_v28 = vld [vmem:[#allocation15 + $0x60] sm:$0xff] }
 0x74c   :  { %v4605_v48 = vpop.f32.mrf.mxu2  ;;  %v3184_v3 = vadd.f32 %v9351_v29, %v3152_v25  ;;  %v9368_v29 = vld [vmem:[#allocation152_spill] sm:$0xff] }
 0x74d   :  { %5105 = vmatpush.msrb.mxu2 %v8655_v30  ;;  %v4706_v12 = vadd.f32 %v8787_v36, %v4683_v49  ;;  %v4606_v42 = vadd.f32 %v4605_v48, %v4573_v1  ;;  %4789 = vmatpush.msra.mxu1 %v8733_v33 }
 0x74e   :  { %v3216_v1 = vadd.f32 %v9356_v5, %v3184_v3  ;;  %v3895_v3 = vadd.f32 %v8540_v43, %v9368_v29  ;;  %v9372_v5 = vld [vmem:[#allocation84_spill] sm:$0xff] }
 0x74f   :  { %5106 = vmatpush.msrb.mxu2 %v8640_v50  ;;  %4722 = vst.msk [vmem:[#allocation3 + $0x10] sm:$0xff] %vm4721_vm6, %v4706_v12  ;;  %v4638_v27 = vadd.f32 %v4637_v63, %v4606_v42  ;;  %4790 = vmatpush.msra.mxu1 %v8707_v55  ;;  %v9359_v63 = vld [vmem:[#allocation150_spill] sm:$0xff]  ;;  %v4579_v48 = vpop.f32.mrf.mxu0  ;;  %v4643_v14 = vpop.f32.mrf.mxu1  ;;  %v4935_v29 = vld [vmem:[#allocation15 + $0x1b0] sm:$0xff] }
 0x750   :  { %6027 = vmatmul.msk.f32.vlgmr.msra.gmra.mxu1 %vm4751_vm5, %v8711_v7  ;;  %v3892_v13 = vadd.f32 %v8532_v39, %v9359_v63  ;;  %v3248_v16 = vadd.f32 %v9361_v44, %v3216_v1  ;;  %v9366_v12 = vld [vmem:[#allocation106_spill] sm:$0xff]  ;;  %v3927_v53 = vadd.f32 %v9371_v62, %v3895_v3  ;;  %v9374_v63 = vld [vmem:[#allocation91_spill] sm:$0xff] }
 0x751   :  { %5107 = vmatpush.msrb.mxu2 %v8625_v59  ;;  %4891 = vmatpush.msrb.mxu1 %v8778_v20  ;;  %v4670_v21 = vadd.f32 %v4669_v2, %v4638_v27  ;;  %v9362_v2 = vld [vmem:[#allocation108_spill] sm:$0xff]  ;;  %v3158_v42 = vadd.f32 %v9366_v12, %v2855_v41  ;;  %v4820_v12 = vld [vmem:[#allocation15 + $0x28] sm:$0xff] }
 0x752   :  { %v3187_v45 = vadd.f32 %v9362_v2, %v3155_v51  ;;  %v3969_v49 = vadd.f32 %v3953_v52, %v3248_v16  ;;  %v3924_v25 = vadd.f32 %v9363_v32, %v3892_v13  ;;  %v9373_v51 = vld [vmem:[#allocation138_spill] sm:$0xff]  ;;  %v4830_v32 = vld [vmem:[#allocation15 + $0x78] sm:$0xff] }
 0x753   :  { %4892 = vmatpush.msrb.mxu1 %v8763_v6  ;;  %v4686_v58 = vadd.f32 %v4670_v21, %v3966_v37  ;;  %v4675_v37 = vpop.f32.mrf.mxu3  ;;  %v9370_v21 = vld [vmem:[#allocation109_spill] sm:$0xff]  ;;  %v4934_v3 = vld [vmem:[#allocation15 + $0x1a8] sm:$0xff] }
 0x754   :  { %v4608_v23 = vpop.f32.mrf.mxu2  ;;  %v3219_v9 = vadd.f32 %v9365_v10, %v3187_v45  ;;  %v3956_v61 = vadd.f32 %v9367_v0, %v3924_v25  ;;  %v3190_v56 = vadd.f32 %v9370_v21, %v3158_v42  ;;  %v4829_v25 = vld [vmem:[#allocation15 + $0x70] sm:$0xff]  ;;  %v4826_v41 = vld [vmem:[#allocation15 + $0x58] sm:$0xff]  ;;  %v4824_v10 = vld [vmem:[#allocation15 + $0x48] sm:$0xff] }
 0x755   :  { %4893 = vmatpush.msrb.mxu1 %v8747_v47  ;;  %v4709_v35 = vadd.f32 %v8787_v36, %v4686_v58  ;;  %v4609_v15 = vadd.f32 %v4608_v23, %v4576_v22  ;;  %v4818_v42 = vld [vmem:[#allocation15 + $0x18] sm:$0xff]  ;;  %v4815_v0 = vld [vmem:[#allocation15] sm:$0xff]  ;;  %v5182_v21 = vld [vmem:[#allocation15 + $0x368] sm:$0xff] }
 0x756   :  { %v3251_v11 = vadd.f32 %v9369_v19, %v3219_v9  ;;  %v3222_v1 = vadd.f32 %v9372_v5, %v3190_v56  ;;  %v4823_v9 = vld [vmem:[#allocation15 + $0x40] sm:$0xff]  ;;  %v5183_v19 = vld [vmem:[#allocation15 + $0x370] sm:$0xff]  ;;  %v8881_v62 = vld [vmem:[#allocation14 + $0x10] sm:$0xff] }
 0x757   :  { %4894 = vmatpush.msrb.mxu1 %v8733_v33  ;;  %4725 = vst.msk [vmem:[#allocation3 + $0x28] sm:$0xff] %vm4721_vm6, %v4709_v35  ;;  %v4641_v40 = vadd.f32 %v4640_v54, %v4609_v15  ;;  %v4582_v17 = vpop.f32.mrf.mxu0  ;;  %v4646_v52 = vpop.f32.mrf.mxu1  ;;  %v4931_v56 = vld [vmem:[#allocation15 + $0x190] sm:$0xff] }
 0x758   :  { %v3972_v24 = vadd.f32 %v3956_v61, %v3251_v11  ;;  %v3254_v13 = vadd.f32 %v9374_v63, %v3222_v1  ;;  %v4936_v61 = vld [vmem:[#allocation15 + $0x1b8] sm:$0xff]  ;;  %v5179_v5 = vld [vmem:[#allocation15 + $0x350] sm:$0xff] }
 0x759   :  { %4895 = vmatpush.msrb.mxu1 %v8707_v55  ;;  %v4673_v39 = vadd.f32 %v4672_v60, %v4641_v40  ;;  %v3959_v60 = vadd.f32 %v9373_v51, %v3927_v53  ;;  %v4932_v11 = vld [vmem:[#allocation15 + $0x198] sm:$0xff]  ;;  %v4958_v51 = vld [vmem:[#allocation15 + $0x268] sm:$0xff] }
 0x75a   :  { %6030 = vmatmul.msk.f32.vlgmr.msrb.gmra.mxu1 %vm4751_vm5, %v8722_v8  ;;  %v5180_v53 = vld [vmem:[#allocation15 + $0x358] sm:$0xff] }
 0x75b   :  { %v4689_v31 = vadd.f32 %v4673_v39, %v3969_v49  ;;  %v4678_v15 = vpop.f32.mrf.mxu3  ;;  %v3975_v57 = vadd.f32 %v3959_v60, %v3254_v13  ;;  %v8868_v49 = vld [vmem:[#allocation3 + $0x10] sm:$0xff]  ;;  %v4828_v39 = vld [vmem:[#allocation15 + $0x68] sm:$0xff]  ;;  %v4927_v60 = vld [vmem:[#allocation15 + $0x170] sm:$0xff] }
 0x75c   :  { %v4611_v38 = vpop.f32.mrf.mxu2  ;;  %v4960_v1 = vld [vmem:[#allocation15 + $0x278] sm:$0xff] }
 0x75d   :  { %v4712_v27 = vadd.f32 %v8787_v36, %v4689_v31  ;;  %v4612_v22 = vadd.f32 %v4611_v38, %v4579_v48  ;;  %v4825_v48 = vld [vmem:[#allocation15 + $0x50] sm:$0xff]  ;;  %v4822_v31 = vld [vmem:[#allocation15 + $0x38] sm:$0xff]  ;;  %v4816_v38 = vld [vmem:[#allocation15 + $0x8] sm:$0xff]  ;;  %5012 = vmatpush.msra.mxu1 %v4960_v1 }
 0x75e   :  { %v5176_v63 = vld [vmem:[#allocation15 + $0x338] sm:$0xff]  ;;  %v4852_v1 = vld [vmem:[#allocation15 + $0x128] sm:$0xff] }
 0x75f   :  { %4728 = vst.msk [vmem:[#allocation3 + $0x40] sm:$0xff] %vm4721_vm6, %v4712_v27  ;;  %v4644_v26 = vadd.f32 %v4643_v14, %v4612_v22  ;;  %v4817_v14 = vld [vmem:[#allocation15 + $0x10] sm:$0xff]  ;;  %v5184_v22 = vld [vmem:[#allocation15 + $0x378] sm:$0xff] }
 0x760   :  { %v4956_v13 = vld [vmem:[#allocation15 + $0x258] sm:$0xff] }
 0x761   :  { %v4676_v54 = vadd.f32 %v4675_v37, %v4644_v26  ;;  %v4933_v37 = vld [vmem:[#allocation15 + $0x1a0] sm:$0xff] }
 0x762   :  { %v5181_v26 = vld [vmem:[#allocation15 + $0x360] sm:$0xff] }
 0x763   :  { %v4692_v58 = vadd.f32 %v4676_v54, %v3972_v24  ;;  %v4930_v24 = vld [vmem:[#allocation15 + $0x188] sm:$0xff]  ;;  %v4929_v54 = vld [vmem:[#allocation15 + $0x180] sm:$0xff] }
 0x764   :  { %v4614_v43 = vpop.f32.mrf.mxu2 }
 0x765   :  { %v4715_v23 = vadd.f32 %v8787_v36, %v4692_v58  ;;  %v4615_v34 = vadd.f32 %v4614_v43, %v4582_v17  ;;  %v4959_v58 = vld [vmem:[#allocation15 + $0x270] sm:$0xff]  ;;  %v4928_v17 = vld [vmem:[#allocation15 + $0x178] sm:$0xff]  ;;  %v5178_v43 = vld [vmem:[#allocation15 + $0x348] sm:$0xff] }
 0x766   :  { %v8860_v40 = vld [vmem:[#allocation3 + $0x40] sm:$0xff]  ;;  %5013 = vmatpush.msra.mxu1 %v4959_v58  ;;  %v5188_v58 = vld [vmem:[#allocation15 + $0x398] sm:$0xff] }
 0x767   :  { %4731 = vst.msk [vmem:[#allocation3 + $0x58] sm:$0xff] %vm4721_vm6, %v4715_v23  ;;  %v4647_v35 = vadd.f32 %v4646_v52, %v4615_v34  ;;  %v5177_v23 = vld [vmem:[#allocation15 + $0x340] sm:$0xff]  ;;  %v4926_v52 = vld [vmem:[#allocation15 + $0x168] sm:$0xff] }
 0x768   :  { %v4957_v34 = vld [vmem:[#allocation15 + $0x260] sm:$0xff]  ;;  %5014 = vmatpush.msra.mxu1 %v4958_v51  ;;  %v4850_v51 = vld [vmem:[#allocation15 + $0x118] sm:$0xff] }
 0x769   :  { %v4679_v18 = vadd.f32 %v4678_v15, %v4647_v35  ;;  %v4925_v35 = vld [vmem:[#allocation15 + $0x160] sm:$0xff]  ;;  %v5175_v15 = vld [vmem:[#allocation15 + $0x330] sm:$0xff] }
 0x76a   :  { %5015 = vmatpush.msra.mxu1 %v4957_v34  ;;  %v5185_v34 = vld [vmem:[#allocation15 + $0x380] sm:$0xff] }
 0x76b   :  { %v4695_v44 = vadd.f32 %v4679_v18, %v3975_v57  ;;  %v4955_v57 = vld [vmem:[#allocation15 + $0x250] sm:$0xff]  ;;  %v4924_v18 = vld [vmem:[#allocation15 + $0x158] sm:$0xff] }
 0x76c   :  { %5016 = vmatpush.msra.mxu1 %v4956_v13 }
 0x76d   :  { %v4718_v16 = vadd.f32 %v8787_v36, %v4695_v44  ;;  %v8864_v36 = vld [vmem:[#allocation3 + $0x28] sm:$0xff]  ;;  %v5174_v44 = vld [vmem:[#allocation15 + $0x328] sm:$0xff] }
 0x76e   :  { %v8856_v45 = vld [vmem:[#allocation3 + $0x58] sm:$0xff]  ;;  %5017 = vmatpush.msra.mxu1 %v4955_v57  ;;  %v6176_v57 = vld [vmem:[#allocation3] sm:$0xff] }
 0x76f   :  { %4734 = vst.msk [vmem:[#allocation3 + $0x70] sm:$0xff] %vm4721_vm6, %v4718_v16  ;;  %v4954_v16 = vld [vmem:[#allocation15 + $0x248] sm:$0xff] }
 0x770   :  { %5018 = vmatpush.msra.mxu1 %v4954_v16  ;;  %v5164_v16 = vld [vmem:[#allocation15 + $0x2d8] sm:$0xff] }
 0x776   :  { %v8852_v2 = vld [vmem:[#allocation3 + $0x70] sm:$0xff] }
 0x777   :  { %4806 = vmatpush.msra.mxu0 %v8852_v2  ;;  %4911 = vmatpush.msra.mxu3 %v8852_v2 }
 0x779   :  { %4807 = vmatpush.msra.mxu0 %v8856_v45  ;;  %4912 = vmatpush.msra.mxu3 %v8856_v45 }
 0x77b   :  { %4808 = vmatpush.msra.mxu0 %v8860_v40  ;;  %4913 = vmatpush.msra.mxu3 %v8860_v40 }
 0x77d   :  { %4809 = vmatpush.msra.mxu0 %v8864_v36  ;;  %4914 = vmatpush.msra.mxu3 %v8864_v36 }
 0x77f   :  { %4810 = vmatpush.msra.mxu0 %v8868_v49  ;;  %4915 = vmatpush.msra.mxu3 %v8868_v49 }
 0x780   :  { %6031 = vmatmul.msk.f32.vlgmr.msra.gmra.mxu3 %vm4751_vm5, %v8722_v8  ;;  %6028 = vmatmul.msk.f32.vlgmr.msra.gmra.mxu0 %vm4751_vm5, %v8711_v7  ;;  %v4821_v8 = vld [vmem:[#allocation15 + $0x30] sm:$0xff]  ;;  %v4819_v7 = vld [vmem:[#allocation15 + $0x20] sm:$0xff] }
 0x781   :  { %5027 = vmatpush.msrb.mxu3 %v4830_v32  ;;  %4964 = vmatpush.msrb.mxu0 %v4936_v61  ;;  %v4923_v32 = vld [vmem:[#allocation15 + $0x150] sm:$0xff]  ;;  %v4840_v61 = vld [vmem:[#allocation15 + $0xc8] sm:$0xff] }
 0x783   :  { %5028 = vmatpush.msrb.mxu3 %v4829_v25  ;;  %4965 = vmatpush.msrb.mxu0 %v4935_v29  ;;  %v5173_v25 = vld [vmem:[#allocation15 + $0x320] sm:$0xff] }
 0x784   :  { %v4839_v29 = vld [vmem:[#allocation15 + $0xc0] sm:$0xff] }
 0x785   :  { %5029 = vmatpush.msrb.mxu3 %v4828_v39  ;;  %4966 = vmatpush.msrb.mxu0 %v4934_v3  ;;  %v4953_v39 = vld [vmem:[#allocation15 + $0x240] sm:$0xff]  ;;  %v4838_v3 = vld [vmem:[#allocation15 + $0xb8] sm:$0xff] }
 0x786   :  { %5019 = vmatpush.msra.mxu1 %v4953_v39  ;;  %v5161_v39 = vld [vmem:[#allocation15 + $0x2c0] sm:$0xff] }
 0x787   :  { %5030 = vmatpush.msrb.mxu3 %v4827_v28  ;;  %4967 = vmatpush.msrb.mxu0 %v4933_v37  ;;  %v4922_v28 = vld [vmem:[#allocation15 + $0x148] sm:$0xff] }
 0x788   :  { %v4836_v37 = vld [vmem:[#allocation15 + $0xa8] sm:$0xff] }
 0x789   :  { %5031 = vmatpush.msrb.mxu3 %v4826_v41  ;;  %4968 = vmatpush.msrb.mxu0 %v4932_v11  ;;  %v4846_v41 = vld [vmem:[#allocation15 + $0xf8] sm:$0xff] }
 0x78a   :  { %5047 = vmatpush.msrb.mxu1 %v4846_v41  ;;  %v4834_v11 = vld [vmem:[#allocation15 + $0x98] sm:$0xff]  ;;  %v5159_v41 = vld [vmem:[#allocation15 + $0x2b0] sm:$0xff] }
 0x78b   :  { %5032 = vmatpush.msrb.mxu3 %v4825_v48  ;;  %4969 = vmatpush.msrb.mxu0 %v4931_v56  ;;  %v5172_v48 = vld [vmem:[#allocation15 + $0x318] sm:$0xff]  ;;  %v5191_v56 = vld [vmem:[#allocation15 + $0x3b0] sm:$0xff] }
 0x78d   :  { %5033 = vmatpush.msrb.mxu3 %v4824_v10  ;;  %4970 = vmatpush.msrb.mxu0 %v4930_v24  ;;  %v4921_v10 = vld [vmem:[#allocation15 + $0x140] sm:$0xff]  ;;  %v5190_v24 = vld [vmem:[#allocation15 + $0x3a8] sm:$0xff] }
 0x78f   :  { %5034 = vmatpush.msrb.mxu3 %v4823_v9  ;;  %4971 = vmatpush.msrb.mxu0 %v4929_v54  ;;  %v4845_v9 = vld [vmem:[#allocation15 + $0xf0] sm:$0xff] }
 0x790   :  { %5048 = vmatpush.msrb.mxu1 %v4845_v9  ;;  %v4853_v54 = vld [vmem:[#allocation15 + $0x130] sm:$0xff]  ;;  %v5157_v9 = vld [vmem:[#allocation15 + $0x2a0] sm:$0xff] }
 0x791   :  { %5035 = vmatpush.msrb.mxu3 %v4822_v31  ;;  %4972 = vmatpush.msrb.mxu0 %v4928_v17  ;;  %v4851_v17 = vld [vmem:[#allocation15 + $0x120] sm:$0xff] }
 0x793   :  { %5036 = vmatpush.msrb.mxu3 %v4821_v8  ;;  %4973 = vmatpush.msrb.mxu0 %v4927_v60  ;;  %v5171_v8 = vld [vmem:[#allocation15 + $0x310] sm:$0xff]  ;;  %v5186_v60 = vld [vmem:[#allocation15 + $0x388] sm:$0xff] }
 0x795   :  { %5037 = vmatpush.msrb.mxu3 %v4820_v12  ;;  %4974 = vmatpush.msrb.mxu0 %v4926_v52  ;;  %v4844_v12 = vld [vmem:[#allocation15 + $0xe8] sm:$0xff] }
 0x796   :  { %5049 = vmatpush.msrb.mxu1 %v4844_v12  ;;  %v4848_v52 = vld [vmem:[#allocation15 + $0x108] sm:$0xff] }
 0x797   :  { %5038 = vmatpush.msrb.mxu3 %v4819_v7  ;;  %4975 = vmatpush.msrb.mxu0 %v4925_v35  ;;  %v5170_v7 = vld [vmem:[#allocation15 + $0x308] sm:$0xff]  ;;  %v6174_v35 = vld [vmem:[#allocation3 + $0x30] sm:$0xff] }
 0x798   :  { %v5154_v12 = vld [vmem:[#allocation15 + $0x288] sm:$0xff] }
 0x799   :  { %5039 = vmatpush.msrb.mxu3 %v4818_v42  ;;  %4976 = vmatpush.msrb.mxu0 %v4924_v18  ;;  %v4843_v42 = vld [vmem:[#allocation15 + $0xe0] sm:$0xff]  ;;  %v5166_v18 = vld [vmem:[#allocation15 + $0x2e8] sm:$0xff] }
 0x79a   :  { %5050 = vmatpush.msrb.mxu1 %v4843_v42  ;;  %v5153_v42 = vld [vmem:[#allocation15 + $0x280] sm:$0xff] }
 0x79b   :  { %5040 = vmatpush.msrb.mxu3 %v4817_v14  ;;  %4977 = vmatpush.msrb.mxu0 %v4923_v32  ;;  %v5169_v14 = vld [vmem:[#allocation15 + $0x300] sm:$0xff]  ;;  %v5163_v32 = vld [vmem:[#allocation15 + $0x2d0] sm:$0xff] }
 0x79d   :  { %5041 = vmatpush.msrb.mxu3 %v4816_v38  ;;  %4978 = vmatpush.msrb.mxu0 %v4922_v28  ;;  %v4842_v38 = vld [vmem:[#allocation15 + $0xd8] sm:$0xff] }
 0x79e   :  { %5051 = vmatpush.msrb.mxu1 %v4842_v38  ;;  %v5160_v28 = vld [vmem:[#allocation15 + $0x2b8] sm:$0xff]  ;;  %v5361_v38 = vld [vmem:[#allocation15 + $0x4f0] sm:$0xff] }
 0x79f   :  { %5042 = vmatpush.msrb.mxu3 %v4815_v0  ;;  %4979 = vmatpush.msrb.mxu0 %v4921_v10  ;;  %v4841_v0 = vld [vmem:[#allocation15 + $0xd0] sm:$0xff] }
 0x7a0   :  { %5052 = vmatpush.msrb.mxu1 %v4841_v0  ;;  %v5360_v0 = vld [vmem:[#allocation15 + $0x4e8] sm:$0xff] }
 0x7a1   :  { %5123 = vmatpush.msra.mxu3 %v8778_v20 }
 0x7a2   :  { %5053 = vmatpush.msrb.mxu1 %v4840_v61  ;;  %v5359_v61 = vld [vmem:[#allocation15 + $0x4e0] sm:$0xff] }
 0x7a3   :  { %5124 = vmatpush.msra.mxu3 %v8763_v6 }
 0x7a4   :  { %5054 = vmatpush.msrb.mxu1 %v4839_v29  ;;  %v5358_v29 = vld [vmem:[#allocation15 + $0x4d8] sm:$0xff] }
 0x7a5   :  { %5125 = vmatpush.msra.mxu3 %v8747_v47  ;;  %v4772_v27 = vpop.f32.mrf.mxu0 }
 0x7a6   :  { %5043 = vmatmul.f32.vlgmr.msrb.gmra.mxu3 %v4772_v27  ;;  %5055 = vmatpush.msrb.mxu1 %v4838_v3  ;;  %v5357_v3 = vld [vmem:[#allocation15 + $0x4d0] sm:$0xff] }
 0x7a7   :  { %5126 = vmatpush.msra.mxu3 %v8733_v33 }
 0x7a9   :  { %5127 = vmatpush.msra.mxu3 %v8707_v55 }
 0x7ab   :  { %5216 = vmatpush.msrb.mxu3 %v5184_v22  ;;  %v4877_v31 = vpop.f32.mrf.mxu2  ;;  %v4837_v22 = vld [vmem:[#allocation15 + $0xb0] sm:$0xff] }
 0x7ac   :  { %4980 = vmatmul.f32.vlgmr.msrb.gmra.mxu0 %v4877_v31  ;;  %5056 = vmatpush.msrb.mxu1 %v4837_v22  ;;  %v5156_v31 = vld [vmem:[#allocation15 + $0x298] sm:$0xff] }
 0x7ad   :  { %5217 = vmatpush.msrb.mxu3 %v5183_v19  ;;  %v4835_v19 = vld [vmem:[#allocation15 + $0xa0] sm:$0xff] }
 0x7ae   :  { %6035 = vmatmul.msk.f32.vlgmr.msra.gmra.mxu3 %vm4751_vm5, %v8881_v62  ;;  %5057 = vmatpush.msrb.mxu1 %v4836_v37 }
 0x7af   :  { %5218 = vmatpush.msrb.mxu3 %v5182_v21 }
 0x7b0   :  { %5058 = vmatpush.msrb.mxu1 %v4835_v19  ;;  %v5354_v19 = vld [vmem:[#allocation15 + $0x4b8] sm:$0xff] }
 0x7b1   :  { %5219 = vmatpush.msrb.mxu3 %v5181_v26  ;;  %v4854_v26 = vld [vmem:[#allocation15 + $0x138] sm:$0xff] }
 0x7b2   :  { %5059 = vmatpush.msrb.mxu1 %v4834_v11  ;;  %5075 = vmatpush.msra.mxu0 %v4854_v26  ;;  %v5353_v11 = vld [vmem:[#allocation15 + $0x4b0] sm:$0xff]  ;;  %v5348_v26 = vld [vmem:[#allocation15 + $0x488] sm:$0xff] }
 0x7b3   :  { %5220 = vmatpush.msrb.mxu3 %v5180_v53  ;;  %v4831_v53 = vld [vmem:[#allocation15 + $0x80] sm:$0xff] }
 0x7b4   :  { %5076 = vmatpush.msra.mxu0 %v4853_v54  ;;  %v5331_v54 = vld [vmem:[#allocation15 + $0x400] sm:$0xff] }
 0x7b5   :  { %5221 = vmatpush.msrb.mxu3 %v5179_v5  ;;  %v5189_v5 = vld [vmem:[#allocation15 + $0x3a0] sm:$0xff] }
 0x7b6   :  { %5077 = vmatpush.msra.mxu0 %v4852_v1  ;;  %v5345_v1 = vld [vmem:[#allocation15 + $0x470] sm:$0xff] }
 0x7b7   :  { %5222 = vmatpush.msrb.mxu3 %v5178_v43  ;;  %v5187_v43 = vld [vmem:[#allocation15 + $0x390] sm:$0xff] }
 0x7b8   :  { %5078 = vmatpush.msra.mxu0 %v4851_v17 }
 0x7b9   :  { %5223 = vmatpush.msrb.mxu3 %v5177_v23  ;;  %v4849_v23 = vld [vmem:[#allocation15 + $0x110] sm:$0xff] }
 0x7ba   :  { %5079 = vmatpush.msra.mxu0 %v4850_v51 }
 0x7bb   :  { %5224 = vmatpush.msrb.mxu3 %v5176_v63  ;;  %v4847_v63 = vld [vmem:[#allocation15 + $0x100] sm:$0xff] }
 0x7bc   :  { %5080 = vmatpush.msra.mxu0 %v4849_v23 }
 0x7bd   :  { %5225 = vmatpush.msrb.mxu3 %v5175_v15  ;;  %v6175_v15 = vld [vmem:[#allocation3 + $0x18] sm:$0xff] }
 0x7be   :  { %5081 = vmatpush.msra.mxu0 %v4848_v52  ;;  %v5343_v52 = vld [vmem:[#allocation15 + $0x460] sm:$0xff] }
 0x7bf   :  { %5226 = vmatpush.msrb.mxu3 %v5174_v44  ;;  %v5165_v44 = vld [vmem:[#allocation15 + $0x2e0] sm:$0xff] }
 0x7c0   :  { %5082 = vmatpush.msra.mxu0 %v4847_v63  ;;  %v5329_v63 = vld [vmem:[#allocation15 + $0x3f0] sm:$0xff] }
 0x7c1   :  { %5227 = vmatpush.msrb.mxu3 %v5173_v25  ;;  %v5162_v25 = vld [vmem:[#allocation15 + $0x2c8] sm:$0xff] }
 0x7c3   :  { %5228 = vmatpush.msrb.mxu3 %v5172_v48  ;;  %v5158_v48 = vld [vmem:[#allocation15 + $0x2a8] sm:$0xff] }
 0x7c5   :  { %5229 = vmatpush.msrb.mxu3 %v5171_v8  ;;  %v5155_v8 = vld [vmem:[#allocation15 + $0x290] sm:$0xff] }
 0x7c7   :  { %5230 = vmatpush.msrb.mxu3 %v5170_v7 }
 0x7c9   :  { %5231 = vmatpush.msrb.mxu3 %v5169_v14  ;;  %v5362_v14 = vld [vmem:[#allocation15 + $0x4f8] sm:$0xff] }
 0x7cb   :  { %5443 = vmatpush.msra.mxu3 %v8684_v46 }
 0x7cd   :  { %5444 = vmatpush.msra.mxu3 %v8670_v4  ;;  %v8889_v27 = vpop.f32.mrf.mxu1 }
 0x7cf   :  { %5445 = vmatpush.msra.mxu3 %v8655_v30  ;;  %v4833_v30 = vld [vmem:[#allocation15 + $0x90] sm:$0xff] }
 0x7d0   :  { %5060 = vmatpush.msrb.mxu1 %v4833_v30  ;;  %v5337_v30 = vld [vmem:[#allocation15 + $0x430] sm:$0xff] }
 0x7d1   :  { %5446 = vmatpush.msra.mxu3 %v8640_v50  ;;  %v4832_v50 = vld [vmem:[#allocation15 + $0x88] sm:$0xff] }
 0x7d2   :  { %5061 = vmatpush.msrb.mxu1 %v4832_v50  ;;  %v5352_v50 = vld [vmem:[#allocation15 + $0x4a8] sm:$0xff] }
 0x7d3   :  { %5447 = vmatpush.msra.mxu3 %v8625_v59  ;;  %v5192_v59 = vld [vmem:[#allocation15 + $0x3b8] sm:$0xff] }
 0x7d4   :  { %5062 = vmatpush.msrb.mxu1 %v4831_v53  ;;  %v5347_v53 = vld [vmem:[#allocation15 + $0x480] sm:$0xff] }
 0x7d7   :  { %v4897_v21 = vpop.f32.mrf.mxu1 }
 0x7d8   :  { %5000 = vmatmul.f32.vlgmr.msra.gmra.mxu2 %v4897_v21  ;;  %v5338_v21 = vld [vmem:[#allocation15 + $0x438] sm:$0xff] }
 0x7d9   :  { %5143 = vmatpush.msra.mxu2 %v8852_v2 }
 0x7db   :  { %5144 = vmatpush.msra.mxu2 %v8856_v45 }
 0x7dd   :  { %5145 = vmatpush.msra.mxu2 %v8860_v40 }
 0x7df   :  { %5146 = vmatpush.msra.mxu2 %v8864_v36 }
 0x7e0   :  { %6034 = vmatmul.msk.f32.vlgmr.msrb.gmra.mxu2 %vm4751_vm5, %v8881_v62 }
 0x7e1   :  { %5147 = vmatpush.msra.mxu2 %v8868_v49 }
 0x7e3   :  { %5244 = vmatpush.msrb.mxu2 %v5192_v59  ;;  %v5351_v59 = vld [vmem:[#allocation15 + $0x4a0] sm:$0xff] }
 0x7e5   :  { %5245 = vmatpush.msrb.mxu2 %v5191_v56  ;;  %v5333_v56 = vld [vmem:[#allocation15 + $0x410] sm:$0xff] }
 0x7e7   :  { %5246 = vmatpush.msrb.mxu2 %v5190_v24  ;;  %v5332_v24 = vld [vmem:[#allocation15 + $0x408] sm:$0xff] }
 0x7e8   :  { %6036 = vmatmul.msk.f32.vlgmr.msra.gmra.mxu2 %vm4751_vm5, %v8881_v62 }
 0x7e9   :  { %5247 = vmatpush.msrb.mxu2 %v5189_v5  ;;  %v5346_v5 = vld [vmem:[#allocation15 + $0x478] sm:$0xff] }
 0x7eb   :  { %5248 = vmatpush.msrb.mxu2 %v5188_v58  ;;  %v5344_v58 = vld [vmem:[#allocation15 + $0x468] sm:$0xff] }
 0x7ed   :  { %5249 = vmatpush.msrb.mxu2 %v5187_v43 }
 0x7ef   :  { %5250 = vmatpush.msrb.mxu2 %v5186_v60 }
 0x7f1   :  { %5251 = vmatpush.msrb.mxu2 %v5185_v34  ;;  %v5330_v34 = vld [vmem:[#allocation15 + $0x3f8] sm:$0xff] }
 0x7f3   :  { %5313 = vmatpush.msra.mxu2 %v8852_v2 }
 0x7f5   :  { %5314 = vmatpush.msra.mxu2 %v8856_v45 }
 0x7f7   :  { %5315 = vmatpush.msra.mxu2 %v8860_v40 }
 0x7f9   :  { %5316 = vmatpush.msra.mxu2 %v8864_v36 }
 0x7fb   :  { %5317 = vmatpush.msra.mxu2 %v8868_v49 }
 0x7fd   :  { %v4812_v62 = vpop.f32.mrf.mxu0 }
 0x7fe   :  { %6033 = vmatmul.msk.f32.vlgmr.msra.gmra.mxu0 %vm4721_vm6, %v4812_v62  ;;  %v5342_v62 = vld [vmem:[#allocation15 + $0x458] sm:$0xff] }
 0x803   :  { %v4917_v13 = vpop.f32.mrf.mxu3 }
 0x804   :  { %6032 = vmatmul.msk.f32.vlgmr.msra.gmra.mxu1 %vm4721_vm6, %v4917_v13  ;;  %v5328_v13 = vld [vmem:[#allocation15 + $0x3e8] sm:$0xff] }
 0x805   :  { %5273 = vmatpush.msra.mxu1 %v8684_v46  ;;  %v5168_v46 = vld [vmem:[#allocation15 + $0x2f8] sm:$0xff] }
 0x806   :  { %5196 = vmatpush.msrb.mxu0 %v5168_v46 }
 0x807   :  { %5274 = vmatpush.msra.mxu1 %v8670_v4  ;;  %v5167_v4 = vld [vmem:[#allocation15 + $0x2f0] sm:$0xff] }
 0x808   :  { %5197 = vmatpush.msrb.mxu0 %v5167_v4  ;;  %v8933_v4 = vld [vmem:[#allocation14 + $0x20] sm:$0xff] }
 0x809   :  { %5275 = vmatpush.msra.mxu1 %v6174_v35  ;;  %v5341_v35 = vld [vmem:[#allocation15 + $0x450] sm:$0xff] }
 0x80a   :  { %5198 = vmatpush.msrb.mxu0 %v5166_v18  ;;  %v5326_v18 = vld [vmem:[#allocation15 + $0x3d8] sm:$0xff] }
 0x80b   :  { %5276 = vmatpush.msra.mxu1 %v6175_v15  ;;  %v5327_v15 = vld [vmem:[#allocation15 + $0x3e0] sm:$0xff] }
 0x80c   :  { %5063 = vmatmul.f32.vlgmr.msrb.gmra.mxu1 %v8889_v27  ;;  %5199 = vmatpush.msrb.mxu0 %v5165_v44  ;;  %v5355_v27 = vld [vmem:[#allocation15 + $0x4c0] sm:$0xff] }
 0x80d   :  { %5277 = vmatpush.msra.mxu1 %v6176_v57  ;;  %v5340_v57 = vld [vmem:[#allocation15 + $0x448] sm:$0xff]  ;;  %v5339_v44 = vld [vmem:[#allocation15 + $0x440] sm:$0xff] }
 0x80e   :  { %5200 = vmatpush.msrb.mxu0 %v5164_v16 }
 0x80f   :  { %5293 = vmatpush.msrb.mxu1 %v8778_v20 }
 0x810   :  { %5201 = vmatpush.msrb.mxu0 %v5163_v32  ;;  %v5325_v32 = vld [vmem:[#allocation15 + $0x3d0] sm:$0xff] }
 0x811   :  { %5294 = vmatpush.msrb.mxu1 %v8763_v6 }
 0x812   :  { %5202 = vmatpush.msrb.mxu0 %v5162_v25  ;;  %v5324_v25 = vld [vmem:[#allocation15 + $0x3c8] sm:$0xff] }
 0x813   :  { %5295 = vmatpush.msrb.mxu1 %v8747_v47 }
 0x814   :  { %5203 = vmatpush.msrb.mxu0 %v5161_v39  ;;  %v5323_v39 = vld [vmem:[#allocation15 + $0x3c0] sm:$0xff] }
 0x815   :  { %5296 = vmatpush.msrb.mxu1 %v8733_v33 }
 0x816   :  { %5204 = vmatpush.msrb.mxu0 %v5160_v28  ;;  %v5508_v28 = vld [vmem:[#allocation15 + $0x578] sm:$0xff] }
 0x817   :  { %5297 = vmatpush.msrb.mxu1 %v8707_v55 }
 0x818   :  { %5205 = vmatpush.msrb.mxu0 %v5159_v41  ;;  %v5507_v41 = vld [vmem:[#allocation15 + $0x570] sm:$0xff] }
 0x81a   :  { %5206 = vmatpush.msrb.mxu0 %v5158_v48  ;;  %v5506_v48 = vld [vmem:[#allocation15 + $0x568] sm:$0xff] }
 0x81c   :  { %5207 = vmatpush.msrb.mxu0 %v5157_v9  ;;  %v5505_v9 = vld [vmem:[#allocation15 + $0x560] sm:$0xff] }
 0x81e   :  { %5208 = vmatpush.msrb.mxu0 %v5156_v31  ;;  %v5504_v31 = vld [vmem:[#allocation15 + $0x558] sm:$0xff] }
 0x820   :  { %5209 = vmatpush.msrb.mxu0 %v5155_v8  ;;  %v5503_v8 = vld [vmem:[#allocation15 + $0x550] sm:$0xff] }
 0x822   :  { %5210 = vmatpush.msrb.mxu0 %v5154_v12  ;;  %v5502_v12 = vld [vmem:[#allocation15 + $0x548] sm:$0xff] }
 0x824   :  { %5211 = vmatpush.msrb.mxu0 %v5153_v42 }
 0x826   :  { %5414 = vmatpush.msra.mxu0 %v5362_v14  ;;  %v5532_v14 = vld [vmem:[#allocation15 + $0x638] sm:$0xff] }
 0x828   :  { %5415 = vmatpush.msra.mxu0 %v5361_v38  ;;  %v5501_v38 = vld [vmem:[#allocation15 + $0x540] sm:$0xff] }
 0x829   :  { %v8916_v10 = vpop.f32.mrf.mxu3 }
 0x82a   :  { %5416 = vmatpush.msra.mxu0 %v5360_v0  ;;  %v5531_v0 = vld [vmem:[#allocation15 + $0x630] sm:$0xff] }
 0x82c   :  { %5417 = vmatpush.msra.mxu0 %v5359_v61 }
 0x82e   :  { %5418 = vmatpush.msra.mxu0 %v5358_v29  ;;  %v5500_v29 = vld [vmem:[#allocation15 + $0x538] sm:$0xff] }
 0x830   :  { %5419 = vmatpush.msra.mxu0 %v5357_v3 }
 0x831   :  { %v5129_v7 = vpop.f32.mrf.mxu3 }
 0x832   :  { %5232 = vmatmul.f32.vlgmr.msrb.gmra.mxu3 %v5129_v7 }
 0x833   :  { %5463 = vmatpush.msrb.mxu3 %v8778_v20  ;;  %v5356_v20 = vld [vmem:[#allocation15 + $0x4c8] sm:$0xff] }
 0x834   :  { %5420 = vmatpush.msra.mxu0 %v5356_v20 }
 0x835   :  { %5464 = vmatpush.msrb.mxu3 %v8763_v6  ;;  %v5258_v6 = vld [vmem:[#allocation14 + $0x18] sm:$0xff] }
 0x836   :  { %5421 = vmatpush.msra.mxu0 %v5355_v27  ;;  %6038 = vmatmul.msk.f32.vlgmr.msra.gmra.mxu1 %vm4751_vm5, %v5258_v6 }
 0x837   :  { %5465 = vmatpush.msrb.mxu3 %v8747_v47  ;;  %v4981_v47 = vpop.f32.mrf.mxu0  ;;  %5366 = vmatpush.msra.mxu1 %v5338_v21  ;;  %v5495_v21 = vld [vmem:[#allocation15 + $0x510] sm:$0xff] }
 0x839   :  { %5466 = vmatpush.msrb.mxu3 %v8733_v33  ;;  %5367 = vmatpush.msra.mxu1 %v5337_v30  ;;  %v5522_v30 = vld [vmem:[#allocation15 + $0x5e8] sm:$0xff] }
 0x83a   :  { %6042 = vmatmul.msk.f32.vlgmr.msra.gmra.mxu3 %vm4751_vm5, %v8933_v4 }
 0x83b   :  { %5467 = vmatpush.msrb.mxu3 %v8707_v55 }
 0x83d   :  { %5536 = vmatpush.msra.mxu3 %v5508_v28 }
 0x83e   :  { %6039 = vmatmul.msk.f32.vlgmr.msrb.gmra.mxu1 %vm4751_vm5, %v5258_v6 }
 0x83f   :  { %5537 = vmatpush.msra.mxu3 %v5507_v41 }
 0x841   :  { %5538 = vmatpush.msra.mxu3 %v5506_v48 }
 0x842   :  { %6043 = vmatmul.msk.f32.vlgmr.msrb.gmra.mxu3 %vm4751_vm5, %v8933_v4 }
 0x843   :  { %5539 = vmatpush.msra.mxu3 %v5505_v9  ;;  %v5608_v9 = vld [vmem:[%s9010_s10 + $0x28] sm:$0xff] }
 0x845   :  { %5540 = vmatpush.msra.mxu3 %v5504_v31  ;;  %v5607_v31 = vld [vmem:[%s9010_s10 + $0x20] sm:$0xff] }
 0x847   :  { %5541 = vmatpush.msra.mxu3 %v5503_v8  ;;  %v5606_v8 = vld [vmem:[%s9010_s10 + $0x18] sm:$0xff] }
 0x849   :  { %5542 = vmatpush.msra.mxu3 %v5502_v12  ;;  %v5605_v12 = vld [vmem:[%s9010_s10 + $0x10] sm:$0xff] }
 0x84b   :  { %5543 = vmatpush.msra.mxu3 %v5501_v38 }
 0x84d   :  { %5544 = vmatpush.msra.mxu3 %v5500_v29 }
 0x85b   :  { %v5001_v22 = vpop.f32.mrf.mxu2 }
 0x85c   :  { %v5002_v33 = vadd.f32 %v5001_v22, %v4981_v47  ;;  %v5498_v22 = vld [vmem:[#allocation15 + $0x528] sm:$0xff] }
 0x863   :  { %v5109_v37 = vpop.f32.mrf.mxu2 }
 0x864   :  { %5212 = vmatmul.f32.vlgmr.msrb.gmra.mxu0 %v5109_v37  ;;  %v5524_v37 = vld [vmem:[#allocation15 + $0x5f8] sm:$0xff] }
 0x865   :  { %5483 = vmatpush.msrb.mxu0 %v8852_v2  ;;  %v5336_v2 = vld [vmem:[#allocation15 + $0x428] sm:$0xff] }
 0x866   :  { %5368 = vmatpush.msra.mxu1 %v5336_v2  ;;  %v5520_v2 = vld [vmem:[#allocation15 + $0x5d8] sm:$0xff] }
 0x867   :  { %5484 = vmatpush.msrb.mxu0 %v8856_v45  ;;  %v5335_v45 = vld [vmem:[#allocation15 + $0x420] sm:$0xff] }
 0x868   :  { %5369 = vmatpush.msra.mxu1 %v5335_v45  ;;  %v5518_v45 = vld [vmem:[#allocation15 + $0x5c8] sm:$0xff] }
 0x869   :  { %5485 = vmatpush.msrb.mxu0 %v8860_v40  ;;  %v5350_v40 = vld [vmem:[#allocation15 + $0x498] sm:$0xff] }
 0x86b   :  { %5486 = vmatpush.msrb.mxu0 %v8864_v36  ;;  %v5149_v55 = vpop.f32.mrf.mxu2  ;;  %v5334_v36 = vld [vmem:[#allocation15 + $0x418] sm:$0xff] }
 0x86c   :  { %6037 = vmatmul.msk.f32.vlgmr.msrb.gmra.mxu2 %vm4721_vm6, %v5149_v55  ;;  %5370 = vmatpush.msra.mxu1 %v5334_v36  ;;  %v5496_v55 = vld [vmem:[#allocation15 + $0x518] sm:$0xff] }
 0x86d   :  { %5487 = vmatpush.msrb.mxu0 %v8868_v49  ;;  %5386 = vmatpush.msrb.mxu2 %v5354_v19  ;;  %v5349_v49 = vld [vmem:[#allocation15 + $0x490] sm:$0xff]  ;;  %v5516_v36 = vld [vmem:[#allocation15 + $0x5b8] sm:$0xff] }
 0x86e   :  { %5371 = vmatpush.msra.mxu1 %v5333_v56  ;;  %v5514_v56 = vld [vmem:[#allocation15 + $0x5a8] sm:$0xff] }
 0x86f   :  { %5387 = vmatpush.msrb.mxu2 %v5353_v11  ;;  %v5523_v11 = vld [vmem:[#allocation15 + $0x5f0] sm:$0xff] }
 0x870   :  { %5372 = vmatpush.msra.mxu1 %v5332_v24  ;;  %v5513_v24 = vld [vmem:[#allocation15 + $0x5a0] sm:$0xff] }
 0x871   :  { %5388 = vmatpush.msrb.mxu2 %v5352_v50  ;;  %v5521_v50 = vld [vmem:[#allocation15 + $0x5e0] sm:$0xff] }
 0x872   :  { %5373 = vmatpush.msra.mxu1 %v5331_v54 }
 0x873   :  { %5389 = vmatpush.msrb.mxu2 %v5351_v59  ;;  %v5519_v59 = vld [vmem:[#allocation15 + $0x5d0] sm:$0xff] }
 0x874   :  { %6040 = vmatmul.msk.f32.vlgmr.msra.gmra.mxu2 %vm4751_vm5, %v5258_v6  ;;  %5374 = vmatpush.msra.mxu1 %v5330_v34  ;;  %v5499_v6 = vld [vmem:[#allocation15 + $0x530] sm:$0xff]  ;;  %v5526_v34 = vld [vmem:[#allocation15 + $0x608] sm:$0xff] }
 0x875   :  { %5390 = vmatpush.msrb.mxu2 %v5350_v40  ;;  %5545 = vmatpush.msra.mxu3 %v5499_v6  ;;  %v5517_v40 = vld [vmem:[#allocation15 + $0x5c0] sm:$0xff] }
 0x876   :  { %5375 = vmatpush.msra.mxu1 %v5329_v63  ;;  %v5525_v63 = vld [vmem:[#allocation15 + $0x600] sm:$0xff] }
 0x877   :  { %5391 = vmatpush.msrb.mxu2 %v5349_v49  ;;  %5546 = vmatpush.msra.mxu3 %v5498_v22  ;;  %v5515_v49 = vld [vmem:[#allocation15 + $0x5b0] sm:$0xff] }
 0x878   :  { %5376 = vmatpush.msra.mxu1 %v5328_v13  ;;  %v5617_v13 = vld [vmem:[%s9010_s10 + $0x70] sm:$0xff] }
 0x879   :  { %5392 = vmatpush.msrb.mxu2 %v5348_v26  ;;  %v5494_v26 = vld [vmem:[#allocation15 + $0x508] sm:$0xff] }
 0x87a   :  { %5377 = vmatpush.msra.mxu1 %v5327_v15  ;;  %v5615_v15 = vld [vmem:[%s9010_s10 + $0x60] sm:$0xff] }
 0x87b   :  { %5393 = vmatpush.msrb.mxu2 %v5347_v53  ;;  %v5530_v53 = vld [vmem:[#allocation15 + $0x628] sm:$0xff] }
 0x87c   :  { %5378 = vmatpush.msra.mxu1 %v5326_v18  ;;  %v5611_v18 = vld [vmem:[%s9010_s10 + $0x40] sm:$0xff] }
 0x87d   :  { %5394 = vmatpush.msrb.mxu2 %v5346_v5  ;;  %v5493_v5 = vld [vmem:[#allocation15 + $0x500] sm:$0xff] }
 0x87e   :  { %5379 = vmatpush.msra.mxu1 %v5325_v32 }
 0x87f   :  { %5395 = vmatpush.msrb.mxu2 %v5345_v1  ;;  %v5512_v1 = vld [vmem:[#allocation15 + $0x598] sm:$0xff] }
 0x880   :  { %5380 = vmatpush.msra.mxu1 %v5324_v25 }
 0x881   :  { %v5021_v17 = vpop.f32.mrf.mxu1  ;;  %5396 = vmatpush.msrb.mxu2 %v5344_v58  ;;  %v5529_v58 = vld [vmem:[#allocation15 + $0x620] sm:$0xff] }
 0x882   :  { %v5022_v43 = vadd.f32 %v5021_v17, %v5002_v33  ;;  %5381 = vmatpush.msra.mxu1 %v5323_v39  ;;  %v5497_v33 = vld [vmem:[#allocation15 + $0x520] sm:$0xff]  ;;  %v5511_v17 = vld [vmem:[#allocation15 + $0x590] sm:$0xff] }
 0x883   :  { %5397 = vmatpush.msrb.mxu2 %v5343_v52  ;;  %5547 = vmatpush.msra.mxu3 %v5497_v33 }
 0x884   :  { %v5045_v51 = vadd.f32 %v8916_v10, %v5022_v43  ;;  %v5084_v10 = vpop.f32.mrf.mxu0  ;;  %5584 = vmatpush.msrb.mxu1 %v5532_v14  ;;  %v5528_v43 = vld [vmem:[#allocation15 + $0x618] sm:$0xff] }
 0x885   :  { %5398 = vmatpush.msrb.mxu2 %v5342_v62  ;;  %5548 = vmatpush.msra.mxu3 %v5496_v55  ;;  %v5618_v62 = vld [vmem:[%s9010_s10 + $0x78] sm:$0xff] }
 0x886   :  { %5585 = vmatpush.msrb.mxu1 %v5531_v0 }
 0x887   :  { %5399 = vmatpush.msrb.mxu2 %v5341_v35  ;;  %5549 = vmatpush.msra.mxu3 %v5495_v21  ;;  %v5616_v35 = vld [vmem:[%s9010_s10 + $0x68] sm:$0xff] }
 0x888   :  { %5586 = vmatpush.msrb.mxu1 %v5530_v53 }
 0x889   :  { %v5064_v60 = vpop.f32.mrf.mxu1  ;;  %5400 = vmatpush.msrb.mxu2 %v5340_v57  ;;  %5550 = vmatpush.msra.mxu3 %v5494_v26  ;;  %v5614_v57 = vld [vmem:[%s9010_s10 + $0x58] sm:$0xff] }
 0x88a   :  { %v5065_v23 = vadd.f32 %v5064_v60, %v5045_v51  ;;  %5587 = vmatpush.msrb.mxu1 %v5529_v58  ;;  %v5510_v51 = vld [vmem:[#allocation15 + $0x588] sm:$0xff]  ;;  %v5527_v60 = vld [vmem:[#allocation15 + $0x610] sm:$0xff] }
 0x88b   :  { %5401 = vmatpush.msrb.mxu2 %v5339_v44  ;;  %5551 = vmatpush.msra.mxu3 %v5493_v5  ;;  %v5610_v44 = vld [vmem:[%s9010_s10 + $0x38] sm:$0xff] }
 0x88c   :  { %v5085_v20 = vadd.f32 %v5084_v10, %v5065_v23  ;;  %5588 = vmatpush.msrb.mxu1 %v5528_v43  ;;  %v5509_v23 = vld [vmem:[#allocation15 + $0x580] sm:$0xff] }
 0x88d   :  { %5623 = vmatpush.msra.mxu2 %v5618_v62 }
 0x88e   :  { %5589 = vmatpush.msrb.mxu1 %v5527_v60 }
 0x88f   :  { %5624 = vmatpush.msra.mxu2 %v5617_v13 }
 0x890   :  { %5590 = vmatpush.msrb.mxu1 %v5526_v34 }
 0x891   :  { %5625 = vmatpush.msra.mxu2 %v5616_v35 }
 0x892   :  { %5591 = vmatpush.msrb.mxu1 %v5525_v63 }
 0x893   :  { %5626 = vmatpush.msra.mxu2 %v5615_v15 }
 0x895   :  { %5627 = vmatpush.msra.mxu2 %v5614_v57 }
 0x8b3   :  { %v5279_v46 = vpop.f32.mrf.mxu1 }
 0x8b4   :  { %5382 = vmatmul.f32.vlgmr.msra.gmra.mxu1 %v5279_v46  ;;  %v5613_v46 = vld [vmem:[%s9010_s10 + $0x50] sm:$0xff] }
 0x8b5   :  { %v5233_v42 = vpop.f32.mrf.mxu3  ;;  %5628 = vmatpush.msra.mxu2 %v5613_v46 }
 0x8bb   :  { %v5299_v16 = vpop.f32.mrf.mxu1 }
 0x8bc   :  { %5402 = vmatmul.f32.vlgmr.msrb.gmra.mxu2 %v5299_v16  ;;  %v5609_v16 = vld [vmem:[%s9010_s10 + $0x30] sm:$0xff] }
 0x8bd   :  { %v5449_v54 = vpop.f32.mrf.mxu3 }
 0x8be   :  { %5552 = vmatmul.f32.vlgmr.msra.gmra.mxu3 %v5449_v54 }
 0x8c5   :  { %v5469_v52 = vpop.f32.mrf.mxu3 }
 0x8e1   :  { %v5213_v7 = vpop.f32.mrf.mxu0 }
 0x8e2   :  { %v5234_v61 = vadd.f32 %v5233_v42, %v5213_v7  ;;  %v5604_v7 = vld [vmem:[%s9010_s10 + $0x8] sm:$0xff]  ;;  %v5603_v42 = vld [vmem:[%s9010_s10] sm:$0xff] }
 0x8ef   :  { %v5253_v3 = vpop.f32.mrf.mxu2 }
 0x8f0   :  { %v5254_v27 = vadd.f32 %v5253_v3, %v5234_v61  ;;  %v6064_v3 = vld [vmem:[#allocation17] ss:$0 sm:$0xff] }
 0x8f2   :  { %v8939_v47 = vadd.f32 %v5254_v27, %v5085_v20 }
 0x8f7   :  { %v5319_v19 = vpop.f32.mrf.mxu2 }
 0x8f8   :  { %6041 = vmatmul.msk.f32.vlgmr.msra.gmra.mxu0 %vm4721_vm6, %v5319_v19 }
 0x8f9   :  { %5556 = vmatpush.msra.mxu0 %v5524_v37 }
 0x8fb   :  { %5557 = vmatpush.msra.mxu0 %v5523_v11 }
 0x8fd   :  { %5558 = vmatpush.msra.mxu0 %v5522_v30 }
 0x8ff   :  { %5559 = vmatpush.msra.mxu0 %v5521_v50 }
 0x900   :  { %6044 = vmatmul.msk.f32.vlgmr.msrb.gmra.mxu0 %vm4751_vm5, %v8933_v4  ;;  %v5612_v4 = vld [vmem:[%s9010_s10 + $0x48] sm:$0xff] }
 0x901   :  { %5560 = vmatpush.msra.mxu0 %v5520_v2  ;;  %5629 = vmatpush.msra.mxu2 %v5612_v4 }
 0x903   :  { %5561 = vmatpush.msra.mxu0 %v5519_v59  ;;  %5630 = vmatpush.msra.mxu2 %v5611_v18 }
 0x905   :  { %5562 = vmatpush.msra.mxu0 %v5518_v45  ;;  %5631 = vmatpush.msra.mxu2 %v5610_v44 }
 0x907   :  { %5563 = vmatpush.msra.mxu0 %v5517_v40  ;;  %5632 = vmatpush.msra.mxu2 %v5609_v16 }
 0x909   :  { %5564 = vmatpush.msra.mxu0 %v5516_v36  ;;  %5633 = vmatpush.msra.mxu2 %v5608_v9 }
 0x90b   :  { %5565 = vmatpush.msra.mxu0 %v5515_v49  ;;  %5634 = vmatpush.msra.mxu2 %v5607_v31 }
 0x90d   :  { %5566 = vmatpush.msra.mxu0 %v5514_v56  ;;  %5635 = vmatpush.msra.mxu2 %v5606_v8 }
 0x90f   :  { %5567 = vmatpush.msra.mxu0 %v5513_v24  ;;  %5636 = vmatpush.msra.mxu2 %v5605_v12 }
 0x911   :  { %5568 = vmatpush.msra.mxu0 %v5512_v1  ;;  %5637 = vmatpush.msra.mxu2 %v5604_v7 }
 0x913   :  { %5569 = vmatpush.msra.mxu0 %v5511_v17  ;;  %5638 = vmatpush.msra.mxu2 %v5603_v42 }
 0x915   :  { %5570 = vmatpush.msra.mxu0 %v5510_v51 }
 0x917   :  { %5571 = vmatpush.msra.mxu0 %v5509_v23 }
 0x918   :  { %5572 = vmatmul.f32.vlgmr.msra.gmra.mxu0 %v5469_v52 }
 0x931   :  { %v5383_v32 = vpop.f32.mrf.mxu1 }
 0x93f   :  { %v5403_v25 = vpop.f32.mrf.mxu2 }
 0x940   :  { %v5404_v39 = vadd.f32 %v5403_v25, %v5383_v32 }
 0x941   :  { %v5553_v14 = vpop.f32.mrf.mxu3 }
 0x975   :  { %v5423_v28 = vpop.f32.mrf.mxu0 }
 0x976   :  { %v5424_v41 = vadd.f32 %v5423_v28, %v5404_v39 }
 0x978   :  { %v5426_v48 = vadd.f32 %v5424_v41, %v8939_v47  ;;  %v6065_v47 = vld [vmem:[#allocation18] ss:$0 sm:$0xff] }
 0x97d   :  { %v5489_v10 = vpop.f32.mrf.mxu0 }
 0x97e   :  { %6045 = vmatmul.msk.f32.vlgmr.msrb.gmra.mxu1 %vm4721_vm6, %v5489_v10 }
 0x995   :  { %v5573_v38 = vpop.f32.mrf.mxu0 }
 0x996   :  { %v5574_v0 = vadd.f32 %v5573_v38, %v5553_v14 }
 0x9fb   :  { %v5593_v61 = vpop.f32.mrf.mxu1 }
 0x9fc   :  { %v5594_v29 = vadd.f32 %v5593_v61, %v5574_v0 }
 0x9fe   :  { %v5596_v20 = vadd.f32 %v5594_v29, %v5426_v48 }
 0xa00   :  { %v5601_v27 = vadd.f32 %v6064_v3, %v5596_v20 }
 0xa02   :  { %v5602_v6 = vmax.f32 %v5601_v27, 0.0 }
 0xa04   :  { %5639 = vmatmul.f32.vlgmr.msra.gmra.mxu2 %v5602_v6 }
 0xa87   :  { %v5640_v22 = vpop.f32.mrf.mxu2 }
 0xa88   :  { %v5641_v33 = vadd.f32 %v6065_v47, %v5640_v22 }
 0xa8a   :  { %v5644_v37 = vsel %vm5643_vm7, %v5641_v33, -inf }
 0xa8b   :  { %5645 = vmax.xlane.f32.xlu0 %v5644_v37 }
 0xafe   :  { %v5646_v55 = vpop.xlane.xlu0 %5645 }
 0xaff   :  { %v5647_v19 = vsub.f32 %v5641_v33, %v5646_v55 }
 0xb01   :  { %v5648_v11 = vmul.f32 1.442695, %v5647_v19 }
 0xb03   :  { %6066 = vpow2.f32 %v5648_v11 }
 0xb09   :  { %v6067_v21 = vpop.eup %6066 }
 0xb0a   :  { %v5650_v30 = vsel %vm5643_vm7, %v6067_v21, 0.0 }
 0xb0b   :  { %5651 = vadd.xlane.f32.xlu0 %v5650_v30 }
 0xb7e   :  { %v5652_v50 = vpop.xlane.xlu0 %5651 }
 0xb7f   :  { %6068 = vrcp.f32 %v5652_v50  ;;  %v5664_v40 = vand.u32 2147483648, %v5652_v50  ;;  %v5662_v49 = vand.u32 2147483647, %v5652_v50  ;;  %vm5658_vm9 = vweird.f32 %v5652_v50 }
 0xb81   :  { %v5665_v26 = vor.u32 1.1754944e-38, %v5664_v40  ;;  %vm5663_vm11 = vcmp.eq.f32.partialorder %v5662_v49, 8.507059e+37 }
 0xb85   :  { %v6069_v2 = vpop.eup %6068 }
 0xb86   :  { %v5654_v59 = vmul.f32 %v6069_v2, %v5652_v50  ;;  %vm5659_vm8 = vweird.f32 %v6069_v2 }
 0xb87   :  { %vm5660_vm10 = vmor %vm5658_vm9, %vm5659_vm8 }
 0xb88   :  { %v5655_v45 = vsub.f32 1.0, %v5654_v59 }
 0xb8a   :  { %v5656_v36 = vmul.f32 %v6069_v2, %v5655_v45 }
 0xb8c   :  { %v5657_v56 = vadd.f32 %v6069_v2, %v5656_v36 }
 0xb8e   :  { %v5661_v24 = vsel %vm5660_vm10, %v6069_v2, %v5657_v56 }
 0xb8f   :  { %v5666_v53 = vsel %vm5663_vm11, %v5665_v26, %v5661_v24 }
 0xb90   :  { %v5667_v54 = vmul.f32 %v6067_v21, %v5666_v53 }
 0xb92   :  { %5668 = vst.msk [vmem:[%s9012_s12] sm:$0xff] %vm5643_vm7, %v5667_v54 }
 0xb93   :  { %5673 = vsyncpa [#allocation5], 1 }
 0xb94   :  { %5674 = vsyncpa [#allocation7], 1 }
 0xb95   :  { %5675 = vsyncpa [#allocation10], 1 }
 0xb96   :  { %5676 = vsyncpa [#allocation13], 1 }
 0xb97   :  { %5677 = vsyncpa [#allocation16], 1 }
 0xb98   :  { %5678 = vsyncpa [#allocation19], 1 }

</bundles_post_ra>
